<compile_context>
chip_gen: v7x
topology: tpu7x:2x2x1
jax: 0.10.0
libtpu: 0.0.40
codegen_flags: <defaults>
</compile_context>

<pallas_src>
import functools
import math

import jax
import jax.numpy as jnp
from jax import lax
from jax.experimental import pallas as pl
from jax.experimental.pallas import tpu as pltpu

SEQ_LEN = 78     # fixed by `nn.Linear(78 * d_model, trg_vocab)` in the module
VPAD = 128       # lane-dense padded vocab width for the head output
EPS = 1e-6


# ----------------------------- kernel helpers -------------------------------
def _layer_norm(x, alpha, bias):
    # tutorial-style Norm: alpha * (x - mean) / (std_unbiased + eps) + bias
    mean = jnp.mean(x, axis=-1, keepdims=True)
    var = jnp.sum((x - mean) ** 2, axis=-1, keepdims=True) / (x.shape[-1] - 1)
    rstd = pl.reciprocal(jnp.sqrt(var) + EPS, approx=True)
    return alpha * (x - mean) * rstd + bias


def _softmax_last(x):
    m = jnp.max(x, axis=-1, keepdims=True)
    e = jnp.exp(x - m)
    return e * pl.reciprocal(jnp.sum(e, axis=-1, keepdims=True), approx=True)


# ------------------------------ fused kernel --------------------------------
def fused_forward_kernel(x_ref, pe_ref,
                         wqkv_ref, bqkv_ref, wo_ref, bo_ref,
                         n1a_ref, n1b_ref, n2a_ref, n2b_ref,
                         w1_ref, b1_ref, w2_ref, b2_ref,
                         na_ref, nb_ref, wh_ref, bh_ref,
                         o_ref, *, n_layers, heads, trg_vocab):
    x = x_ref[0]                                   # (S, D) for this batch elem
    S, D = x.shape
    dk = D // heads
    scale = 1.0 / math.sqrt(dk)

    # PositionalEncoder: x * sqrt(d_model) + pe
    x = x * math.sqrt(D) + pe_ref[...]

    for l in range(n_layers):                      # static unroll (small N)
        # ---- pre-norm multi-head self-attention (mask=None) + residual ----
        x2 = _layer_norm(x, n1a_ref[l], n1b_ref[l])
        qkv = jnp.dot(x2, wqkv_ref[l],
                      preferred_element_type=jnp.float32) + bqkv_ref[l]
        q = qkv[:, 0:D] * scale                    # scale hoisted into q
        k = qkv[:, D:2 * D]
        v = qkv[:, 2 * D:3 * D]

        heads_out = []
        for h in range(heads):                     # static loop over heads
            sl = slice(h * dk, (h + 1) * dk)
            # contract on the head dim directly -> no explicit k.T materialized
            scores = lax.dot_general(
                q[:, sl], k[:, sl],
                dimension_numbers=(((1,), (1,)), ((), ())),
                preferred_element_type=jnp.float32)            # (S, S)
            probs = _softmax_last(scores)
            heads_out.append(jnp.dot(probs, v[:, sl],
                                     preferred_element_type=jnp.float32))
        concat = jnp.concatenate(heads_out, axis=-1)           # (S, D)
        attn = jnp.dot(concat, wo_ref[l],
                       preferred_element_type=jnp.float32) + bo_ref[l]
        x = x + attn                               # residual (dropout = id)

        # ---- pre-norm feed-forward + residual ----
        x2 = _layer_norm(x, n2a_ref[l], n2b_ref[l])
        hid = jnp.maximum(
            jnp.dot(x2, w1_ref[l],
                    preferred_element_type=jnp.float32) + b1_ref[l], 0.0)
        ff = jnp.dot(hid, w2_ref[l],
                     preferred_element_type=jnp.float32) + b2_ref[l]
        x = x + ff

    # ---- final Norm ----
    x = _layer_norm(x, na_ref[...], nb_ref[...])

    # ---- classification head: logits = flatten(x) @ W_out + b_out ----
    # W_out (S*D, Vpad) is pre-reshaped on the host to (D, S, Vpad); the
    # flattened matmul is computed as a D-step multiply-accumulate so no
    # in-kernel (S, D) -> (1, S*D) relayout/reshape is needed.
    vpad = bh_ref.shape[-1]
    p = jnp.zeros((S, vpad), jnp.float32)
    for d in range(D):
        p = p + x[:, d:d + 1] * wh_ref[d]          # (S,1) * (S,Vpad)
    logits = jnp.sum(p, axis=0, keepdims=True) + bh_ref[...]   # (1, Vpad)

    # mask padded vocab lanes, softmax over real classes (exact reciprocal so
    # the probabilities sum to 1 to f32 precision)
    col = lax.broadcasted_iota(jnp.int32, logits.shape, 1)
    logits = jnp.where(col < trg_vocab, logits, -jnp.inf)
    m = jnp.max(logits, axis=-1, keepdims=True)
    e = jnp.exp(logits - m)
    o_ref[0] = e / jnp.sum(e, axis=-1, keepdims=True)


# ------------------------------ pallas wrapper -------------------------------
def _const_spec(a):
    return pl.BlockSpec(a.shape, lambda b, _nd=a.ndim: (0,) * _nd)


def ids_encoder_only_forward(src, params, heads, trg_vocab):
    B, S, D = src.shape
    n_layers = params["w_qkv"].shape[0]
    vpad = params["b_head"].shape[-1]

    weights = [params[k] for k in (
        "pe", "w_qkv", "b_qkv", "w_o", "b_o",
        "n1a", "n1b", "n2a", "n2b",
        "w1", "b1", "w2", "b2",
        "norm_a", "norm_b", "w_head", "b_head")]

    out = pl.pallas_call(
        functools.partial(fused_forward_kernel, n_layers=n_layers,
                          heads=heads, trg_vocab=trg_vocab),
        out_shape=jax.ShapeDtypeStruct((B, 1, vpad), jnp.float32),
        grid_spec=pltpu.PrefetchScalarGridSpec(
            num_scalar_prefetch=0,
            grid=(B,),
            in_specs=[pl.BlockSpec((1, S, D), lambda b: (b, 0, 0))]
                     + [_const_spec(w) for w in weights],
            out_specs=pl.BlockSpec((1, 1, vpad), lambda b: (b, 0, 0)),
        ),
        compiler_params=pltpu.CompilerParams(
            dimension_semantics=("parallel",)),
    )(src, *weights)
    return out[:, 0, :trg_vocab]                   # drop lane padding


# ------------------------------ params & glue -------------------------------
def positional_encoding(seq_len, d_model):
    pos = jnp.arange(seq_len, dtype=jnp.float32)[:, None]
    i = jnp.arange(0, d_model, 2, dtype=jnp.float32)
    angle = pos / jnp.power(10000.0, i / d_model)
    pe = jnp.zeros((seq_len, d_model), jnp.float32)
    pe = pe.at[:, 0::2].set(jnp.sin(angle))
    pe = pe.at[:, 1::2].set(jnp.cos(angle))
    return pe


def init_params(key, d_model, n_layers, heads, d_ff, trg_vocab, vpad=VPAD):
    def dense(k, fan_in, fan_out):
        k1, k2 = jax.random.split(k)
        bound = 1.0 / math.sqrt(fan_in)
        w = jax.random.uniform(k1, (fan_in, fan_out), jnp.float32, -bound, bound)
        b = jax.random.uniform(k2, (1, fan_out), jnp.float32, -bound, bound)
        return w, b

    keys = jax.random.split(key, n_layers + 1)
    wqkv, bqkv, wo, bo, w1, b1, w2, b2 = ([] for _ in range(8))
    n1a, n1b, n2a, n2b = ([] for _ in range(4))
    for li in range(n_layers):
        lk = jax.random.split(keys[li], 6)
        wq, bq = dense(lk[0], d_model, d_model)
        wk, bk = dense(lk[1], d_model, d_model)
        wv, bv = dense(lk[2], d_model, d_model)
        wo_l, bo_l = dense(lk[3], d_model, d_model)
        w1_l, b1_l = dense(lk[4], d_model, d_ff)
        w2_l, b2_l = dense(lk[5], d_ff, d_model)
        wqkv.append(jnp.concatenate([wq, wk, wv], axis=1))   # fused QKV (D, 3D)
        bqkv.append(jnp.concatenate([bq, bk, bv], axis=1))
        wo.append(wo_l); bo.append(bo_l)
        w1.append(w1_l); b1.append(b1_l)
        w2.append(w2_l); b2.append(b2_l)
        n1a.append(jnp.ones((1, d_model), jnp.float32))
        n1b.append(jnp.zeros((1, d_model), jnp.float32))
        n2a.append(jnp.ones((1, d_model), jnp.float32))
        n2b.append(jnp.zeros((1, d_model), jnp.float32))

    w_out, b_out = dense(keys[n_layers], SEQ_LEN * d_model, trg_vocab)
    # head weight: (S*D, V) -> (S, D, V) -> (D, S, V), pad vocab to VPAD lanes
    w_head = jnp.transpose(w_out.reshape(SEQ_LEN, d_model, trg_vocab), (1, 0, 2))
    w_head = jnp.pad(w_head, ((0, 0), (0, 0), (0, vpad - trg_vocab)))
    b_head = jnp.pad(b_out, ((0, 0), (0, vpad - trg_vocab)))

    stack = lambda xs: jnp.stack(xs, axis=0)
    return dict(
        pe=positional_encoding(SEQ_LEN, d_model),
        w_qkv=stack(wqkv), b_qkv=stack(bqkv), w_o=stack(wo), b_o=stack(bo),
        n1a=stack(n1a), n1b=stack(n1b), n2a=stack(n2a), n2b=stack(n2b),
        w1=stack(w1), b1=stack(b1), w2=stack(w2), b2=stack(b2),
        norm_a=jnp.ones((1, d_model), jnp.float32),
        norm_b=jnp.zeros((1, d_model), jnp.float32),
        w_head=w_head, b_head=b_head)


# ---------------------------------- main -------------------------------------
if __name__ == "__main__":
    d_model, n_layers, heads, d_ff, trg_vocab, batch = 32, 2, 4, 64, 5, 2
    key = jax.random.PRNGKey(0)
    kp, kx = jax.random.split(key)
    params = init_params(kp, d_model, n_layers, heads, d_ff, trg_vocab)
    src = jax.random.normal(kx, (batch, SEQ_LEN, d_model), jnp.float32)

    fwd = jax.jit(functools.partial(ids_encoder_only_forward,
                                    heads=heads, trg_vocab=trg_vocab))
    out = fwd(src, params)
    out = jax.block_until_ready(out)

    assert out.shape == (batch, trg_vocab)
    assert bool(jnp.all(jnp.isfinite(out)))
    assert bool(jnp.allclose(jnp.sum(out, axis=1), 1.0, atol=1e-5))
    print("KERNEL_OK")
</pallas_src>

<mosaic_0001>
module attributes {stable_mosaic.version = 11 : i64} {
  func.func @fused_forward_kernel(%arg0: i32, %arg1: memref<1x78x32xf32, #tpu.memory_space<vmem>>, %arg2: memref<78x32xf32, #tpu.memory_space<vmem>>, %arg3: memref<2x32x96xf32, #tpu.memory_space<vmem>>, %arg4: memref<2x1x96xf32, #tpu.memory_space<vmem>>, %arg5: memref<2x32x32xf32, #tpu.memory_space<vmem>>, %arg6: memref<2x1x32xf32, #tpu.memory_space<vmem>>, %arg7: memref<2x1x32xf32, #tpu.memory_space<vmem>>, %arg8: memref<2x1x32xf32, #tpu.memory_space<vmem>>, %arg9: memref<2x1x32xf32, #tpu.memory_space<vmem>>, %arg10: memref<2x1x32xf32, #tpu.memory_space<vmem>>, %arg11: memref<2x32x64xf32, #tpu.memory_space<vmem>>, %arg12: memref<2x1x64xf32, #tpu.memory_space<vmem>>, %arg13: memref<2x64x32xf32, #tpu.memory_space<vmem>>, %arg14: memref<2x1x32xf32, #tpu.memory_space<vmem>>, %arg15: memref<1x32xf32, #tpu.memory_space<vmem>>, %arg16: memref<1x32xf32, #tpu.memory_space<vmem>>, %arg17: memref<32x78x128xf32, #tpu.memory_space<vmem>>, %arg18: memref<1x128xf32, #tpu.memory_space<vmem>>, %arg19: memref<1x1x128xf32, #tpu.memory_space<vmem>>) attributes {dimension_semantics = [#tpu.dimension_semantics<parallel>], iteration_bounds = array<i64: 2>, scalar_prefetch = 0 : i64, scratch_operands = 0 : i64, tpu.core_type = #tpu.core_type<tc>, window_params = [{transform_indices = @transform_0, window_bounds = array<i64: 1, 78, 32>}, {pipeline_mode = #tpu.pipeline_mode<synchronous>, transform_indices = @transform_1, window_bounds = array<i64: 78, 32>}, {pipeline_mode = #tpu.pipeline_mode<synchronous>, transform_indices = @transform_2, window_bounds = array<i64: 2, 32, 96>}, {pipeline_mode = #tpu.pipeline_mode<synchronous>, transform_indices = @transform_3, window_bounds = array<i64: 2, 1, 96>}, {pipeline_mode = #tpu.pipeline_mode<synchronous>, transform_indices = @transform_4, window_bounds = array<i64: 2, 32, 32>}, {pipeline_mode = #tpu.pipeline_mode<synchronous>, transform_indices = @transform_5, window_bounds = array<i64: 2, 1, 32>}, {pipeline_mode = #tpu.pipeline_mode<synchronous>, transform_indices = @transform_6, window_bounds = array<i64: 2, 1, 32>}, {pipeline_mode = #tpu.pipeline_mode<synchronous>, transform_indices = @transform_7, window_bounds = array<i64: 2, 1, 32>}, {pipeline_mode = #tpu.pipeline_mode<synchronous>, transform_indices = @transform_8, window_bounds = array<i64: 2, 1, 32>}, {pipeline_mode = #tpu.pipeline_mode<synchronous>, transform_indices = @transform_9, window_bounds = array<i64: 2, 1, 32>}, {pipeline_mode = #tpu.pipeline_mode<synchronous>, transform_indices = @transform_10, window_bounds = array<i64: 2, 32, 64>}, {pipeline_mode = #tpu.pipeline_mode<synchronous>, transform_indices = @transform_11, window_bounds = array<i64: 2, 1, 64>}, {pipeline_mode = #tpu.pipeline_mode<synchronous>, transform_indices = @transform_12, window_bounds = array<i64: 2, 64, 32>}, {pipeline_mode = #tpu.pipeline_mode<synchronous>, transform_indices = @transform_13, window_bounds = array<i64: 2, 1, 32>}, {pipeline_mode = #tpu.pipeline_mode<synchronous>, transform_indices = @transform_14, window_bounds = array<i64: 1, 32>}, {pipeline_mode = #tpu.pipeline_mode<synchronous>, transform_indices = @transform_15, window_bounds = array<i64: 1, 32>}, {pipeline_mode = #tpu.pipeline_mode<synchronous>, transform_indices = @transform_16, window_bounds = array<i64: 32, 78, 128>}, {pipeline_mode = #tpu.pipeline_mode<synchronous>, transform_indices = @transform_17, window_bounds = array<i64: 1, 128>}, {transform_indices = @transform_18, window_bounds = array<i64: 1, 1, 128>}]} {
    %c0 = arith.constant 0 : index
    %c0_0 = arith.constant 0 : index
    %c0_1 = arith.constant 0 : index
    %0 = vector.load %arg1[%c0, %c0_0, %c0_1] : memref<1x78x32xf32, #tpu.memory_space<vmem>>, vector<1x78x32xf32>
    %1 = vector.shape_cast %0 : vector<1x78x32xf32> to vector<78x32xf32>
    %cst = arith.constant 5.65685415 : f32
    %2 = vector.broadcast %cst : f32 to vector<78x32xf32>
    %3 = arith.mulf %1, %2 : vector<78x32xf32>
    %c0_2 = arith.constant 0 : index
    %c0_3 = arith.constant 0 : index
    %4 = vector.load %arg2[%c0_2, %c0_3] : memref<78x32xf32, #tpu.memory_space<vmem>>, vector<78x32xf32>
    %5 = arith.addf %3, %4 : vector<78x32xf32>
    %c0_4 = arith.constant 0 : index
    %c0_5 = arith.constant 0 : index
    %c0_6 = arith.constant 0 : index
    %6 = vector.load %arg7[%c0_4, %c0_5, %c0_6] : memref<2x1x32xf32, #tpu.memory_space<vmem>>, vector<1x1x32xf32>
    %7 = vector.shape_cast %6 : vector<1x1x32xf32> to vector<1x32xf32>
    %c0_7 = arith.constant 0 : index
    %c0_8 = arith.constant 0 : index
    %c0_9 = arith.constant 0 : index
    %8 = vector.load %arg8[%c0_7, %c0_8, %c0_9] : memref<2x1x32xf32, #tpu.memory_space<vmem>>, vector<1x1x32xf32>
    %9 = vector.shape_cast %8 : vector<1x1x32xf32> to vector<1x32xf32>
    %cst_10 = arith.constant dense<0.000000e+00> : vector<78xf32>
    %10 = vector.multi_reduction <add>, %5, %cst_10 [1] : vector<78x32xf32> to vector<78xf32>
    %11 = vector.shape_cast %10 : vector<78xf32> to vector<78x1xf32>
    %cst_11 = arith.constant 3.200000e+01 : f32
    %12 = vector.broadcast %cst_11 : f32 to vector<78x1xf32>
    %13 = arith.divf %11, %12 : vector<78x1xf32>
    %14 = vector.broadcast %13 : vector<78x1xf32> to vector<78x32xf32>
    %15 = arith.subf %5, %14 : vector<78x32xf32>
    %16 = arith.mulf %15, %15 : vector<78x32xf32>
    %cst_12 = arith.constant dense<0.000000e+00> : vector<78xf32>
    %17 = vector.multi_reduction <add>, %16, %cst_12 [1] : vector<78x32xf32> to vector<78xf32>
    %18 = vector.shape_cast %17 : vector<78xf32> to vector<78x1xf32>
    %cst_13 = arith.constant 3.100000e+01 : f32
    %19 = vector.broadcast %cst_13 : f32 to vector<78x1xf32>
    %20 = arith.divf %18, %19 : vector<78x1xf32>
    %21 = math.sqrt %20 : vector<78x1xf32>
    %cst_14 = arith.constant 9.99999997E-7 : f32
    %22 = vector.broadcast %cst_14 : f32 to vector<78x1xf32>
    %23 = arith.addf %21, %22 : vector<78x1xf32>
    %24 = tpu.reciprocal %23 {approx = true} : vector<78x1xf32> -> vector<78x1xf32>
    %25 = vector.broadcast %13 : vector<78x1xf32> to vector<78x32xf32>
    %26 = arith.subf %5, %25 : vector<78x32xf32>
    %27 = vector.broadcast %7 : vector<1x32xf32> to vector<78x32xf32>
    %28 = arith.mulf %27, %26 : vector<78x32xf32>
    %29 = vector.broadcast %24 : vector<78x1xf32> to vector<78x32xf32>
    %30 = arith.mulf %28, %29 : vector<78x32xf32>
    %31 = vector.broadcast %9 : vector<1x32xf32> to vector<78x32xf32>
    %32 = arith.addf %30, %31 : vector<78x32xf32>
    %c0_15 = arith.constant 0 : index
    %c0_16 = arith.constant 0 : index
    %c0_17 = arith.constant 0 : index
    %33 = vector.load %arg3[%c0_15, %c0_16, %c0_17] : memref<2x32x96xf32, #tpu.memory_space<vmem>>, vector<1x32x96xf32>
    %34 = vector.shape_cast %33 : vector<1x32x96xf32> to vector<32x96xf32>
    %cst_18 = arith.constant dense<0.000000e+00> : vector<78x96xf32>
    %35 = tpu.matmul %32, %34, %cst_18 {dimension_numbers = #tpu.dot_dimension_numbers<[1], [0], [0], [1], [0, 0, 1, 1], [], []>} : vector<78x32xf32>, vector<32x96xf32>, vector<78x96xf32> -> vector<78x96xf32>
    %c0_19 = arith.constant 0 : index
    %c0_20 = arith.constant 0 : index
    %c0_21 = arith.constant 0 : index
    %36 = vector.load %arg4[%c0_19, %c0_20, %c0_21] : memref<2x1x96xf32, #tpu.memory_space<vmem>>, vector<1x1x96xf32>
    %37 = vector.shape_cast %36 : vector<1x1x96xf32> to vector<1x96xf32>
    %38 = vector.broadcast %37 : vector<1x96xf32> to vector<78x96xf32>
    %39 = arith.addf %35, %38 : vector<78x96xf32>
    %40 = vector.extract_strided_slice %39 {offsets = [0, 0], sizes = [78, 32], strides = [1, 1]} : vector<78x96xf32> to vector<78x32xf32>
    %cst_22 = arith.constant 0.353553385 : f32
    %41 = vector.broadcast %cst_22 : f32 to vector<78x32xf32>
    %42 = arith.mulf %40, %41 : vector<78x32xf32>
    %43 = vector.extract_strided_slice %39 {offsets = [0, 32], sizes = [78, 32], strides = [1, 1]} : vector<78x96xf32> to vector<78x32xf32>
    %44 = vector.extract_strided_slice %39 {offsets = [0, 64], sizes = [78, 32], strides = [1, 1]} : vector<78x96xf32> to vector<78x32xf32>
    %45 = vector.extract_strided_slice %42 {offsets = [0, 0], sizes = [78, 8], strides = [1, 1]} : vector<78x32xf32> to vector<78x8xf32>
    %46 = vector.extract_strided_slice %43 {offsets = [0, 0], sizes = [78, 8], strides = [1, 1]} : vector<78x32xf32> to vector<78x8xf32>
    %cst_23 = arith.constant dense<0.000000e+00> : vector<78x78xf32>
    %47 = tpu.matmul %45, %46, %cst_23 {dimension_numbers = #tpu.dot_dimension_numbers<[1], [1], [0], [0], [0, 0, 1, 0], [], []>} : vector<78x8xf32>, vector<78x8xf32>, vector<78x78xf32> -> vector<78x78xf32>
    %cst_24 = arith.constant dense<0xFF800000> : vector<78xf32>
    %48 = vector.multi_reduction <maximumf>, %47, %cst_24 [1] : vector<78x78xf32> to vector<78xf32>
    %49 = vector.shape_cast %48 : vector<78xf32> to vector<78x1xf32>
    %50 = vector.broadcast %49 : vector<78x1xf32> to vector<78x78xf32>
    %51 = arith.subf %47, %50 : vector<78x78xf32>
    %52 = math.exp %51 : vector<78x78xf32>
    %cst_25 = arith.constant dense<0.000000e+00> : vector<78xf32>
    %53 = vector.multi_reduction <add>, %52, %cst_25 [1] : vector<78x78xf32> to vector<78xf32>
    %54 = vector.shape_cast %53 : vector<78xf32> to vector<78x1xf32>
    %55 = tpu.reciprocal %54 {approx = true} : vector<78x1xf32> -> vector<78x1xf32>
    %56 = vector.broadcast %55 : vector<78x1xf32> to vector<78x78xf32>
    %57 = arith.mulf %52, %56 : vector<78x78xf32>
    %58 = vector.extract_strided_slice %44 {offsets = [0, 0], sizes = [78, 8], strides = [1, 1]} : vector<78x32xf32> to vector<78x8xf32>
    %cst_26 = arith.constant dense<0.000000e+00> : vector<78x8xf32>
    %59 = tpu.matmul %57, %58, %cst_26 {dimension_numbers = #tpu.dot_dimension_numbers<[1], [0], [0], [1], [0, 0, 1, 1], [], []>} : vector<78x78xf32>, vector<78x8xf32>, vector<78x8xf32> -> vector<78x8xf32>
    %60 = vector.extract_strided_slice %42 {offsets = [0, 8], sizes = [78, 8], strides = [1, 1]} : vector<78x32xf32> to vector<78x8xf32>
    %61 = vector.extract_strided_slice %43 {offsets = [0, 8], sizes = [78, 8], strides = [1, 1]} : vector<78x32xf32> to vector<78x8xf32>
    %cst_27 = arith.constant dense<0.000000e+00> : vector<78x78xf32>
    %62 = tpu.matmul %60, %61, %cst_27 {dimension_numbers = #tpu.dot_dimension_numbers<[1], [1], [0], [0], [0, 0, 1, 0], [], []>} : vector<78x8xf32>, vector<78x8xf32>, vector<78x78xf32> -> vector<78x78xf32>
    %cst_28 = arith.constant dense<0xFF800000> : vector<78xf32>
    %63 = vector.multi_reduction <maximumf>, %62, %cst_28 [1] : vector<78x78xf32> to vector<78xf32>
    %64 = vector.shape_cast %63 : vector<78xf32> to vector<78x1xf32>
    %65 = vector.broadcast %64 : vector<78x1xf32> to vector<78x78xf32>
    %66 = arith.subf %62, %65 : vector<78x78xf32>
    %67 = math.exp %66 : vector<78x78xf32>
    %cst_29 = arith.constant dense<0.000000e+00> : vector<78xf32>
    %68 = vector.multi_reduction <add>, %67, %cst_29 [1] : vector<78x78xf32> to vector<78xf32>
    %69 = vector.shape_cast %68 : vector<78xf32> to vector<78x1xf32>
    %70 = tpu.reciprocal %69 {approx = true} : vector<78x1xf32> -> vector<78x1xf32>
    %71 = vector.broadcast %70 : vector<78x1xf32> to vector<78x78xf32>
    %72 = arith.mulf %67, %71 : vector<78x78xf32>
    %73 = vector.extract_strided_slice %44 {offsets = [0, 8], sizes = [78, 8], strides = [1, 1]} : vector<78x32xf32> to vector<78x8xf32>
    %cst_30 = arith.constant dense<0.000000e+00> : vector<78x8xf32>
    %74 = tpu.matmul %72, %73, %cst_30 {dimension_numbers = #tpu.dot_dimension_numbers<[1], [0], [0], [1], [0, 0, 1, 1], [], []>} : vector<78x78xf32>, vector<78x8xf32>, vector<78x8xf32> -> vector<78x8xf32>
    %75 = vector.extract_strided_slice %42 {offsets = [0, 16], sizes = [78, 8], strides = [1, 1]} : vector<78x32xf32> to vector<78x8xf32>
    %76 = vector.extract_strided_slice %43 {offsets = [0, 16], sizes = [78, 8], strides = [1, 1]} : vector<78x32xf32> to vector<78x8xf32>
    %cst_31 = arith.constant dense<0.000000e+00> : vector<78x78xf32>
    %77 = tpu.matmul %75, %76, %cst_31 {dimension_numbers = #tpu.dot_dimension_numbers<[1], [1], [0], [0], [0, 0, 1, 0], [], []>} : vector<78x8xf32>, vector<78x8xf32>, vector<78x78xf32> -> vector<78x78xf32>
    %cst_32 = arith.constant dense<0xFF800000> : vector<78xf32>
    %78 = vector.multi_reduction <maximumf>, %77, %cst_32 [1] : vector<78x78xf32> to vector<78xf32>
    %79 = vector.shape_cast %78 : vector<78xf32> to vector<78x1xf32>
    %80 = vector.broadcast %79 : vector<78x1xf32> to vector<78x78xf32>
    %81 = arith.subf %77, %80 : vector<78x78xf32>
    %82 = math.exp %81 : vector<78x78xf32>
    %cst_33 = arith.constant dense<0.000000e+00> : vector<78xf32>
    %83 = vector.multi_reduction <add>, %82, %cst_33 [1] : vector<78x78xf32> to vector<78xf32>
    %84 = vector.shape_cast %83 : vector<78xf32> to vector<78x1xf32>
    %85 = tpu.reciprocal %84 {approx = true} : vector<78x1xf32> -> vector<78x1xf32>
    %86 = vector.broadcast %85 : vector<78x1xf32> to vector<78x78xf32>
    %87 = arith.mulf %82, %86 : vector<78x78xf32>
    %88 = vector.extract_strided_slice %44 {offsets = [0, 16], sizes = [78, 8], strides = [1, 1]} : vector<78x32xf32> to vector<78x8xf32>
    %cst_34 = arith.constant dense<0.000000e+00> : vector<78x8xf32>
    %89 = tpu.matmul %87, %88, %cst_34 {dimension_numbers = #tpu.dot_dimension_numbers<[1], [0], [0], [1], [0, 0, 1, 1], [], []>} : vector<78x78xf32>, vector<78x8xf32>, vector<78x8xf32> -> vector<78x8xf32>
    %90 = vector.extract_strided_slice %42 {offsets = [0, 24], sizes = [78, 8], strides = [1, 1]} : vector<78x32xf32> to vector<78x8xf32>
    %91 = vector.extract_strided_slice %43 {offsets = [0, 24], sizes = [78, 8], strides = [1, 1]} : vector<78x32xf32> to vector<78x8xf32>
    %cst_35 = arith.constant dense<0.000000e+00> : vector<78x78xf32>
    %92 = tpu.matmul %90, %91, %cst_35 {dimension_numbers = #tpu.dot_dimension_numbers<[1], [1], [0], [0], [0, 0, 1, 0], [], []>} : vector<78x8xf32>, vector<78x8xf32>, vector<78x78xf32> -> vector<78x78xf32>
    %cst_36 = arith.constant dense<0xFF800000> : vector<78xf32>
    %93 = vector.multi_reduction <maximumf>, %92, %cst_36 [1] : vector<78x78xf32> to vector<78xf32>
    %94 = vector.shape_cast %93 : vector<78xf32> to vector<78x1xf32>
    %95 = vector.broadcast %94 : vector<78x1xf32> to vector<78x78xf32>
    %96 = arith.subf %92, %95 : vector<78x78xf32>
    %97 = math.exp %96 : vector<78x78xf32>
    %cst_37 = arith.constant dense<0.000000e+00> : vector<78xf32>
    %98 = vector.multi_reduction <add>, %97, %cst_37 [1] : vector<78x78xf32> to vector<78xf32>
    %99 = vector.shape_cast %98 : vector<78xf32> to vector<78x1xf32>
    %100 = tpu.reciprocal %99 {approx = true} : vector<78x1xf32> -> vector<78x1xf32>
    %101 = vector.broadcast %100 : vector<78x1xf32> to vector<78x78xf32>
    %102 = arith.mulf %97, %101 : vector<78x78xf32>
    %103 = vector.extract_strided_slice %44 {offsets = [0, 24], sizes = [78, 8], strides = [1, 1]} : vector<78x32xf32> to vector<78x8xf32>
    %cst_38 = arith.constant dense<0.000000e+00> : vector<78x8xf32>
    %104 = tpu.matmul %102, %103, %cst_38 {dimension_numbers = #tpu.dot_dimension_numbers<[1], [0], [0], [1], [0, 0, 1, 1], [], []>} : vector<78x78xf32>, vector<78x8xf32>, vector<78x8xf32> -> vector<78x8xf32>
    %105 = tpu.concatenate %59, %74, %89, %104 in 1 : vector<78x8xf32>, vector<78x8xf32>, vector<78x8xf32>, vector<78x8xf32> -> vector<78x32xf32>
    %c0_39 = arith.constant 0 : index
    %c0_40 = arith.constant 0 : index
    %c0_41 = arith.constant 0 : index
    %106 = vector.load %arg5[%c0_39, %c0_40, %c0_41] : memref<2x32x32xf32, #tpu.memory_space<vmem>>, vector<1x32x32xf32>
    %107 = vector.shape_cast %106 : vector<1x32x32xf32> to vector<32x32xf32>
    %cst_42 = arith.constant dense<0.000000e+00> : vector<78x32xf32>
    %108 = tpu.matmul %105, %107, %cst_42 {dimension_numbers = #tpu.dot_dimension_numbers<[1], [0], [0], [1], [0, 0, 1, 1], [], []>} : vector<78x32xf32>, vector<32x32xf32>, vector<78x32xf32> -> vector<78x32xf32>
    %c0_43 = arith.constant 0 : index
    %c0_44 = arith.constant 0 : index
    %c0_45 = arith.constant 0 : index
    %109 = vector.load %arg6[%c0_43, %c0_44, %c0_45] : memref<2x1x32xf32, #tpu.memory_space<vmem>>, vector<1x1x32xf32>
    %110 = vector.shape_cast %109 : vector<1x1x32xf32> to vector<1x32xf32>
    %111 = vector.broadcast %110 : vector<1x32xf32> to vector<78x32xf32>
    %112 = arith.addf %108, %111 : vector<78x32xf32>
    %113 = arith.addf %5, %112 : vector<78x32xf32>
    %c0_46 = arith.constant 0 : index
    %c0_47 = arith.constant 0 : index
    %c0_48 = arith.constant 0 : index
    %114 = vector.load %arg9[%c0_46, %c0_47, %c0_48] : memref<2x1x32xf32, #tpu.memory_space<vmem>>, vector<1x1x32xf32>
    %115 = vector.shape_cast %114 : vector<1x1x32xf32> to vector<1x32xf32>
    %c0_49 = arith.constant 0 : index
    %c0_50 = arith.constant 0 : index
    %c0_51 = arith.constant 0 : index
    %116 = vector.load %arg10[%c0_49, %c0_50, %c0_51] : memref<2x1x32xf32, #tpu.memory_space<vmem>>, vector<1x1x32xf32>
    %117 = vector.shape_cast %116 : vector<1x1x32xf32> to vector<1x32xf32>
    %cst_52 = arith.constant dense<0.000000e+00> : vector<78xf32>
    %118 = vector.multi_reduction <add>, %113, %cst_52 [1] : vector<78x32xf32> to vector<78xf32>
    %119 = vector.shape_cast %118 : vector<78xf32> to vector<78x1xf32>
    %cst_53 = arith.constant 3.200000e+01 : f32
    %120 = vector.broadcast %cst_53 : f32 to vector<78x1xf32>
    %121 = arith.divf %119, %120 : vector<78x1xf32>
    %122 = vector.broadcast %121 : vector<78x1xf32> to vector<78x32xf32>
    %123 = arith.subf %113, %122 : vector<78x32xf32>
    %124 = arith.mulf %123, %123 : vector<78x32xf32>
    %cst_54 = arith.constant dense<0.000000e+00> : vector<78xf32>
    %125 = vector.multi_reduction <add>, %124, %cst_54 [1] : vector<78x32xf32> to vector<78xf32>
    %126 = vector.shape_cast %125 : vector<78xf32> to vector<78x1xf32>
    %cst_55 = arith.constant 3.100000e+01 : f32
    %127 = vector.broadcast %cst_55 : f32 to vector<78x1xf32>
    %128 = arith.divf %126, %127 : vector<78x1xf32>
    %129 = math.sqrt %128 : vector<78x1xf32>
    %cst_56 = arith.constant 9.99999997E-7 : f32
    %130 = vector.broadcast %cst_56 : f32 to vector<78x1xf32>
    %131 = arith.addf %129, %130 : vector<78x1xf32>
    %132 = tpu.reciprocal %131 {approx = true} : vector<78x1xf32> -> vector<78x1xf32>
    %133 = vector.broadcast %121 : vector<78x1xf32> to vector<78x32xf32>
    %134 = arith.subf %113, %133 : vector<78x32xf32>
    %135 = vector.broadcast %115 : vector<1x32xf32> to vector<78x32xf32>
    %136 = arith.mulf %135, %134 : vector<78x32xf32>
    %137 = vector.broadcast %132 : vector<78x1xf32> to vector<78x32xf32>
    %138 = arith.mulf %136, %137 : vector<78x32xf32>
    %139 = vector.broadcast %117 : vector<1x32xf32> to vector<78x32xf32>
    %140 = arith.addf %138, %139 : vector<78x32xf32>
    %c0_57 = arith.constant 0 : index
    %c0_58 = arith.constant 0 : index
    %c0_59 = arith.constant 0 : index
    %141 = vector.load %arg11[%c0_57, %c0_58, %c0_59] : memref<2x32x64xf32, #tpu.memory_space<vmem>>, vector<1x32x64xf32>
    %142 = vector.shape_cast %141 : vector<1x32x64xf32> to vector<32x64xf32>
    %cst_60 = arith.constant dense<0.000000e+00> : vector<78x64xf32>
    %143 = tpu.matmul %140, %142, %cst_60 {dimension_numbers = #tpu.dot_dimension_numbers<[1], [0], [0], [1], [0, 0, 1, 1], [], []>} : vector<78x32xf32>, vector<32x64xf32>, vector<78x64xf32> -> vector<78x64xf32>
    %c0_61 = arith.constant 0 : index
    %c0_62 = arith.constant 0 : index
    %c0_63 = arith.constant 0 : index
    %144 = vector.load %arg12[%c0_61, %c0_62, %c0_63] : memref<2x1x64xf32, #tpu.memory_space<vmem>>, vector<1x1x64xf32>
    %145 = vector.shape_cast %144 : vector<1x1x64xf32> to vector<1x64xf32>
    %146 = vector.broadcast %145 : vector<1x64xf32> to vector<78x64xf32>
    %147 = arith.addf %143, %146 : vector<78x64xf32>
    %cst_64 = arith.constant 0.000000e+00 : f32
    %148 = vector.broadcast %cst_64 : f32 to vector<78x64xf32>
    %149 = arith.maximumf %147, %148 : vector<78x64xf32>
    %c0_65 = arith.constant 0 : index
    %c0_66 = arith.constant 0 : index
    %c0_67 = arith.constant 0 : index
    %150 = vector.load %arg13[%c0_65, %c0_66, %c0_67] : memref<2x64x32xf32, #tpu.memory_space<vmem>>, vector<1x64x32xf32>
    %151 = vector.shape_cast %150 : vector<1x64x32xf32> to vector<64x32xf32>
    %cst_68 = arith.constant dense<0.000000e+00> : vector<78x32xf32>
    %152 = tpu.matmul %149, %151, %cst_68 {dimension_numbers = #tpu.dot_dimension_numbers<[1], [0], [0], [1], [0, 0, 1, 1], [], []>} : vector<78x64xf32>, vector<64x32xf32>, vector<78x32xf32> -> vector<78x32xf32>
    %c0_69 = arith.constant 0 : index
    %c0_70 = arith.constant 0 : index
    %c0_71 = arith.constant 0 : index
    %153 = vector.load %arg14[%c0_69, %c0_70, %c0_71] : memref<2x1x32xf32, #tpu.memory_space<vmem>>, vector<1x1x32xf32>
    %154 = vector.shape_cast %153 : vector<1x1x32xf32> to vector<1x32xf32>
    %155 = vector.broadcast %154 : vector<1x32xf32> to vector<78x32xf32>
    %156 = arith.addf %152, %155 : vector<78x32xf32>
    %157 = arith.addf %113, %156 : vector<78x32xf32>
    %c1 = arith.constant 1 : index
    %c0_72 = arith.constant 0 : index
    %c0_73 = arith.constant 0 : index
    %158 = vector.load %arg7[%c1, %c0_72, %c0_73] : memref<2x1x32xf32, #tpu.memory_space<vmem>>, vector<1x1x32xf32>
    %159 = vector.shape_cast %158 : vector<1x1x32xf32> to vector<1x32xf32>
    %c1_74 = arith.constant 1 : index
    %c0_75 = arith.constant 0 : index
    %c0_76 = arith.constant 0 : index
    %160 = vector.load %arg8[%c1_74, %c0_75, %c0_76] : memref<2x1x32xf32, #tpu.memory_space<vmem>>, vector<1x1x32xf32>
    %161 = vector.shape_cast %160 : vector<1x1x32xf32> to vector<1x32xf32>
    %cst_77 = arith.constant dense<0.000000e+00> : vector<78xf32>
    %162 = vector.multi_reduction <add>, %157, %cst_77 [1] : vector<78x32xf32> to vector<78xf32>
    %163 = vector.shape_cast %162 : vector<78xf32> to vector<78x1xf32>
    %cst_78 = arith.constant 3.200000e+01 : f32
    %164 = vector.broadcast %cst_78 : f32 to vector<78x1xf32>
    %165 = arith.divf %163, %164 : vector<78x1xf32>
    %166 = vector.broadcast %165 : vector<78x1xf32> to vector<78x32xf32>
    %167 = arith.subf %157, %166 : vector<78x32xf32>
    %168 = arith.mulf %167, %167 : vector<78x32xf32>
    %cst_79 = arith.constant dense<0.000000e+00> : vector<78xf32>
    %169 = vector.multi_reduction <add>, %168, %cst_79 [1] : vector<78x32xf32> to vector<78xf32>
    %170 = vector.shape_cast %169 : vector<78xf32> to vector<78x1xf32>
    %cst_80 = arith.constant 3.100000e+01 : f32
    %171 = vector.broadcast %cst_80 : f32 to vector<78x1xf32>
    %172 = arith.divf %170, %171 : vector<78x1xf32>
    %173 = math.sqrt %172 : vector<78x1xf32>
    %cst_81 = arith.constant 9.99999997E-7 : f32
    %174 = vector.broadcast %cst_81 : f32 to vector<78x1xf32>
    %175 = arith.addf %173, %174 : vector<78x1xf32>
    %176 = tpu.reciprocal %175 {approx = true} : vector<78x1xf32> -> vector<78x1xf32>
    %177 = vector.broadcast %165 : vector<78x1xf32> to vector<78x32xf32>
    %178 = arith.subf %157, %177 : vector<78x32xf32>
    %179 = vector.broadcast %159 : vector<1x32xf32> to vector<78x32xf32>
    %180 = arith.mulf %179, %178 : vector<78x32xf32>
    %181 = vector.broadcast %176 : vector<78x1xf32> to vector<78x32xf32>
    %182 = arith.mulf %180, %181 : vector<78x32xf32>
    %183 = vector.broadcast %161 : vector<1x32xf32> to vector<78x32xf32>
    %184 = arith.addf %182, %183 : vector<78x32xf32>
    %c1_82 = arith.constant 1 : index
    %c0_83 = arith.constant 0 : index
    %c0_84 = arith.constant 0 : index
    %185 = vector.load %arg3[%c1_82, %c0_83, %c0_84] : memref<2x32x96xf32, #tpu.memory_space<vmem>>, vector<1x32x96xf32>
    %186 = vector.shape_cast %185 : vector<1x32x96xf32> to vector<32x96xf32>
    %cst_85 = arith.constant dense<0.000000e+00> : vector<78x96xf32>
    %187 = tpu.matmul %184, %186, %cst_85 {dimension_numbers = #tpu.dot_dimension_numbers<[1], [0], [0], [1], [0, 0, 1, 1], [], []>} : vector<78x32xf32>, vector<32x96xf32>, vector<78x96xf32> -> vector<78x96xf32>
    %c1_86 = arith.constant 1 : index
    %c0_87 = arith.constant 0 : index
    %c0_88 = arith.constant 0 : index
    %188 = vector.load %arg4[%c1_86, %c0_87, %c0_88] : memref<2x1x96xf32, #tpu.memory_space<vmem>>, vector<1x1x96xf32>
    %189 = vector.shape_cast %188 : vector<1x1x96xf32> to vector<1x96xf32>
    %190 = vector.broadcast %189 : vector<1x96xf32> to vector<78x96xf32>
    %191 = arith.addf %187, %190 : vector<78x96xf32>
    %192 = vector.extract_strided_slice %191 {offsets = [0, 0], sizes = [78, 32], strides = [1, 1]} : vector<78x96xf32> to vector<78x32xf32>
    %cst_89 = arith.constant 0.353553385 : f32
    %193 = vector.broadcast %cst_89 : f32 to vector<78x32xf32>
    %194 = arith.mulf %192, %193 : vector<78x32xf32>
    %195 = vector.extract_strided_slice %191 {offsets = [0, 32], sizes = [78, 32], strides = [1, 1]} : vector<78x96xf32> to vector<78x32xf32>
    %196 = vector.extract_strided_slice %191 {offsets = [0, 64], sizes = [78, 32], strides = [1, 1]} : vector<78x96xf32> to vector<78x32xf32>
    %197 = vector.extract_strided_slice %194 {offsets = [0, 0], sizes = [78, 8], strides = [1, 1]} : vector<78x32xf32> to vector<78x8xf32>
    %198 = vector.extract_strided_slice %195 {offsets = [0, 0], sizes = [78, 8], strides = [1, 1]} : vector<78x32xf32> to vector<78x8xf32>
    %cst_90 = arith.constant dense<0.000000e+00> : vector<78x78xf32>
    %199 = tpu.matmul %197, %198, %cst_90 {dimension_numbers = #tpu.dot_dimension_numbers<[1], [1], [0], [0], [0, 0, 1, 0], [], []>} : vector<78x8xf32>, vector<78x8xf32>, vector<78x78xf32> -> vector<78x78xf32>
    %cst_91 = arith.constant dense<0xFF800000> : vector<78xf32>
    %200 = vector.multi_reduction <maximumf>, %199, %cst_91 [1] : vector<78x78xf32> to vector<78xf32>
    %201 = vector.shape_cast %200 : vector<78xf32> to vector<78x1xf32>
    %202 = vector.broadcast %201 : vector<78x1xf32> to vector<78x78xf32>
    %203 = arith.subf %199, %202 : vector<78x78xf32>
    %204 = math.exp %203 : vector<78x78xf32>
    %cst_92 = arith.constant dense<0.000000e+00> : vector<78xf32>
    %205 = vector.multi_reduction <add>, %204, %cst_92 [1] : vector<78x78xf32> to vector<78xf32>
    %206 = vector.shape_cast %205 : vector<78xf32> to vector<78x1xf32>
    %207 = tpu.reciprocal %206 {approx = true} : vector<78x1xf32> -> vector<78x1xf32>
    %208 = vector.broadcast %207 : vector<78x1xf32> to vector<78x78xf32>
    %209 = arith.mulf %204, %208 : vector<78x78xf32>
    %210 = vector.extract_strided_slice %196 {offsets = [0, 0], sizes = [78, 8], strides = [1, 1]} : vector<78x32xf32> to vector<78x8xf32>
    %cst_93 = arith.constant dense<0.000000e+00> : vector<78x8xf32>
    %211 = tpu.matmul %209, %210, %cst_93 {dimension_numbers = #tpu.dot_dimension_numbers<[1], [0], [0], [1], [0, 0, 1, 1], [], []>} : vector<78x78xf32>, vector<78x8xf32>, vector<78x8xf32> -> vector<78x8xf32>
    %212 = vector.extract_strided_slice %194 {offsets = [0, 8], sizes = [78, 8], strides = [1, 1]} : vector<78x32xf32> to vector<78x8xf32>
    %213 = vector.extract_strided_slice %195 {offsets = [0, 8], sizes = [78, 8], strides = [1, 1]} : vector<78x32xf32> to vector<78x8xf32>
    %cst_94 = arith.constant dense<0.000000e+00> : vector<78x78xf32>
    %214 = tpu.matmul %212, %213, %cst_94 {dimension_numbers = #tpu.dot_dimension_numbers<[1], [1], [0], [0], [0, 0, 1, 0], [], []>} : vector<78x8xf32>, vector<78x8xf32>, vector<78x78xf32> -> vector<78x78xf32>
    %cst_95 = arith.constant dense<0xFF800000> : vector<78xf32>
    %215 = vector.multi_reduction <maximumf>, %214, %cst_95 [1] : vector<78x78xf32> to vector<78xf32>
    %216 = vector.shape_cast %215 : vector<78xf32> to vector<78x1xf32>
    %217 = vector.broadcast %216 : vector<78x1xf32> to vector<78x78xf32>
    %218 = arith.subf %214, %217 : vector<78x78xf32>
    %219 = math.exp %218 : vector<78x78xf32>
    %cst_96 = arith.constant dense<0.000000e+00> : vector<78xf32>
    %220 = vector.multi_reduction <add>, %219, %cst_96 [1] : vector<78x78xf32> to vector<78xf32>
    %221 = vector.shape_cast %220 : vector<78xf32> to vector<78x1xf32>
    %222 = tpu.reciprocal %221 {approx = true} : vector<78x1xf32> -> vector<78x1xf32>
    %223 = vector.broadcast %222 : vector<78x1xf32> to vector<78x78xf32>
    %224 = arith.mulf %219, %223 : vector<78x78xf32>
    %225 = vector.extract_strided_slice %196 {offsets = [0, 8], sizes = [78, 8], strides = [1, 1]} : vector<78x32xf32> to vector<78x8xf32>
    %cst_97 = arith.constant dense<0.000000e+00> : vector<78x8xf32>
    %226 = tpu.matmul %224, %225, %cst_97 {dimension_numbers = #tpu.dot_dimension_numbers<[1], [0], [0], [1], [0, 0, 1, 1], [], []>} : vector<78x78xf32>, vector<78x8xf32>, vector<78x8xf32> -> vector<78x8xf32>
    %227 = vector.extract_strided_slice %194 {offsets = [0, 16], sizes = [78, 8], strides = [1, 1]} : vector<78x32xf32> to vector<78x8xf32>
    %228 = vector.extract_strided_slice %195 {offsets = [0, 16], sizes = [78, 8], strides = [1, 1]} : vector<78x32xf32> to vector<78x8xf32>
    %cst_98 = arith.constant dense<0.000000e+00> : vector<78x78xf32>
    %229 = tpu.matmul %227, %228, %cst_98 {dimension_numbers = #tpu.dot_dimension_numbers<[1], [1], [0], [0], [0, 0, 1, 0], [], []>} : vector<78x8xf32>, vector<78x8xf32>, vector<78x78xf32> -> vector<78x78xf32>
    %cst_99 = arith.constant dense<0xFF800000> : vector<78xf32>
    %230 = vector.multi_reduction <maximumf>, %229, %cst_99 [1] : vector<78x78xf32> to vector<78xf32>
    %231 = vector.shape_cast %230 : vector<78xf32> to vector<78x1xf32>
    %232 = vector.broadcast %231 : vector<78x1xf32> to vector<78x78xf32>
    %233 = arith.subf %229, %232 : vector<78x78xf32>
    %234 = math.exp %233 : vector<78x78xf32>
    %cst_100 = arith.constant dense<0.000000e+00> : vector<78xf32>
    %235 = vector.multi_reduction <add>, %234, %cst_100 [1] : vector<78x78xf32> to vector<78xf32>
    %236 = vector.shape_cast %235 : vector<78xf32> to vector<78x1xf32>
    %237 = tpu.reciprocal %236 {approx = true} : vector<78x1xf32> -> vector<78x1xf32>
    %238 = vector.broadcast %237 : vector<78x1xf32> to vector<78x78xf32>
    %239 = arith.mulf %234, %238 : vector<78x78xf32>
    %240 = vector.extract_strided_slice %196 {offsets = [0, 16], sizes = [78, 8], strides = [1, 1]} : vector<78x32xf32> to vector<78x8xf32>
    %cst_101 = arith.constant dense<0.000000e+00> : vector<78x8xf32>
    %241 = tpu.matmul %239, %240, %cst_101 {dimension_numbers = #tpu.dot_dimension_numbers<[1], [0], [0], [1], [0, 0, 1, 1], [], []>} : vector<78x78xf32>, vector<78x8xf32>, vector<78x8xf32> -> vector<78x8xf32>
    %242 = vector.extract_strided_slice %194 {offsets = [0, 24], sizes = [78, 8], strides = [1, 1]} : vector<78x32xf32> to vector<78x8xf32>
    %243 = vector.extract_strided_slice %195 {offsets = [0, 24], sizes = [78, 8], strides = [1, 1]} : vector<78x32xf32> to vector<78x8xf32>
    %cst_102 = arith.constant dense<0.000000e+00> : vector<78x78xf32>
    %244 = tpu.matmul %242, %243, %cst_102 {dimension_numbers = #tpu.dot_dimension_numbers<[1], [1], [0], [0], [0, 0, 1, 0], [], []>} : vector<78x8xf32>, vector<78x8xf32>, vector<78x78xf32> -> vector<78x78xf32>
    %cst_103 = arith.constant dense<0xFF800000> : vector<78xf32>
    %245 = vector.multi_reduction <maximumf>, %244, %cst_103 [1] : vector<78x78xf32> to vector<78xf32>
    %246 = vector.shape_cast %245 : vector<78xf32> to vector<78x1xf32>
    %247 = vector.broadcast %246 : vector<78x1xf32> to vector<78x78xf32>
    %248 = arith.subf %244, %247 : vector<78x78xf32>
    %249 = math.exp %248 : vector<78x78xf32>
    %cst_104 = arith.constant dense<0.000000e+00> : vector<78xf32>
    %250 = vector.multi_reduction <add>, %249, %cst_104 [1] : vector<78x78xf32> to vector<78xf32>
    %251 = vector.shape_cast %250 : vector<78xf32> to vector<78x1xf32>
    %252 = tpu.reciprocal %251 {approx = true} : vector<78x1xf32> -> vector<78x1xf32>
    %253 = vector.broadcast %252 : vector<78x1xf32> to vector<78x78xf32>
    %254 = arith.mulf %249, %253 : vector<78x78xf32>
    %255 = vector.extract_strided_slice %196 {offsets = [0, 24], sizes = [78, 8], strides = [1, 1]} : vector<78x32xf32> to vector<78x8xf32>
    %cst_105 = arith.constant dense<0.000000e+00> : vector<78x8xf32>
    %256 = tpu.matmul %254, %255, %cst_105 {dimension_numbers = #tpu.dot_dimension_numbers<[1], [0], [0], [1], [0, 0, 1, 1], [], []>} : vector<78x78xf32>, vector<78x8xf32>, vector<78x8xf32> -> vector<78x8xf32>
    %257 = tpu.concatenate %211, %226, %241, %256 in 1 : vector<78x8xf32>, vector<78x8xf32>, vector<78x8xf32>, vector<78x8xf32> -> vector<78x32xf32>
    %c1_106 = arith.constant 1 : index
    %c0_107 = arith.constant 0 : index
    %c0_108 = arith.constant 0 : index
    %258 = vector.load %arg5[%c1_106, %c0_107, %c0_108] : memref<2x32x32xf32, #tpu.memory_space<vmem>>, vector<1x32x32xf32>
    %259 = vector.shape_cast %258 : vector<1x32x32xf32> to vector<32x32xf32>
    %cst_109 = arith.constant dense<0.000000e+00> : vector<78x32xf32>
    %260 = tpu.matmul %257, %259, %cst_109 {dimension_numbers = #tpu.dot_dimension_numbers<[1], [0], [0], [1], [0, 0, 1, 1], [], []>} : vector<78x32xf32>, vector<32x32xf32>, vector<78x32xf32> -> vector<78x32xf32>
    %c1_110 = arith.constant 1 : index
    %c0_111 = arith.constant 0 : index
    %c0_112 = arith.constant 0 : index
    %261 = vector.load %arg6[%c1_110, %c0_111, %c0_112] : memref<2x1x32xf32, #tpu.memory_space<vmem>>, vector<1x1x32xf32>
    %262 = vector.shape_cast %261 : vector<1x1x32xf32> to vector<1x32xf32>
    %263 = vector.broadcast %262 : vector<1x32xf32> to vector<78x32xf32>
    %264 = arith.addf %260, %263 : vector<78x32xf32>
    %265 = arith.addf %157, %264 : vector<78x32xf32>
    %c1_113 = arith.constant 1 : index
    %c0_114 = arith.constant 0 : index
    %c0_115 = arith.constant 0 : index
    %266 = vector.load %arg9[%c1_113, %c0_114, %c0_115] : memref<2x1x32xf32, #tpu.memory_space<vmem>>, vector<1x1x32xf32>
    %267 = vector.shape_cast %266 : vector<1x1x32xf32> to vector<1x32xf32>
    %c1_116 = arith.constant 1 : index
    %c0_117 = arith.constant 0 : index
    %c0_118 = arith.constant 0 : index
    %268 = vector.load %arg10[%c1_116, %c0_117, %c0_118] : memref<2x1x32xf32, #tpu.memory_space<vmem>>, vector<1x1x32xf32>
    %269 = vector.shape_cast %268 : vector<1x1x32xf32> to vector<1x32xf32>
    %cst_119 = arith.constant dense<0.000000e+00> : vector<78xf32>
    %270 = vector.multi_reduction <add>, %265, %cst_119 [1] : vector<78x32xf32> to vector<78xf32>
    %271 = vector.shape_cast %270 : vector<78xf32> to vector<78x1xf32>
    %cst_120 = arith.constant 3.200000e+01 : f32
    %272 = vector.broadcast %cst_120 : f32 to vector<78x1xf32>
    %273 = arith.divf %271, %272 : vector<78x1xf32>
    %274 = vector.broadcast %273 : vector<78x1xf32> to vector<78x32xf32>
    %275 = arith.subf %265, %274 : vector<78x32xf32>
    %276 = arith.mulf %275, %275 : vector<78x32xf32>
    %cst_121 = arith.constant dense<0.000000e+00> : vector<78xf32>
    %277 = vector.multi_reduction <add>, %276, %cst_121 [1] : vector<78x32xf32> to vector<78xf32>
    %278 = vector.shape_cast %277 : vector<78xf32> to vector<78x1xf32>
    %cst_122 = arith.constant 3.100000e+01 : f32
    %279 = vector.broadcast %cst_122 : f32 to vector<78x1xf32>
    %280 = arith.divf %278, %279 : vector<78x1xf32>
    %281 = math.sqrt %280 : vector<78x1xf32>
    %cst_123 = arith.constant 9.99999997E-7 : f32
    %282 = vector.broadcast %cst_123 : f32 to vector<78x1xf32>
    %283 = arith.addf %281, %282 : vector<78x1xf32>
    %284 = tpu.reciprocal %283 {approx = true} : vector<78x1xf32> -> vector<78x1xf32>
    %285 = vector.broadcast %273 : vector<78x1xf32> to vector<78x32xf32>
    %286 = arith.subf %265, %285 : vector<78x32xf32>
    %287 = vector.broadcast %267 : vector<1x32xf32> to vector<78x32xf32>
    %288 = arith.mulf %287, %286 : vector<78x32xf32>
    %289 = vector.broadcast %284 : vector<78x1xf32> to vector<78x32xf32>
    %290 = arith.mulf %288, %289 : vector<78x32xf32>
    %291 = vector.broadcast %269 : vector<1x32xf32> to vector<78x32xf32>
    %292 = arith.addf %290, %291 : vector<78x32xf32>
    %c1_124 = arith.constant 1 : index
    %c0_125 = arith.constant 0 : index
    %c0_126 = arith.constant 0 : index
    %293 = vector.load %arg11[%c1_124, %c0_125, %c0_126] : memref<2x32x64xf32, #tpu.memory_space<vmem>>, vector<1x32x64xf32>
    %294 = vector.shape_cast %293 : vector<1x32x64xf32> to vector<32x64xf32>
    %cst_127 = arith.constant dense<0.000000e+00> : vector<78x64xf32>
    %295 = tpu.matmul %292, %294, %cst_127 {dimension_numbers = #tpu.dot_dimension_numbers<[1], [0], [0], [1], [0, 0, 1, 1], [], []>} : vector<78x32xf32>, vector<32x64xf32>, vector<78x64xf32> -> vector<78x64xf32>
    %c1_128 = arith.constant 1 : index
    %c0_129 = arith.constant 0 : index
    %c0_130 = arith.constant 0 : index
    %296 = vector.load %arg12[%c1_128, %c0_129, %c0_130] : memref<2x1x64xf32, #tpu.memory_space<vmem>>, vector<1x1x64xf32>
    %297 = vector.shape_cast %296 : vector<1x1x64xf32> to vector<1x64xf32>
    %298 = vector.broadcast %297 : vector<1x64xf32> to vector<78x64xf32>
    %299 = arith.addf %295, %298 : vector<78x64xf32>
    %cst_131 = arith.constant 0.000000e+00 : f32
    %300 = vector.broadcast %cst_131 : f32 to vector<78x64xf32>
    %301 = arith.maximumf %299, %300 : vector<78x64xf32>
    %c1_132 = arith.constant 1 : index
    %c0_133 = arith.constant 0 : index
    %c0_134 = arith.constant 0 : index
    %302 = vector.load %arg13[%c1_132, %c0_133, %c0_134] : memref<2x64x32xf32, #tpu.memory_space<vmem>>, vector<1x64x32xf32>
    %303 = vector.shape_cast %302 : vector<1x64x32xf32> to vector<64x32xf32>
    %cst_135 = arith.constant dense<0.000000e+00> : vector<78x32xf32>
    %304 = tpu.matmul %301, %303, %cst_135 {dimension_numbers = #tpu.dot_dimension_numbers<[1], [0], [0], [1], [0, 0, 1, 1], [], []>} : vector<78x64xf32>, vector<64x32xf32>, vector<78x32xf32> -> vector<78x32xf32>
    %c1_136 = arith.constant 1 : index
    %c0_137 = arith.constant 0 : index
    %c0_138 = arith.constant 0 : index
    %305 = vector.load %arg14[%c1_136, %c0_137, %c0_138] : memref<2x1x32xf32, #tpu.memory_space<vmem>>, vector<1x1x32xf32>
    %306 = vector.shape_cast %305 : vector<1x1x32xf32> to vector<1x32xf32>
    %307 = vector.broadcast %306 : vector<1x32xf32> to vector<78x32xf32>
    %308 = arith.addf %304, %307 : vector<78x32xf32>
    %309 = arith.addf %265, %308 : vector<78x32xf32>
    %c0_139 = arith.constant 0 : index
    %c0_140 = arith.constant 0 : index
    %310 = vector.load %arg15[%c0_139, %c0_140] : memref<1x32xf32, #tpu.memory_space<vmem>>, vector<1x32xf32>
    %c0_141 = arith.constant 0 : index
    %c0_142 = arith.constant 0 : index
    %311 = vector.load %arg16[%c0_141, %c0_142] : memref<1x32xf32, #tpu.memory_space<vmem>>, vector<1x32xf32>
    %cst_143 = arith.constant dense<0.000000e+00> : vector<78xf32>
    %312 = vector.multi_reduction <add>, %309, %cst_143 [1] : vector<78x32xf32> to vector<78xf32>
    %313 = vector.shape_cast %312 : vector<78xf32> to vector<78x1xf32>
    %cst_144 = arith.constant 3.200000e+01 : f32
    %314 = vector.broadcast %cst_144 : f32 to vector<78x1xf32>
    %315 = arith.divf %313, %314 : vector<78x1xf32>
    %316 = vector.broadcast %315 : vector<78x1xf32> to vector<78x32xf32>
    %317 = arith.subf %309, %316 : vector<78x32xf32>
    %318 = arith.mulf %317, %317 : vector<78x32xf32>
    %cst_145 = arith.constant dense<0.000000e+00> : vector<78xf32>
    %319 = vector.multi_reduction <add>, %318, %cst_145 [1] : vector<78x32xf32> to vector<78xf32>
    %320 = vector.shape_cast %319 : vector<78xf32> to vector<78x1xf32>
    %cst_146 = arith.constant 3.100000e+01 : f32
    %321 = vector.broadcast %cst_146 : f32 to vector<78x1xf32>
    %322 = arith.divf %320, %321 : vector<78x1xf32>
    %323 = math.sqrt %322 : vector<78x1xf32>
    %cst_147 = arith.constant 9.99999997E-7 : f32
    %324 = vector.broadcast %cst_147 : f32 to vector<78x1xf32>
    %325 = arith.addf %323, %324 : vector<78x1xf32>
    %326 = tpu.reciprocal %325 {approx = true} : vector<78x1xf32> -> vector<78x1xf32>
    %327 = vector.broadcast %315 : vector<78x1xf32> to vector<78x32xf32>
    %328 = arith.subf %309, %327 : vector<78x32xf32>
    %329 = vector.broadcast %310 : vector<1x32xf32> to vector<78x32xf32>
    %330 = arith.mulf %329, %328 : vector<78x32xf32>
    %331 = vector.broadcast %326 : vector<78x1xf32> to vector<78x32xf32>
    %332 = arith.mulf %330, %331 : vector<78x32xf32>
    %333 = vector.broadcast %311 : vector<1x32xf32> to vector<78x32xf32>
    %334 = arith.addf %332, %333 : vector<78x32xf32>
    %cst_148 = arith.constant 0.000000e+00 : f32
    %335 = vector.broadcast %cst_148 : f32 to vector<78x128xf32>
    %336 = vector.extract_strided_slice %334 {offsets = [0, 0], sizes = [78, 1], strides = [1, 1]} : vector<78x32xf32> to vector<78x1xf32>
    %c0_149 = arith.constant 0 : index
    %c0_150 = arith.constant 0 : index
    %c0_151 = arith.constant 0 : index
    %337 = vector.load %arg17[%c0_149, %c0_150, %c0_151] : memref<32x78x128xf32, #tpu.memory_space<vmem>>, vector<1x78x128xf32>
    %338 = vector.shape_cast %337 : vector<1x78x128xf32> to vector<78x128xf32>
    %339 = vector.broadcast %336 : vector<78x1xf32> to vector<78x128xf32>
    %340 = arith.mulf %339, %338 : vector<78x128xf32>
    %341 = arith.addf %335, %340 : vector<78x128xf32>
    %342 = vector.extract_strided_slice %334 {offsets = [0, 1], sizes = [78, 1], strides = [1, 1]} : vector<78x32xf32> to vector<78x1xf32>
    %c1_152 = arith.constant 1 : index
    %c0_153 = arith.constant 0 : index
    %c0_154 = arith.constant 0 : index
    %343 = vector.load %arg17[%c1_152, %c0_153, %c0_154] : memref<32x78x128xf32, #tpu.memory_space<vmem>>, vector<1x78x128xf32>
    %344 = vector.shape_cast %343 : vector<1x78x128xf32> to vector<78x128xf32>
    %345 = vector.broadcast %342 : vector<78x1xf32> to vector<78x128xf32>
    %346 = arith.mulf %345, %344 : vector<78x128xf32>
    %347 = arith.addf %341, %346 : vector<78x128xf32>
    %348 = vector.extract_strided_slice %334 {offsets = [0, 2], sizes = [78, 1], strides = [1, 1]} : vector<78x32xf32> to vector<78x1xf32>
    %c2 = arith.constant 2 : index
    %c0_155 = arith.constant 0 : index
    %c0_156 = arith.constant 0 : index
    %349 = vector.load %arg17[%c2, %c0_155, %c0_156] : memref<32x78x128xf32, #tpu.memory_space<vmem>>, vector<1x78x128xf32>
    %350 = vector.shape_cast %349 : vector<1x78x128xf32> to vector<78x128xf32>
    %351 = vector.broadcast %348 : vector<78x1xf32> to vector<78x128xf32>
    %352 = arith.mulf %351, %350 : vector<78x128xf32>
    %353 = arith.addf %347, %352 : vector<78x128xf32>
    %354 = vector.extract_strided_slice %334 {offsets = [0, 3], sizes = [78, 1], strides = [1, 1]} : vector<78x32xf32> to vector<78x1xf32>
    %c3 = arith.constant 3 : index
    %c0_157 = arith.constant 0 : index
    %c0_158 = arith.constant 0 : index
    %355 = vector.load %arg17[%c3, %c0_157, %c0_158] : memref<32x78x128xf32, #tpu.memory_space<vmem>>, vector<1x78x128xf32>
    %356 = vector.shape_cast %355 : vector<1x78x128xf32> to vector<78x128xf32>
    %357 = vector.broadcast %354 : vector<78x1xf32> to vector<78x128xf32>
    %358 = arith.mulf %357, %356 : vector<78x128xf32>
    %359 = arith.addf %353, %358 : vector<78x128xf32>
    %360 = vector.extract_strided_slice %334 {offsets = [0, 4], sizes = [78, 1], strides = [1, 1]} : vector<78x32xf32> to vector<78x1xf32>
    %c4 = arith.constant 4 : index
    %c0_159 = arith.constant 0 : index
    %c0_160 = arith.constant 0 : index
    %361 = vector.load %arg17[%c4, %c0_159, %c0_160] : memref<32x78x128xf32, #tpu.memory_space<vmem>>, vector<1x78x128xf32>
    %362 = vector.shape_cast %361 : vector<1x78x128xf32> to vector<78x128xf32>
    %363 = vector.broadcast %360 : vector<78x1xf32> to vector<78x128xf32>
    %364 = arith.mulf %363, %362 : vector<78x128xf32>
    %365 = arith.addf %359, %364 : vector<78x128xf32>
    %366 = vector.extract_strided_slice %334 {offsets = [0, 5], sizes = [78, 1], strides = [1, 1]} : vector<78x32xf32> to vector<78x1xf32>
    %c5 = arith.constant 5 : index
    %c0_161 = arith.constant 0 : index
    %c0_162 = arith.constant 0 : index
    %367 = vector.load %arg17[%c5, %c0_161, %c0_162] : memref<32x78x128xf32, #tpu.memory_space<vmem>>, vector<1x78x128xf32>
    %368 = vector.shape_cast %367 : vector<1x78x128xf32> to vector<78x128xf32>
    %369 = vector.broadcast %366 : vector<78x1xf32> to vector<78x128xf32>
    %370 = arith.mulf %369, %368 : vector<78x128xf32>
    %371 = arith.addf %365, %370 : vector<78x128xf32>
    %372 = vector.extract_strided_slice %334 {offsets = [0, 6], sizes = [78, 1], strides = [1, 1]} : vector<78x32xf32> to vector<78x1xf32>
    %c6 = arith.constant 6 : index
    %c0_163 = arith.constant 0 : index
    %c0_164 = arith.constant 0 : index
    %373 = vector.load %arg17[%c6, %c0_163, %c0_164] : memref<32x78x128xf32, #tpu.memory_space<vmem>>, vector<1x78x128xf32>
    %374 = vector.shape_cast %373 : vector<1x78x128xf32> to vector<78x128xf32>
    %375 = vector.broadcast %372 : vector<78x1xf32> to vector<78x128xf32>
    %376 = arith.mulf %375, %374 : vector<78x128xf32>
    %377 = arith.addf %371, %376 : vector<78x128xf32>
    %378 = vector.extract_strided_slice %334 {offsets = [0, 7], sizes = [78, 1], strides = [1, 1]} : vector<78x32xf32> to vector<78x1xf32>
    %c7 = arith.constant 7 : index
    %c0_165 = arith.constant 0 : index
    %c0_166 = arith.constant 0 : index
    %379 = vector.load %arg17[%c7, %c0_165, %c0_166] : memref<32x78x128xf32, #tpu.memory_space<vmem>>, vector<1x78x128xf32>
    %380 = vector.shape_cast %379 : vector<1x78x128xf32> to vector<78x128xf32>
    %381 = vector.broadcast %378 : vector<78x1xf32> to vector<78x128xf32>
    %382 = arith.mulf %381, %380 : vector<78x128xf32>
    %383 = arith.addf %377, %382 : vector<78x128xf32>
    %384 = vector.extract_strided_slice %334 {offsets = [0, 8], sizes = [78, 1], strides = [1, 1]} : vector<78x32xf32> to vector<78x1xf32>
    %c8 = arith.constant 8 : index
    %c0_167 = arith.constant 0 : index
    %c0_168 = arith.constant 0 : index
    %385 = vector.load %arg17[%c8, %c0_167, %c0_168] : memref<32x78x128xf32, #tpu.memory_space<vmem>>, vector<1x78x128xf32>
    %386 = vector.shape_cast %385 : vector<1x78x128xf32> to vector<78x128xf32>
    %387 = vector.broadcast %384 : vector<78x1xf32> to vector<78x128xf32>
    %388 = arith.mulf %387, %386 : vector<78x128xf32>
    %389 = arith.addf %383, %388 : vector<78x128xf32>
    %390 = vector.extract_strided_slice %334 {offsets = [0, 9], sizes = [78, 1], strides = [1, 1]} : vector<78x32xf32> to vector<78x1xf32>
    %c9 = arith.constant 9 : index
    %c0_169 = arith.constant 0 : index
    %c0_170 = arith.constant 0 : index
    %391 = vector.load %arg17[%c9, %c0_169, %c0_170] : memref<32x78x128xf32, #tpu.memory_space<vmem>>, vector<1x78x128xf32>
    %392 = vector.shape_cast %391 : vector<1x78x128xf32> to vector<78x128xf32>
    %393 = vector.broadcast %390 : vector<78x1xf32> to vector<78x128xf32>
    %394 = arith.mulf %393, %392 : vector<78x128xf32>
    %395 = arith.addf %389, %394 : vector<78x128xf32>
    %396 = vector.extract_strided_slice %334 {offsets = [0, 10], sizes = [78, 1], strides = [1, 1]} : vector<78x32xf32> to vector<78x1xf32>
    %c10 = arith.constant 10 : index
    %c0_171 = arith.constant 0 : index
    %c0_172 = arith.constant 0 : index
    %397 = vector.load %arg17[%c10, %c0_171, %c0_172] : memref<32x78x128xf32, #tpu.memory_space<vmem>>, vector<1x78x128xf32>
    %398 = vector.shape_cast %397 : vector<1x78x128xf32> to vector<78x128xf32>
    %399 = vector.broadcast %396 : vector<78x1xf32> to vector<78x128xf32>
    %400 = arith.mulf %399, %398 : vector<78x128xf32>
    %401 = arith.addf %395, %400 : vector<78x128xf32>
    %402 = vector.extract_strided_slice %334 {offsets = [0, 11], sizes = [78, 1], strides = [1, 1]} : vector<78x32xf32> to vector<78x1xf32>
    %c11 = arith.constant 11 : index
    %c0_173 = arith.constant 0 : index
    %c0_174 = arith.constant 0 : index
    %403 = vector.load %arg17[%c11, %c0_173, %c0_174] : memref<32x78x128xf32, #tpu.memory_space<vmem>>, vector<1x78x128xf32>
    %404 = vector.shape_cast %403 : vector<1x78x128xf32> to vector<78x128xf32>
    %405 = vector.broadcast %402 : vector<78x1xf32> to vector<78x128xf32>
    %406 = arith.mulf %405, %404 : vector<78x128xf32>
    %407 = arith.addf %401, %406 : vector<78x128xf32>
    %408 = vector.extract_strided_slice %334 {offsets = [0, 12], sizes = [78, 1], strides = [1, 1]} : vector<78x32xf32> to vector<78x1xf32>
    %c12 = arith.constant 12 : index
    %c0_175 = arith.constant 0 : index
    %c0_176 = arith.constant 0 : index
    %409 = vector.load %arg17[%c12, %c0_175, %c0_176] : memref<32x78x128xf32, #tpu.memory_space<vmem>>, vector<1x78x128xf32>
    %410 = vector.shape_cast %409 : vector<1x78x128xf32> to vector<78x128xf32>
    %411 = vector.broadcast %408 : vector<78x1xf32> to vector<78x128xf32>
    %412 = arith.mulf %411, %410 : vector<78x128xf32>
    %413 = arith.addf %407, %412 : vector<78x128xf32>
    %414 = vector.extract_strided_slice %334 {offsets = [0, 13], sizes = [78, 1], strides = [1, 1]} : vector<78x32xf32> to vector<78x1xf32>
    %c13 = arith.constant 13 : index
    %c0_177 = arith.constant 0 : index
    %c0_178 = arith.constant 0 : index
    %415 = vector.load %arg17[%c13, %c0_177, %c0_178] : memref<32x78x128xf32, #tpu.memory_space<vmem>>, vector<1x78x128xf32>
    %416 = vector.shape_cast %415 : vector<1x78x128xf32> to vector<78x128xf32>
    %417 = vector.broadcast %414 : vector<78x1xf32> to vector<78x128xf32>
    %418 = arith.mulf %417, %416 : vector<78x128xf32>
    %419 = arith.addf %413, %418 : vector<78x128xf32>
    %420 = vector.extract_strided_slice %334 {offsets = [0, 14], sizes = [78, 1], strides = [1, 1]} : vector<78x32xf32> to vector<78x1xf32>
    %c14 = arith.constant 14 : index
    %c0_179 = arith.constant 0 : index
    %c0_180 = arith.constant 0 : index
    %421 = vector.load %arg17[%c14, %c0_179, %c0_180] : memref<32x78x128xf32, #tpu.memory_space<vmem>>, vector<1x78x128xf32>
    %422 = vector.shape_cast %421 : vector<1x78x128xf32> to vector<78x128xf32>
    %423 = vector.broadcast %420 : vector<78x1xf32> to vector<78x128xf32>
    %424 = arith.mulf %423, %422 : vector<78x128xf32>
    %425 = arith.addf %419, %424 : vector<78x128xf32>
    %426 = vector.extract_strided_slice %334 {offsets = [0, 15], sizes = [78, 1], strides = [1, 1]} : vector<78x32xf32> to vector<78x1xf32>
    %c15 = arith.constant 15 : index
    %c0_181 = arith.constant 0 : index
    %c0_182 = arith.constant 0 : index
    %427 = vector.load %arg17[%c15, %c0_181, %c0_182] : memref<32x78x128xf32, #tpu.memory_space<vmem>>, vector<1x78x128xf32>
    %428 = vector.shape_cast %427 : vector<1x78x128xf32> to vector<78x128xf32>
    %429 = vector.broadcast %426 : vector<78x1xf32> to vector<78x128xf32>
    %430 = arith.mulf %429, %428 : vector<78x128xf32>
    %431 = arith.addf %425, %430 : vector<78x128xf32>
    %432 = vector.extract_strided_slice %334 {offsets = [0, 16], sizes = [78, 1], strides = [1, 1]} : vector<78x32xf32> to vector<78x1xf32>
    %c16 = arith.constant 16 : index
    %c0_183 = arith.constant 0 : index
    %c0_184 = arith.constant 0 : index
    %433 = vector.load %arg17[%c16, %c0_183, %c0_184] : memref<32x78x128xf32, #tpu.memory_space<vmem>>, vector<1x78x128xf32>
    %434 = vector.shape_cast %433 : vector<1x78x128xf32> to vector<78x128xf32>
    %435 = vector.broadcast %432 : vector<78x1xf32> to vector<78x128xf32>
    %436 = arith.mulf %435, %434 : vector<78x128xf32>
    %437 = arith.addf %431, %436 : vector<78x128xf32>
    %438 = vector.extract_strided_slice %334 {offsets = [0, 17], sizes = [78, 1], strides = [1, 1]} : vector<78x32xf32> to vector<78x1xf32>
    %c17 = arith.constant 17 : index
    %c0_185 = arith.constant 0 : index
    %c0_186 = arith.constant 0 : index
    %439 = vector.load %arg17[%c17, %c0_185, %c0_186] : memref<32x78x128xf32, #tpu.memory_space<vmem>>, vector<1x78x128xf32>
    %440 = vector.shape_cast %439 : vector<1x78x128xf32> to vector<78x128xf32>
    %441 = vector.broadcast %438 : vector<78x1xf32> to vector<78x128xf32>
    %442 = arith.mulf %441, %440 : vector<78x128xf32>
    %443 = arith.addf %437, %442 : vector<78x128xf32>
    %444 = vector.extract_strided_slice %334 {offsets = [0, 18], sizes = [78, 1], strides = [1, 1]} : vector<78x32xf32> to vector<78x1xf32>
    %c18 = arith.constant 18 : index
    %c0_187 = arith.constant 0 : index
    %c0_188 = arith.constant 0 : index
    %445 = vector.load %arg17[%c18, %c0_187, %c0_188] : memref<32x78x128xf32, #tpu.memory_space<vmem>>, vector<1x78x128xf32>
    %446 = vector.shape_cast %445 : vector<1x78x128xf32> to vector<78x128xf32>
    %447 = vector.broadcast %444 : vector<78x1xf32> to vector<78x128xf32>
    %448 = arith.mulf %447, %446 : vector<78x128xf32>
    %449 = arith.addf %443, %448 : vector<78x128xf32>
    %450 = vector.extract_strided_slice %334 {offsets = [0, 19], sizes = [78, 1], strides = [1, 1]} : vector<78x32xf32> to vector<78x1xf32>
    %c19 = arith.constant 19 : index
    %c0_189 = arith.constant 0 : index
    %c0_190 = arith.constant 0 : index
    %451 = vector.load %arg17[%c19, %c0_189, %c0_190] : memref<32x78x128xf32, #tpu.memory_space<vmem>>, vector<1x78x128xf32>
    %452 = vector.shape_cast %451 : vector<1x78x128xf32> to vector<78x128xf32>
    %453 = vector.broadcast %450 : vector<78x1xf32> to vector<78x128xf32>
    %454 = arith.mulf %453, %452 : vector<78x128xf32>
    %455 = arith.addf %449, %454 : vector<78x128xf32>
    %456 = vector.extract_strided_slice %334 {offsets = [0, 20], sizes = [78, 1], strides = [1, 1]} : vector<78x32xf32> to vector<78x1xf32>
    %c20 = arith.constant 20 : index
    %c0_191 = arith.constant 0 : index
    %c0_192 = arith.constant 0 : index
    %457 = vector.load %arg17[%c20, %c0_191, %c0_192] : memref<32x78x128xf32, #tpu.memory_space<vmem>>, vector<1x78x128xf32>
    %458 = vector.shape_cast %457 : vector<1x78x128xf32> to vector<78x128xf32>
    %459 = vector.broadcast %456 : vector<78x1xf32> to vector<78x128xf32>
    %460 = arith.mulf %459, %458 : vector<78x128xf32>
    %461 = arith.addf %455, %460 : vector<78x128xf32>
    %462 = vector.extract_strided_slice %334 {offsets = [0, 21], sizes = [78, 1], strides = [1, 1]} : vector<78x32xf32> to vector<78x1xf32>
    %c21 = arith.constant 21 : index
    %c0_193 = arith.constant 0 : index
    %c0_194 = arith.constant 0 : index
    %463 = vector.load %arg17[%c21, %c0_193, %c0_194] : memref<32x78x128xf32, #tpu.memory_space<vmem>>, vector<1x78x128xf32>
    %464 = vector.shape_cast %463 : vector<1x78x128xf32> to vector<78x128xf32>
    %465 = vector.broadcast %462 : vector<78x1xf32> to vector<78x128xf32>
    %466 = arith.mulf %465, %464 : vector<78x128xf32>
    %467 = arith.addf %461, %466 : vector<78x128xf32>
    %468 = vector.extract_strided_slice %334 {offsets = [0, 22], sizes = [78, 1], strides = [1, 1]} : vector<78x32xf32> to vector<78x1xf32>
    %c22 = arith.constant 22 : index
    %c0_195 = arith.constant 0 : index
    %c0_196 = arith.constant 0 : index
    %469 = vector.load %arg17[%c22, %c0_195, %c0_196] : memref<32x78x128xf32, #tpu.memory_space<vmem>>, vector<1x78x128xf32>
    %470 = vector.shape_cast %469 : vector<1x78x128xf32> to vector<78x128xf32>
    %471 = vector.broadcast %468 : vector<78x1xf32> to vector<78x128xf32>
    %472 = arith.mulf %471, %470 : vector<78x128xf32>
    %473 = arith.addf %467, %472 : vector<78x128xf32>
    %474 = vector.extract_strided_slice %334 {offsets = [0, 23], sizes = [78, 1], strides = [1, 1]} : vector<78x32xf32> to vector<78x1xf32>
    %c23 = arith.constant 23 : index
    %c0_197 = arith.constant 0 : index
    %c0_198 = arith.constant 0 : index
    %475 = vector.load %arg17[%c23, %c0_197, %c0_198] : memref<32x78x128xf32, #tpu.memory_space<vmem>>, vector<1x78x128xf32>
    %476 = vector.shape_cast %475 : vector<1x78x128xf32> to vector<78x128xf32>
    %477 = vector.broadcast %474 : vector<78x1xf32> to vector<78x128xf32>
    %478 = arith.mulf %477, %476 : vector<78x128xf32>
    %479 = arith.addf %473, %478 : vector<78x128xf32>
    %480 = vector.extract_strided_slice %334 {offsets = [0, 24], sizes = [78, 1], strides = [1, 1]} : vector<78x32xf32> to vector<78x1xf32>
    %c24 = arith.constant 24 : index
    %c0_199 = arith.constant 0 : index
    %c0_200 = arith.constant 0 : index
    %481 = vector.load %arg17[%c24, %c0_199, %c0_200] : memref<32x78x128xf32, #tpu.memory_space<vmem>>, vector<1x78x128xf32>
    %482 = vector.shape_cast %481 : vector<1x78x128xf32> to vector<78x128xf32>
    %483 = vector.broadcast %480 : vector<78x1xf32> to vector<78x128xf32>
    %484 = arith.mulf %483, %482 : vector<78x128xf32>
    %485 = arith.addf %479, %484 : vector<78x128xf32>
    %486 = vector.extract_strided_slice %334 {offsets = [0, 25], sizes = [78, 1], strides = [1, 1]} : vector<78x32xf32> to vector<78x1xf32>
    %c25 = arith.constant 25 : index
    %c0_201 = arith.constant 0 : index
    %c0_202 = arith.constant 0 : index
    %487 = vector.load %arg17[%c25, %c0_201, %c0_202] : memref<32x78x128xf32, #tpu.memory_space<vmem>>, vector<1x78x128xf32>
    %488 = vector.shape_cast %487 : vector<1x78x128xf32> to vector<78x128xf32>
    %489 = vector.broadcast %486 : vector<78x1xf32> to vector<78x128xf32>
    %490 = arith.mulf %489, %488 : vector<78x128xf32>
    %491 = arith.addf %485, %490 : vector<78x128xf32>
    %492 = vector.extract_strided_slice %334 {offsets = [0, 26], sizes = [78, 1], strides = [1, 1]} : vector<78x32xf32> to vector<78x1xf32>
    %c26 = arith.constant 26 : index
    %c0_203 = arith.constant 0 : index
    %c0_204 = arith.constant 0 : index
    %493 = vector.load %arg17[%c26, %c0_203, %c0_204] : memref<32x78x128xf32, #tpu.memory_space<vmem>>, vector<1x78x128xf32>
    %494 = vector.shape_cast %493 : vector<1x78x128xf32> to vector<78x128xf32>
    %495 = vector.broadcast %492 : vector<78x1xf32> to vector<78x128xf32>
    %496 = arith.mulf %495, %494 : vector<78x128xf32>
    %497 = arith.addf %491, %496 : vector<78x128xf32>
    %498 = vector.extract_strided_slice %334 {offsets = [0, 27], sizes = [78, 1], strides = [1, 1]} : vector<78x32xf32> to vector<78x1xf32>
    %c27 = arith.constant 27 : index
    %c0_205 = arith.constant 0 : index
    %c0_206 = arith.constant 0 : index
    %499 = vector.load %arg17[%c27, %c0_205, %c0_206] : memref<32x78x128xf32, #tpu.memory_space<vmem>>, vector<1x78x128xf32>
    %500 = vector.shape_cast %499 : vector<1x78x128xf32> to vector<78x128xf32>
    %501 = vector.broadcast %498 : vector<78x1xf32> to vector<78x128xf32>
    %502 = arith.mulf %501, %500 : vector<78x128xf32>
    %503 = arith.addf %497, %502 : vector<78x128xf32>
    %504 = vector.extract_strided_slice %334 {offsets = [0, 28], sizes = [78, 1], strides = [1, 1]} : vector<78x32xf32> to vector<78x1xf32>
    %c28 = arith.constant 28 : index
    %c0_207 = arith.constant 0 : index
    %c0_208 = arith.constant 0 : index
    %505 = vector.load %arg17[%c28, %c0_207, %c0_208] : memref<32x78x128xf32, #tpu.memory_space<vmem>>, vector<1x78x128xf32>
    %506 = vector.shape_cast %505 : vector<1x78x128xf32> to vector<78x128xf32>
    %507 = vector.broadcast %504 : vector<78x1xf32> to vector<78x128xf32>
    %508 = arith.mulf %507, %506 : vector<78x128xf32>
    %509 = arith.addf %503, %508 : vector<78x128xf32>
    %510 = vector.extract_strided_slice %334 {offsets = [0, 29], sizes = [78, 1], strides = [1, 1]} : vector<78x32xf32> to vector<78x1xf32>
    %c29 = arith.constant 29 : index
    %c0_209 = arith.constant 0 : index
    %c0_210 = arith.constant 0 : index
    %511 = vector.load %arg17[%c29, %c0_209, %c0_210] : memref<32x78x128xf32, #tpu.memory_space<vmem>>, vector<1x78x128xf32>
    %512 = vector.shape_cast %511 : vector<1x78x128xf32> to vector<78x128xf32>
    %513 = vector.broadcast %510 : vector<78x1xf32> to vector<78x128xf32>
    %514 = arith.mulf %513, %512 : vector<78x128xf32>
    %515 = arith.addf %509, %514 : vector<78x128xf32>
    %516 = vector.extract_strided_slice %334 {offsets = [0, 30], sizes = [78, 1], strides = [1, 1]} : vector<78x32xf32> to vector<78x1xf32>
    %c30 = arith.constant 30 : index
    %c0_211 = arith.constant 0 : index
    %c0_212 = arith.constant 0 : index
    %517 = vector.load %arg17[%c30, %c0_211, %c0_212] : memref<32x78x128xf32, #tpu.memory_space<vmem>>, vector<1x78x128xf32>
    %518 = vector.shape_cast %517 : vector<1x78x128xf32> to vector<78x128xf32>
    %519 = vector.broadcast %516 : vector<78x1xf32> to vector<78x128xf32>
    %520 = arith.mulf %519, %518 : vector<78x128xf32>
    %521 = arith.addf %515, %520 : vector<78x128xf32>
    %522 = vector.extract_strided_slice %334 {offsets = [0, 31], sizes = [78, 1], strides = [1, 1]} : vector<78x32xf32> to vector<78x1xf32>
    %c31 = arith.constant 31 : index
    %c0_213 = arith.constant 0 : index
    %c0_214 = arith.constant 0 : index
    %523 = vector.load %arg17[%c31, %c0_213, %c0_214] : memref<32x78x128xf32, #tpu.memory_space<vmem>>, vector<1x78x128xf32>
    %524 = vector.shape_cast %523 : vector<1x78x128xf32> to vector<78x128xf32>
    %525 = vector.broadcast %522 : vector<78x1xf32> to vector<78x128xf32>
    %526 = arith.mulf %525, %524 : vector<78x128xf32>
    %527 = arith.addf %521, %526 : vector<78x128xf32>
    %cst_215 = arith.constant dense<0.000000e+00> : vector<128xf32>
    %528 = vector.multi_reduction <add>, %527, %cst_215 [0] : vector<78x128xf32> to vector<128xf32>
    %529 = vector.shape_cast %528 : vector<128xf32> to vector<1x128xf32>
    %c0_216 = arith.constant 0 : index
    %c0_217 = arith.constant 0 : index
    %530 = vector.load %arg18[%c0_216, %c0_217] : memref<1x128xf32, #tpu.memory_space<vmem>>, vector<1x128xf32>
    %531 = arith.addf %529, %530 : vector<1x128xf32>
    %532 = tpu.iota {dimensions = array<i32: 1>} : vector<1x128xi32>
    %c5_i32 = arith.constant 5 : i32
    %533 = vector.broadcast %c5_i32 : i32 to vector<1x128xi32>
    %534 = arith.cmpi slt, %532, %533 : vector<1x128xi32>
    %cst_218 = arith.constant 0xFF800000 : f32
    %535 = vector.broadcast %cst_218 : f32 to vector<1x128xf32>
    %536 = arith.select %534, %531, %535 : vector<1x128xi1>, vector<1x128xf32>
    %cst_219 = arith.constant dense<0xFF800000> : vector<1xf32>
    %537 = vector.multi_reduction <maximumf>, %536, %cst_219 [1] : vector<1x128xf32> to vector<1xf32>
    %538 = vector.shape_cast %537 : vector<1xf32> to vector<1x1xf32>
    %539 = vector.broadcast %538 : vector<1x1xf32> to vector<1x128xf32>
    %540 = arith.subf %536, %539 : vector<1x128xf32>
    %541 = math.exp %540 : vector<1x128xf32>
    %cst_220 = arith.constant dense<0.000000e+00> : vector<1xf32>
    %542 = vector.multi_reduction <add>, %541, %cst_220 [1] : vector<1x128xf32> to vector<1xf32>
    %543 = vector.shape_cast %542 : vector<1xf32> to vector<1x1xf32>
    %544 = vector.broadcast %543 : vector<1x1xf32> to vector<1x128xf32>
    %545 = arith.divf %541, %544 : vector<1x128xf32>
    %c0_221 = arith.constant 0 : index
    %c0_222 = arith.constant 0 : index
    %c0_223 = arith.constant 0 : index
    %546 = vector.load %arg19[%c0_221, %c0_222, %c0_223] : memref<1x1x128xf32, #tpu.memory_space<vmem>>, vector<1x1x128xf32>
    %547 = vector.shape_cast %546 : vector<1x1x128xf32> to vector<1x128xf32>
    %548 = vector.shape_cast %545 : vector<1x128xf32> to vector<1x1x128xf32>
    tpu.vector_store %arg19[%c0_221, %c0_222, %c0_223], %548 {strides = array<i32>} : memref<1x1x128xf32, #tpu.memory_space<vmem>>, vector<1x1x128xf32>,
    return
  }
  func.func @transform_0(%arg0: i32) -> (i32, i32, i32) {
    %c0_i32 = arith.constant 0 : i32
    %c0_i32_0 = arith.constant 0 : i32
    %c0_i32_1 = arith.constant 0 : i32
    return %arg0, %c0_i32, %c0_i32_0 : i32, i32, i32
  }
  func.func @transform_1(%arg0: i32) -> (i32, i32) {
    %c0_i32 = arith.constant 0 : i32
    %c0_i32_0 = arith.constant 0 : i32
    %c0_i32_1 = arith.constant 0 : i32
    return %c0_i32, %c0_i32_0 : i32, i32
  }
  func.func @transform_2(%arg0: i32) -> (i32, i32, i32) {
    %c0_i32 = arith.constant 0 : i32
    %c0_i32_0 = arith.constant 0 : i32
    %c0_i32_1 = arith.constant 0 : i32
    %c0_i32_2 = arith.constant 0 : i32
    return %c0_i32, %c0_i32_0, %c0_i32_1 : i32, i32, i32
  }
  func.func @transform_3(%arg0: i32) -> (i32, i32, i32) {
    %c0_i32 = arith.constant 0 : i32
    %c0_i32_0 = arith.constant 0 : i32
    %c0_i32_1 = arith.constant 0 : i32
    %c0_i32_2 = arith.constant 0 : i32
    return %c0_i32, %c0_i32_0, %c0_i32_1 : i32, i32, i32
  }
  func.func @transform_4(%arg0: i32) -> (i32, i32, i32) {
    %c0_i32 = arith.constant 0 : i32
    %c0_i32_0 = arith.constant 0 : i32
    %c0_i32_1 = arith.constant 0 : i32
    %c0_i32_2 = arith.constant 0 : i32
    return %c0_i32, %c0_i32_0, %c0_i32_1 : i32, i32, i32
  }
  func.func @transform_5(%arg0: i32) -> (i32, i32, i32) {
    %c0_i32 = arith.constant 0 : i32
    %c0_i32_0 = arith.constant 0 : i32
    %c0_i32_1 = arith.constant 0 : i32
    %c0_i32_2 = arith.constant 0 : i32
    return %c0_i32, %c0_i32_0, %c0_i32_1 : i32, i32, i32
  }
  func.func @transform_6(%arg0: i32) -> (i32, i32, i32) {
    %c0_i32 = arith.constant 0 : i32
    %c0_i32_0 = arith.constant 0 : i32
    %c0_i32_1 = arith.constant 0 : i32
    %c0_i32_2 = arith.constant 0 : i32
    return %c0_i32, %c0_i32_0, %c0_i32_1 : i32, i32, i32
  }
  func.func @transform_7(%arg0: i32) -> (i32, i32, i32) {
    %c0_i32 = arith.constant 0 : i32
    %c0_i32_0 = arith.constant 0 : i32
    %c0_i32_1 = arith.constant 0 : i32
    %c0_i32_2 = arith.constant 0 : i32
    return %c0_i32, %c0_i32_0, %c0_i32_1 : i32, i32, i32
  }
  func.func @transform_8(%arg0: i32) -> (i32, i32, i32) {
    %c0_i32 = arith.constant 0 : i32
    %c0_i32_0 = arith.constant 0 : i32
    %c0_i32_1 = arith.constant 0 : i32
    %c0_i32_2 = arith.constant 0 : i32
    return %c0_i32, %c0_i32_0, %c0_i32_1 : i32, i32, i32
  }
  func.func @transform_9(%arg0: i32) -> (i32, i32, i32) {
    %c0_i32 = arith.constant 0 : i32
    %c0_i32_0 = arith.constant 0 : i32
    %c0_i32_1 = arith.constant 0 : i32
    %c0_i32_2 = arith.constant 0 : i32
    return %c0_i32, %c0_i32_0, %c0_i32_1 : i32, i32, i32
  }
  func.func @transform_10(%arg0: i32) -> (i32, i32, i32) {
    %c0_i32 = arith.constant 0 : i32
    %c0_i32_0 = arith.constant 0 : i32
    %c0_i32_1 = arith.constant 0 : i32
    %c0_i32_2 = arith.constant 0 : i32
    return %c0_i32, %c0_i32_0, %c0_i32_1 : i32, i32, i32
  }
  func.func @transform_11(%arg0: i32) -> (i32, i32, i32) {
    %c0_i32 = arith.constant 0 : i32
    %c0_i32_0 = arith.constant 0 : i32
    %c0_i32_1 = arith.constant 0 : i32
    %c0_i32_2 = arith.constant 0 : i32
    return %c0_i32, %c0_i32_0, %c0_i32_1 : i32, i32, i32
  }
  func.func @transform_12(%arg0: i32) -> (i32, i32, i32) {
    %c0_i32 = arith.constant 0 : i32
    %c0_i32_0 = arith.constant 0 : i32
    %c0_i32_1 = arith.constant 0 : i32
    %c0_i32_2 = arith.constant 0 : i32
    return %c0_i32, %c0_i32_0, %c0_i32_1 : i32, i32, i32
  }
  func.func @transform_13(%arg0: i32) -> (i32, i32, i32) {
    %c0_i32 = arith.constant 0 : i32
    %c0_i32_0 = arith.constant 0 : i32
    %c0_i32_1 = arith.constant 0 : i32
    %c0_i32_2 = arith.constant 0 : i32
    return %c0_i32, %c0_i32_0, %c0_i32_1 : i32, i32, i32
  }
  func.func @transform_14(%arg0: i32) -> (i32, i32) {
    %c0_i32 = arith.constant 0 : i32
    %c0_i32_0 = arith.constant 0 : i32
    %c0_i32_1 = arith.constant 0 : i32
    return %c0_i32, %c0_i32_0 : i32, i32
  }
  func.func @transform_15(%arg0: i32) -> (i32, i32) {
    %c0_i32 = arith.constant 0 : i32
    %c0_i32_0 = arith.constant 0 : i32
    %c0_i32_1 = arith.constant 0 : i32
    return %c0_i32, %c0_i32_0 : i32, i32
  }
  func.func @transform_16(%arg0: i32) -> (i32, i32, i32) {
    %c0_i32 = arith.constant 0 : i32
    %c0_i32_0 = arith.constant 0 : i32
    %c0_i32_1 = arith.constant 0 : i32
    %c0_i32_2 = arith.constant 0 : i32
    return %c0_i32, %c0_i32_0, %c0_i32_1 : i32, i32, i32
  }
  func.func @transform_17(%arg0: i32) -> (i32, i32) {
    %c0_i32 = arith.constant 0 : i32
    %c0_i32_0 = arith.constant 0 : i32
    %c0_i32_1 = arith.constant 0 : i32
    return %c0_i32, %c0_i32_0 : i32, i32
  }
  func.func @transform_18(%arg0: i32) -> (i32, i32, i32) {
    %c0_i32 = arith.constant 0 : i32
    %c0_i32_0 = arith.constant 0 : i32
    %c0_i32_1 = arith.constant 0 : i32
    return %arg0, %c0_i32, %c0_i32_0 : i32, i32, i32
  }
}

</mosaic_0001>

<bundles_post_ra>
// kernel: ids_encoder_only_forward.1
= control target key start
LH: loop header
LB: loop body
LE: loop exit
PB: predicated region body
PF: predicated region fallthrough
CT: control target
= control target key end

     0   :  { %s18829_s0 = inlined_call_operand.vmem [shape: f32[2,78,32], index: 0, kind: input, shape index: {}]   ;;  %s18830_s1 = inlined_call_operand.vmem [shape: f32[78,32], index: 1, kind: input, shape index: {}]   ;;  %s18831_s2 = inlined_call_operand.vmem [shape: f32[2,32,96], index: 2, kind: input, shape index: {}]   ;;  %s18832_s3 = inlined_call_operand.vmem [shape: f32[2,1,96], index: 3, kind: input, shape index: {}]   ;;  %s18833_s4 = inlined_call_operand.vmem [shape: f32[2,32,32], index: 4, kind: input, shape index: {}]   ;;  %s18834_s5 = inlined_call_operand.vmem [shape: f32[2,1,32], index: 5, kind: input, shape index: {}]   ;;  %s18835_s6 = inlined_call_operand.vmem [shape: f32[2,1,32], index: 6, kind: input, shape index: {}]   ;;  %s18836_s7 = inlined_call_operand.vmem [shape: f32[2,1,32], index: 7, kind: input, shape index: {}]   ;;  %s18837_s8 = inlined_call_operand.vmem [shape: f32[2,1,32], index: 8, kind: input, shape index: {}]   ;;  %s18838_s9 = inlined_call_operand.vmem [shape: f32[2,1,32], index: 9, kind: input, shape index: {}]   ;;  %s18839_s10 = inlined_call_operand.vmem [shape: f32[2,32,64], index: 10, kind: input, shape index: {}]   ;;  %s18840_s11 = inlined_call_operand.vmem [shape: f32[2,1,64], index: 11, kind: input, shape index: {}]   ;;  %s18841_s12 = inlined_call_operand.vmem [shape: f32[2,64,32], index: 12, kind: input, shape index: {}]   ;;  %s18842_s13 = inlined_call_operand.vmem [shape: f32[2,1,32], index: 13, kind: input, shape index: {}]   ;;  %s18843_s14 = inlined_call_operand.vmem [shape: f32[1,32], index: 14, kind: input, shape index: {}]   ;;  %s18844_s15 = inlined_call_operand.vmem [shape: f32[1,32], index: 15, kind: input, shape index: {}]   ;;  %s18845_s16 = inlined_call_operand.vmem [shape: f32[32,78,128], index: 16, kind: input, shape index: {}]   ;;  %s18846_s17 = inlined_call_operand.vmem [shape: f32[1,128], index: 17, kind: input, shape index: {}]   ;;  %s18847_s18 = inlined_call_operand.hbm [shape: f32[2,1,128], index: 18, kind: output, shape index: {}]  }
   0x1   :  { %18980 = sst [smem:[#allocation177_spill]] %s18829_s0 }
   0x2   :  { %18981 = sst [smem:[#allocation178_spill]] %s18830_s1 }
   0x3   :  { %18982 = sst [smem:[#allocation179_spill]] %s18831_s2 }
   0x4   :  { %23 = vsyncpa [#allocation3], 0 }
   0x5   :  { %25 = vsyncpa [#allocation3 + $0x1], 0  ;;  %s13604_s27 = smov 0   ;;  %s13606_s28 = smov 0  }
   0x6   :  { %s13608_s29 = smov 0   ;;  %s13610_s30 = smov 0  }
   0x7 LB: > { %18983 = sst [smem:[#allocation5_spill]] %s13447_s27  ;;  %s13625_s0 = sadd.s32 4294967295, %s13459_s30   ;;  %s13459_s30 = sphi %s13610_s30, %s19447_s30   ;;  %s13455_s29 = sphi %s13608_s29, %s19449_s29   ;;  %s13451_s28 = sphi %s13606_s28, %s19451_s28   ;;  %s13447_s27 = sphi %s13604_s27, %s19450_s27  }
   0x8   : > { %18984 = sst [smem:[#allocation6_spill]] %s13455_s29  ;;  %s9674_s19 = sadd.s32 4294967294, %s13459_s30  }
   0x9   : > { %18985 = sst [smem:[#allocation7_spill]] %s13459_s30  ;;  %s13629_s1 = sadd.s32 1, %s13459_s30  }
   0xa   : > { %18986 = sst [smem:[#allocation8_spill]] %s13629_s1  ;;  %s421_s20 = sadd.s32 1, %s13455_s29 }
   0xb   : > { %s418_s21 = ssub.s32 %s13459_s30, %s13629_s1  ;;  %p431_p0 = scmp.ne.s32.totalorder %s13455_s29, %s13451_s28 }
   0xc   : > { %p419_p1 = scmp.eq.s32.totalorder %s418_s21, 0  ;;  %p432_p2 = scmp.eq.s32.totalorder %s13625_s0, 1 }
   0xd   : > { %p437_p3 = scmp.ne.s32.totalorder %s13451_s28, %s13447_s27  ;;  %p438_p4 = scmp.eq.s32.totalorder %s9674_s19, 1 }
   0xe   : > { %s13640_s22 = scalar_select %p419_p1, %s13455_s29, %s421_s20  }
   0xf   : > { %p13642_p5 = por %p432_p2, %p431_p0  ;;  %p13646_p6 = por %p438_p4, %p437_p3 }
  0x10   : > { %18987 = sst [smem:[#allocation9_spill]] %s13640_s22  ;;  %p9677_p7 = scmp.ge.s32.totalorder %s13459_s30, 1 }
  0x11   : > { %s18989_s23 = scalar_select %p13646_p6, 1, 0 }
  0x12   : > { %p515_p8 = scmp.lt.s32.totalorder %s13459_s30, 3 }
  0x13   : > { %18990 = sst [smem:[#allocation10_spill]] %s18989_s23 }
  0x14   : > { %p516_p9 = pnand %p9677_p7, %p515_p8 }
  0x16   : > { %519 = sbr.rel (%p516_p9) target bundleno = 10665 (0x29a9), region = 92 }
  0x1d   : > { %p568_p10 = scmp.lt.s32.totalorder %s13625_s0, 1  ;;  %s18991_s20 = sld [smem:[#allocation177_spill]]  ;;  %vm615_vm0 = vcmask 261120   ;;  %vm643_vm1 = vcmask 259072  }
  0x1e   : > { %s18992_s1 = sld [smem:[#allocation178_spill]]  ;;  %s18882_s29 = smov 88  }
  0x1f   : > { %s569_s24 = scalar_select %p568_p10, %s13625_s0, 1 }
  0x20   : > { %s18880_s22 = smov 120   ;;  %s18878_s27 = smov 56  }
  0x21   : > { %s12066_s25 = smul.u32 80, %s569_s24  ;;  %s18884_s24 = smov 64  }
  0x22   : > { %s18874_s30 = smov 112   ;;  %s18872_s23 = smov 48  }
  0x23   : > { %s13657_s21 = scalar_lea.vmem %s18991_s20, %s12066_s25  ;;  %s19003_s25 = sld [smem:[#allocation179_spill]] }
  0x24   : > { %v593_v0 = vld [vmem:[%s18992_s1] sm:$0xff]  ;;  %v595_v1 = vld [vmem:[%s18992_s1 + $0x10] sm:$0xff]  ;;  %v594_v2 = vld [vmem:[%s18992_s1 + $0x8] sm:$0xff]  ;;  %s18886_s20 = smov 96   ;;  %s18866_s26 = smov 72  }
  0x25   : > { %v573_v3 = vld [vmem:[%s13657_s21] sm:$0xff]  ;;  %v575_v4 = vld [vmem:[%s13657_s21 + $0x10] sm:$0xff]  ;;  %v574_v5 = vld [vmem:[%s13657_s21 + $0x8] sm:$0xff]  ;;  %s18870_s19 = smov 104  }
  0x26   : > { %v596_v6 = vld [vmem:[%s18992_s1 + $0x18] sm:$0xff]  ;;  %v583_v7 = vmul.f32 5.656854, %v573_v3  ;;  %v585_v8 = vmul.f32 5.656854, %v575_v4  ;;  %v577_v11 = vld [vmem:[%s13657_s21 + $0x20] sm:$0xff] }
  0x27   : > { %v584_v9 = vmul.f32 5.656854, %v574_v5  ;;  %v576_v10 = vld [vmem:[%s13657_s21 + $0x18] sm:$0xff]  ;;  %v578_v12 = vld [vmem:[%s13657_s21 + $0x28] sm:$0xff]  ;;  %v597_v17 = vld [vmem:[%s18992_s1 + $0x20] sm:$0xff] }
  0x28   : > { %v13677_v13 = vadd.f32 %v593_v0, %v583_v7  ;;  %v13679_v14 = vadd.f32 %v595_v1, %v585_v8  ;;  %v586_v16 = vmul.f32 5.656854, %v576_v10  ;;  %v579_v18 = vld [vmem:[%s13657_s21 + $0x30] sm:$0xff]  ;;  %v587_v19 = vmul.f32 5.656854, %v577_v11  ;;  %v598_v21 = vld [vmem:[%s18992_s1 + $0x28] sm:$0xff] }
  0x29   : > { %v13681_v15 = vadd.f32 %v594_v2, %v584_v9  ;;  %v588_v20 = vmul.f32 5.656854, %v578_v12  ;;  %v580_v22 = vld [vmem:[%s13657_s21 + $0x38] sm:$0xff]  ;;  %v589_v27 = vmul.f32 5.656854, %v579_v18  ;;  %v599_v31 = vld [vmem:[%s18992_s1 + $0x30] sm:$0xff] }
  0x2a   : > { %18993 = vst [vmem:[#allocation11_spill] sm:$0xff] %v13677_v13  ;;  %18994 = vst [vmem:[#allocation12_spill] sm:$0xff] %v13679_v14  ;;  %v616_v23 = vsel %vm615_vm0, %v13677_v13, 0.0  ;;  %v622_v24 = vsel %vm615_vm0, %v13679_v14, 0.0  ;;  %v13695_v25 = vadd.f32 %v596_v6, %v586_v16  ;;  %v13701_v29 = vadd.f32 %v597_v17, %v587_v19  ;;  %v581_v33 = vld [vmem:[%s13657_s21 + $0x40] sm:$0xff]  ;;  %v600_v34 = vld [vmem:[%s18992_s1 + $0x38] sm:$0xff] }
  0x2b   : > { %18995 = vst [vmem:[#allocation13_spill] sm:$0xff] %v13681_v15  ;;  %617 = vadd.xlane.f32.xlu0 %v616_v23  ;;  %623 = vadd.xlane.f32.xlu1 %v622_v24  ;;  %v619_v26 = vsel %vm615_vm0, %v13681_v15, 0.0  ;;  %v13703_v30 = vadd.f32 %v598_v21, %v588_v20  ;;  %v590_v32 = vmul.f32 5.656854, %v580_v22  ;;  %v582_v35 = vld [vmem:[%s13657_s21 + $0x48] sm:$0x3f]  ;;  %v13713_v36 = vadd.f32 %v599_v31, %v589_v27 }
  0x2c   : > { %18996 = vst [vmem:[#allocation14_spill] sm:$0xff] %v13695_v25  ;;  %v625_v28 = vsel %vm615_vm0, %v13695_v25, 0.0  ;;  %18997 = vst [vmem:[#allocation15_spill] sm:$0xff] %v13701_v29  ;;  %v591_v37 = vmul.f32 5.656854, %v581_v33  ;;  %v628_v38 = vsel %vm615_vm0, %v13701_v29, 0.0 }
  0x2d   : > { %18998 = vst [vmem:[#allocation16_spill] sm:$0xff] %v13703_v30  ;;  %18999 = vst [vmem:[#allocation17_spill] sm:$0xff] %v13713_v36  ;;  %v631_v39 = vsel %vm615_vm0, %v13703_v30, 0.0  ;;  %v13719_v40 = vadd.f32 %v600_v34, %v590_v32  ;;  %v592_v41 = vmul.f32 5.656854, %v582_v35  ;;  %v601_v42 = vld [vmem:[%s18992_s1 + $0x40] sm:$0xff] }
  0x2e   : > { %v602_v43 = vld [vmem:[%s18992_s1 + $0x48] sm:$0x3f]  ;;  %v634_v44 = vsel %vm615_vm0, %v13713_v36, 0.0  ;;  %v13731_v46 = vadd.f32 %v601_v42, %v591_v37  ;;  %s18876_s21 = smov 80  }
  0x2f   : > { %620 = vadd.xlane.f32.xlu0 %v619_v26  ;;  %626 = vadd.xlane.f32.xlu1 %v625_v28  ;;  %19000 = vst [vmem:[#allocation18_spill] sm:$0xff] %v13719_v40  ;;  %v637_v45 = vsel %vm615_vm0, %v13719_v40, 0.0  ;;  %v13733_v47 = vadd.f32 %v602_v43, %v592_v41 }
  0x30   : > { %19001 = vst [vmem:[#allocation19_spill] sm:$0xff] %v13731_v46  ;;  %v640_v48 = vsel %vm615_vm0, %v13731_v46, 0.0 }
  0x31   : > { %19002 = vst [vmem:[#allocation20_spill] sm:$0xff] %v13733_v47  ;;  %v644_v49 = vsel %vm643_vm1, %v13733_v47, 0.0 }
  0x33   : > { %629 = vadd.xlane.f32.xlu0 %v628_v38  ;;  %632 = vadd.xlane.f32.xlu1 %v631_v39 }
  0x37   : > { %635 = vadd.xlane.f32.xlu0 %v634_v44  ;;  %638 = vadd.xlane.f32.xlu1 %v637_v45  ;;  %v851_v44 = vld [vmem:[%s19003_s25] sm:$0xff]  ;;  %v852_v45 = vld [vmem:[%s19003_s25 + $0x8] sm:$0xff] }
  0x3b   : > { %641 = vadd.xlane.f32.xlu0 %v640_v48  ;;  %645 = vadd.xlane.f32.xlu1 %v644_v49  ;;  %v11566_v48 = vpack.c.bf16 %v852_v45, %v851_v44  ;;  %v853_v49 = vld [vmem:[%s19003_s25 + $0x10] sm:$0xff] }
  0x3d   : > { %11567 = vmatprep.subr.bf16.mxu0 %v11566_v48 }
  0x3e   : > { %11569 = vmatpush3.bf16.msra.mxu0 %v11566_v48 }
  0xb8   : > { %v618_v50 = vpop.xlane.xlu0 %617  ;;  %v624_v51 = vpop.xlane.xlu1 %623 }
  0xb9   : > { %v648_v52 = vmul.f32 0.03125, %v618_v50  ;;  %v650_v53 = vmul.f32 0.03125, %v624_v51  ;;  %v854_v50 = vld [vmem:[%s19003_s25 + $0x18] sm:$0xff] }
  0xba   : > { %v11570_v51 = vpack.c.bf16 %v854_v50, %v853_v49 }
  0xbb   : > { %v13740_v54 = vsub.f32 %v13677_v13, %v648_v52  ;;  %v13743_v55 = vsub.f32 %v13679_v14, %v650_v53 }
  0xbc   : > { %v621_v56 = vpop.xlane.xlu0 %620  ;;  %v627_v57 = vpop.xlane.xlu1 %626  ;;  %11571 = vmatprep.subr.bf16.mxu0 %v11570_v51 }
  0xbd   : > { %v649_v58 = vmul.f32 0.03125, %v621_v56  ;;  %v651_v59 = vmul.f32 0.03125, %v627_v57  ;;  %v668_v60 = vmul.f32 %v13740_v54, %v13740_v54  ;;  %v670_v61 = vmul.f32 %v13743_v55, %v13743_v55  ;;  %11573 = vmatpush3.bf16.msra.mxu0 %v11570_v51 }
  0xbf   : > { %v13750_v62 = vsub.f32 %v13681_v15, %v649_v58  ;;  %v13753_v63 = vsub.f32 %v13695_v25, %v651_v59  ;;  %v678_v0 = vsel %vm615_vm0, %v668_v60, 0.0  ;;  %v684_v5 = vsel %vm615_vm0, %v670_v61, 0.0 }
  0xc0   : > { %679 = vadd.xlane.f32.xlu0 %v678_v0  ;;  %v630_v1 = vpop.xlane.xlu0 %629  ;;  %v633_v2 = vpop.xlane.xlu1 %632 }
  0xc1   : > { %v652_v3 = vmul.f32 0.03125, %v630_v1  ;;  %v653_v4 = vmul.f32 0.03125, %v633_v2  ;;  %v669_v6 = vmul.f32 %v13750_v62, %v13750_v62  ;;  %v671_v7 = vmul.f32 %v13753_v63, %v13753_v63 }
  0xc3   : > { %v13762_v8 = vsub.f32 %v13701_v29, %v652_v3  ;;  %v13765_v9 = vsub.f32 %v13703_v30, %v653_v4  ;;  %v681_v10 = vsel %vm615_vm0, %v669_v6, 0.0  ;;  %v687_v18 = vsel %vm615_vm0, %v671_v7, 0.0 }
  0xc4   : > { %685 = vadd.xlane.f32.xlu0 %v684_v5  ;;  %v636_v11 = vpop.xlane.xlu0 %635  ;;  %v639_v12 = vpop.xlane.xlu1 %638  ;;  %682 = vadd.xlane.f32.xlu1 %v681_v10 }
  0xc5   : > { %v654_v16 = vmul.f32 0.03125, %v636_v11  ;;  %v655_v17 = vmul.f32 0.03125, %v639_v12  ;;  %v672_v19 = vmul.f32 %v13762_v8, %v13762_v8  ;;  %v673_v20 = vmul.f32 %v13765_v9, %v13765_v9 }
  0xc7   : > { %v13774_v21 = vsub.f32 %v13713_v36, %v654_v16  ;;  %v13777_v22 = vsub.f32 %v13719_v40, %v655_v17  ;;  %v690_v23 = vsel %vm615_vm0, %v672_v19, 0.0  ;;  %v693_v31 = vsel %vm615_vm0, %v673_v20, 0.0 }
  0xc8   : > { %v642_v24 = vpop.xlane.xlu0 %641  ;;  %v646_v26 = vpop.xlane.xlu1 %645  ;;  %688 = vadd.xlane.f32.xlu1 %v687_v18  ;;  %691 = vadd.xlane.f32.xlu0 %v690_v23 }
  0xc9   : > { %v656_v27 = vmul.f32 0.03125, %v642_v24  ;;  %v657_v28 = vmul.f32 0.03125, %v646_v26  ;;  %v674_v32 = vmul.f32 %v13774_v21, %v13774_v21  ;;  %v675_v33 = vmul.f32 %v13777_v22, %v13777_v22 }
  0xcb   : > { %v13786_v34 = vsub.f32 %v13731_v46, %v656_v27  ;;  %v13789_v35 = vsub.f32 %v13733_v47, %v657_v28  ;;  %v696_v37 = vsel %vm615_vm0, %v674_v32, 0.0  ;;  %v699_v39 = vsel %vm615_vm0, %v675_v33, 0.0 }
  0xcc   : > { %694 = vadd.xlane.f32.xlu1 %v693_v31  ;;  %697 = vadd.xlane.f32.xlu0 %v696_v37 }
  0xcd   : > { %v676_v38 = vmul.f32 %v13786_v34, %v13786_v34  ;;  %v677_v41 = vmul.f32 %v13789_v35, %v13789_v35 }
  0xcf   : > { %v702_v42 = vsel %vm615_vm0, %v676_v38, 0.0  ;;  %v705_v43 = vsel %vm643_vm1, %v677_v41, 0.0 }
  0xd0   : > { %700 = vadd.xlane.f32.xlu1 %v699_v39  ;;  %703 = vadd.xlane.f32.xlu0 %v702_v42 }
  0xd4   : > { %706 = vadd.xlane.f32.xlu1 %v705_v43 }
 0x14d   : > { %v680_v52 = vpop.xlane.xlu0 %679 }
 0x14e   : > { %v709_v53 = vmul.f32 0.032258064, %v680_v52 }
 0x150   : > { %12873 = vrsqrt.f32 %v709_v53  ;;  %vm721_vm2 = vcmp.eq.f32.partialorder %v709_v53, inf  ;;  %vm723_vm3 = vcmp.eq.f32.partialorder %v709_v53, 0.0  ;;  %v724_v10 = vand.u32 2147483648, %v709_v53 }
 0x151   : > { %v686_v56 = vpop.xlane.xlu0 %685  ;;  %v683_v57 = vpop.xlane.xlu1 %682 }
 0x152   : > { %v711_v58 = vmul.f32 0.032258064, %v686_v56  ;;  %v710_v59 = vmul.f32 0.032258064, %v683_v57 }
 0x154   : > { %12875 = vrsqrt.f32 %v711_v58  ;;  %vm735_vm4 = vcmp.eq.f32.partialorder %v711_v58, inf  ;;  %vm737_vm5 = vcmp.eq.f32.partialorder %v711_v58, 0.0  ;;  %vm728_vm6 = vcmp.eq.f32.partialorder %v710_v59, inf }
 0x155   : > { %12877 = vrsqrt.f32 %v710_v59  ;;  %v689_v60 = vpop.xlane.xlu1 %688  ;;  %v692_v61 = vpop.xlane.xlu0 %691  ;;  %vm730_vm7 = vcmp.eq.f32.partialorder %v710_v59, 0.0  ;;  %v738_v12 = vand.u32 2147483648, %v711_v58  ;;  %v731_v27 = vand.u32 2147483648, %v710_v59 }
 0x156   : > { %v13811_v0 = vmul.f32 0.032258064, %v689_v60  ;;  %v13813_v1 = vmul.f32 0.032258064, %v692_v61 }
 0x158   : > { %12879 = vrsqrt.f32 %v13811_v0  ;;  %vm742_vm8 = vcmp.eq.f32.partialorder %v13811_v0, inf  ;;  %vm744_vm9 = vcmp.eq.f32.partialorder %v13811_v0, 0.0  ;;  %v745_v32 = vand.u32 2147483648, %v13811_v0 }
 0x159   : > { %12881 = vrsqrt.f32 %v13813_v1  ;;  %v695_v3 = vpop.xlane.xlu1 %694  ;;  %v698_v4 = vpop.xlane.xlu0 %697  ;;  %vm749_vm10 = vcmp.eq.f32.partialorder %v13813_v1, inf  ;;  %vm751_vm11 = vcmp.eq.f32.partialorder %v13813_v1, 0.0  ;;  %v752_v39 = vand.u32 2147483648, %v13813_v1 }
 0x15a   : > { %v12874_v2 = vpop.eup %12873  ;;  %v13817_v6 = vmul.f32 0.032258064, %v695_v3  ;;  %v13819_v7 = vmul.f32 0.032258064, %v698_v4 }
 0x15b   : > { %v720_v5 = vmul.f32 %v12874_v2, %v709_v53 }
 0x15c   : > { %12883 = vrsqrt.f32 %v13817_v6  ;;  %vm756_vm12 = vcmp.eq.f32.partialorder %v13817_v6, inf  ;;  %vm758_vm13 = vcmp.eq.f32.partialorder %v13817_v6, 0.0  ;;  %v759_v50 = vand.u32 2147483648, %v13817_v6 }
 0x15d   : > { %12885 = vrsqrt.f32 %v13819_v7  ;;  %v701_v16 = vpop.xlane.xlu1 %700  ;;  %v704_v17 = vpop.xlane.xlu0 %703  ;;  %v722_v24 = vsel %vm721_vm2, %v709_v53, %v720_v5  ;;  %vm763_vm14 = vcmp.eq.f32.partialorder %v13819_v7, inf  ;;  %vm765_vm15 = vcmp.eq.f32.partialorder %v13819_v7, 0.0 }
 0x15e   : > { %v12876_v11 = vpop.eup %12875  ;;  %v13823_v20 = vmul.f32 0.032258064, %v701_v16  ;;  %v13825_v23 = vmul.f32 0.032258064, %v704_v17  ;;  %v725_v28 = vsel %vm723_vm3, %v724_v10, %v722_v24  ;;  %v766_v57 = vand.u32 2147483648, %v13819_v7 }
 0x15f   : > { %v12878_v18 = vpop.eup %12877  ;;  %v734_v19 = vmul.f32 %v12876_v11, %v711_v58  ;;  %v789_v42 = vadd.f32 1e-06, %v725_v28 }
 0x160   : > { %v727_v26 = vmul.f32 %v12878_v18, %v710_v59  ;;  %12887 = vrsqrt.f32 %v13823_v20  ;;  %vm770_vm2 = vcmp.eq.f32.partialorder %v13823_v20, inf  ;;  %vm772_vm3 = vcmp.eq.f32.partialorder %v13823_v20, 0.0 }
 0x161   : > { %v736_v31 = vsel %vm735_vm4, %v711_v58, %v734_v19  ;;  %12889 = vrsqrt.f32 %v13825_v23  ;;  %v707_v37 = vpop.xlane.xlu1 %706  ;;  %vm777_vm4 = vcmp.eq.f32.partialorder %v13825_v23, inf  ;;  %v780_v19 = vand.u32 2147483648, %v13825_v23 }
 0x162   : > { %v729_v33 = vsel %vm728_vm6, %v710_v59, %v727_v26  ;;  %v12880_v38 = vpop.eup %12879  ;;  %v13840_v41 = vmul.f32 0.032258064, %v707_v37  ;;  %v739_v48 = vsel %vm737_vm5, %v738_v12, %v736_v31  ;;  %vm779_vm5 = vcmp.eq.f32.partialorder %v13825_v23, 0.0 }
 0x163   : > { %v12882_v43 = vpop.eup %12881  ;;  %v741_v44 = vmul.f32 %v12880_v38, %v13811_v0  ;;  %v732_v45 = vsel %vm730_vm7, %v731_v27, %v729_v33  ;;  %v791_v58 = vadd.f32 1e-06, %v739_v48 }
 0x164   : > { %v748_v49 = vmul.f32 %v12882_v43, %v13813_v1  ;;  %12891 = vrsqrt.f32 %v13840_v41  ;;  %v790_v52 = vadd.f32 1e-06, %v732_v45  ;;  %vm784_vm6 = vcmp.eq.f32.partialorder %v13840_v41, inf }
 0x165   : > { %v743_v51 = vsel %vm742_vm8, %v13811_v0, %v741_v44  ;;  %12893 = vrcp.f32 %v789_v42  ;;  %v773_v0 = vand.u32 2147483648, %v13823_v20  ;;  %v787_v33 = vand.u32 2147483648, %v13840_v41 }
 0x166   : > { %v12884_v53 = vpop.eup %12883  ;;  %v750_v56 = vsel %vm749_vm10, %v13813_v1, %v748_v49  ;;  %v746_v59 = vsel %vm744_vm9, %v745_v32, %v743_v51  ;;  %12895 = vrcp.f32 %v790_v52  ;;  %v13873_v1 = vld [vmem:[%s18835_s6] ss:$0 sm:$0xff]  ;;  %vm786_vm7 = vcmp.eq.f32.partialorder %v13840_v41, 0.0 }
 0x167   : > { %v12886_v60 = vpop.eup %12885  ;;  %v755_v61 = vmul.f32 %v12884_v53, %v13817_v6  ;;  %v792_v2 = vadd.f32 1e-06, %v746_v59  ;;  %v753_v3 = vsel %vm751_vm11, %v752_v39, %v750_v56  ;;  %12897 = vrcp.f32 %v791_v58 }
 0x168   : > { %v762_v4 = vmul.f32 %v12886_v60, %v13819_v7  ;;  %v793_v5 = vadd.f32 1e-06, %v753_v3  ;;  %v816_v44 = vmul.f32 %v13873_v1, %v13750_v62  ;;  %v817_v49 = vmul.f32 %v13873_v1, %v13743_v55 }
 0x169   : > { %v757_v10 = vsel %vm756_vm12, %v13817_v6, %v755_v61  ;;  %12899 = vrcp.f32 %v792_v2  ;;  %v815_v6 = vmul.f32 %v13873_v1, %v13740_v54  ;;  %v9680_v54 = vld [vmem:[%s18836_s7] ss:$0 sm:$0xff]  ;;  %v820_v3 = vmul.f32 %v13873_v1, %v13765_v9 }
 0x16a   : > { %v12888_v11 = vpop.eup %12887  ;;  %v764_v12 = vsel %vm763_vm14, %v13819_v7, %v762_v4  ;;  %12901 = vrcp.f32 %v793_v5  ;;  %v760_v16 = vsel %vm758_vm13, %v759_v50, %v757_v10  ;;  %v818_v50 = vmul.f32 %v13873_v1, %v13753_v63 }
 0x16b   : > { %v12890_v17 = vpop.eup %12889  ;;  %v769_v18 = vmul.f32 %v12888_v11, %v13823_v20  ;;  %v794_v24 = vadd.f32 1e-06, %v760_v16  ;;  %v767_v26 = vsel %vm765_vm15, %v766_v57, %v764_v12  ;;  %v819_v57 = vmul.f32 %v13873_v1, %v13762_v8 }
 0x16c   : > { %v776_v27 = vmul.f32 %v12890_v17, %v13825_v23  ;;  %v795_v28 = vadd.f32 1e-06, %v767_v26  ;;  %v821_v8 = vmul.f32 %v13873_v1, %v13774_v21  ;;  %v822_v12 = vmul.f32 %v13873_v1, %v13777_v22 }
 0x16d   : > { %v771_v31 = vsel %vm770_vm2, %v13823_v20, %v769_v18  ;;  %12903 = vrcp.f32 %v794_v24  ;;  %v823_v17 = vmul.f32 %v13873_v1, %v13786_v34  ;;  %v824_v26 = vmul.f32 %v13873_v1, %v13789_v35 }
 0x16e   : > { %v12892_v32 = vpop.eup %12891  ;;  %v778_v7 = vsel %vm777_vm4, %v13825_v23, %v776_v27  ;;  %12905 = vrcp.f32 %v795_v28  ;;  %v774_v37 = vsel %vm772_vm3, %v773_v0, %v771_v31  ;;  %vm1047_vm8 = vcmask 64512  }
 0x16f   : > { %v12894_v38 = vpop.eup %12893  ;;  %v783_v39 = vmul.f32 %v12892_v32, %v13840_v41  ;;  %v796_v42 = vadd.f32 1e-06, %v774_v37  ;;  %v781_v43 = vsel %vm779_vm5, %v780_v19, %v778_v7  ;;  %vm14003_vm9 = vmpackc.low %vm1047_vm8, %vm1047_vm8  ;;  %vm1213_vm10 = vcmask 637952  }
 0x170   : > { %v825_v45 = vmul.f32 %v12894_v38, %v815_v6  ;;  %v797_v48 = vadd.f32 1e-06, %v781_v43  ;;  %v12896_v20 = vpop.eup %12895  ;;  %v9681_v6 = vld [vmem:[%s18832_s3] ss:$0 sm:$0xff]  ;;  %vm1241_vm11 = vcmask 635904   ;;  %vm18894_vm12 = vcmask 1045504  }
 0x171   : > { %v785_v51 = vsel %vm784_vm6, %v13840_v41, %v783_v39  ;;  %12907 = vrcp.f32 %v796_v42  ;;  %v12898_v52 = vpop.eup %12897  ;;  %v826_v53 = vmul.f32 %v12896_v20, %v816_v44  ;;  %vm13464_vm13 = vmmov 1  }
 0x172   : > { %v841_v23 = vadd.f32 %v9680_v54, %v825_v45  ;;  %12909 = vrcp.f32 %v797_v48  ;;  %v788_v62 = vsel %vm786_vm7, %v787_v33, %v785_v51  ;;  %v827_v55 = vmul.f32 %v12898_v52, %v817_v49  ;;  %vm14105_vm14 = vmpackc.low %vm18894_vm12, %vm13464_vm13 }
 0x173   : > { %v12900_v56 = vpop.eup %12899  ;;  %v798_v58 = vadd.f32 1e-06, %v788_v62  ;;  %v842_v63 = vadd.f32 %v9680_v54, %v826_v53  ;;  %vm3075_vm15 = vcmask 130048   ;;  %vm3086_vm2 = vcmask 195584  }
 0x174   : > { %v12902_v59 = vpop.eup %12901  ;;  %10814 = vmatprep.mubr.msk.f32.mxu0 %vm615_vm0, %v841_v23  ;;  %v828_v60 = vmul.f32 %v12900_v56, %v818_v50  ;;  %v843_v61 = vadd.f32 %v9680_v54, %v827_v55 }
 0x175   : > { %v829_v2 = vmul.f32 %v12902_v59, %v819_v57  ;;  %12911 = vrcp.f32 %v798_v58  ;;  %10815 = vmatmul.mubr.msk.f32.vlgmr.msra.gmra.mrb[0].mxu0 %vm615_vm0, %v842_v63 }
 0x176   : > { %v844_v41 = vadd.f32 %v9680_v54, %v828_v60  ;;  %10817 = vmatprep.mubr.msk.f32.mxu0 %vm615_vm0, %v843_v61 }
 0x177   : > { %v12904_v4 = vpop.eup %12903  ;;  %v845_v5 = vadd.f32 %v9680_v54, %v829_v2 }
 0x178   : > { %v12906_v10 = vpop.eup %12905  ;;  %v830_v0 = vmul.f32 %v12904_v4, %v820_v3 }
 0x179   : > { %v831_v11 = vmul.f32 %v12906_v10, %v821_v8  ;;  %10818 = vmatmul.mubr.msk.f32.gmra.mrb[2].mxu0 %vm615_vm0, %v844_v41 }
 0x17a   : > { %v846_v16 = vadd.f32 %v9680_v54, %v830_v0  ;;  %10820 = vmatprep.mubr.msk.f32.mxu0 %vm615_vm0, %v845_v5 }
 0x17b   : > { %v12908_v9 = vpop.eup %12907  ;;  %v847_v18 = vadd.f32 %v9680_v54, %v831_v11 }
 0x17c   : > { %v12910_v21 = vpop.eup %12909  ;;  %v832_v19 = vmul.f32 %v12908_v9, %v822_v12 }
 0x17d   : > { %v833_v24 = vmul.f32 %v12910_v21, %v823_v17  ;;  %10821 = vmatmul.mubr.msk.f32.gmra.mrb[4].mxu0 %vm615_vm0, %v846_v16 }
 0x17e   : > { %v848_v27 = vadd.f32 %v9680_v54, %v832_v19  ;;  %10823 = vmatprep.mubr.msk.f32.mxu0 %vm615_vm0, %v847_v18 }
 0x17f   : > { %v12912_v22 = vpop.eup %12911  ;;  %v849_v28 = vadd.f32 %v9680_v54, %v833_v24 }
 0x180   : > { %v834_v31 = vmul.f32 %v12912_v22, %v824_v26 }
 0x181   : > { %10824 = vmatmul.mubr.msk.f32.gmra.mrb[6].mxu0 %vm615_vm0, %v848_v27 }
 0x182   : > { %v850_v34 = vadd.f32 %v9680_v54, %v834_v31  ;;  %10826 = vmatprep.mubr.msk.f32.mxu0 %vm615_vm0, %v849_v28 }
 0x185   : > { %10827 = vmatmul.mubr.msk.f32.gmra.mrb[8].mxu0 %vm615_vm0, %v850_v34 }
 0x248   : > { %v10816_v35 = vpop.f32.mrb[0].mxu0 }
 0x249   : > { %v13942_v1 = vadd.f32 %v10816_v35, %v9681_v6  ;;  %v958_v32 = vpop.f32.mrb[1].mxu0 }
 0x24a   : > { %v959_v7 = vadd.f32 %v9681_v6, %v958_v32 }
 0x24c   : > { %v10819_v33 = vpop.f32.mrb[2].mxu0  ;;  %v13945_v37 = vpack.i.bf16 %v13942_v1, %v959_v7  ;;  %v13947_v38 = vmul.f32 0.35355338, %v959_v7 }
 0x24d   : > { %v13949_v39 = vadd.f32 %v10819_v33, %v9681_v6  ;;  %v968_v54 = vpop.f32.mrb[3].mxu0 }
 0x24e   : > { %v13951_v42 = vadd.f32 %v9681_v6, %v968_v54  ;;  %12154 = vrot.lane.b32.xlu0 %v13945_v37, %s18886_s20  ;;  %10849 = vmatprep.mubr.msk.f32.mxu1 %vm1047_vm8, %v13947_v38 }
 0x250   : > { %v10822_v43 = vpop.f32.mrb[4].mxu0  ;;  %v13959_v44 = vpack.i.bf16 %v13949_v39, %v13951_v42 }
 0x251   : > { %v13961_v45 = vadd.f32 %v10822_v43, %v9681_v6  ;;  %v978_v48 = vpop.f32.mrb[5].mxu0 }
 0x252   : > { %v13963_v20 = vadd.f32 %v9681_v6, %v978_v48  ;;  %12159 = vrot.lane.b32.xlu1 %v13959_v44, %s18886_s20 }
 0x254   : > { %v10825_v49 = vpop.f32.mrb[6].mxu0  ;;  %v13969_v50 = vpack.i.bf16 %v13961_v45, %v13963_v20 }
 0x255   : > { %v13971_v51 = vadd.f32 %v10825_v49, %v9681_v6  ;;  %v988_v52 = vpop.f32.mrb[7].mxu0 }
 0x256   : > { %v13973_v23 = vadd.f32 %v9681_v6, %v988_v52  ;;  %12164 = vrot.lane.b32.xlu1 %v13969_v50, %s18886_s20 }
 0x258   : > { %v10828_v53 = vpop.f32.mrb[8].mxu0  ;;  %v13979_v62 = vpack.i.bf16 %v13971_v51, %v13973_v23 }
 0x259   : > { %v13981_v56 = vadd.f32 %v10828_v53, %v9681_v6  ;;  %v998_v57 = vpop.f32.mrb[9].mxu0  ;;  %v14028_v53 = vmul.f32 0.35355338, %v13942_v1  ;;  %v14048_v1 = vmul.f32 0.35355338, %v13961_v45 }
 0x25a   : > { %v13983_v55 = vadd.f32 %v9681_v6, %v998_v57  ;;  %12169 = vrot.lane.b32.xlu1 %v13979_v62, %s18886_s20  ;;  %v14031_v57 = vmul.f32 0.35355338, %v13951_v42  ;;  %v14051_v42 = vmul.f32 0.35355338, %v13973_v23 }
 0x25b   : > { %v14068_v45 = vmul.f32 0.35355338, %v13981_v56 }
 0x25c   : > { %v13989_v58 = vpack.i.bf16 %v13981_v56, %v13983_v55 }
 0x25e   : > { %12184 = vrot.lane.b32.xlu1 %v13959_v44, %s18884_s24  ;;  %12174 = vrot.lane.b32.xlu0 %v13989_v58, %s18886_s20  ;;  %s19034_s20 = smov 96  }
 0x262   : > { %12189 = vrot.lane.b32.xlu1 %v13969_v50, %s18884_s24  ;;  %12179 = vrot.lane.b32.xlu0 %v13945_v37, %s18884_s24 }
 0x266   : > { %12194 = vrot.lane.b32.xlu0 %v13979_v62, %s18884_s24 }
 0x2c0   : > { %v12155_v59 = vpop.permute.xlu0 %12154 }
 0x2c1   : > { %v12157_v63 = vunpack.i.h.bf16 %v12155_v59  ;;  %v12156_v60 = vunpack.i.l.bf16 %v12155_v59  ;;  %v14038_v59 = vmul.f32 0.35355338, %v13949_v39  ;;  %v14058_v39 = vmul.f32 0.35355338, %v13971_v51 }
 0x2c3   : > { %v11574_v2 = vpack.c.bf16 %v12157_v63, %v12156_v60  ;;  %v14041_v63 = vmul.f32 0.35355338, %v13963_v20  ;;  %v14061_v20 = vmul.f32 0.35355338, %v13983_v55 }
 0x2c4   : > { %v12160_v3 = vpop.permute.xlu1 %12159 }
 0x2c5   : > { %v12162_v41 = vunpack.i.h.bf16 %v12160_v3  ;;  %v12161_v4 = vunpack.i.l.bf16 %v12160_v3  ;;  %11576 = vmatprep.subr.msk.bf16.mxu1 %vm14003_vm9, %v11574_v2 }
 0x2c6   : > { %11579 = vmatpush3.bf16.xpose.msk.msra.mxu1 %vm14003_vm9, %v11574_v2 }
 0x2c7   : > { %v11580_v8 = vpack.c.bf16 %v12162_v41, %v12161_v4 }
 0x2c8   : > { %v12165_v5 = vpop.permute.xlu1 %12164 }
 0x2c9   : > { %v12167_v10 = vunpack.i.h.bf16 %v12165_v5  ;;  %v12166_v0 = vunpack.i.l.bf16 %v12165_v5  ;;  %11582 = vmatprep.subr.msk.bf16.mxu1 %vm14003_vm9, %v11580_v8 }
 0x2cb   : > { %v11586_v12 = vpack.c.bf16 %v12167_v10, %v12166_v0 }
 0x2cc   : > { %v12170_v11 = vpop.permute.xlu1 %12169 }
 0x2cd   : > { %v12172_v16 = vunpack.i.h.bf16 %v12170_v11  ;;  %v12171_v9 = vunpack.i.l.bf16 %v12170_v11 }
 0x2ce   : > { %11585 = vmatpush3.bf16.xpose.msk.msra.mxu1 %vm14003_vm9, %v11580_v8 }
 0x2cf   : > { %11588 = vmatprep.subr.msk.bf16.mxu1 %vm14003_vm9, %v11586_v12  ;;  %v11592_v21 = vpack.c.bf16 %v12172_v16, %v12171_v9 }
 0x2d0   : > { %v12185_v17 = vpop.permute.xlu1 %12184  ;;  %v12175_v18 = vpop.permute.xlu0 %12174 }
 0x2d1   : > { %v12187_v24 = vunpack.i.h.bf16 %v12185_v17  ;;  %v12186_v26 = vunpack.i.l.bf16 %v12185_v17  ;;  %v12177_v34 = vunpack.i.h.bf16 %v12175_v18  ;;  %v12176_v6 = vunpack.i.l.bf16 %v12175_v18 }
 0x2d3   : > { %v11608_v7 = vpack.c.bf16 %v12187_v24, %v12186_v26  ;;  %v11598_v54 = vpack.c.bf16 %v12177_v34, %v12176_v6 }
 0x2d4   : > { %v12180_v19 = vpop.permute.xlu0 %12179  ;;  %v12190_v28 = vpop.permute.xlu1 %12189 }
 0x2d5   : > { %v12182_v27 = vunpack.i.h.bf16 %v12180_v19  ;;  %v12181_v22 = vunpack.i.l.bf16 %v12180_v19  ;;  %v12192_v35 = vunpack.i.h.bf16 %v12190_v28  ;;  %v12191_v32 = vunpack.i.l.bf16 %v12190_v28 }
 0x2d6   : > { %11591 = vmatpush3.bf16.xpose.msk.msra.mxu1 %vm14003_vm9, %v11586_v12 }
 0x2d7   : > { %11594 = vmatprep.subr.msk.bf16.mxu1 %vm14003_vm9, %v11592_v21  ;;  %v11604_v31 = vpack.c.bf16 %v12182_v27, %v12181_v22  ;;  %v11612_v49 = vpack.c.bf16 %v12192_v35, %v12191_v32 }
 0x2d8   : > { %v12195_v33 = vpop.permute.xlu0 %12194 }
 0x2d9   : > { %11605 = vmatprep.subr.bf16.mxu0 %v11604_v31  ;;  %v12197_v43 = vunpack.i.h.bf16 %v12195_v33  ;;  %v12196_v48 = vunpack.i.l.bf16 %v12195_v33 }
 0x2da   : > { %11607 = vmatpush3.bf16.msra.mxu0 %v11604_v31 }
 0x2db   : > { %11609 = vmatprep.subr.bf16.mxu0 %v11608_v7  ;;  %v11616_v52 = vpack.c.bf16 %v12197_v43, %v12196_v48 }
 0x2de   : > { %11597 = vmatpush3.bf16.xpose.msk.msra.mxu1 %vm14003_vm9, %v11592_v21  ;;  %11611 = vmatpush3.bf16.msra.mxu0 %v11608_v7 }
 0x2df   : > { %11600 = vmatprep.subr.msk.bf16.mxu1 %vm14003_vm9, %v11598_v54  ;;  %11613 = vmatprep.subr.bf16.mxu0 %v11612_v49 }
 0x2e2   : > { %11615 = vmatpush3.bf16.msra.mxu0 %v11612_v49 }
 0x2e3   : > { %11617 = vmatprep.subr.bf16.mxu0 %v11616_v52 }
 0x2e6   : > { %11603 = vmatpush3.bf16.xpose.msk.msra.mxu1 %vm14003_vm9, %v11598_v54  ;;  %11619 = vmatpush3.bf16.msra.mxu0 %v11616_v52 }
 0x2ed   : > { %10850 = vmatmul.mubr.msk.f32.vlgmr.msra.gmra.mrb[0].mxu1 %vm1047_vm8, %v14028_v53 }
 0x2ee   : > { %10852 = vmatprep.mubr.msk.f32.mxu1 %vm1047_vm8, %v14031_v57 }
 0x2f1   : > { %10853 = vmatmul.mubr.msk.f32.gmra.mrb[2].mxu1 %vm1047_vm8, %v14038_v59 }
 0x2f2   : > { %10855 = vmatprep.mubr.msk.f32.mxu1 %vm1047_vm8, %v14041_v63 }
 0x2f5   : > { %10856 = vmatmul.mubr.msk.f32.gmra.mrb[4].mxu1 %vm1047_vm8, %v14048_v1 }
 0x2f6   : > { %10858 = vmatprep.mubr.msk.f32.mxu1 %vm1047_vm8, %v14051_v42 }
 0x2f9   : > { %10859 = vmatmul.mubr.msk.f32.gmra.mrb[6].mxu1 %vm1047_vm8, %v14058_v39 }
 0x2fa   : > { %10861 = vmatprep.mubr.msk.f32.mxu1 %vm1047_vm8, %v14061_v20 }
 0x2fd   : > { %10862 = vmatmul.mubr.msk.f32.gmra.mrb[8].mxu1 %vm1047_vm8, %v14068_v45 }
 0x3c0   : > { %v10851_v23 = vpop.f32.mrb[0].mxu1 }
 0x3c1   : > { %v1164_v60 = vpop.f32.mrb[1].mxu1  ;;  %v1217_v51 = vsel %vm1213_vm10, %v10851_v23, -inf }
 0x3c2   : > { %1218 = vmax.xlane.f32.xlu0 %v1217_v51  ;;  %v1214_v55 = vsel %vm1213_vm10, %v1164_v60, -inf }
 0x3c3   : > { %1215 = vmax.xlane.f32.xlu1 %v1214_v55 }
 0x3c4   : > { %v10854_v2 = vpop.f32.mrb[2].mxu1 }
 0x3c5   : > { %v1174_v3 = vpop.f32.mrb[3].mxu1  ;;  %v1223_v41 = vsel %vm1213_vm10, %v10854_v2, -inf }
 0x3c6   : > { %1224 = vmax.xlane.f32.xlu0 %v1223_v41  ;;  %v1220_v8 = vsel %vm1213_vm10, %v1174_v3, -inf }
 0x3c8   : > { %v14075_v4 = vpop.f32.mrb[4].mxu1 }
 0x3c9   : > { %v14077_v56 = vpop.f32.mrb[5].mxu1  ;;  %v1229_v0 = vsel %vm1213_vm10, %v14075_v4, -inf }
 0x3ca   : > { %1221 = vmax.xlane.f32.xlu0 %v1220_v8  ;;  %v1226_v17 = vsel %vm1213_vm10, %v14077_v56, -inf }
 0x3cc   : > { %v14080_v5 = vpop.f32.mrb[6].mxu1 }
 0x3cd   : > { %v14082_v10 = vpop.f32.mrb[7].mxu1  ;;  %v1235_v16 = vsel %vm1213_vm10, %v14080_v5, -inf }
 0x3ce   : > { %1230 = vmax.xlane.f32.xlu0 %v1229_v0  ;;  %v1232_v18 = vsel %vm1213_vm10, %v14082_v10, -inf }
 0x3d0   : > { %v14086_v11 = vpop.f32.mrb[8].mxu1 }
 0x3d1   : > { %v14088_v12 = vpop.f32.mrb[9].mxu1  ;;  %v1242_v9 = vsel %vm1241_vm11, %v14086_v11, -inf }
 0x3d2   : > { %1236 = vmax.xlane.f32.xlu0 %v1235_v16  ;;  %v1238_v21 = vsel %vm1213_vm10, %v14088_v12, -inf }
 0x3d4   : > { %12199 = vrot.lane.b32.xlu1 %v13989_v58, %s18884_s24  ;;  %s19035_s24 = smov 64  }
 0x3d6   : > { %1243 = vmax.xlane.f32.xlu0 %v1242_v9 }
 0x3ec   : > { %12204 = vrot.lane.b32.xlu0 %v13945_v37, %s18882_s29 }
 0x3f8   : > { %1227 = vmax.xlane.f32.xlu1 %v1226_v17 }
 0x3fc   : > { %1233 = vmax.xlane.f32.xlu1 %v1232_v18 }
 0x400   : > { %1239 = vmax.xlane.f32.xlu1 %v1238_v21 }
 0x44f   : > { %v1219_v19 = vpop.xlane.xlu0 %1218 }
 0x450   : > { %v1246_v24 = vsub.f32 %v10851_v23, %v1219_v19  ;;  %v1216_v26 = vpop.xlane.xlu1 %1215 }
 0x451   : > { %v1245_v27 = vsub.f32 %v1164_v60, %v1216_v26 }
 0x452   : > { %v1257_v22 = vmul.f32 1.442695, %v1246_v24 }
 0x453   : > { %v1255_v28 = vmul.f32 1.442695, %v1245_v27  ;;  %v1225_v31 = vpop.xlane.xlu0 %1224 }
 0x454   : > { %12913 = vpow2.f32 %v1257_v22  ;;  %v1248_v34 = vsub.f32 %v10854_v2, %v1225_v31  ;;  %v12200_v6 = vpop.permute.xlu1 %12199 }
 0x455   : > { %v12202_v35 = vunpack.i.h.bf16 %v12200_v6  ;;  %v12201_v32 = vunpack.i.l.bf16 %v12200_v6  ;;  %12915 = vpow2.f32 %v1255_v28 }
 0x456   : > { %v1261_v7 = vmul.f32 1.442695, %v1248_v34 }
 0x457   : > { %v11620_v54 = vpack.c.bf16 %v12202_v35, %v12201_v32  ;;  %v1222_v43 = vpop.xlane.xlu0 %1221 }
 0x458   : > { %v1247_v48 = vsub.f32 %v1174_v3, %v1222_v43  ;;  %12917 = vpow2.f32 %v1261_v7 }
 0x459   : > { %11622 = vmatprep.subr.msk.bf16.mxu0 %vm14105_vm14, %v11620_v54 }
 0x45a   : > { %v1259_v49 = vmul.f32 1.442695, %v1247_v48  ;;  %11625 = vmatpush3.bf16.msk.msra.mxu0 %vm14105_vm14, %v11620_v54 }
 0x45b   : > { %v1231_v52 = vpop.xlane.xlu0 %1230 }
 0x45c   : > { %12919 = vpow2.f32 %v1259_v49  ;;  %v1250_v26 = vsub.f32 %v14075_v4, %v1231_v52 }
 0x45e   : > { %v14113_v23 = vpop.eup %12913  ;;  %v1265_v22 = vmul.f32 1.442695, %v1250_v26 }
 0x45f   : > { %v1237_v60 = vpop.xlane.xlu0 %1236  ;;  %v1278_v51 = vsel %vm1213_vm10, %v14113_v23, 0.0  ;;  %v14117_v55 = vpop.eup %12915 }
 0x460   : > { %1279 = vadd.xlane.f32.xlu1 %v1278_v51  ;;  %v1275_v3 = vsel %vm1213_vm10, %v14117_v55, 0.0  ;;  %v1252_v34 = vsub.f32 %v14080_v5, %v1237_v60 }
 0x462   : > { %v14121_v41 = vpop.eup %12917  ;;  %v1269_v32 = vmul.f32 1.442695, %v1252_v34 }
 0x463   : > { %v1244_v2 = vpop.xlane.xlu0 %1243  ;;  %v1284_v9 = vsel %vm1213_vm10, %v14121_v41, 0.0 }
 0x464   : > { %1276 = vadd.xlane.f32.xlu1 %v1275_v3  ;;  %v1254_v19 = vsub.f32 %v14086_v11, %v1244_v2 }
 0x466   : > { %v14123_v8 = vpop.eup %12919  ;;  %v1273_v24 = vmul.f32 1.442695, %v1254_v19 }
 0x467   : > { %v12205_v0 = vpop.permute.xlu0 %12204  ;;  %v1281_v16 = vsel %vm1213_vm10, %v14123_v8, 0.0 }
 0x468   : > { %v12207_v17 = vunpack.i.h.bf16 %v12205_v0  ;;  %v12206_v18 = vunpack.i.l.bf16 %v12205_v0  ;;  %1282 = vadd.xlane.f32.xlu0 %v1281_v16  ;;  %1285 = vadd.xlane.f32.xlu1 %v1284_v9  ;;  %12921 = vpow2.f32 %v1273_v24 }
 0x469   : > { %12923 = vpow2.f32 %v1265_v22 }
 0x46a   : > { %v14129_v21 = vpack.c.bf16 %v12207_v17, %v12206_v18 }
 0x46c   : > { %11628 = vmatprep.subr.msk.bf16.mxu0 %vm14003_vm9, %v14129_v21 }
 0x472   : > { %v14146_v35 = vpop.eup %12921 }
 0x473   : > { %v1302_v4 = vsel %vm1241_vm11, %v14146_v35, 0.0  ;;  %v14152_v43 = vpop.eup %12923 }
 0x474   : > { %v1290_v48 = vsel %vm1213_vm10, %v14152_v43, 0.0 }
 0x479   : > { %12214 = vrot.lane.b32.xlu1 %v13969_v50, %s18882_s29 }
 0x47d   : > { %12219 = vrot.lane.b32.xlu1 %v13979_v62, %s18882_s29 }
 0x47e   : > { %12209 = vrot.lane.b32.xlu0 %v13959_v44, %s18882_s29 }
 0x481   : > { %12224 = vrot.lane.b32.xlu1 %v13989_v58, %s18882_s29  ;;  %s19037_s29 = smov 120  }
 0x485   : > { %v1228_v27 = vpop.xlane.xlu1 %1227 }
 0x486   : > { %v1249_v28 = vsub.f32 %v14077_v56, %v1228_v27 }
 0x488   : > { %v1263_v6 = vmul.f32 1.442695, %v1249_v28 }
 0x489   : > { %v1234_v31 = vpop.xlane.xlu1 %1233 }
 0x48a   : > { %12925 = vpow2.f32 %v1263_v6  ;;  %v1251_v7 = vsub.f32 %v14082_v10, %v1234_v31 }
 0x48b   : > { %12927 = vpow2.f32 %v1269_v32 }
 0x48c   : > { %v1267_v54 = vmul.f32 1.442695, %v1251_v7 }
 0x48d   : > { %v1240_v11 = vpop.xlane.xlu1 %1239 }
 0x48e   : > { %v1253_v56 = vsub.f32 %v14088_v12, %v1240_v11  ;;  %12929 = vpow2.f32 %v1267_v54 }
 0x490   : > { %v1271_v5 = vmul.f32 1.442695, %v1253_v56 }
 0x492   : > { %12931 = vpow2.f32 %v1271_v5 }
 0x494   : > { %v14156_v49 = vpop.eup %12925 }
 0x495   : > { %v1287_v10 = vsel %vm1213_vm10, %v14156_v49, 0.0  ;;  %v14160_v52 = vpop.eup %12927 }
 0x496   : > { %v1296_v12 = vsel %vm1213_vm10, %v14160_v52, 0.0 }
 0x498   : > { %v14164_v60 = vpop.eup %12929 }
 0x499   : > { %v1293_v51 = vsel %vm1213_vm10, %v14164_v60, 0.0 }
 0x49c   : > { %v14168_v2 = vpop.eup %12931 }
 0x49d   : > { %1303 = vadd.xlane.f32.xlu0 %v1302_v4  ;;  %v1299_v3 = vsel %vm1213_vm10, %v14168_v2, 0.0 }
 0x4a5   : > { %1291 = vadd.xlane.f32.xlu1 %v1290_v48 }
 0x4a9   : > { %1288 = vadd.xlane.f32.xlu1 %v1287_v10 }
 0x4ad   : > { %1297 = vadd.xlane.f32.xlu1 %v1296_v12 }
 0x4b1   : > { %1294 = vadd.xlane.f32.xlu1 %v1293_v51 }
 0x4b3   : > { %1504 = vrot.lane.b32.xlu0 %v14028_v53, %s18880_s22 }
 0x4b5   : > { %1300 = vadd.xlane.f32.xlu1 %v1299_v3 }
 0x4b7   : > { %1518 = vrot.lane.b32.xlu0 %v14061_v20, %s18880_s22 }
 0x4bb   : > { %12229 = vrot.lane.b32.xlu0 %v13945_v37, %s18878_s27 }
 0x4bf   : > { %12239 = vrot.lane.b32.xlu0 %v13969_v50, %s18878_s27 }
 0x4c3   : > { %12249 = vrot.lane.b32.xlu0 %v13989_v58, %s18878_s27 }
 0x4c6   : > { %1502 = vrot.lane.b32.xlu1 %v13947_v38, %s18880_s22 }
 0x4c7   : > { %12254 = vrot.lane.b32.xlu0 %v13945_v37, %s18876_s21 }
 0x4ca   : > { %1506 = vrot.lane.b32.xlu1 %v14031_v57, %s18880_s22 }
 0x4ce   : > { %1508 = vrot.lane.b32.xlu1 %v14038_v59, %s18880_s22 }
 0x4d2   : > { %1510 = vrot.lane.b32.xlu1 %v14041_v63, %s18880_s22 }
 0x4d6   : > { %1512 = vrot.lane.b32.xlu1 %v14048_v1, %s18880_s22 }
 0x4da   : > { %1514 = vrot.lane.b32.xlu1 %v14051_v42, %s18880_s22 }
 0x4de   : > { %1516 = vrot.lane.b32.xlu1 %v14058_v39, %s18880_s22 }
 0x4e2   : > { %1520 = vrot.lane.b32.xlu1 %v14068_v45, %s18880_s22  ;;  %s19042_s22 = smov 112  }
 0x4e6   : > { %12234 = vrot.lane.b32.xlu1 %v13959_v44, %s18878_s27 }
 0x4ed   : > { %v1280_v0 = vpop.xlane.xlu1 %1279 }
 0x4ee   : > { %12933 = vrcp.f32 %v1280_v0 }
 0x4f1   : > { %v1277_v16 = vpop.xlane.xlu1 %1276 }
 0x4f2   : > { %12935 = vrcp.f32 %v1277_v16 }
 0x4f5   : > { %v1283_v9 = vpop.xlane.xlu0 %1282  ;;  %v1286_v17 = vpop.xlane.xlu1 %1285 }
 0x4f6   : > { %12937 = vrcp.f32 %v1283_v9 }
 0x4f7   : > { %12939 = vrcp.f32 %v1286_v17 }
 0x4f8   : > { %v12934_v19 = vpop.eup %12933 }
 0x4f9   : > { %v12210_v18 = vpop.permute.xlu0 %12209  ;;  %v1316_v28 = vmul.f32 %v12934_v19, %v14113_v23  ;;  %v12215_v32 = vpop.permute.xlu1 %12214 }
 0x4fa   : > { %v12212_v26 = vunpack.i.h.bf16 %v12210_v18  ;;  %v12211_v27 = vunpack.i.l.bf16 %v12210_v18  ;;  %v12217_v23 = vunpack.i.h.bf16 %v12215_v32  ;;  %v12216_v11 = vunpack.i.l.bf16 %v12215_v32 }
 0x4fc   : > { %v12936_v24 = vpop.eup %12935  ;;  %v11632_v34 = vpack.c.bf16 %v12212_v26, %v12211_v27  ;;  %v11638_v4 = vpack.c.bf16 %v12217_v23, %v12216_v11 }
 0x4fd   : > { %v1315_v22 = vmul.f32 %v12936_v24, %v14117_v55  ;;  %v12220_v54 = vpop.permute.xlu1 %12219 }
 0x4ff   : > { %10884 = vmatprep.mubr.msk.f32.mxu0 %vm1213_vm10, %v1315_v22 }
 0x500   : > { %v12938_v31 = vpop.eup %12937  ;;  %10885 = vmatmul.mubr.msk.f32.vlgmr.msra.gmra.mrb[10].mxu0 %vm1213_vm10, %v1316_v28 }
 0x501   : > { %v12940_v6 = vpop.eup %12939  ;;  %11631 = vmatpush3.bf16.xpose.msk.msra.mxu0 %vm14003_vm9, %v14129_v21  ;;  %v1317_v7 = vmul.f32 %v12938_v31, %v14123_v8  ;;  %v12222_v8 = vunpack.i.h.bf16 %v12220_v54  ;;  %v12221_v21 = vunpack.i.l.bf16 %v12220_v54  ;;  %v12225_v5 = vpop.permute.xlu1 %12224 }
 0x502   : > { %11634 = vmatprep.subr.msk.bf16.mxu0 %vm14003_vm9, %v11632_v34  ;;  %v1318_v55 = vmul.f32 %v12940_v6, %v14121_v41  ;;  %v12227_v41 = vunpack.i.h.bf16 %v12225_v5  ;;  %v12226_v48 = vunpack.i.l.bf16 %v12225_v5 }
 0x503   : > { %10887 = vmatprep.mubr.msk.f32.mxu0 %vm1213_vm10, %v1317_v7  ;;  %v11644_v56 = vpack.c.bf16 %v12222_v8, %v12221_v21 }
 0x504   : > { %10888 = vmatmul.mubr.msk.f32.gmra.mrb[12].mxu0 %vm1213_vm10, %v1318_v55  ;;  %v11650_v10 = vpack.c.bf16 %v12227_v41, %v12226_v48 }
 0x509   : > { %11637 = vmatpush3.bf16.xpose.msk.msra.mxu0 %vm14003_vm9, %v11632_v34 }
 0x50a   : > { %11640 = vmatprep.subr.msk.bf16.mxu0 %vm14003_vm9, %v11638_v4 }
 0x511   : > { %11643 = vmatpush3.bf16.xpose.msk.msra.mxu0 %vm14003_vm9, %v11638_v4 }
 0x512   : > { %11646 = vmatprep.subr.msk.bf16.mxu0 %vm14003_vm9, %v11644_v56 }
 0x519   : > { %11649 = vmatpush3.bf16.xpose.msk.msra.mxu0 %vm14003_vm9, %v11644_v56 }
 0x51a   : > { %11652 = vmatprep.subr.msk.bf16.mxu0 %vm14003_vm9, %v11650_v10 }
 0x521   : > { %11655 = vmatpush3.bf16.xpose.msk.msra.mxu0 %vm14003_vm9, %v11650_v10 }
 0x52a   : > { %v1304_v12 = vpop.xlane.xlu0 %1303 }
 0x52e   : > { %v1505_v51 = vpop.permute.xlu0 %1504 }
 0x532   : > { %v1519_v3 = vpop.permute.xlu0 %1518  ;;  %v1292_v0 = vpop.xlane.xlu1 %1291 }
 0x533   : > { %12941 = vrcp.f32 %v1292_v0 }
 0x536   : > { %v12230_v16 = vpop.permute.xlu0 %12229  ;;  %v1289_v9 = vpop.xlane.xlu1 %1288 }
 0x537   : > { %v12232_v17 = vunpack.i.h.bf16 %v12230_v16  ;;  %v12231_v18 = vunpack.i.l.bf16 %v12230_v16  ;;  %12943 = vrcp.f32 %v1289_v9 }
 0x539   : > { %v11656_v19 = vpack.c.bf16 %v12232_v17, %v12231_v18 }
 0x53a   : > { %v1298_v24 = vpop.xlane.xlu1 %1297  ;;  %v12240_v56 = vpop.permute.xlu0 %12239 }
 0x53b   : > { %11657 = vmatprep.subr.bf16.mxu1 %v11656_v19  ;;  %12945 = vrcp.f32 %v1298_v24  ;;  %v12242_v41 = vunpack.i.h.bf16 %v12240_v56  ;;  %v12241_v48 = vunpack.i.l.bf16 %v12240_v56 }
 0x53c   : > { %11659 = vmatpush3.bf16.msra.mxu1 %v11656_v19 }
 0x53d   : > { %v12942_v27 = vpop.eup %12941  ;;  %v11664_v0 = vpack.c.bf16 %v12242_v41, %v12241_v48 }
 0x53e   : > { %v1295_v26 = vpop.xlane.xlu1 %1294  ;;  %v1320_v34 = vmul.f32 %v12942_v27, %v14152_v43 }
 0x53f   : > { %12947 = vrcp.f32 %v1295_v26 }
 0x540   : > { %12949 = vrcp.f32 %v1304_v12 }
 0x541   : > { %v12944_v22 = vpop.eup %12943 }
 0x542   : > { %v1301_v28 = vpop.xlane.xlu1 %1300  ;;  %v1319_v31 = vmul.f32 %v12944_v22, %v14156_v49 }
 0x543   : > { %12951 = vrcp.f32 %v1301_v28 }
 0x544   : > { %10890 = vmatprep.mubr.msk.f32.mxu0 %vm1213_vm10, %v1319_v31 }
 0x545   : > { %10891 = vmatmul.mubr.msk.f32.gmra.mrb[14].mxu0 %vm1213_vm10, %v1320_v34  ;;  %v12946_v32 = vpop.eup %12945 }
 0x546   : > { %v1503_v6 = vpop.permute.xlu1 %1502  ;;  %v1322_v11 = vmul.f32 %v12946_v32, %v14160_v52 }
 0x549   : > { %v12948_v7 = vpop.eup %12947 }
 0x54a   : > { %v1507_v55 = vpop.permute.xlu1 %1506  ;;  %v1321_v23 = vmul.f32 %v12948_v7, %v14164_v60  ;;  %v12950_v4 = vpop.eup %12949 }
 0x54b   : > { %v1324_v8 = vmul.f32 %v12950_v4, %v14146_v35 }
 0x54c   : > { %10893 = vmatprep.mubr.msk.f32.mxu0 %vm1213_vm10, %v1321_v23 }
 0x54d   : > { %v12952_v54 = vpop.eup %12951  ;;  %10894 = vmatmul.mubr.msk.f32.gmra.mrb[16].mxu0 %vm1213_vm10, %v1322_v11 }
 0x54e   : > { %v1509_v49 = vpop.permute.xlu1 %1508  ;;  %v1323_v43 = vmul.f32 %v12952_v54, %v14168_v2 }
 0x550   : > { %10896 = vmatprep.mubr.msk.f32.mxu0 %vm1213_vm10, %v1323_v43 }
 0x551   : > { %10897 = vmatmul.mubr.msk.f32.gmra.mrb[18].mxu0 %vm1213_vm10, %v1324_v8 }
 0x552   : > { %10919 = vmatprep.mubr.msk.f32.mxu0 %vm1047_vm8, %v1503_v6  ;;  %v1511_v60 = vpop.permute.xlu1 %1510 }
 0x555   : > { %10920 = vmatmul.mubr.msk.f32.vlgmr.msra.gmra.mrb[20].mxu0 %vm1047_vm8, %v1505_v51 }
 0x556   : > { %v1513_v52 = vpop.permute.xlu1 %1512  ;;  %10922 = vmatprep.mubr.msk.f32.mxu0 %vm1047_vm8, %v1507_v55 }
 0x559   : > { %10923 = vmatmul.mubr.msk.f32.gmra.mrb[22].mxu0 %vm1047_vm8, %v1509_v49 }
 0x55a   : > { %v1515_v21 = vpop.permute.xlu1 %1514  ;;  %10925 = vmatprep.mubr.msk.f32.mxu0 %vm1047_vm8, %v1511_v60 }
 0x55d   : > { %10926 = vmatmul.mubr.msk.f32.gmra.mrb[24].mxu0 %vm1047_vm8, %v1513_v52 }
 0x55e   : > { %v1517_v35 = vpop.permute.xlu1 %1516  ;;  %10928 = vmatprep.mubr.msk.f32.mxu0 %vm1047_vm8, %v1515_v21 }
 0x561   : > { %10929 = vmatmul.mubr.msk.f32.gmra.mrb[26].mxu0 %vm1047_vm8, %v1517_v35 }
 0x562   : > { %v1521_v2 = vpop.permute.xlu1 %1520  ;;  %10931 = vmatprep.mubr.msk.f32.mxu0 %vm1047_vm8, %v1519_v3 }
 0x565   : > { %10932 = vmatmul.mubr.msk.f32.gmra.mrb[28].mxu0 %vm1047_vm8, %v1521_v2 }
 0x566   : > { %v12235_v5 = vpop.permute.xlu1 %12234 }
 0x567   : > { %v12237_v10 = vunpack.i.h.bf16 %v12235_v5  ;;  %v12236_v12 = vunpack.i.l.bf16 %v12235_v5  ;;  %v12250_v5 = vpop.permute.xlu0 %12249 }
 0x569   : > { %v11660_v51 = vpack.c.bf16 %v12237_v10, %v12236_v12 }
 0x56b   : > { %11661 = vmatprep.subr.bf16.mxu1 %v11660_v51  ;;  %v12255_v41 = vpop.permute.xlu0 %12254 }
 0x56c   : > { %11663 = vmatpush3.bf16.msra.mxu1 %v11660_v51  ;;  %v12257_v47 = vunpack.i.h.bf16 %v12255_v41  ;;  %v12256_v36 = vunpack.i.l.bf16 %v12255_v41 }
 0x56d   : > { %11665 = vmatprep.subr.bf16.mxu1 %v11664_v0 }
 0x570   : > { %11667 = vmatpush3.bf16.msra.mxu1 %v11664_v0 }
 0x5d3   : > { %v14251_v16 = vpop.f32.mrb[10].mxu0 }
 0x5d4   : > { %v14253_v9 = vpop.f32.mrb[11].mxu0 }
 0x5d7   : > { %v14255_v17 = vpop.f32.mrb[12].mxu0 }
 0x5d8   : > { %v14257_v3 = vpop.f32.mrb[13].mxu0 }
 0x618   : > { %v14259_v18 = vpop.f32.mrb[14].mxu0 }
 0x619   : > { %v14261_v19 = vpop.f32.mrb[15].mxu0 }
 0x620   : > { %v14263_v24 = vpop.f32.mrb[16].mxu0 }
 0x621   : > { %19008 = vst [vmem:[#allocation21_spill] sm:$0xff] %v14263_v24  ;;  %v14265_v26 = vpop.f32.mrb[17].mxu0 }
 0x624   : > { %v14267_v27 = vpop.f32.mrb[18].mxu0 }
 0x625   : > { %19009 = vst [vmem:[#allocation22_spill] sm:$0xff] %v14267_v27  ;;  %v14269_v22 = vpop.f32.mrb[19].mxu0 }
 0x626   : > { %19010 = vst [vmem:[#allocation23_spill] sm:$0xff] %v14269_v22 }
 0x628   : > { %v10921_v28 = vpop.f32.mrb[20].mxu0 }
 0x629   : > { %v1648_v31 = vpop.f32.mrb[21].mxu0  ;;  %v1700_v34 = vsel %vm1213_vm10, %v10921_v28, -inf }
 0x62a   : > { %1701 = vmax.xlane.f32.xlu1 %v1700_v34  ;;  %v1697_v6 = vsel %vm1213_vm10, %v1648_v31, -inf  ;;  %v12252_v34 = vunpack.i.h.bf16 %v12250_v5 }
 0x62b   : > { %1698 = vmax.xlane.f32.xlu0 %v1697_v6 }
 0x62c   : > { %v10924_v32 = vpop.f32.mrb[22].mxu0 }
 0x62d   : > { %v1658_v7 = vpop.f32.mrb[23].mxu0  ;;  %v1706_v55 = vsel %vm1213_vm10, %v10924_v32, -inf }
 0x62e   : > { %v1703_v4 = vsel %vm1213_vm10, %v1658_v7, -inf }
 0x62f   : > { %1707 = vmax.xlane.f32.xlu0 %v1706_v55 }
 0x630   : > { %v10927_v23 = vpop.f32.mrb[24].mxu0 }
 0x631   : > { %v14274_v11 = vpop.f32.mrb[25].mxu0  ;;  %v1712_v43 = vsel %vm1213_vm10, %v10927_v23, -inf }
 0x632   : > { %v1709_v35 = vsel %vm1213_vm10, %v14274_v11, -inf }
 0x633   : > { %1704 = vmax.xlane.f32.xlu0 %v1703_v4  ;;  %v12251_v4 = vunpack.i.l.bf16 %v12250_v5 }
 0x634   : > { %v14277_v54 = vpop.f32.mrb[26].mxu0 }
 0x635   : > { %v14279_v49 = vpop.f32.mrb[27].mxu0  ;;  %v1718_v52 = vsel %vm1213_vm10, %v14277_v54, -inf  ;;  %v11672_v46 = vpack.c.bf16 %v12252_v34, %v12251_v4 }
 0x636   : > { %v1715_v2 = vsel %vm1213_vm10, %v14279_v49, -inf }
 0x637   : > { %1713 = vmax.xlane.f32.xlu0 %v1712_v43 }
 0x638   : > { %v14282_v8 = vpop.f32.mrb[28].mxu0 }
 0x639   : > { %v14284_v60 = vpop.f32.mrb[29].mxu0  ;;  %v1724_v21 = vsel %vm1241_vm11, %v14282_v8, -inf }
 0x63a   : > { %v1721_v56 = vsel %vm1213_vm10, %v14284_v60, -inf }
 0x63b   : > { %12244 = vrot.lane.b32.xlu1 %v13979_v62, %s18878_s27  ;;  %1719 = vmax.xlane.f32.xlu0 %v1718_v52  ;;  %s18888_s27 = smov 24  }
 0x63f   : > { %1725 = vmax.xlane.f32.xlu0 %v1724_v21 }
 0x655   : > { %12264 = vrot.lane.b32.xlu0 %v13969_v50, %s18876_s21 }
 0x65f   : > { %1710 = vmax.xlane.f32.xlu1 %v1709_v35 }
 0x663   : > { %1716 = vmax.xlane.f32.xlu1 %v1715_v2 }
 0x667   : > { %1722 = vmax.xlane.f32.xlu1 %v1721_v56 }
 0x678   : > { %12259 = vrot.lane.b32.xlu1 %v13959_v44, %s18876_s21 }
 0x6b7   : > { %v1702_v48 = vpop.xlane.xlu1 %1701 }
 0x6b8   : > { %v1728_v10 = vsub.f32 %v10921_v28, %v1702_v48  ;;  %v1699_v12 = vpop.xlane.xlu0 %1698  ;;  %v14304_v48 = vpack.c.bf16 %v12257_v47, %v12256_v36 }
 0x6b9   : > { %v1727_v51 = vsub.f32 %v1648_v31, %v1699_v12 }
 0x6ba   : > { %v1739_v0 = vmul.f32 1.442695, %v1728_v10 }
 0x6bb   : > { %v1737_v6 = vmul.f32 1.442695, %v1727_v51  ;;  %v12245_v55 = vpop.permute.xlu1 %12244 }
 0x6bc   : > { %12953 = vpow2.f32 %v1739_v0  ;;  %v12247_v43 = vunpack.i.h.bf16 %v12245_v55  ;;  %v12246_v52 = vunpack.i.l.bf16 %v12245_v55  ;;  %v1708_v21 = vpop.xlane.xlu0 %1707 }
 0x6bd   : > { %v1730_v35 = vsub.f32 %v10924_v32, %v1708_v21  ;;  %12955 = vpow2.f32 %v1737_v6 }
 0x6be   : > { %v11668_v2 = vpack.c.bf16 %v12247_v43, %v12246_v52 }
 0x6bf   : > { %v1743_v56 = vmul.f32 1.442695, %v1730_v35 }
 0x6c0   : > { %11669 = vmatprep.subr.bf16.mxu1 %v11668_v2  ;;  %v1705_v28 = vpop.xlane.xlu0 %1704 }
 0x6c1   : > { %12957 = vpow2.f32 %v1743_v56  ;;  %v1729_v31 = vsub.f32 %v1658_v7, %v1705_v28  ;;  %11671 = vmatpush3.bf16.msra.mxu1 %v11668_v2 }
 0x6c2   : > { %11674 = vmatprep.subr.msk.bf16.mxu1 %vm14105_vm14, %v11672_v46 }
 0x6c3   : > { %v1741_v5 = vmul.f32 1.442695, %v1729_v31 }
 0x6c4   : > { %v1714_v10 = vpop.xlane.xlu0 %1713 }
 0x6c5   : > { %12959 = vpow2.f32 %v1741_v5  ;;  %v1732_v32 = vsub.f32 %v10927_v23, %v1714_v10  ;;  %11677 = vmatpush3.bf16.msk.msra.mxu1 %vm14105_vm14, %v11672_v46 }
 0x6c6   : > { %v14308_v12 = vpop.eup %12953  ;;  %11680 = vmatprep.subr.msk.bf16.mxu1 %vm14003_vm9, %v14304_v48 }
 0x6c7   : > { %v1747_v7 = vmul.f32 1.442695, %v1732_v32  ;;  %v1760_v41 = vsel %vm1213_vm10, %v14308_v12, 0.0  ;;  %v14315_v51 = vpop.eup %12955 }
 0x6c8   : > { %1761 = vadd.xlane.f32.xlu1 %v1760_v41  ;;  %v1757_v47 = vsel %vm1213_vm10, %v14315_v51, 0.0  ;;  %v1720_v55 = vpop.xlane.xlu0 %1719 }
 0x6c9   : > { %12961 = vpow2.f32 %v1747_v7  ;;  %v1734_v4 = vsub.f32 %v14277_v54, %v1720_v55 }
 0x6cb   : > { %v14317_v36 = vpop.eup %12957  ;;  %v1751_v21 = vmul.f32 1.442695, %v1734_v4 }
 0x6cc   : > { %1758 = vadd.xlane.f32.xlu1 %v1757_v47  ;;  %v1766_v46 = vsel %vm1213_vm10, %v14317_v36, 0.0  ;;  %v1726_v2 = vpop.xlane.xlu0 %1725 }
 0x6cd   : > { %1767 = vadd.xlane.f32.xlu0 %v1766_v46  ;;  %v1736_v31 = vsub.f32 %v14282_v8, %v1726_v2 }
 0x6cf   : > { %v14323_v23 = vpop.eup %12959  ;;  %v1755_v7 = vmul.f32 1.442695, %v1736_v31 }
 0x6d0   : > { %v1763_v0 = vsel %vm1213_vm10, %v14323_v23, 0.0 }
 0x6d1   : > { %1764 = vadd.xlane.f32.xlu1 %v1763_v0 }
 0x6d3   : > { %v14327_v34 = vpop.eup %12961 }
 0x6d4   : > { %v1772_v6 = vsel %vm1213_vm10, %v14327_v34, 0.0 }
 0x6d5   : > { %1773 = vadd.xlane.f32.xlu1 %v1772_v6 }
 0x6e3   : > { %12274 = vrot.lane.b32.xlu0 %v13989_v58, %s18876_s21 }
 0x6ec   : > { %v1711_v43 = vpop.xlane.xlu1 %1710 }
 0x6ed   : > { %v1731_v52 = vsub.f32 %v14274_v11, %v1711_v43 }
 0x6ef   : > { %v1745_v35 = vmul.f32 1.442695, %v1731_v52  ;;  %v12265_v52 = vpop.permute.xlu0 %12264 }
 0x6f0   : > { %v1717_v56 = vpop.xlane.xlu1 %1716 }
 0x6f1   : > { %12963 = vpow2.f32 %v1745_v35  ;;  %v1733_v28 = vsub.f32 %v14279_v49, %v1717_v56 }
 0x6f2   : > { %12965 = vpow2.f32 %v1751_v21 }
 0x6f3   : > { %v1749_v5 = vmul.f32 1.442695, %v1733_v28 }
 0x6f4   : > { %v1723_v10 = vpop.xlane.xlu1 %1722 }
 0x6f5   : > { %v1735_v32 = vsub.f32 %v14284_v60, %v1723_v10  ;;  %12967 = vpow2.f32 %v1749_v5 }
 0x6f7   : > { %v1753_v54 = vmul.f32 1.442695, %v1735_v32 }
 0x6f8   : > { %v12260_v4 = vpop.permute.xlu1 %12259 }
 0x6f9   : > { %12969 = vpow2.f32 %v1753_v54  ;;  %v12262_v31 = vunpack.i.h.bf16 %v12260_v4  ;;  %v12261_v5 = vunpack.i.l.bf16 %v12260_v4 }
 0x6fa   : > { %12971 = vpow2.f32 %v1755_v7 }
 0x6fb   : > { %v14338_v41 = vpop.eup %12963  ;;  %v11684_v54 = vpack.c.bf16 %v12262_v31, %v12261_v5 }
 0x6fc   : > { %v1769_v11 = vsel %vm1213_vm10, %v14338_v41, 0.0  ;;  %v14342_v47 = vpop.eup %12965 }
 0x6fd   : > { %1770 = vadd.xlane.f32.xlu1 %v1769_v11  ;;  %v1778_v49 = vsel %vm1213_vm10, %v14342_v47, 0.0 }
 0x6ff   : > { %v14346_v8 = vpop.eup %12967 }
 0x700   : > { %v1775_v46 = vsel %vm1213_vm10, %v14346_v8, 0.0 }
 0x701   : > { %1779 = vadd.xlane.f32.xlu1 %v1778_v49 }
 0x703   : > { %v14348_v60 = vpop.eup %12969 }
 0x704   : > { %v1781_v0 = vsel %vm1213_vm10, %v14348_v60, 0.0  ;;  %v14354_v6 = vpop.eup %12971 }
 0x705   : > { %1776 = vadd.xlane.f32.xlu1 %v1775_v46  ;;  %1782 = vadd.xlane.f32.xlu0 %v1781_v0  ;;  %v1784_v55 = vsel %vm1241_vm11, %v14354_v6, 0.0  ;;  %v12267_v46 = vunpack.i.h.bf16 %v12265_v52 }
 0x709   : > { %1785 = vadd.xlane.f32.xlu1 %v1784_v55 }
 0x71a   : > { %12269 = vrot.lane.b32.xlu1 %v13979_v62, %s18876_s21  ;;  %s19043_s21 = smov 48  }
 0x71b   : > { %1983 = vrot.lane.b32.xlu0 %v13947_v38, %s18874_s30 }
 0x71e   : > { %1989 = vrot.lane.b32.xlu1 %v14038_v59, %s18874_s30 }
 0x71f   : > { %1985 = vrot.lane.b32.xlu0 %v14028_v53, %s18874_s30 }
 0x722   : > { %1993 = vrot.lane.b32.xlu1 %v14048_v1, %s18874_s30 }
 0x723   : > { %1987 = vrot.lane.b32.xlu0 %v14031_v57, %s18874_s30 }
 0x726   : > { %1997 = vrot.lane.b32.xlu1 %v14058_v39, %s18874_s30 }
 0x727   : > { %1991 = vrot.lane.b32.xlu0 %v14041_v63, %s18874_s30 }
 0x72a   : > { %2001 = vrot.lane.b32.xlu1 %v14068_v45, %s18874_s30 }
 0x72b   : > { %1995 = vrot.lane.b32.xlu0 %v14051_v42, %s18874_s30 }
 0x72e   : > { %12284 = vrot.lane.b32.xlu1 %v13959_v44, %s18872_s23 }
 0x72f   : > { %1999 = vrot.lane.b32.xlu0 %v14061_v20, %s18874_s30  ;;  %s19044_s30 = smov 72  }
 0x733   : > { %12279 = vrot.lane.b32.xlu0 %v13945_v37, %s18872_s23 }
 0x737   : > { %12289 = vrot.lane.b32.xlu0 %v13969_v50, %s18872_s23 }
 0x73b   : > { %12299 = vrot.lane.b32.xlu0 %v13989_v58, %s18872_s23 }
 0x73f   : > { %12304 = vrot.lane.b32.xlu0 %v13945_v37, %s18866_s26 }
 0x755   : > { %v1762_v43 = vpop.xlane.xlu1 %1761 }
 0x756   : > { %12973 = vrcp.f32 %v1762_v43 }
 0x759   : > { %v1759_v21 = vpop.xlane.xlu1 %1758 }
 0x75a   : > { %12975 = vrcp.f32 %v1759_v21  ;;  %v1768_v35 = vpop.xlane.xlu0 %1767 }
 0x75b   : > { %12977 = vrcp.f32 %v1768_v35 }
 0x75e   : > { %v1765_v2 = vpop.xlane.xlu1 %1764 }
 0x75f   : > { %12979 = vrcp.f32 %v1765_v2 }
 0x760   : > { %v12974_v56 = vpop.eup %12973 }
 0x761   : > { %v1798_v32 = vmul.f32 %v12974_v56, %v14308_v12  ;;  %v12266_v12 = vunpack.i.l.bf16 %v12265_v52 }
 0x763   : > { %v11690_v0 = vpack.c.bf16 %v12267_v46, %v12266_v12 }
 0x764   : > { %v12976_v28 = vpop.eup %12975 }
 0x765   : > { %v1797_v10 = vmul.f32 %v12976_v28, %v14315_v51  ;;  %v12978_v7 = vpop.eup %12977 }
 0x766   : > { %v1800_v51 = vmul.f32 %v12978_v7, %v14317_v36  ;;  %v12275_v36 = vpop.permute.xlu0 %12274 }
 0x767   : > { %10954 = vmatprep.mubr.msk.f32.mxu1 %vm1213_vm10, %v1797_v10  ;;  %v12277_v10 = vunpack.i.h.bf16 %v12275_v36 }
 0x768   : > { %10955 = vmatmul.mubr.msk.f32.vlgmr.msra.gmra.mrb[10].mxu1 %vm1213_vm10, %v1798_v32  ;;  %v12276_v32 = vunpack.i.l.bf16 %v12275_v36 }
 0x769   : > { %v12980_v11 = vpop.eup %12979  ;;  %11683 = vmatpush3.bf16.xpose.msk.msra.mxu1 %vm14003_vm9, %v14304_v48  ;;  %v1774_v48 = vpop.xlane.xlu1 %1773 }
 0x76a   : > { %11686 = vmatprep.subr.msk.bf16.mxu1 %vm14003_vm9, %v11684_v54  ;;  %v1799_v49 = vmul.f32 %v12980_v11, %v14323_v23  ;;  %12981 = vrcp.f32 %v1774_v48 }
 0x76c   : > { %10957 = vmatprep.mubr.msk.f32.mxu1 %vm1213_vm10, %v1799_v49 }
 0x76d   : > { %10958 = vmatmul.mubr.msk.f32.gmra.mrb[12].mxu1 %vm1213_vm10, %v1800_v51 }
 0x771   : > { %11689 = vmatpush3.bf16.xpose.msk.msra.mxu1 %vm14003_vm9, %v11684_v54 }
 0x772   : > { %11692 = vmatprep.subr.msk.bf16.mxu1 %vm14003_vm9, %v11690_v0 }
 0x774   : > { %v12982_v52 = vpop.eup %12981 }
 0x775   : > { %v1802_v28 = vmul.f32 %v12982_v52, %v14327_v34 }
 0x779   : > { %11695 = vmatpush3.bf16.xpose.msk.msra.mxu1 %vm14003_vm9, %v11690_v0 }
 0x78a   : > { %v1771_v23 = vpop.xlane.xlu1 %1770 }
 0x78b   : > { %12983 = vrcp.f32 %v1771_v23 }
 0x78e   : > { %v1780_v55 = vpop.xlane.xlu1 %1779 }
 0x78f   : > { %12985 = vrcp.f32 %v1780_v55 }
 0x792   : > { %v1783_v4 = vpop.xlane.xlu0 %1782  ;;  %v1777_v43 = vpop.xlane.xlu1 %1776 }
 0x793   : > { %12987 = vrcp.f32 %v1783_v4 }
 0x794   : > { %12989 = vrcp.f32 %v1777_v43 }
 0x795   : > { %v12984_v21 = vpop.eup %12983 }
 0x796   : > { %v1984_v35 = vpop.permute.xlu0 %1983  ;;  %v1786_v2 = vpop.xlane.xlu1 %1785  ;;  %v1801_v56 = vmul.f32 %v12984_v21, %v14338_v41  ;;  %v11702_v41 = vpack.c.bf16 %v12277_v10, %v12276_v32 }
 0x797   : > { %12991 = vrcp.f32 %v1786_v2 }
 0x798   : > { %10960 = vmatprep.mubr.msk.f32.mxu1 %vm1213_vm10, %v1801_v56 }
 0x799   : > { %10961 = vmatmul.mubr.msk.f32.gmra.mrb[14].mxu1 %vm1213_vm10, %v1802_v28  ;;  %v12986_v11 = vpop.eup %12985 }
 0x79a   : > { %v1986_v31 = vpop.permute.xlu0 %1985  ;;  %v12270_v5 = vpop.permute.xlu1 %12269  ;;  %v1804_v48 = vmul.f32 %v12986_v11, %v14342_v47 }
 0x79b   : > { %v12272_v7 = vunpack.i.h.bf16 %v12270_v5  ;;  %v12271_v54 = vunpack.i.l.bf16 %v12270_v5 }
 0x79d   : > { %v12988_v49 = vpop.eup %12987  ;;  %v11696_v51 = vpack.c.bf16 %v12272_v7, %v12271_v54 }
 0x79e   : > { %v12990_v46 = vpop.eup %12989  ;;  %v1988_v12 = vpop.permute.xlu0 %1987  ;;  %v1805_v36 = vmul.f32 %v12988_v49, %v14348_v60 }
 0x79f   : > { %v1990_v0 = vpop.permute.xlu1 %1989  ;;  %11698 = vmatprep.subr.msk.bf16.mxu1 %vm14003_vm9, %v11696_v51  ;;  %v1803_v34 = vmul.f32 %v12990_v46, %v14346_v8 }
 0x7a0   : > { %11701 = vmatpush3.bf16.xpose.msk.msra.mxu1 %vm14003_vm9, %v11696_v51 }
 0x7a1   : > { %v12992_v23 = vpop.eup %12991  ;;  %10963 = vmatprep.mubr.msk.f32.mxu1 %vm1213_vm10, %v1803_v34  ;;  %11704 = vmatprep.subr.msk.bf16.mxu1 %vm14003_vm9, %v11702_v41 }
 0x7a2   : > { %10964 = vmatmul.mubr.msk.f32.gmra.mrb[16].mxu1 %vm1213_vm10, %v1804_v48  ;;  %v1992_v55 = vpop.permute.xlu0 %1991  ;;  %v1806_v43 = vmul.f32 %v12992_v23, %v14354_v6 }
 0x7a3   : > { %v1994_v4 = vpop.permute.xlu1 %1993  ;;  %10966 = vmatprep.mubr.msk.f32.mxu1 %vm1213_vm10, %v1805_v36 }
 0x7a6   : > { %10967 = vmatmul.mubr.msk.f32.gmra.mrb[18].mxu1 %vm1213_vm10, %v1806_v43  ;;  %v1996_v8 = vpop.permute.xlu0 %1995 }
 0x7a7   : > { %v1998_v47 = vpop.permute.xlu1 %1997  ;;  %10989 = vmatprep.mubr.msk.f32.mxu1 %vm1047_vm8, %v1984_v35 }
 0x7a8   : > { %11707 = vmatpush3.bf16.xpose.msk.msra.mxu1 %vm14003_vm9, %v11702_v41 }
 0x7aa   : > { %v2000_v52 = vpop.permute.xlu0 %1999 }
 0x7ab   : > { %v2002_v21 = vpop.permute.xlu1 %2001 }
 0x7ae   : > { %v12280_v60 = vpop.permute.xlu0 %12279 }
 0x7af   : > { %v12285_v2 = vpop.permute.xlu1 %12284  ;;  %v12282_v56 = vunpack.i.h.bf16 %v12280_v60  ;;  %v12281_v28 = vunpack.i.l.bf16 %v12280_v60  ;;  %10990 = vmatmul.mubr.msk.f32.vlgmr.msra.gmra.mrb[20].mxu1 %vm1047_vm8, %v1986_v31 }
 0x7b0   : > { %v12287_v5 = vunpack.i.h.bf16 %v12285_v2  ;;  %v12286_v10 = vunpack.i.l.bf16 %v12285_v2  ;;  %10992 = vmatprep.mubr.msk.f32.mxu1 %vm1047_vm8, %v1988_v12 }
 0x7b1   : > { %v11708_v6 = vpack.c.bf16 %v12282_v56, %v12281_v28 }
 0x7b2   : > { %v12290_v32 = vpop.permute.xlu0 %12289  ;;  %v11712_v35 = vpack.c.bf16 %v12287_v5, %v12286_v10 }
 0x7b3   : > { %v12292_v7 = vunpack.i.h.bf16 %v12290_v32  ;;  %v12291_v54 = vunpack.i.l.bf16 %v12290_v32  ;;  %10993 = vmatmul.mubr.msk.f32.gmra.mrb[22].mxu1 %vm1047_vm8, %v1990_v0  ;;  %11709 = vmatprep.subr.bf16.mxu0 %v11708_v6 }
 0x7b4   : > { %10995 = vmatprep.mubr.msk.f32.mxu1 %vm1047_vm8, %v1992_v55  ;;  %11711 = vmatpush3.bf16.msra.mxu0 %v11708_v6 }
 0x7b5   : > { %11713 = vmatprep.subr.bf16.mxu0 %v11712_v35  ;;  %v11716_v11 = vpack.c.bf16 %v12292_v7, %v12291_v54 }
 0x7b7   : > { %10996 = vmatmul.mubr.msk.f32.gmra.mrb[24].mxu1 %vm1047_vm8, %v1994_v4 }
 0x7b8   : > { %10998 = vmatprep.mubr.msk.f32.mxu1 %vm1047_vm8, %v1996_v8  ;;  %11715 = vmatpush3.bf16.msra.mxu0 %v11712_v35 }
 0x7b9   : > { %11717 = vmatprep.subr.bf16.mxu0 %v11716_v11 }
 0x7bb   : > { %10999 = vmatmul.mubr.msk.f32.gmra.mrb[26].mxu1 %vm1047_vm8, %v1998_v47 }
 0x7bc   : > { %11001 = vmatprep.mubr.msk.f32.mxu1 %vm1047_vm8, %v2000_v52  ;;  %11719 = vmatpush3.bf16.msra.mxu0 %v11716_v11 }
 0x7bf   : > { %11002 = vmatmul.mubr.msk.f32.gmra.mrb[28].mxu1 %vm1047_vm8, %v2002_v21 }
 0x83b   : > { %v14439_v31 = vpop.f32.mrb[10].mxu1 }
 0x83c   : > { %v14441_v49 = vpop.f32.mrb[11].mxu1 }
 0x840   : > { %v14443_v51 = vpop.f32.mrb[12].mxu1 }
 0x841   : > { %v14445_v46 = vpop.f32.mrb[13].mxu1 }
 0x86c   : > { %v14447_v12 = vpop.f32.mrb[14].mxu1 }
 0x86d   : > { %v14449_v0 = vpop.f32.mrb[15].mxu1 }
 0x875   : > { %v14451_v41 = vpop.f32.mrb[16].mxu1 }
 0x876   : > { %v14453_v34 = vpop.f32.mrb[17].mxu1 }
 0x879   : > { %v14455_v48 = vpop.f32.mrb[18].mxu1 }
 0x87a   : > { %v14457_v23 = vpop.f32.mrb[19].mxu1 }
 0x882   : > { %v10991_v36 = vpop.f32.mrb[20].mxu1 }
 0x883   : > { %v2129_v55 = vpop.f32.mrb[21].mxu1  ;;  %v2181_v4 = vsel %vm1213_vm10, %v10991_v36, -inf }
 0x884   : > { %2182 = vmax.xlane.f32.xlu1 %v2181_v4  ;;  %v2178_v43 = vsel %vm1213_vm10, %v2129_v55, -inf  ;;  %v12300_v4 = vpop.permute.xlu0 %12299 }
 0x885   : > { %2179 = vmax.xlane.f32.xlu0 %v2178_v43  ;;  %v12302_v40 = vunpack.i.h.bf16 %v12300_v4  ;;  %v12301_v30 = vunpack.i.l.bf16 %v12300_v4 }
 0x886   : > { %v10994_v8 = vpop.f32.mrb[22].mxu1 }
 0x887   : > { %v2139_v47 = vpop.f32.mrb[23].mxu1  ;;  %v2187_v52 = vsel %vm1213_vm10, %v10994_v8, -inf  ;;  %v11724_v27 = vpack.c.bf16 %v12302_v40, %v12301_v30 }
 0x888   : > { %v2184_v2 = vsel %vm1213_vm10, %v2139_v47, -inf  ;;  %v12305_v43 = vpop.permute.xlu0 %12304 }
 0x889   : > { %2188 = vmax.xlane.f32.xlu0 %v2187_v52  ;;  %v12307_v22 = vunpack.i.h.bf16 %v12305_v43  ;;  %v12306_v24 = vunpack.i.l.bf16 %v12305_v43 }
 0x88a   : > { %v10997_v21 = vpop.f32.mrb[24].mxu1 }
 0x88b   : > { %v14462_v60 = vpop.f32.mrb[25].mxu1  ;;  %v2193_v5 = vsel %vm1213_vm10, %v10997_v21, -inf }
 0x88c   : > { %v2190_v54 = vsel %vm1213_vm10, %v14462_v60, -inf }
 0x88d   : > { %2185 = vmax.xlane.f32.xlu0 %v2184_v2 }
 0x88e   : > { %v14465_v56 = vpop.f32.mrb[26].mxu1 }
 0x88f   : > { %v14467_v28 = vpop.f32.mrb[27].mxu1  ;;  %v2199_v32 = vsel %vm1213_vm10, %v14465_v56, -inf }
 0x890   : > { %v2196_v35 = vsel %vm1213_vm10, %v14467_v28, -inf }
 0x891   : > { %2194 = vmax.xlane.f32.xlu0 %v2193_v5 }
 0x892   : > { %v14470_v10 = vpop.f32.mrb[28].mxu1 }
 0x893   : > { %v14472_v6 = vpop.f32.mrb[29].mxu1  ;;  %v2205_v7 = vsel %vm1241_vm11, %v14470_v10, -inf }
 0x894   : > { %v2202_v11 = vsel %vm1213_vm10, %v14472_v6, -inf }
 0x895   : > { %12294 = vrot.lane.b32.xlu1 %v13979_v62, %s18872_s23  ;;  %2200 = vmax.xlane.f32.xlu0 %v2199_v32  ;;  %s19045_s23 = smov 104  }
 0x899   : > { %2206 = vmax.xlane.f32.xlu0 %v2205_v7 }
 0x8af   : > { %12314 = vrot.lane.b32.xlu0 %v13969_v50, %s18866_s26 }
 0x8b9   : > { %2191 = vmax.xlane.f32.xlu1 %v2190_v54 }
 0x8bd   : > { %2197 = vmax.xlane.f32.xlu1 %v2196_v35 }
 0x8c1   : > { %2203 = vmax.xlane.f32.xlu1 %v2202_v11 }
 0x8d2   : > { %12309 = vrot.lane.b32.xlu1 %v13959_v44, %s18866_s26 }
 0x911   : > { %v2183_v52 = vpop.xlane.xlu1 %2182 }
 0x912   : > { %v2209_v2 = vsub.f32 %v10991_v36, %v2183_v52  ;;  %v2180_v5 = vpop.xlane.xlu0 %2179  ;;  %v14492_v52 = vpack.c.bf16 %v12307_v22, %v12306_v24 }
 0x913   : > { %v2208_v32 = vsub.f32 %v2129_v55, %v2180_v5 }
 0x914   : > { %v2220_v7 = vmul.f32 1.442695, %v2209_v2 }
 0x915   : > { %v2218_v54 = vmul.f32 1.442695, %v2208_v32  ;;  %v12295_v29 = vpop.permute.xlu1 %12294 }
 0x916   : > { %12993 = vpow2.f32 %v2220_v7  ;;  %v12297_v35 = vunpack.i.h.bf16 %v12295_v29  ;;  %v12296_v14 = vunpack.i.l.bf16 %v12295_v29  ;;  %v2189_v25 = vpop.xlane.xlu0 %2188 }
 0x917   : > { %v2211_v13 = vsub.f32 %v10994_v8, %v2189_v25  ;;  %12995 = vpow2.f32 %v2218_v54 }
 0x918   : > { %v11720_v11 = vpack.c.bf16 %v12297_v35, %v12296_v14 }
 0x919   : > { %v2224_v15 = vmul.f32 1.442695, %v2211_v13 }
 0x91a   : > { %11721 = vmatprep.subr.bf16.mxu0 %v11720_v11  ;;  %v2186_v36 = vpop.xlane.xlu0 %2185 }
 0x91b   : > { %12997 = vpow2.f32 %v2224_v15  ;;  %v2210_v55 = vsub.f32 %v2139_v47, %v2186_v36  ;;  %11723 = vmatpush3.bf16.msra.mxu0 %v11720_v11 }
 0x91c   : > { %11726 = vmatprep.subr.msk.bf16.mxu0 %vm14105_vm14, %v11724_v27 }
 0x91d   : > { %v2222_v4 = vmul.f32 1.442695, %v2210_v55 }
 0x91e   : > { %v2195_v29 = vpop.xlane.xlu0 %2194 }
 0x91f   : > { %12999 = vpow2.f32 %v2222_v4  ;;  %v2213_v25 = vsub.f32 %v10997_v21, %v2195_v29  ;;  %11729 = vmatpush3.bf16.msk.msra.mxu0 %vm14105_vm14, %v11724_v27 }
 0x920   : > { %v14496_v13 = vpop.eup %12993  ;;  %11732 = vmatprep.subr.msk.bf16.mxu0 %vm14003_vm9, %v14492_v52 }
 0x921   : > { %v2228_v14 = vmul.f32 1.442695, %v2213_v25  ;;  %v2241_v15 = vsel %vm1213_vm10, %v14496_v13, 0.0  ;;  %v14503_v30 = vpop.eup %12995 }
 0x922   : > { %2242 = vadd.xlane.f32.xlu1 %v2241_v15  ;;  %v2238_v24 = vsel %vm1213_vm10, %v14503_v30, 0.0  ;;  %v2201_v43 = vpop.xlane.xlu0 %2200 }
 0x923   : > { %13001 = vpow2.f32 %v2228_v14  ;;  %v2215_v2 = vsub.f32 %v14465_v56, %v2201_v43 }
 0x925   : > { %v14505_v40 = vpop.eup %12997  ;;  %v2232_v7 = vmul.f32 1.442695, %v2215_v2 }
 0x926   : > { %2239 = vadd.xlane.f32.xlu1 %v2238_v24  ;;  %v2247_v27 = vsel %vm1213_vm10, %v14505_v40, 0.0  ;;  %v2207_v35 = vpop.xlane.xlu0 %2206 }
 0x927   : > { %2248 = vadd.xlane.f32.xlu0 %v2247_v27  ;;  %v2217_v55 = vsub.f32 %v14470_v10, %v2207_v35 }
 0x929   : > { %v14511_v22 = vpop.eup %12999  ;;  %v2236_v14 = vmul.f32 1.442695, %v2217_v55 }
 0x92a   : > { %v2244_v8 = vsel %vm1213_vm10, %v14511_v22, 0.0 }
 0x92b   : > { %2245 = vadd.xlane.f32.xlu1 %v2244_v8 }
 0x92d   : > { %v14515_v47 = vpop.eup %13001 }
 0x92e   : > { %v2253_v21 = vsel %vm1213_vm10, %v14515_v47, 0.0 }
 0x92f   : > { %2254 = vadd.xlane.f32.xlu1 %v2253_v21 }
 0x93d   : > { %12324 = vrot.lane.b32.xlu0 %v13989_v58, %s18866_s26 }
 0x946   : > { %v2192_v5 = vpop.xlane.xlu1 %2191 }
 0x947   : > { %v2212_v32 = vsub.f32 %v14462_v60, %v2192_v5 }
 0x949   : > { %v2226_v54 = vmul.f32 1.442695, %v2212_v32 }
 0x94a   : > { %v2198_v11 = vpop.xlane.xlu1 %2197 }
 0x94b   : > { %13003 = vpow2.f32 %v2226_v54  ;;  %v2214_v36 = vsub.f32 %v14467_v28, %v2198_v11 }
 0x94c   : > { %13005 = vpow2.f32 %v2232_v7 }
 0x94d   : > { %v2230_v4 = vmul.f32 1.442695, %v2214_v36 }
 0x94e   : > { %v2204_v29 = vpop.xlane.xlu1 %2203 }
 0x94f   : > { %v2216_v25 = vsub.f32 %v14472_v6, %v2204_v29  ;;  %13007 = vpow2.f32 %v2230_v4 }
 0x951   : > { %v2234_v56 = vmul.f32 1.442695, %v2216_v25 }
 0x953   : > { %13009 = vpow2.f32 %v2234_v56 }
 0x954   : > { %13011 = vpow2.f32 %v2236_v14 }
 0x955   : > { %v14526_v15 = vpop.eup %13003 }
 0x956   : > { %v2250_v60 = vsel %vm1213_vm10, %v14526_v15, 0.0  ;;  %v14530_v24 = vpop.eup %13005 }
 0x957   : > { %2251 = vadd.xlane.f32.xlu1 %v2250_v60  ;;  %v2259_v28 = vsel %vm1213_vm10, %v14530_v24, 0.0 }
 0x959   : > { %v14534_v10 = vpop.eup %13007 }
 0x95a   : > { %v2256_v27 = vsel %vm1213_vm10, %v14534_v10, 0.0 }
 0x95b   : > { %2260 = vadd.xlane.f32.xlu1 %v2259_v28 }
 0x95d   : > { %v14536_v6 = vpop.eup %13009 }
 0x95e   : > { %v2262_v8 = vsel %vm1213_vm10, %v14536_v6, 0.0  ;;  %v14542_v21 = vpop.eup %13011 }
 0x95f   : > { %2257 = vadd.xlane.f32.xlu1 %v2256_v27  ;;  %2263 = vadd.xlane.f32.xlu0 %v2262_v8  ;;  %v2265_v43 = vsel %vm1241_vm11, %v14542_v21, 0.0 }
 0x963   : > { %2266 = vadd.xlane.f32.xlu1 %v2265_v43 }
 0x974   : > { %12319 = vrot.lane.b32.xlu1 %v13979_v62, %s18866_s26  ;;  %s18868_s26 = smov 40  }
 0x975   : > { %2464 = vrot.lane.b32.xlu0 %v13947_v38, %s18870_s19  ;;  %v12310_v38 = vpop.permute.xlu1 %12309 }
 0x976   : > { %v12311_v2 = vunpack.i.l.bf16 %v12310_v38 }
 0x978   : > { %2470 = vrot.lane.b32.xlu1 %v14038_v59, %s18870_s19 }
 0x979   : > { %2466 = vrot.lane.b32.xlu0 %v14028_v53, %s18870_s19 }
 0x97c   : > { %2474 = vrot.lane.b32.xlu1 %v14048_v1, %s18870_s19 }
 0x97d   : > { %2468 = vrot.lane.b32.xlu0 %v14031_v57, %s18870_s19  ;;  %v12315_v57 = vpop.permute.xlu0 %12314 }
 0x97e   : > { %v12317_v35 = vunpack.i.h.bf16 %v12315_v57 }
 0x980   : > { %2478 = vrot.lane.b32.xlu1 %v14058_v39, %s18870_s19 }
 0x981   : > { %2472 = vrot.lane.b32.xlu0 %v14041_v63, %s18870_s19 }
 0x984   : > { %2482 = vrot.lane.b32.xlu1 %v14068_v45, %s18870_s19 }
 0x985   : > { %2476 = vrot.lane.b32.xlu0 %v14051_v42, %s18870_s19  ;;  %v12312_v42 = vunpack.i.h.bf16 %v12310_v38 }
 0x987   : > { %v11736_v32 = vpack.c.bf16 %v12312_v42, %v12311_v2 }
 0x988   : > { %12329 = vrot.lane.b32.xlu1 %v13945_v37, %s18868_s26 }
 0x989   : > { %2480 = vrot.lane.b32.xlu0 %v14061_v20, %s18870_s19  ;;  %s18890_s19 = smov 16  }
 0x9af   : > { %v2243_v53 = vpop.xlane.xlu1 %2242 }
 0x9b0   : > { %13013 = vrcp.f32 %v2243_v53 }
 0x9b3   : > { %v2240_v59 = vpop.xlane.xlu1 %2239 }
 0x9b4   : > { %13015 = vrcp.f32 %v2240_v59  ;;  %v2249_v63 = vpop.xlane.xlu0 %2248 }
 0x9b5   : > { %13017 = vrcp.f32 %v2249_v63 }
 0x9b8   : > { %v2246_v1 = vpop.xlane.xlu1 %2245 }
 0x9b9   : > { %13019 = vrcp.f32 %v2246_v1 }
 0x9ba   : > { %v13014_v39 = vpop.eup %13013 }
 0x9bb   : > { %v2279_v37 = vmul.f32 %v13014_v39, %v14496_v13  ;;  %v12316_v13 = vunpack.i.l.bf16 %v12315_v57 }
 0x9bd   : > { %v11742_v11 = vpack.c.bf16 %v12317_v35, %v12316_v13 }
 0x9be   : > { %v13016_v45 = vpop.eup %13015 }
 0x9bf   : > { %v2278_v5 = vmul.f32 %v13016_v45, %v14503_v30  ;;  %v13018_v20 = vpop.eup %13017 }
 0x9c0   : > { %v2281_v30 = vmul.f32 %v13018_v20, %v14505_v40  ;;  %v12325_v40 = vpop.permute.xlu0 %12324 }
 0x9c1   : > { %11024 = vmatprep.mubr.msk.f32.mxu0 %vm1213_vm10, %v2278_v5  ;;  %v12327_v27 = vunpack.i.h.bf16 %v12325_v40  ;;  %v12326_v8 = vunpack.i.l.bf16 %v12325_v40 }
 0x9c2   : > { %11025 = vmatmul.mubr.msk.f32.vlgmr.msra.gmra.mrb[30].mxu0 %vm1213_vm10, %v2279_v37 }
 0x9c3   : > { %v13020_v7 = vpop.eup %13019  ;;  %11735 = vmatpush3.bf16.xpose.msk.msra.mxu0 %vm14003_vm9, %v14492_v52  ;;  %v2255_v52 = vpop.xlane.xlu1 %2254  ;;  %v11754_v45 = vpack.c.bf16 %v12327_v27, %v12326_v8 }
 0x9c4   : > { %11738 = vmatprep.subr.msk.bf16.mxu0 %vm14003_vm9, %v11736_v32  ;;  %v2280_v54 = vmul.f32 %v13020_v7, %v14511_v22  ;;  %13021 = vrcp.f32 %v2255_v52 }
 0x9c6   : > { %11027 = vmatprep.mubr.msk.f32.mxu0 %vm1213_vm10, %v2280_v54 }
 0x9c7   : > { %11028 = vmatmul.mubr.msk.f32.gmra.mrb[32].mxu0 %vm1213_vm10, %v2281_v30 }
 0x9cb   : > { %11741 = vmatpush3.bf16.xpose.msk.msra.mxu0 %vm14003_vm9, %v11736_v32 }
 0x9cc   : > { %11744 = vmatprep.subr.msk.bf16.mxu0 %vm14003_vm9, %v11742_v11 }
 0x9ce   : > { %v13022_v29 = vpop.eup %13021 }
 0x9cf   : > { %v2283_v60 = vmul.f32 %v13022_v29, %v14515_v47 }
 0x9d3   : > { %11747 = vmatpush3.bf16.xpose.msk.msra.mxu0 %vm14003_vm9, %v11742_v11 }
 0x9e4   : > { %v2252_v22 = vpop.xlane.xlu1 %2251 }
 0x9e5   : > { %13023 = vrcp.f32 %v2252_v22 }
 0x9e8   : > { %v2261_v36 = vpop.xlane.xlu1 %2260 }
 0x9e9   : > { %13025 = vrcp.f32 %v2261_v36 }
 0x9ec   : > { %v2264_v55 = vpop.xlane.xlu0 %2263  ;;  %v2258_v4 = vpop.xlane.xlu1 %2257 }
 0x9ed   : > { %13027 = vrcp.f32 %v2264_v55 }
 0x9ee   : > { %13029 = vrcp.f32 %v2258_v4 }
 0x9ef   : > { %v13024_v25 = vpop.eup %13023 }
 0x9f0   : > { %v2267_v14 = vpop.xlane.xlu1 %2266  ;;  %v2282_v56 = vmul.f32 %v13024_v25, %v14526_v15  ;;  %v2465_v59 = vpop.permute.xlu0 %2464 }
 0x9f1   : > { %13031 = vrcp.f32 %v2267_v14 }
 0x9f2   : > { %11030 = vmatprep.mubr.msk.f32.mxu0 %vm1213_vm10, %v2282_v56 }
 0x9f3   : > { %11031 = vmatmul.mubr.msk.f32.gmra.mrb[34].mxu0 %vm1213_vm10, %v2283_v60  ;;  %v13026_v53 = vpop.eup %13025 }
 0x9f4   : > { %v12320_v28 = vpop.permute.xlu1 %12319  ;;  %v2285_v15 = vmul.f32 %v13026_v53, %v14530_v24  ;;  %v2467_v20 = vpop.permute.xlu0 %2466 }
 0x9f5   : > { %v12322_v43 = vunpack.i.h.bf16 %v12320_v28  ;;  %v12321_v38 = vunpack.i.l.bf16 %v12320_v28 }
 0x9f7   : > { %v13028_v57 = vpop.eup %13027  ;;  %v11748_v63 = vpack.c.bf16 %v12322_v43, %v12321_v38 }
 0x9f8   : > { %v13030_v1 = vpop.eup %13029  ;;  %v2471_v39 = vpop.permute.xlu1 %2470  ;;  %v2286_v2 = vmul.f32 %v13028_v57, %v14536_v6 }
 0x9f9   : > { %11750 = vmatprep.subr.msk.bf16.mxu0 %vm14003_vm9, %v11748_v63  ;;  %v2284_v47 = vmul.f32 %v13030_v1, %v14534_v10  ;;  %v2469_v24 = vpop.permute.xlu0 %2468 }
 0x9fa   : > { %11753 = vmatpush3.bf16.xpose.msk.msra.mxu0 %vm14003_vm9, %v11748_v63 }
 0x9fb   : > { %v13032_v42 = vpop.eup %13031  ;;  %11033 = vmatprep.mubr.msk.f32.mxu0 %vm1213_vm10, %v2284_v47  ;;  %11756 = vmatprep.subr.msk.bf16.mxu0 %vm14003_vm9, %v11754_v45 }
 0x9fc   : > { %11034 = vmatmul.mubr.msk.f32.gmra.mrb[36].mxu0 %vm1213_vm10, %v2285_v15  ;;  %v2475_v5 = vpop.permute.xlu1 %2474  ;;  %v2287_v37 = vmul.f32 %v13032_v42, %v14542_v21 }
 0x9fd   : > { %11036 = vmatprep.mubr.msk.f32.mxu0 %vm1213_vm10, %v2286_v2  ;;  %v2473_v6 = vpop.permute.xlu0 %2472 }
 0xa00   : > { %11037 = vmatmul.mubr.msk.f32.gmra.mrb[38].mxu0 %vm1213_vm10, %v2287_v37  ;;  %v2479_v10 = vpop.permute.xlu1 %2478 }
 0xa01   : > { %11059 = vmatprep.mubr.msk.f32.mxu0 %vm1047_vm8, %v2465_v59  ;;  %v2477_v35 = vpop.permute.xlu0 %2476 }
 0xa02   : > { %11759 = vmatpush3.bf16.xpose.msk.msra.mxu0 %vm14003_vm9, %v11754_v45 }
 0xa04   : > { %v2483_v32 = vpop.permute.xlu1 %2482 }
 0xa05   : > { %v2481_v13 = vpop.permute.xlu0 %2480 }
 0xa08   : > { %v12330_v7 = vpop.permute.xlu1 %12329 }
 0xa09   : > { %v12332_v54 = vunpack.i.h.bf16 %v12330_v7  ;;  %v12331_v30 = vunpack.i.l.bf16 %v12330_v7  ;;  %11060 = vmatmul.mubr.msk.f32.vlgmr.msra.gmra.mrb[40].mxu0 %vm1047_vm8, %v2467_v20 }
 0xa0a   : > { %11062 = vmatprep.mubr.msk.f32.mxu0 %vm1047_vm8, %v2469_v24 }
 0xa0b   : > { %v11760_v21 = vpack.c.bf16 %v12332_v54, %v12331_v30 }
 0xa0d   : > { %11063 = vmatmul.mubr.msk.f32.gmra.mrb[42].mxu0 %vm1047_vm8, %v2471_v39  ;;  %11761 = vmatprep.subr.bf16.mxu1 %v11760_v21 }
 0xa0e   : > { %11065 = vmatprep.mubr.msk.f32.mxu0 %vm1047_vm8, %v2473_v6  ;;  %11763 = vmatpush3.bf16.msra.mxu1 %v11760_v21 }
 0xa11   : > { %11066 = vmatmul.mubr.msk.f32.gmra.mrb[44].mxu0 %vm1047_vm8, %v2475_v5 }
 0xa12   : > { %11068 = vmatprep.mubr.msk.f32.mxu0 %vm1047_vm8, %v2477_v35 }
 0xa15   : > { %11069 = vmatmul.mubr.msk.f32.gmra.mrb[46].mxu0 %vm1047_vm8, %v2479_v10 }
 0xa16   : > { %11071 = vmatprep.mubr.msk.f32.mxu0 %vm1047_vm8, %v2481_v13 }
 0xa19   : > { %11072 = vmatmul.mubr.msk.f32.gmra.mrb[48].mxu0 %vm1047_vm8, %v2483_v32 }
 0xa95   : > { %v14619_v11 = vpop.f32.mrb[30].mxu0 }
 0xa96   : > { %v14621_v52 = vpop.f32.mrb[31].mxu0 }
 0xa9a   : > { %v14623_v22 = vpop.f32.mrb[32].mxu0 }
 0xa9b   : > { %v14625_v40 = vpop.f32.mrb[33].mxu0 }
 0xac6   : > { %v14627_v36 = vpop.f32.mrb[34].mxu0 }
 0xac7   : > { %v14629_v55 = vpop.f32.mrb[35].mxu0 }
 0xacf   : > { %v14631_v4 = vpop.f32.mrb[36].mxu0 }
 0xad0   : > { %v14633_v29 = vpop.f32.mrb[37].mxu0 }
 0xad3   : > { %v14635_v25 = vpop.f32.mrb[38].mxu0 }
 0xad4   : > { %v14637_v14 = vpop.f32.mrb[39].mxu0 }
 0xadc   : > { %v11061_v56 = vpop.f32.mrb[40].mxu0 }
 0xadd   : > { %v2610_v60 = vpop.f32.mrb[41].mxu0  ;;  %v2662_v28 = vsel %vm1213_vm10, %v11061_v56, -inf }
 0xade   : > { %2663 = vmax.xlane.f32.xlu1 %v2662_v28  ;;  %v2659_v27 = vsel %vm1213_vm10, %v2610_v60, -inf }
 0xadf   : > { %2660 = vmax.xlane.f32.xlu0 %v2659_v27 }
 0xae0   : > { %v11064_v8 = vpop.f32.mrb[42].mxu0 }
 0xae1   : > { %v2620_v43 = vpop.f32.mrb[43].mxu0  ;;  %v2668_v38 = vsel %vm1213_vm10, %v11064_v8, -inf }
 0xae2   : > { %v2665_v59 = vsel %vm1213_vm10, %v2620_v43, -inf }
 0xae3   : > { %2669 = vmax.xlane.f32.xlu0 %v2668_v38 }
 0xae4   : > { %v11067_v53 = vpop.f32.mrb[44].mxu0 }
 0xae5   : > { %v2630_v57 = vpop.f32.mrb[45].mxu0  ;;  %v2674_v45 = vsel %vm1213_vm10, %v11067_v53, -inf }
 0xae6   : > { %v2671_v63 = vsel %vm1213_vm10, %v2630_v57, -inf }
 0xae7   : > { %2666 = vmax.xlane.f32.xlu0 %v2665_v59  ;;  %2672 = vmax.xlane.f32.xlu1 %v2671_v63 }
 0xae8   : > { %v14644_v1 = vpop.f32.mrb[46].mxu0 }
 0xae9   : > { %v14646_v39 = vpop.f32.mrb[47].mxu0  ;;  %v2680_v2 = vsel %vm1213_vm10, %v14644_v1, -inf }
 0xaea   : > { %v2677_v47 = vsel %vm1213_vm10, %v14646_v39, -inf }
 0xaeb   : > { %2675 = vmax.xlane.f32.xlu0 %v2674_v45  ;;  %2678 = vmax.xlane.f32.xlu1 %v2677_v47 }
 0xaec   : > { %v14651_v15 = vpop.f32.mrb[48].mxu0 }
 0xaed   : > { %v14653_v42 = vpop.f32.mrb[49].mxu0  ;;  %v2686_v37 = vsel %vm1241_vm11, %v14651_v15, -inf }
 0xaee   : > { %v2683_v5 = vsel %vm1213_vm10, %v14653_v42, -inf }
 0xaef   : > { %2681 = vmax.xlane.f32.xlu0 %v2680_v2  ;;  %2684 = vmax.xlane.f32.xlu1 %v2683_v5 }
 0xaf3   : > { %2687 = vmax.xlane.f32.xlu0 %v2686_v37 }
 0xb00   : > { %12339 = vrot.lane.b32.xlu1 %v13969_v50, %s18868_s26 }
 0xb09   : > { %12334 = vrot.lane.b32.xlu0 %v13959_v44, %s18868_s26 }
 0xb6b   : > { %v2664_v20 = vpop.xlane.xlu1 %2663 }
 0xb6c   : > { %v2690_v10 = vsub.f32 %v11061_v56, %v2664_v20  ;;  %v2661_v24 = vpop.xlane.xlu0 %2660 }
 0xb6d   : > { %v2689_v32 = vsub.f32 %v2610_v60, %v2661_v24 }
 0xb6e   : > { %v2701_v7 = vmul.f32 1.442695, %v2690_v10 }
 0xb6f   : > { %v2699_v6 = vmul.f32 1.442695, %v2689_v32 }
 0xb70   : > { %13033 = vpow2.f32 %v2701_v7  ;;  %v2670_v54 = vpop.xlane.xlu0 %2669 }
 0xb71   : > { %13035 = vpow2.f32 %v2699_v6  ;;  %v2692_v30 = vsub.f32 %v11064_v8, %v2670_v54 }
 0xb73   : > { %v2705_v21 = vmul.f32 1.442695, %v2692_v30 }
 0xb74   : > { %v2667_v35 = vpop.xlane.xlu0 %2666  ;;  %v2673_v13 = vpop.xlane.xlu1 %2672 }
 0xb75   : > { %13037 = vpow2.f32 %v2705_v21  ;;  %v2691_v28 = vsub.f32 %v2620_v43, %v2667_v35  ;;  %v2693_v27 = vsub.f32 %v2630_v57, %v2673_v13 }
 0xb77   : > { %v2703_v50 = vmul.f32 1.442695, %v2691_v28  ;;  %v2707_v38 = vmul.f32 1.442695, %v2693_v27 }
 0xb78   : > { %v2676_v59 = vpop.xlane.xlu0 %2675  ;;  %v2679_v44 = vpop.xlane.xlu1 %2678 }
 0xb79   : > { %13039 = vpow2.f32 %v2703_v50  ;;  %v2694_v56 = vsub.f32 %v11067_v53, %v2676_v59  ;;  %v2695_v50 = vsub.f32 %v14646_v39, %v2679_v44 }
 0xb7a   : > { %v14665_v63 = vpop.eup %13033  ;;  %13041 = vpow2.f32 %v2707_v38 }
 0xb7b   : > { %v14667_v60 = vpop.eup %13035  ;;  %v2709_v45 = vmul.f32 1.442695, %v2694_v56  ;;  %v2722_v8 = vsel %vm1213_vm10, %v14665_v63, 0.0  ;;  %v2711_v59 = vmul.f32 1.442695, %v2695_v50 }
 0xb7c   : > { %v2682_v47 = vpop.xlane.xlu0 %2681  ;;  %2723 = vadd.xlane.f32.xlu0 %v2722_v8  ;;  %v2685_v2 = vpop.xlane.xlu1 %2684  ;;  %v2719_v43 = vsel %vm1213_vm10, %v14667_v60, 0.0 }
 0xb7d   : > { %13043 = vpow2.f32 %v2709_v45  ;;  %2720 = vadd.xlane.f32.xlu1 %v2719_v43  ;;  %v2696_v38 = vsub.f32 %v14644_v1, %v2682_v47  ;;  %v2697_v56 = vsub.f32 %v14653_v42, %v2685_v2 }
 0xb7e   : > { %13045 = vpow2.f32 %v2711_v59 }
 0xb7f   : > { %v14673_v57 = vpop.eup %13037  ;;  %v2713_v45 = vmul.f32 1.442695, %v2696_v38  ;;  %v2715_v8 = vmul.f32 1.442695, %v2697_v56 }
 0xb80   : > { %v2688_v53 = vpop.xlane.xlu0 %2687  ;;  %v2728_v5 = vsel %vm1213_vm10, %v14673_v57, 0.0  ;;  %v12340_v37 = vpop.permute.xlu1 %12339 }
 0xb81   : > { %2729 = vadd.xlane.f32.xlu0 %v2728_v5  ;;  %v12342_v24 = vunpack.i.h.bf16 %v12340_v37  ;;  %v12341_v6 = vunpack.i.l.bf16 %v12340_v37  ;;  %v2698_v43 = vsub.f32 %v14651_v15, %v2688_v53  ;;  %13047 = vpow2.f32 %v2713_v45 }
 0xb82   : > { %13049 = vpow2.f32 %v2715_v8 }
 0xb83   : > { %v14677_v20 = vpop.eup %13039  ;;  %v11768_v27 = vpack.c.bf16 %v12342_v24, %v12341_v6  ;;  %v2717_v5 = vmul.f32 1.442695, %v2698_v43 }
 0xb84   : > { %v14679_v10 = vpop.eup %13041  ;;  %v12335_v32 = vpop.permute.xlu0 %12334  ;;  %v2725_v7 = vsel %vm1213_vm10, %v14677_v20, 0.0 }
 0xb85   : > { %v12337_v54 = vunpack.i.h.bf16 %v12335_v32  ;;  %v12336_v30 = vunpack.i.l.bf16 %v12335_v32  ;;  %2726 = vadd.xlane.f32.xlu0 %v2725_v7  ;;  %v2731_v21 = vsel %vm1213_vm10, %v14679_v10, 0.0  ;;  %13051 = vpow2.f32 %v2717_v5  ;;  %v3097_v5 = vld [vmem:[%s18833_s4] sm:$0xff] }
 0xb86   : > { %2732 = vadd.xlane.f32.xlu1 %v2731_v21 }
 0xb87   : > { %v14685_v35 = vpop.eup %13043  ;;  %v11764_v13 = vpack.c.bf16 %v12337_v54, %v12336_v30 }
 0xb88   : > { %v2734_v28 = vsel %vm1213_vm10, %v14685_v35, 0.0 }
 0xb89   : > { %2735 = vadd.xlane.f32.xlu0 %v2734_v28  ;;  %11765 = vmatprep.subr.bf16.mxu1 %v11764_v13 }
 0xb8a   : > { %11767 = vmatpush3.bf16.msra.mxu1 %v11764_v13 }
 0xb8b   : > { %11769 = vmatprep.subr.bf16.mxu1 %v11768_v27 }
 0xb8e   : > { %11771 = vmatpush3.bf16.msra.mxu1 %v11768_v27 }
 0xb97   : > { %12344 = vrot.lane.b32.xlu1 %v13979_v62, %s18868_s26  ;;  %v14697_v62 = vpop.eup %13045 }
 0xb98   : > { %v14699_v37 = vpop.eup %13047 }
 0xb99   : > { %v14703_v1 = vpop.eup %13049  ;;  %v2740_v39 = vsel %vm1213_vm10, %v14699_v37, 0.0 }
 0xb9a   : > { %v2743_v15 = vsel %vm1213_vm10, %v14703_v1, 0.0  ;;  %v14709_v42 = vpop.eup %13051 }
 0xb9b   : > { %v2746_v44 = vsel %vm1241_vm11, %v14709_v42, 0.0 }
 0xb9f   : > { %12349 = vrot.lane.b32.xlu0 %v13989_v58, %s18868_s26  ;;  %v2737_v58 = vsel %vm1213_vm10, %v14697_v62, 0.0  ;;  %s18892_s26 = smov 8  }
 0xbbb   : > { %2738 = vadd.xlane.f32.xlu1 %v2737_v58 }
 0xbbe   : > { %2741 = vadd.xlane.f32.xlu0 %v2740_v39 }
 0xbbf   : > { %2744 = vadd.xlane.f32.xlu1 %v2743_v15 }
 0xbc3   : > { %2747 = vadd.xlane.f32.xlu1 %v2746_v44 }
 0xbd4   : > { %2957 = vrot.lane.b32.xlu1 %v14439_v31, %s18892_s26  ;;  %2955 = vrot.lane.b32.xlu0 %v14441_v49, %s18892_s26 }
 0xbd8   : > { %2995 = vrot.lane.b32.xlu1 %v14621_v52, %s18890_s19  ;;  %2997 = vrot.lane.b32.xlu0 %v14619_v11, %s18890_s19 }
 0xbdc   : > { %2959 = vrot.lane.b32.xlu1 %v14445_v46, %s18892_s26  ;;  %2961 = vrot.lane.b32.xlu0 %v14443_v51, %s18892_s26 }
 0xbe0   : > { %2999 = vrot.lane.b32.xlu1 %v14625_v40, %s18890_s19  ;;  %3001 = vrot.lane.b32.xlu0 %v14623_v22, %s18890_s19 }
 0xbe4   : > { %2963 = vrot.lane.b32.xlu1 %v14449_v0, %s18892_s26  ;;  %2965 = vrot.lane.b32.xlu0 %v14447_v12, %s18892_s26 }
 0xbe8   : > { %3003 = vrot.lane.b32.xlu1 %v14629_v55, %s18890_s19  ;;  %3005 = vrot.lane.b32.xlu0 %v14627_v36, %s18890_s19 }
 0xc09   : > { %v2724_v31 = vpop.xlane.xlu0 %2723 }
 0xc0a   : > { %v2721_v49 = vpop.xlane.xlu1 %2720 }
 0xc0b   : > { %13053 = vrcp.f32 %v2721_v49 }
 0xc0c   : > { %13055 = vrcp.f32 %v2724_v31 }
 0xc0e   : > { %v2730_v51 = vpop.xlane.xlu0 %2729 }
 0xc12   : > { %v2727_v46 = vpop.xlane.xlu0 %2726 }
 0xc13   : > { %v2733_v11 = vpop.xlane.xlu1 %2732  ;;  %13057 = vrcp.f32 %v2727_v46 }
 0xc14   : > { %13059 = vrcp.f32 %v2730_v51 }
 0xc15   : > { %v13054_v52 = vpop.eup %13053  ;;  %13061 = vrcp.f32 %v2733_v11 }
 0xc16   : > { %v2736_v22 = vpop.xlane.xlu0 %2735  ;;  %v2759_v0 = vmul.f32 %v13054_v52, %v14667_v60  ;;  %v13056_v32 = vpop.eup %13055 }
 0xc17   : > { %v12345_v40 = vpop.permute.xlu1 %12344  ;;  %13063 = vrcp.f32 %v2736_v22  ;;  %v2760_v7 = vmul.f32 %v13056_v32, %v14665_v63 }
 0xc18   : > { %v12347_v12 = vunpack.i.h.bf16 %v12345_v40  ;;  %v12346_v47 = vunpack.i.l.bf16 %v12345_v40  ;;  %11094 = vmatprep.mubr.msk.f32.mxu1 %vm1213_vm10, %v2759_v0 }
 0xc1a   : > { %v12350_v36 = vpop.permute.xlu0 %12349  ;;  %v11772_v55 = vpack.c.bf16 %v12347_v12, %v12346_v47 }
 0xc1b   : > { %v12352_v2 = vunpack.i.h.bf16 %v12350_v36  ;;  %v12351_v53 = vunpack.i.l.bf16 %v12350_v36 }
 0xc1c   : > { %11773 = vmatprep.subr.bf16.mxu1 %v11772_v55 }
 0xc1d   : > { %v11776_v24 = vpack.c.bf16 %v12352_v2, %v12351_v53  ;;  %11775 = vmatpush3.bf16.msra.mxu1 %v11772_v55  ;;  %v13058_v60 = vpop.eup %13057 }
 0xc1e   : > { %v13060_v6 = vpop.eup %13059  ;;  %v2761_v54 = vmul.f32 %v13058_v60, %v14677_v20 }
 0xc1f   : > { %11778 = vmatprep.subr.msk.bf16.mxu1 %vm14105_vm14, %v11776_v24  ;;  %v13062_v30 = vpop.eup %13061  ;;  %v2762_v21 = vmul.f32 %v13060_v6, %v14673_v57 }
 0xc20   : > { %v2763_v28 = vmul.f32 %v13062_v30, %v14679_v10 }
 0xc21   : > { %11781 = vmatpush3.bf16.msk.msra.mxu1 %vm14105_vm14, %v11776_v24  ;;  %v13064_v13 = vpop.eup %13063 }
 0xc22   : > { %v2764_v27 = vmul.f32 %v13064_v13, %v14685_v35 }
 0xc24   : > { %11095 = vmatmul.mubr.msk.f32.vlgmr.msra.gmra.mrb[30].mxu1 %vm1213_vm10, %v2760_v7 }
 0xc25   : > { %11097 = vmatprep.mubr.msk.f32.mxu1 %vm1213_vm10, %v2761_v54 }
 0xc28   : > { %11098 = vmatmul.mubr.msk.f32.gmra.mrb[32].mxu1 %vm1213_vm10, %v2762_v21 }
 0xc29   : > { %11100 = vmatprep.mubr.msk.f32.mxu1 %vm1213_vm10, %v2763_v28 }
 0xc2c   : > { %11101 = vmatmul.mubr.msk.f32.gmra.mrb[34].mxu1 %vm1213_vm10, %v2764_v27 }
 0xc48   : > { %v2739_v63 = vpop.xlane.xlu1 %2738 }
 0xc49   : > { %13065 = vrcp.f32 %v2739_v63 }
 0xc4b   : > { %v2742_v20 = vpop.xlane.xlu0 %2741 }
 0xc4c   : > { %13067 = vrcp.f32 %v2742_v20  ;;  %v2745_v50 = vpop.xlane.xlu1 %2744 }
 0xc4d   : > { %13069 = vrcp.f32 %v2745_v50 }
 0xc50   : > { %v2748_v38 = vpop.xlane.xlu1 %2747 }
 0xc51   : > { %13071 = vrcp.f32 %v2748_v38 }
 0xc53   : > { %v13066_v57 = vpop.eup %13065 }
 0xc54   : > { %v2765_v59 = vmul.f32 %v13066_v57, %v14697_v62  ;;  %v3098_v62 = vld [vmem:[%s18833_s4 + $0x8] sm:$0xff] }
 0xc55   : > { %v11782_v58 = vpack.c.bf16 %v3098_v62, %v3097_v5 }
 0xc56   : > { %v13068_v10 = vpop.eup %13067  ;;  %11103 = vmatprep.mubr.msk.f32.mxu1 %vm1213_vm10, %v2765_v59 }
 0xc57   : > { %v13070_v56 = vpop.eup %13069  ;;  %v2766_v45 = vmul.f32 %v13068_v10, %v14699_v37  ;;  %v3099_v37 = vld [vmem:[%s18833_s4 + $0x10] sm:$0xff]  ;;  %11783 = vmatprep.subr.bf16.mxu0 %v11782_v58  ;;  %12062 = vmatprep.subr.bf16.mxu1 %v11782_v58 }
 0xc58   : > { %v2767_v35 = vmul.f32 %v13070_v56, %v14703_v1  ;;  %v3100_v1 = vld [vmem:[%s18833_s4 + $0x18] sm:$0xff]  ;;  %11785 = vmatpush3.bf16.msra.mxu0 %v11782_v58  ;;  %12064 = vmatpush3.bf16.msra.mxu1 %v11782_v58 }
 0xc59   : > { %11104 = vmatmul.mubr.msk.f32.gmra.mrb[36].mxu1 %vm1213_vm10, %v2766_v45  ;;  %v11786_v39 = vpack.c.bf16 %v3100_v1, %v3099_v37 }
 0xc5a   : > { %11106 = vmatprep.mubr.msk.f32.mxu1 %vm1213_vm10, %v2767_v35 }
 0xc5b   : > { %v13072_v8 = vpop.eup %13071  ;;  %11787 = vmatprep.subr.bf16.mxu0 %v11786_v39  ;;  %12063 = vmatprep.subr.bf16.mxu1 %v11786_v39 }
 0xc5c   : > { %v2768_v43 = vmul.f32 %v13072_v8, %v14709_v42  ;;  %11789 = vmatpush3.bf16.msra.mxu0 %v11786_v39  ;;  %12065 = vmatpush3.bf16.msra.mxu1 %v11786_v39 }
 0xc5e   : > { %11107 = vmatmul.mubr.msk.f32.gmra.mrb[38].mxu1 %vm1213_vm10, %v2768_v43 }
 0xcf7   : > { %v11096_v15 = vpop.f32.mrb[30].mxu1 }
 0xcf8   : > { %3037 = vrot.lane.b32.xlu0 %v11096_v15, %s18888_s27  ;;  %v2896_v42 = vpop.f32.mrb[31].mxu1 }
 0xcf9   : > { %3035 = vrot.lane.b32.xlu1 %v2896_v42, %s18888_s27 }
 0xcfb   : > { %v11099_v44 = vpop.f32.mrb[32].mxu1 }
 0xcfc   : > { %2969 = vrot.lane.b32.xlu0 %v14451_v41, %s18892_s26  ;;  %v2906_v31 = vpop.f32.mrb[33].mxu1 }
 0xcfd   : > { %2967 = vrot.lane.b32.xlu1 %v14453_v34, %s18892_s26 }
 0xcff   : > { %v11102_v49 = vpop.f32.mrb[34].mxu1 }
 0xd00   : > { %3041 = vrot.lane.b32.xlu0 %v11099_v44, %s18888_s27  ;;  %v2916_v51 = vpop.f32.mrb[35].mxu1 }
 0xd01   : > { %3039 = vrot.lane.b32.xlu1 %v2906_v31, %s18888_s27 }
 0xd04   : > { %3009 = vrot.lane.b32.xlu0 %v14631_v4, %s18890_s19 }
 0xd05   : > { %3007 = vrot.lane.b32.xlu1 %v14633_v29, %s18890_s19 }
 0xd08   : > { %3045 = vrot.lane.b32.xlu0 %v11102_v49, %s18888_s27  ;;  %v19013_v49 = vld [vmem:[#allocation22_spill] sm:$0xff] }
 0xd09   : > { %3043 = vrot.lane.b32.xlu1 %v2916_v51, %s18888_s27 }
 0xd0c   : > { %2973 = vrot.lane.b32.xlu0 %v14455_v48, %s18892_s26  ;;  %v2956_v48 = vpop.permute.xlu0 %2955 }
 0xd0d   : > { %2971 = vrot.lane.b32.xlu1 %v14457_v23, %s18892_s26  ;;  %v2958_v23 = vpop.permute.xlu1 %2957  ;;  %s19038_s26 = smov 56  }
 0xd0e   : > { %v3066_v55 = vsel %vm1047_vm8, %v14251_v16, %v2958_v23  ;;  %v9816_v23 = vld [vmem:[%s18834_s5] ss:$0 sm:$0xff] }
 0xd10   : > { %v2998_v46 = vpop.permute.xlu0 %2997 }
 0xd11   : > { %v2996_v11 = vpop.permute.xlu1 %2995  ;;  %v3077_v32 = vsel %vm3075_vm15, %v3066_v55, %v2998_v46 }
 0xd14   : > { %v2962_v52 = vpop.permute.xlu0 %2961 }
 0xd15   : > { %v2960_v22 = vpop.permute.xlu1 %2959  ;;  %v3068_v30 = vsel %vm1047_vm8, %v14255_v17, %v2962_v52 }
 0xd16   : > { %v3067_v54 = vsel %vm1047_vm8, %v14257_v3, %v2960_v22 }
 0xd18   : > { %v3002_v0 = vpop.permute.xlu0 %3001 }
 0xd19   : > { %v3000_v40 = vpop.permute.xlu1 %2999  ;;  %v3079_v28 = vsel %vm3075_vm15, %v3068_v30, %v3002_v0  ;;  %v19014_v0 = vld [vmem:[#allocation13_spill] sm:$0xff] }
 0xd1a   : > { %v3078_v21 = vsel %vm3075_vm15, %v3067_v54, %v3000_v40 }
 0xd1c   : > { %v2966_v12 = vpop.permute.xlu0 %2965 }
 0xd1d   : > { %v2964_v47 = vpop.permute.xlu1 %2963  ;;  %v3070_v17 = vsel %vm1047_vm8, %v14259_v18, %v2966_v12  ;;  %v19011_v18 = vld [vmem:[#allocation21_spill] sm:$0xff]  ;;  %v19015_v12 = vld [vmem:[#allocation11_spill] sm:$0xff] }
 0xd1e   : > { %v3069_v3 = vsel %vm1047_vm8, %v14261_v19, %v2964_v47 }
 0xd20   : > { %v3006_v36 = vpop.permute.xlu0 %3005 }
 0xd21   : > { %v3081_v10 = vsel %vm3075_vm15, %v3070_v17, %v3006_v36 }
 0xd2c   : > { %v11105_v41 = vpop.f32.mrb[36].mxu1 }
 0xd2d   : > { %3049 = vrot.lane.b32.xlu0 %v11105_v41, %s18888_s27  ;;  %v2926_v34 = vpop.f32.mrb[37].mxu1 }
 0xd2e   : > { %3047 = vrot.lane.b32.xlu1 %v2926_v34, %s18888_s27 }
 0xd31   : > { %v11108_v4 = vpop.f32.mrb[38].mxu1  ;;  %3013 = vrot.lane.b32.xlu0 %v14635_v25, %s18890_s19  ;;  %v3004_v25 = vpop.permute.xlu1 %3003 }
 0xd32   : > { %v2936_v29 = vpop.f32.mrb[39].mxu1  ;;  %3011 = vrot.lane.b32.xlu1 %v14637_v14, %s18890_s19  ;;  %v3065_v14 = vsel %vm1047_vm8, %v14253_v9, %v2956_v48  ;;  %v3080_v57 = vsel %vm3075_vm15, %v3069_v3, %v3004_v25  ;;  %s19039_s19 = smov 80  }
 0xd33   : > { %v3076_v53 = vsel %vm3075_vm15, %v3065_v14, %v2996_v11 }
 0xd35   : > { %3053 = vrot.lane.b32.xlu0 %v11108_v4, %s18888_s27 }
 0xd36   : > { %3051 = vrot.lane.b32.xlu1 %v2936_v29, %s18888_s27  ;;  %s19036_s27 = smov 88  }
 0xd6a   : > { %v3038_v2 = vpop.permute.xlu0 %3037 }
 0xd6b   : > { %v3036_v24 = vpop.permute.xlu1 %3035  ;;  %v3088_v7 = vsel %vm3086_vm2, %v3077_v32, %v3038_v2 }
 0xd6c   : > { %v3087_v60 = vsel %vm3086_vm2, %v3076_v53, %v3036_v24  ;;  %v19016_v24 = vld [vmem:[#allocation14_spill] sm:$0xff] }
 0xd6d   : > { %11117 = vmatprep.mubr.msk.f32.mxu0 %vm615_vm0, %v3087_v60  ;;  %v19017_v60 = vld [vmem:[#allocation12_spill] sm:$0xff] }
 0xd6e   : > { %v2970_v6 = vpop.permute.xlu0 %2969  ;;  %11118 = vmatmul.mubr.msk.f32.vlgmr.msra.gmra.mrb[50].mxu0 %vm615_vm0, %v3088_v7 }
 0xd6f   : > { %v2968_v16 = vpop.permute.xlu1 %2967  ;;  %v3072_v5 = vsel %vm1047_vm8, %v19011_v18, %v2970_v6 }
 0xd70   : > { %v3071_v19 = vsel %vm1047_vm8, %v14265_v26, %v2968_v16  ;;  %v19012_v26 = vld [vmem:[#allocation23_spill] sm:$0xff] }
 0xd72   : > { %v3042_v9 = vpop.permute.xlu0 %3041 }
 0xd73   : > { %v3040_v13 = vpop.permute.xlu1 %3039  ;;  %v3090_v63 = vsel %vm3086_vm2, %v3079_v28, %v3042_v9 }
 0xd74   : > { %v3089_v27 = vsel %vm3086_vm2, %v3078_v21, %v3040_v13  ;;  %v19018_v13 = vld [vmem:[#allocation16_spill] sm:$0xff] }
 0xd75   : > { %11120 = vmatprep.mubr.msk.f32.mxu1 %vm615_vm0, %v3089_v27  ;;  %v19019_v27 = vld [vmem:[#allocation15_spill] sm:$0xff] }
 0xd76   : > { %v3010_v20 = vpop.permute.xlu0 %3009  ;;  %11121 = vmatmul.mubr.msk.f32.vlgmr.msra.gmra.mrb[40].mxu1 %vm615_vm0, %v3090_v63 }
 0xd77   : > { %v3008_v50 = vpop.permute.xlu1 %3007  ;;  %v3083_v58 = vsel %vm3075_vm15, %v3072_v5, %v3010_v20 }
 0xd78   : > { %v3082_v62 = vsel %vm3075_vm15, %v3071_v19, %v3008_v50 }
 0xd7a   : > { %v3046_v38 = vpop.permute.xlu0 %3045 }
 0xd7b   : > { %v3044_v59 = vpop.permute.xlu1 %3043  ;;  %v3092_v45 = vsel %vm3086_vm2, %v3081_v10, %v3046_v38 }
 0xd7c   : > { %v3091_v56 = vsel %vm3086_vm2, %v3080_v57, %v3044_v59  ;;  %v19020_v59 = vld [vmem:[#allocation18_spill] sm:$0xff] }
 0xd7d   : > { %11123 = vmatprep.mubr.msk.f32.mxu1 %vm615_vm0, %v3091_v56  ;;  %v19021_v56 = vld [vmem:[#allocation17_spill] sm:$0xff] }
 0xd7e   : > { %11124 = vmatmul.mubr.msk.f32.gmra.mrb[42].mxu1 %vm615_vm0, %v3092_v45  ;;  %v2974_v35 = vpop.permute.xlu0 %2973 }
 0xd7f   : > { %v2972_v8 = vpop.permute.xlu1 %2971  ;;  %v3074_v51 = vsel %vm1047_vm8, %v19013_v49, %v2974_v35 }
 0xd80   : > { %v3073_v44 = vsel %vm1047_vm8, %v19012_v26, %v2972_v8 }
 0xd9f   : > { %v3050_v43 = vpop.permute.xlu0 %3049 }
 0xda0   : > { %v3048_v37 = vpop.permute.xlu1 %3047  ;;  %v3094_v39 = vsel %vm3086_vm2, %v3083_v58, %v3050_v43  ;;  %v19023_v58 = vld [vmem:[#allocation19_spill] sm:$0xff] }
 0xda1   : > { %v3093_v1 = vsel %vm3086_vm2, %v3082_v62, %v3048_v37  ;;  %v19022_v62 = vld [vmem:[#allocation20_spill] sm:$0xff] }
 0xda2   : > { %11126 = vmatprep.mubr.msk.f32.mxu1 %vm615_vm0, %v3093_v1 }
 0xda3   : > { %v3014_v15 = vpop.permute.xlu0 %3013  ;;  %11127 = vmatmul.mubr.msk.f32.gmra.mrb[44].mxu1 %vm615_vm0, %v3094_v39 }
 0xda4   : > { %v3012_v42 = vpop.permute.xlu1 %3011  ;;  %v3085_v4 = vsel %vm3075_vm15, %v3074_v51, %v3014_v15 }
 0xda5   : > { %v3084_v41 = vsel %vm3075_vm15, %v3073_v44, %v3012_v42 }
 0xda7   : > { %v3054_v31 = vpop.permute.xlu0 %3053 }
 0xda8   : > { %v3052_v34 = vpop.permute.xlu1 %3051  ;;  %v3096_v48 = vsel %vm3086_vm2, %v3085_v4, %v3054_v31 }
 0xda9   : > { %v3095_v29 = vsel %vm3086_vm2, %v3084_v41, %v3052_v34 }
 0xdaa   : > { %11129 = vmatprep.mubr.msk.f32.mxu1 %vm615_vm0, %v3095_v29 }
 0xdab   : > { %11130 = vmatmul.mubr.msk.f32.gmra.mrb[46].mxu1 %vm615_vm0, %v3096_v48 }
 0xe41   : > { %v11119_v46 = vpop.f32.mrb[50].mxu0 }
 0xe42   : > { %v3210_v11 = vadd.f32 %v11119_v46, %v9816_v23  ;;  %v3204_v52 = vpop.f32.mrb[51].mxu0 }
 0xe43   : > { %v3205_v22 = vadd.f32 %v9816_v23, %v3204_v52 }
 0xe44   : > { %v14853_v40 = vadd.f32 %v3210_v11, %v19014_v0 }
 0xe45   : > { %v14856_v47 = vadd.f32 %v3205_v22, %v19015_v12 }
 0xe46   : > { %v3268_v36 = vsel %vm615_vm0, %v14853_v40, 0.0 }
 0xe47   : > { %3269 = vadd.xlane.f32.xlu0 %v3268_v36  ;;  %v3265_v25 = vsel %vm615_vm0, %v14856_v47, 0.0 }
 0xe48   : > { %3266 = vadd.xlane.f32.xlu1 %v3265_v25 }
 0xe49   : > { %v11122_v55 = vpop.f32.mrb[40].mxu1 }
 0xe4a   : > { %v3220_v14 = vadd.f32 %v11122_v55, %v9816_v23  ;;  %v3214_v2 = vpop.f32.mrb[41].mxu1 }
 0xe4b   : > { %v3215_v53 = vadd.f32 %v9816_v23, %v3214_v2 }
 0xe4c   : > { %v14863_v32 = vadd.f32 %v3220_v14, %v19016_v24 }
 0xe4d   : > { %v14866_v7 = vadd.f32 %v3215_v53, %v19017_v60 }
 0xe4e   : > { %v3274_v6 = vsel %vm615_vm0, %v14863_v32, 0.0 }
 0xe4f   : > { %3275 = vadd.xlane.f32.xlu1 %v3274_v6  ;;  %v3271_v16 = vsel %vm615_vm0, %v14866_v7, 0.0 }
 0xe50   : > { %3272 = vadd.xlane.f32.xlu0 %v3271_v16 }
 0xe51   : > { %v11125_v54 = vpop.f32.mrb[42].mxu1 }
 0xe52   : > { %v3230_v9 = vadd.f32 %v11125_v54, %v9816_v23  ;;  %v3224_v30 = vpop.f32.mrb[43].mxu1 }
 0xe53   : > { %v3225_v21 = vadd.f32 %v9816_v23, %v3224_v30  ;;  %v3497_v30 = vld [vmem:[%s18839_s10] sm:$0xff] }
 0xe54   : > { %v14873_v28 = vadd.f32 %v3230_v9, %v19018_v13 }
 0xe55   : > { %v14876_v63 = vadd.f32 %v3225_v21, %v19019_v27  ;;  %v3498_v21 = vld [vmem:[%s18839_s10 + $0x8] sm:$0xff]  ;;  %v3499_v27 = vld [vmem:[%s18839_s10 + $0x10] sm:$0xff] }
 0xe56   : > { %v3280_v20 = vsel %vm615_vm0, %v14873_v28, 0.0  ;;  %v11790_v13 = vpack.c.bf16 %v3498_v21, %v3497_v30 }
 0xe57   : > { %3281 = vadd.xlane.f32.xlu1 %v3280_v20  ;;  %v3277_v50 = vsel %vm615_vm0, %v14876_v63, 0.0  ;;  %v3500_v20 = vld [vmem:[%s18839_s10 + $0x18] sm:$0xff] }
 0xe58   : > { %3278 = vadd.xlane.f32.xlu0 %v3277_v50  ;;  %11791 = vmatprep.subr.bf16.mxu0 %v11790_v13 }
 0xe59   : > { %11793 = vmatpush3.bf16.msra.mxu0 %v11790_v13 }
 0xe76   : > { %v11128_v3 = vpop.f32.mrb[44].mxu1 }
 0xe77   : > { %v3240_v38 = vadd.f32 %v11128_v3, %v9816_v23  ;;  %v3234_v17 = vpop.f32.mrb[45].mxu1  ;;  %v11794_v3 = vpack.c.bf16 %v3500_v20, %v3499_v27 }
 0xe78   : > { %v3235_v57 = vadd.f32 %v9816_v23, %v3234_v17 }
 0xe79   : > { %v14883_v10 = vadd.f32 %v3240_v38, %v19020_v59  ;;  %11795 = vmatprep.subr.bf16.mxu0 %v11794_v3 }
 0xe7a   : > { %v14886_v45 = vadd.f32 %v3235_v57, %v19021_v56  ;;  %11797 = vmatpush3.bf16.msra.mxu0 %v11794_v3 }
 0xe7b   : > { %v3286_v35 = vsel %vm615_vm0, %v14883_v10, 0.0 }
 0xe7c   : > { %3287 = vadd.xlane.f32.xlu1 %v3286_v35  ;;  %v3283_v8 = vsel %vm615_vm0, %v14886_v45, 0.0 }
 0xe7d   : > { %3284 = vadd.xlane.f32.xlu0 %v3283_v8 }
 0xe7e   : > { %v11131_v19 = vpop.f32.mrb[46].mxu1 }
 0xe7f   : > { %v3250_v43 = vadd.f32 %v11131_v19, %v9816_v23  ;;  %v3244_v18 = vpop.f32.mrb[47].mxu1 }
 0xe80   : > { %v3245_v5 = vadd.f32 %v9816_v23, %v3244_v18 }
 0xe81   : > { %v14893_v37 = vadd.f32 %v3250_v43, %v19022_v62 }
 0xe82   : > { %v14896_v1 = vadd.f32 %v3245_v5, %v19023_v58 }
 0xe83   : > { %v3292_v39 = vsel %vm643_vm1, %v14893_v37, 0.0 }
 0xe84   : > { %3293 = vadd.xlane.f32.xlu1 %v3292_v39  ;;  %v3289_v15 = vsel %vm615_vm0, %v14896_v1, 0.0 }
 0xe85   : > { %3290 = vadd.xlane.f32.xlu0 %v3289_v15 }
 0xed4   : > { %v3270_v42 = vpop.xlane.xlu0 %3269 }
 0xed5   : > { %v3296_v26 = vmul.f32 0.03125, %v3270_v42  ;;  %v3267_v44 = vpop.xlane.xlu1 %3266 }
 0xed6   : > { %v3295_v31 = vmul.f32 0.03125, %v3267_v44 }
 0xed7   : > { %v14903_v49 = vsub.f32 %v14853_v40, %v3296_v26 }
 0xed8   : > { %v14906_v51 = vsub.f32 %v14856_v47, %v3295_v31 }
 0xed9   : > { %v3316_v41 = vmul.f32 %v14903_v49, %v14903_v49 }
 0xeda   : > { %v3315_v34 = vmul.f32 %v14906_v51, %v14906_v51 }
 0xedb   : > { %v3328_v4 = vsel %vm615_vm0, %v3316_v41, 0.0  ;;  %v3663_v41 = vld [vmem:[%s18841_s12] sm:$0xff] }
 0xedc   : > { %v3276_v29 = vpop.xlane.xlu1 %3275  ;;  %3329 = vadd.xlane.f32.xlu1 %v3328_v4  ;;  %v3325_v48 = vsel %vm615_vm0, %v3315_v34, 0.0  ;;  %v3664_v34 = vld [vmem:[%s18841_s12 + $0x8] sm:$0xff]  ;;  %v3665_v4 = vld [vmem:[%s18841_s12 + $0x10] sm:$0xff] }
 0xedd   : > { %v3298_v23 = vmul.f32 0.03125, %v3276_v29  ;;  %3326 = vadd.xlane.f32.xlu0 %v3325_v48  ;;  %v3273_v46 = vpop.xlane.xlu0 %3272  ;;  %v11798_v29 = vpack.c.bf16 %v3664_v34, %v3663_v41  ;;  %v3666_v48 = vld [vmem:[%s18841_s12 + $0x18] sm:$0xff] }
 0xede   : > { %v3297_v11 = vmul.f32 0.03125, %v3273_v46  ;;  %v3667_v46 = vld [vmem:[%s18841_s12 + $0x20] sm:$0xff] }
 0xedf   : > { %v14915_v52 = vsub.f32 %v14863_v32, %v3298_v23  ;;  %v11802_v23 = vpack.c.bf16 %v3666_v48, %v3665_v4  ;;  %11799 = vmatprep.subr.bf16.mxu1 %v11798_v29 }
 0xee0   : > { %v14918_v22 = vsub.f32 %v14866_v7, %v3297_v11  ;;  %v3668_v11 = vld [vmem:[%s18841_s12 + $0x28] sm:$0xff]  ;;  %11801 = vmatpush3.bf16.msra.mxu1 %v11798_v29  ;;  %v14995_v29 = vld [vmem:[%s18837_s8] ss:$0 sm:$0xff] }
 0xee1   : > { %v3318_v0 = vmul.f32 %v14915_v52, %v14915_v52  ;;  %11803 = vmatprep.subr.bf16.mxu1 %v11802_v23 }
 0xee2   : > { %v3317_v12 = vmul.f32 %v14918_v22, %v14918_v22 }
 0xee3   : > { %v3334_v36 = vsel %vm615_vm0, %v3318_v0, 0.0  ;;  %v11806_v0 = vpack.c.bf16 %v3668_v11, %v3667_v46 }
 0xee4   : > { %v3282_v25 = vpop.xlane.xlu1 %3281  ;;  %3335 = vadd.xlane.f32.xlu1 %v3334_v36  ;;  %v3331_v55 = vsel %vm615_vm0, %v3317_v12, 0.0  ;;  %11805 = vmatpush3.bf16.msra.mxu1 %v11802_v23 }
 0xee5   : > { %v3300_v14 = vmul.f32 0.03125, %v3282_v25  ;;  %3332 = vadd.xlane.f32.xlu0 %v3331_v55  ;;  %v3279_v2 = vpop.xlane.xlu0 %3278  ;;  %11807 = vmatprep.subr.bf16.mxu1 %v11806_v0 }
 0xee6   : > { %v3299_v53 = vmul.f32 0.03125, %v3279_v2 }
 0xee7   : > { %v14927_v24 = vsub.f32 %v14873_v28, %v3300_v14 }
 0xee8   : > { %v14930_v60 = vsub.f32 %v14876_v63, %v3299_v53  ;;  %11809 = vmatpush3.bf16.msra.mxu1 %v11806_v0  ;;  %v3462_v0 = vmul.f32 %v14995_v29, %v14903_v49 }
 0xee9   : > { %v3320_v6 = vmul.f32 %v14927_v24, %v14927_v24 }
 0xeea   : > { %v3319_v16 = vmul.f32 %v14930_v60, %v14930_v60 }
 0xeeb   : > { %v3340_v54 = vsel %vm615_vm0, %v3320_v6, 0.0 }
 0xeec   : > { %3341 = vadd.xlane.f32.xlu1 %v3340_v54  ;;  %v3337_v9 = vsel %vm615_vm0, %v3319_v16, 0.0 }
 0xeed   : > { %3338 = vadd.xlane.f32.xlu0 %v3337_v9 }
 0xf09   : > { %v3288_v50 = vpop.xlane.xlu1 %3287 }
 0xf0a   : > { %v3302_v38 = vmul.f32 0.03125, %v3288_v50  ;;  %v3285_v17 = vpop.xlane.xlu0 %3284 }
 0xf0b   : > { %v3301_v57 = vmul.f32 0.03125, %v3285_v17 }
 0xf0c   : > { %v14951_v59 = vsub.f32 %v14883_v10, %v3302_v38 }
 0xf0d   : > { %v14954_v56 = vsub.f32 %v14886_v45, %v3301_v57 }
 0xf0e   : > { %v3322_v35 = vmul.f32 %v14951_v59, %v14951_v59 }
 0xf0f   : > { %v3321_v8 = vmul.f32 %v14954_v56, %v14954_v56 }
 0xf10   : > { %v3346_v19 = vsel %vm615_vm0, %v3322_v35, 0.0 }
 0xf11   : > { %3347 = vadd.xlane.f32.xlu1 %v3346_v19  ;;  %v3294_v43 = vpop.xlane.xlu1 %3293  ;;  %v3343_v18 = vsel %vm615_vm0, %v3321_v8, 0.0 }
 0xf12   : > { %v3304_v5 = vmul.f32 0.03125, %v3294_v43  ;;  %3344 = vadd.xlane.f32.xlu0 %v3343_v18  ;;  %v3291_v62 = vpop.xlane.xlu0 %3290 }
 0xf13   : > { %v3303_v58 = vmul.f32 0.03125, %v3291_v62 }
 0xf14   : > { %v14963_v39 = vsub.f32 %v14893_v37, %v3304_v5 }
 0xf15   : > { %v14966_v15 = vsub.f32 %v14896_v1, %v3303_v58 }
 0xf16   : > { %v3324_v42 = vmul.f32 %v14963_v39, %v14963_v39 }
 0xf17   : > { %v3323_v26 = vmul.f32 %v14966_v15, %v14966_v15 }
 0xf18   : > { %v3352_v44 = vsel %vm643_vm1, %v3324_v42, 0.0 }
 0xf19   : > { %3353 = vadd.xlane.f32.xlu1 %v3352_v44  ;;  %v3349_v31 = vsel %vm615_vm0, %v3323_v26, 0.0 }
 0xf1a   : > { %3350 = vadd.xlane.f32.xlu0 %v3349_v31 }
 0xf69   : > { %v3330_v12 = vpop.xlane.xlu1 %3329 }
 0xf6a   : > { %v3356_v36 = vmul.f32 0.032258064, %v3330_v12  ;;  %v3327_v25 = vpop.xlane.xlu0 %3326 }
 0xf6b   : > { %v3355_v55 = vmul.f32 0.032258064, %v3327_v25 }
 0xf6c   : > { %13073 = vrsqrt.f32 %v3356_v36  ;;  %vm3374_vm3 = vcmp.eq.f32.partialorder %v3356_v36, inf  ;;  %v3377_v30 = vand.u32 2147483648, %v3356_v36  ;;  %vm3376_vm4 = vcmp.eq.f32.partialorder %v3356_v36, 0.0 }
 0xf6d   : > { %13075 = vrsqrt.f32 %v3355_v55  ;;  %vm3367_vm5 = vcmp.eq.f32.partialorder %v3355_v55, inf  ;;  %v3370_v27 = vand.u32 2147483648, %v3355_v55  ;;  %vm3369_vm6 = vcmp.eq.f32.partialorder %v3355_v55, 0.0 }
 0xf71   : > { %v3336_v14 = vpop.xlane.xlu1 %3335 }
 0xf72   : > { %v3358_v2 = vmul.f32 0.032258064, %v3336_v14  ;;  %v3333_v53 = vpop.xlane.xlu0 %3332 }
 0xf73   : > { %v3357_v6 = vmul.f32 0.032258064, %v3333_v53  ;;  %v15004_v53 = vld [vmem:[%s18838_s9] ss:$0 sm:$0xff] }
 0xf74   : > { %13077 = vrsqrt.f32 %v3358_v2  ;;  %vm3388_vm7 = vcmp.eq.f32.partialorder %v3358_v2, inf  ;;  %v3391_v62 = vand.u32 2147483648, %v3358_v2  ;;  %vm3390_vm13 = vcmp.eq.f32.partialorder %v3358_v2, 0.0 }
 0xf75   : > { %13079 = vrsqrt.f32 %v3357_v6  ;;  %v3384_v26 = vand.u32 2147483648, %v3357_v6 }
 0xf76   : > { %v13074_v16 = vpop.eup %13073 }
 0xf77   : > { %v13076_v54 = vpop.eup %13075  ;;  %v3373_v9 = vmul.f32 %v13074_v16, %v3356_v36 }
 0xf78   : > { %v3366_v21 = vmul.f32 %v13076_v54, %v3355_v55 }
 0xf79   : > { %v3375_v13 = vsel %vm3374_vm3, %v3356_v36, %v3373_v9  ;;  %v3342_v20 = vpop.xlane.xlu1 %3341  ;;  %vm3381_vm3 = vcmp.eq.f32.partialorder %v3357_v6, inf  ;;  %v3461_v36 = vmul.f32 %v14995_v29, %v14906_v51 }
 0xf7a   : > { %v3378_v50 = vsel %vm3376_vm4, %v3377_v30, %v3375_v13  ;;  %v3368_v3 = vsel %vm3367_vm5, %v3355_v55, %v3366_v21  ;;  %v3360_v38 = vmul.f32 0.032258064, %v3342_v20  ;;  %v3339_v17 = vpop.xlane.xlu0 %3338  ;;  %vm3383_vm4 = vcmp.eq.f32.partialorder %v3357_v6, 0.0 }
 0xf7b   : > { %v3436_v57 = vadd.f32 1e-06, %v3378_v50  ;;  %v3359_v35 = vmul.f32 0.032258064, %v3339_v17  ;;  %v3371_v8 = vsel %vm3369_vm6, %v3370_v27, %v3368_v3  ;;  %v3464_v13 = vmul.f32 %v14995_v29, %v14915_v52 }
 0xf7c   : > { %13081 = vrsqrt.f32 %v3360_v38  ;;  %v3435_v43 = vadd.f32 1e-06, %v3371_v8  ;;  %vm3402_vm5 = vcmp.eq.f32.partialorder %v3360_v38, inf  ;;  %v3405_v12 = vand.u32 2147483648, %v3360_v38 }
 0xf7d   : > { %13083 = vrcp.f32 %v3436_v57  ;;  %vm3404_vm6 = vcmp.eq.f32.partialorder %v3360_v38, 0.0  ;;  %v3463_v50 = vmul.f32 %v14995_v29, %v14918_v22  ;;  %v3466_v22 = vmul.f32 %v14995_v29, %v14927_v24 }
 0xf7e   : > { %v13078_v19 = vpop.eup %13077  ;;  %13085 = vrsqrt.f32 %v3359_v35  ;;  %v3465_v8 = vmul.f32 %v14995_v29, %v14930_v60 }
 0xf7f   : > { %v13080_v18 = vpop.eup %13079  ;;  %v3387_v5 = vmul.f32 %v13078_v19, %v3358_v2  ;;  %13087 = vrcp.f32 %v3435_v43 }
 0xf80   : > { %v3380_v58 = vmul.f32 %v13080_v18, %v3357_v6 }
 0xf81   : > { %v3389_v42 = vsel %vm3388_vm7, %v3358_v2, %v3387_v5  ;;  %vm3395_vm7 = vcmp.eq.f32.partialorder %v3359_v35, inf  ;;  %v3398_v2 = vand.u32 2147483648, %v3359_v35 }
 0xf82   : > { %v3382_v44 = vsel %vm3381_vm3, %v3357_v6, %v3380_v58  ;;  %v3392_v31 = vsel %vm3390_vm13, %v3391_v62, %v3389_v42  ;;  %vm3397_vm13 = vcmp.eq.f32.partialorder %v3359_v35, 0.0 }
 0xf83   : > { %v3385_v41 = vsel %vm3383_vm4, %v3384_v26, %v3382_v44  ;;  %v3438_v34 = vadd.f32 1e-06, %v3392_v31 }
 0xf84   : > { %v3437_v4 = vadd.f32 1e-06, %v3385_v41 }
 0xf85   : > { %13089 = vrcp.f32 %v3438_v34 }
 0xf86   : > { %v13082_v48 = vpop.eup %13081  ;;  %13091 = vrcp.f32 %v3437_v4 }
 0xf87   : > { %v13084_v23 = vpop.eup %13083  ;;  %v3401_v46 = vmul.f32 %v13082_v48, %v3360_v38 }
 0xf88   : > { %v13086_v11 = vpop.eup %13085  ;;  %v3472_v6 = vmul.f32 %v13084_v23, %v3462_v0 }
 0xf89   : > { %v3403_v25 = vsel %vm3402_vm5, %v3360_v38, %v3401_v46  ;;  %v3394_v55 = vmul.f32 %v13086_v11, %v3359_v35  ;;  %v13088_v14 = vpop.eup %13087 }
 0xf8a   : > { %v3406_v16 = vsel %vm3404_vm6, %v3405_v12, %v3403_v25  ;;  %v3471_v49 = vmul.f32 %v13088_v14, %v3461_v36  ;;  %v3488_v27 = vadd.f32 %v15004_v53, %v3472_v6 }
 0xf8b   : > { %v3396_v54 = vsel %vm3395_vm7, %v3359_v35, %v3394_v55  ;;  %v3440_v9 = vadd.f32 1e-06, %v3406_v16 }
 0xf8c   : > { %v3399_v30 = vsel %vm3397_vm13, %v3398_v2, %v3396_v54  ;;  %v3487_v51 = vadd.f32 %v15004_v53, %v3471_v49 }
 0xf8d   : > { %v3439_v21 = vadd.f32 1e-06, %v3399_v30  ;;  %13093 = vrcp.f32 %v3440_v9 }
 0xf8e   : > { %11140 = vmatprep.mubr.msk.f32.mxu0 %vm615_vm0, %v3487_v51 }
 0xf8f   : > { %v13090_v20 = vpop.eup %13089  ;;  %13095 = vrcp.f32 %v3439_v21  ;;  %11141 = vmatmul.mubr.msk.f32.vlgmr.msra.gmra.mrb[52].mxu0 %vm615_vm0, %v3488_v27 }
 0xf90   : > { %v13092_v3 = vpop.eup %13091  ;;  %v3474_v38 = vmul.f32 %v13090_v20, %v3464_v13 }
 0xf91   : > { %v3473_v17 = vmul.f32 %v13092_v3, %v3463_v50  ;;  %v3468_v50 = vmul.f32 %v14995_v29, %v14951_v59 }
 0xf92   : > { %v3490_v35 = vadd.f32 %v15004_v53, %v3474_v38  ;;  %v3467_v38 = vmul.f32 %v14995_v29, %v14954_v56 }
 0xf93   : > { %v3489_v57 = vadd.f32 %v15004_v53, %v3473_v17 }
 0xf95   : > { %11143 = vmatprep.mubr.msk.f32.mxu0 %vm615_vm0, %v3489_v57 }
 0xf96   : > { %11144 = vmatmul.mubr.msk.f32.gmra.mrb[54].mxu0 %vm615_vm0, %v3490_v35 }
 0xf97   : > { %v13094_v52 = vpop.eup %13093 }
 0xf98   : > { %v3476_v43 = vmul.f32 %v13094_v52, %v3466_v22 }
 0xf99   : > { %v13096_v19 = vpop.eup %13095 }
 0xf9a   : > { %v3475_v18 = vmul.f32 %v13096_v19, %v3465_v8  ;;  %v3492_v62 = vadd.f32 %v15004_v53, %v3476_v43  ;;  %v3470_v8 = vmul.f32 %v14995_v29, %v14963_v39  ;;  %v3469_v19 = vmul.f32 %v14995_v29, %v14966_v15  ;;  %v3669_v39 = vld [vmem:[%s18841_s12 + $0x30] sm:$0xff]  ;;  %v9829_v29 = vld [vmem:[%s18840_s11] ss:$0 sm:$0xff] }
 0xf9c   : > { %v3491_v5 = vadd.f32 %v15004_v53, %v3475_v18 }
 0xf9e   : > { %11146 = vmatprep.mubr.msk.f32.mxu0 %vm615_vm0, %v3491_v5  ;;  %v3348_v58 = vpop.xlane.xlu1 %3347 }
 0xf9f   : > { %11147 = vmatmul.mubr.msk.f32.gmra.mrb[56].mxu0 %vm615_vm0, %v3492_v62  ;;  %v3362_v42 = vmul.f32 0.032258064, %v3348_v58  ;;  %v3345_v26 = vpop.xlane.xlu0 %3344  ;;  %v3670_v58 = vld [vmem:[%s18841_s12 + $0x38] sm:$0xff] }
 0xfa0   : > { %v3361_v44 = vmul.f32 0.032258064, %v3345_v26  ;;  %v11810_v15 = vpack.c.bf16 %v3670_v58, %v3669_v39 }
 0xfa1   : > { %13097 = vrsqrt.f32 %v3362_v42  ;;  %vm3416_vm3 = vcmp.eq.f32.partialorder %v3362_v42, inf  ;;  %v3419_v23 = vand.u32 2147483648, %v3362_v42  ;;  %vm3418_vm4 = vcmp.eq.f32.partialorder %v3362_v42, 0.0 }
 0xfa2   : > { %13099 = vrsqrt.f32 %v3361_v44  ;;  %vm3409_vm5 = vcmp.eq.f32.partialorder %v3361_v44, inf  ;;  %v3412_v0 = vand.u32 2147483648, %v3361_v44  ;;  %vm3411_vm6 = vcmp.eq.f32.partialorder %v3361_v44, 0.0  ;;  %11811 = vmatprep.subr.bf16.mxu1 %v11810_v15 }
 0xfa3   : > { %11813 = vmatpush3.bf16.msra.mxu1 %v11810_v15 }
 0xfa6   : > { %v3354_v24 = vpop.xlane.xlu1 %3353 }
 0xfa7   : > { %v3364_v31 = vmul.f32 0.032258064, %v3354_v24  ;;  %v3351_v60 = vpop.xlane.xlu0 %3350 }
 0xfa8   : > { %v3363_v41 = vmul.f32 0.032258064, %v3351_v60 }
 0xfa9   : > { %13101 = vrsqrt.f32 %v3364_v31  ;;  %vm3430_vm7 = vcmp.eq.f32.partialorder %v3364_v31, inf  ;;  %v3433_v54 = vand.u32 2147483648, %v3364_v31  ;;  %vm3432_vm13 = vcmp.eq.f32.partialorder %v3364_v31, 0.0 }
 0xfaa   : > { %13103 = vrsqrt.f32 %v3363_v41  ;;  %v3426_v30 = vand.u32 2147483648, %v3363_v41  ;;  %vm3425_vm12 = vcmp.eq.f32.partialorder %v3363_v41, 0.0 }
 0xfab   : > { %v13098_v34 = vpop.eup %13097 }
 0xfac   : > { %v13100_v4 = vpop.eup %13099  ;;  %v3415_v48 = vmul.f32 %v13098_v34, %v3362_v42 }
 0xfad   : > { %v3408_v46 = vmul.f32 %v13100_v4, %v3361_v44 }
 0xfae   : > { %v3417_v11 = vsel %vm3416_vm3, %v3362_v42, %v3415_v48  ;;  %vm3423_vm3 = vcmp.eq.f32.partialorder %v3363_v41, inf }
 0xfaf   : > { %v3410_v12 = vsel %vm3409_vm5, %v3361_v44, %v3408_v46  ;;  %v3420_v36 = vsel %vm3418_vm4, %v3419_v23, %v3417_v11 }
 0xfb0   : > { %v3413_v25 = vsel %vm3411_vm6, %v3412_v0, %v3410_v12  ;;  %v3442_v55 = vadd.f32 1e-06, %v3420_v36 }
 0xfb1   : > { %v3441_v14 = vadd.f32 1e-06, %v3413_v25 }
 0xfb2   : > { %13105 = vrcp.f32 %v3442_v55 }
 0xfb3   : > { %v13102_v2 = vpop.eup %13101  ;;  %13107 = vrcp.f32 %v3441_v14 }
 0xfb4   : > { %v13104_v6 = vpop.eup %13103  ;;  %v3429_v16 = vmul.f32 %v13102_v2, %v3364_v31 }
 0xfb5   : > { %v3422_v49 = vmul.f32 %v13104_v6, %v3363_v41 }
 0xfb6   : > { %v3431_v9 = vsel %vm3430_vm7, %v3364_v31, %v3429_v16 }
 0xfb7   : > { %v3424_v51 = vsel %vm3423_vm3, %v3363_v41, %v3422_v49  ;;  %v3434_v21 = vsel %vm3432_vm13, %v3433_v54, %v3431_v9 }
 0xfb8   : > { %v3427_v13 = vsel %vm3425_vm12, %v3426_v30, %v3424_v51  ;;  %v3444_v27 = vadd.f32 1e-06, %v3434_v21  ;;  %vm18895_vm12 = vcmask 523264  }
 0xfb9   : > { %v3443_v20 = vadd.f32 1e-06, %v3427_v13 }
 0xfba   : > { %13109 = vrcp.f32 %v3444_v27  ;;  %v9840_v27 = vld [vmem:[%s18842_s13] ss:$0 sm:$0xff] }
 0xfbb   : > { %13111 = vrcp.f32 %v3443_v20 }
 0xfbc   : > { %v13106_v3 = vpop.eup %13105 }
 0xfbd   : > { %v13108_v17 = vpop.eup %13107  ;;  %v3478_v57 = vmul.f32 %v13106_v3, %v3468_v50 }
 0xfbe   : > { %v3477_v35 = vmul.f32 %v13108_v17, %v3467_v38 }
 0xfbf   : > { %v3494_v22 = vadd.f32 %v15004_v53, %v3478_v57 }
 0xfc0   : > { %v3493_v52 = vadd.f32 %v15004_v53, %v3477_v35 }
 0xfc2   : > { %11149 = vmatprep.mubr.msk.f32.mxu0 %vm615_vm0, %v3493_v52 }
 0xfc3   : > { %11150 = vmatmul.mubr.msk.f32.gmra.mrb[58].mxu0 %vm615_vm0, %v3494_v22 }
 0xfc4   : > { %v13110_v59 = vpop.eup %13109 }
 0xfc5   : > { %v13112_v43 = vpop.eup %13111  ;;  %v3480_v56 = vmul.f32 %v13110_v59, %v3470_v8 }
 0xfc6   : > { %v3479_v18 = vmul.f32 %v13112_v43, %v3469_v19 }
 0xfc7   : > { %v3496_v62 = vadd.f32 %v15004_v53, %v3480_v56 }
 0xfc8   : > { %v3495_v5 = vadd.f32 %v15004_v53, %v3479_v18 }
 0xfca   : > { %11152 = vmatprep.mubr.msk.f32.mxu0 %vm615_vm0, %v3495_v5 }
 0xfcb   : > { %11153 = vmatmul.mubr.msk.f32.gmra.mrb[60].mxu0 %vm615_vm0, %v3496_v62 }
0x1062   : > { %v11142_v53 = vpop.f32.mrb[52].mxu0 }
0x1063   : > { %v3610_v42 = vadd.f32 %v11142_v53, %v9829_v29  ;;  %v3604_v26 = vpop.f32.mrb[53].mxu0 }
0x1064   : > { %v3605_v44 = vadd.f32 %v9829_v29, %v3604_v26 }
0x1065   : > { %v3654_v31 = vmax.f32 %v3610_v42, 0.0 }
0x1066   : > { %v3653_v24 = vmax.f32 %v3605_v44, 0.0 }
0x1068   : > { %11171 = vmatprep.mubr.msk.f32.mxu1 %vm18895_vm12, %v3653_v24 }
0x1069   : > { %v11145_v60 = vpop.f32.mrb[54].mxu0  ;;  %11172 = vmatmul.mubr.msk.f32.vlgmr.msra.gmra.mrb[48].mxu1 %vm18895_vm12, %v3654_v31 }
0x106a   : > { %v3620_v41 = vadd.f32 %v11145_v60, %v9829_v29  ;;  %v3614_v34 = vpop.f32.mrb[55].mxu0 }
0x106b   : > { %v3615_v4 = vadd.f32 %v9829_v29, %v3614_v34 }
0x106c   : > { %v3656_v23 = vmax.f32 %v3620_v41, 0.0 }
0x106d   : > { %v3655_v48 = vmax.f32 %v3615_v4, 0.0 }
0x106f   : > { %11174 = vmatprep.mubr.msk.f32.mxu1 %vm18895_vm12, %v3655_v48 }
0x1070   : > { %11175 = vmatmul.mubr.msk.f32.gmra.mrb[50].mxu1 %vm18895_vm12, %v3656_v23 }
0x1072   : > { %v11148_v46 = vpop.f32.mrb[56].mxu0 }
0x1073   : > { %v3630_v11 = vadd.f32 %v11148_v46, %v9829_v29  ;;  %v3624_v0 = vpop.f32.mrb[57].mxu0 }
0x1074   : > { %v3625_v12 = vadd.f32 %v9829_v29, %v3624_v0 }
0x1075   : > { %v3658_v25 = vmax.f32 %v3630_v11, 0.0 }
0x1076   : > { %v3657_v36 = vmax.f32 %v3625_v12, 0.0 }
0x1078   : > { %11177 = vmatprep.mubr.msk.f32.mxu1 %vm18895_vm12, %v3657_v36 }
0x1079   : > { %11178 = vmatmul.mubr.msk.f32.gmra.mrb[52].mxu1 %vm18895_vm12, %v3658_v25 }
0x1096   : > { %v11151_v55 = vpop.f32.mrb[58].mxu0 }
0x1097   : > { %v3640_v14 = vadd.f32 %v11151_v55, %v9829_v29  ;;  %v3634_v2 = vpop.f32.mrb[59].mxu0 }
0x1098   : > { %v3635_v6 = vadd.f32 %v9829_v29, %v3634_v2 }
0x1099   : > { %v3660_v54 = vmax.f32 %v3640_v14, 0.0 }
0x109a   : > { %v3659_v16 = vmax.f32 %v3635_v6, 0.0 }
0x109c   : > { %11180 = vmatprep.mubr.msk.f32.mxu1 %vm18895_vm12, %v3659_v16 }
0x109d   : > { %11181 = vmatmul.mubr.msk.f32.gmra.mrb[54].mxu1 %vm18895_vm12, %v3660_v54 }
0x109e   : > { %v11154_v49 = vpop.f32.mrb[60].mxu0 }
0x109f   : > { %v3650_v9 = vadd.f32 %v11154_v49, %v9829_v29  ;;  %v3644_v30 = vpop.f32.mrb[61].mxu0 }
0x10a0   : > { %v3645_v51 = vadd.f32 %v9829_v29, %v3644_v30 }
0x10a1   : > { %v3662_v13 = vmax.f32 %v3650_v9, 0.0 }
0x10a2   : > { %v3661_v21 = vmax.f32 %v3645_v51, 0.0 }
0x10a4   : > { %11183 = vmatprep.mubr.msk.f32.mxu1 %vm18895_vm12, %v3661_v21 }
0x10a5   : > { %11184 = vmatmul.mubr.msk.f32.gmra.mrb[56].mxu1 %vm18895_vm12, %v3662_v13 }
0x113c   : > { %v11173_v20 = vpop.f32.mrb[48].mxu1 }
0x113d   : > { %v3781_v50 = vadd.f32 %v11173_v20, %v9840_v27  ;;  %v3775_v3 = vpop.f32.mrb[49].mxu1 }
0x113e   : > { %v3776_v38 = vadd.f32 %v9840_v27, %v3775_v3 }
0x113f   : > { %v15065_v17 = vadd.f32 %v3781_v50, %v14853_v40 }
0x1140   : > { %v15068_v57 = vadd.f32 %v3776_v38, %v14856_v47 }
0x1141   : > { %19024 = vst [vmem:[#allocation21_spill] sm:$0xff] %v15065_v17  ;;  %v3841_v35 = vsel %vm615_vm0, %v15065_v17, 0.0 }
0x1142   : > { %19025 = vst [vmem:[#allocation23_spill] sm:$0xff] %v15068_v57  ;;  %3842 = vadd.xlane.f32.xlu1 %v3841_v35  ;;  %v3838_v52 = vsel %vm615_vm0, %v15068_v57, 0.0 }
0x1143   : > { %v11176_v22 = vpop.f32.mrb[50].mxu1  ;;  %3839 = vadd.xlane.f32.xlu0 %v3838_v52 }
0x1144   : > { %v3791_v8 = vadd.f32 %v11176_v22, %v9840_v27  ;;  %v3785_v59 = vpop.f32.mrb[51].mxu1 }
0x1145   : > { %v3786_v19 = vadd.f32 %v9840_v27, %v3785_v59  ;;  %v9855_v59 = vld [vmem:[%s19003_s25 + $0x20] sm:$0xff] }
0x1146   : > { %v15075_v43 = vadd.f32 %v3791_v8, %v14863_v32 }
0x1147   : > { %v15078_v40 = vadd.f32 %v3786_v19, %v14866_v7  ;;  %v9856_v19 = vld [vmem:[%s19003_s25 + $0x28] sm:$0xff] }
0x1148   : > { %19026 = vst [vmem:[#allocation22_spill] sm:$0xff] %v15075_v43  ;;  %v3847_v47 = vsel %vm615_vm0, %v15075_v43, 0.0 }
0x1149   : > { %19027 = vst [vmem:[#allocation13_spill] sm:$0xff] %v15078_v40  ;;  %3848 = vadd.xlane.f32.xlu1 %v3847_v47  ;;  %v3844_v56 = vsel %vm615_vm0, %v15078_v40, 0.0  ;;  %v11814_v47 = vpack.c.bf16 %v9856_v19, %v9855_v59 }
0x114a   : > { %3845 = vadd.xlane.f32.xlu0 %v3844_v56 }
0x114b   : > { %11815 = vmatprep.subr.bf16.mxu0 %v11814_v47 }
0x114c   : > { %v11179_v18 = vpop.f32.mrb[52].mxu1  ;;  %11817 = vmatpush3.bf16.msra.mxu0 %v11814_v47 }
0x114d   : > { %v3801_v5 = vadd.f32 %v11179_v18, %v9840_v27  ;;  %v3795_v62 = vpop.f32.mrb[53].mxu1  ;;  %v9857_v18 = vld [vmem:[%s19003_s25 + $0x30] sm:$0xff] }
0x114e   : > { %v3796_v39 = vadd.f32 %v9840_v27, %v3795_v62 }
0x114f   : > { %v15085_v58 = vadd.f32 %v3801_v5, %v14873_v28  ;;  %v9858_v5 = vld [vmem:[%s19003_s25 + $0x38] sm:$0xff] }
0x1150   : > { %v15088_v32 = vadd.f32 %v3796_v39, %v14876_v63 }
0x1151   : > { %19028 = vst [vmem:[#allocation11_spill] sm:$0xff] %v15085_v58  ;;  %v3853_v7 = vsel %vm615_vm0, %v15085_v58, 0.0 }
0x1152   : > { %19029 = vst [vmem:[#allocation14_spill] sm:$0xff] %v15088_v32  ;;  %3854 = vadd.xlane.f32.xlu1 %v3853_v7  ;;  %v3850_v15 = vsel %vm615_vm0, %v15088_v32, 0.0  ;;  %v11818_v7 = vpack.c.bf16 %v9858_v5, %v9857_v18 }
0x1153   : > { %3851 = vadd.xlane.f32.xlu0 %v3850_v15 }
0x1154   : > { %11819 = vmatprep.subr.bf16.mxu0 %v11818_v7 }
0x1155   : > { %11821 = vmatpush3.bf16.msra.mxu0 %v11818_v7 }
0x1170   : > { %v11182_v29 = vpop.f32.mrb[54].mxu1 }
0x1171   : > { %v3811_v53 = vadd.f32 %v11182_v29, %v9840_v27  ;;  %v3805_v42 = vpop.f32.mrb[55].mxu1 }
0x1172   : > { %v3806_v26 = vadd.f32 %v9840_v27, %v3805_v42 }
0x1173   : > { %v15095_v44 = vadd.f32 %v3811_v53, %v14883_v10 }
0x1174   : > { %v15098_v28 = vadd.f32 %v3806_v26, %v14886_v45 }
0x1175   : > { %19030 = vst [vmem:[#allocation12_spill] sm:$0xff] %v15095_v44  ;;  %v3859_v63 = vsel %vm615_vm0, %v15095_v44, 0.0 }
0x1176   : > { %19031 = vst [vmem:[#allocation16_spill] sm:$0xff] %v15098_v28  ;;  %3860 = vadd.xlane.f32.xlu1 %v3859_v63  ;;  %v3856_v24 = vsel %vm615_vm0, %v15098_v28, 0.0 }
0x1177   : > { %3857 = vadd.xlane.f32.xlu0 %v3856_v24 }
0x1178   : > { %v11185_v31 = vpop.f32.mrb[56].mxu1 }
0x1179   : > { %v3821_v60 = vadd.f32 %v11185_v31, %v9840_v27  ;;  %v3815_v41 = vpop.f32.mrb[57].mxu1 }
0x117a   : > { %v3816_v34 = vadd.f32 %v9840_v27, %v3815_v41 }
0x117b   : > { %v15105_v4 = vadd.f32 %v3821_v60, %v14893_v37 }
0x117c   : > { %v15108_v10 = vadd.f32 %v3816_v34, %v14896_v1 }
0x117d   : > { %19032 = vst [vmem:[#allocation15_spill] sm:$0xff] %v15105_v4  ;;  %v3865_v45 = vsel %vm643_vm1, %v15105_v4, 0.0 }
0x117e   : > { %19033 = vst [vmem:[#allocation18_spill] sm:$0xff] %v15108_v10  ;;  %3866 = vadd.xlane.f32.xlu1 %v3865_v45  ;;  %v3862_v48 = vsel %vm615_vm0, %v15108_v10, 0.0 }
0x117f   : > { %3863 = vadd.xlane.f32.xlu0 %v3862_v48 }
0x11cf   : > { %v3843_v23 = vpop.xlane.xlu1 %3842 }
0x11d0   : > { %v3869_v46 = vmul.f32 0.03125, %v3843_v23  ;;  %v3840_v11 = vpop.xlane.xlu0 %3839 }
0x11d1   : > { %v3868_v0 = vmul.f32 0.03125, %v3840_v11 }
0x11d2   : > { %v15115_v12 = vsub.f32 %v15065_v17, %v3869_v46 }
0x11d3   : > { %v15118_v37 = vsub.f32 %v15068_v57, %v3868_v0 }
0x11d4   : > { %v3889_v1 = vmul.f32 %v15115_v12, %v15115_v12 }
0x11d5   : > { %v3888_v25 = vmul.f32 %v15118_v37, %v15118_v37 }
0x11d6   : > { %v3849_v36 = vpop.xlane.xlu1 %3848  ;;  %v3901_v14 = vsel %vm615_vm0, %v3889_v1, 0.0 }
0x11d7   : > { %v3871_v55 = vmul.f32 0.03125, %v3849_v36  ;;  %v3846_v2 = vpop.xlane.xlu0 %3845  ;;  %3902 = vadd.xlane.f32.xlu1 %v3901_v14  ;;  %v3898_v6 = vsel %vm615_vm0, %v3888_v25, 0.0 }
0x11d8   : > { %v3870_v16 = vmul.f32 0.03125, %v3846_v2  ;;  %3899 = vadd.xlane.f32.xlu0 %v3898_v6 }
0x11d9   : > { %v15127_v54 = vsub.f32 %v15075_v43, %v3871_v55 }
0x11da   : > { %v15130_v49 = vsub.f32 %v15078_v40, %v3870_v16 }
0x11db   : > { %v3891_v9 = vmul.f32 %v15127_v54, %v15127_v54 }
0x11dc   : > { %v3890_v30 = vmul.f32 %v15130_v49, %v15130_v49 }
0x11dd   : > { %v3907_v51 = vsel %vm615_vm0, %v3891_v9, 0.0 }
0x11de   : > { %3908 = vadd.xlane.f32.xlu1 %v3907_v51  ;;  %v3904_v21 = vsel %vm615_vm0, %v3890_v30, 0.0 }
0x11df   : > { %v3855_v13 = vpop.xlane.xlu1 %3854  ;;  %3905 = vadd.xlane.f32.xlu0 %v3904_v21 }
0x11e0   : > { %v3873_v27 = vmul.f32 0.03125, %v3855_v13  ;;  %v3852_v20 = vpop.xlane.xlu0 %3851 }
0x11e1   : > { %v3872_v50 = vmul.f32 0.03125, %v3852_v20 }
0x11e2   : > { %v15139_v3 = vsub.f32 %v15085_v58, %v3873_v27 }
0x11e3   : > { %v15142_v38 = vsub.f32 %v15088_v32, %v3872_v50 }
0x11e4   : > { %v3893_v35 = vmul.f32 %v15139_v3, %v15139_v3 }
0x11e5   : > { %v3892_v52 = vmul.f32 %v15142_v38, %v15142_v38 }
0x11e6   : > { %v3913_v22 = vsel %vm615_vm0, %v3893_v35, 0.0 }
0x11e7   : > { %3914 = vadd.xlane.f32.xlu1 %v3913_v22  ;;  %v3910_v8 = vsel %vm615_vm0, %v3892_v52, 0.0 }
0x11e8   : > { %3911 = vadd.xlane.f32.xlu0 %v3910_v8 }
0x1203   : > { %v3861_v56 = vpop.xlane.xlu1 %3860 }
0x1204   : > { %v3875_v62 = vmul.f32 0.03125, %v3861_v56  ;;  %v3858_v39 = vpop.xlane.xlu0 %3857 }
0x1205   : > { %v3874_v15 = vmul.f32 0.03125, %v3858_v39 }
0x1206   : > { %v15163_v29 = vsub.f32 %v15095_v44, %v3875_v62 }
0x1207   : > { %v15166_v53 = vsub.f32 %v15098_v28, %v3874_v15 }
0x1208   : > { %v3895_v42 = vmul.f32 %v15163_v29, %v15163_v29 }
0x1209   : > { %v3894_v26 = vmul.f32 %v15166_v53, %v15166_v53 }
0x120a   : > { %v3919_v63 = vsel %vm615_vm0, %v3895_v42, 0.0 }
0x120b   : > { %3920 = vadd.xlane.f32.xlu1 %v3919_v63  ;;  %v3867_v24 = vpop.xlane.xlu1 %3866  ;;  %v3916_v31 = vsel %vm615_vm0, %v3894_v26, 0.0 }
0x120c   : > { %v3877_v60 = vmul.f32 0.03125, %v3867_v24  ;;  %3917 = vadd.xlane.f32.xlu0 %v3916_v31  ;;  %v3864_v41 = vpop.xlane.xlu0 %3863 }
0x120d   : > { %v3876_v34 = vmul.f32 0.03125, %v3864_v41  ;;  %v15189_v41 = vld [vmem:[%s18835_s6 + $0x1] ss:$0 sm:$0xff] }
0x120e   : > { %v15175_v45 = vsub.f32 %v15105_v4, %v3877_v60 }
0x120f   : > { %v15178_v48 = vsub.f32 %v15108_v10, %v3876_v34 }
0x1210   : > { %v3897_v23 = vmul.f32 %v15175_v45, %v15175_v45 }
0x1211   : > { %v3896_v46 = vmul.f32 %v15178_v48, %v15178_v48 }
0x1212   : > { %v3925_v11 = vsel %vm643_vm1, %v3897_v23, 0.0 }
0x1213   : > { %3926 = vadd.xlane.f32.xlu1 %v3925_v11  ;;  %v3922_v0 = vsel %vm615_vm0, %v3896_v46, 0.0 }
0x1214   : > { %3923 = vadd.xlane.f32.xlu0 %v3922_v0  ;;  %v4035_v0 = vmul.f32 %v15189_v41, %v15115_v12 }
0x1264   : > { %v3903_v1 = vpop.xlane.xlu1 %3902 }
0x1265   : > { %v3929_v36 = vmul.f32 0.032258064, %v3903_v1  ;;  %v3900_v25 = vpop.xlane.xlu0 %3899 }
0x1266   : > { %v3928_v55 = vmul.f32 0.032258064, %v3900_v25 }
0x1267   : > { %13113 = vrsqrt.f32 %v3929_v36  ;;  %vm3947_vm4 = vcmp.eq.f32.partialorder %v3929_v36, inf  ;;  %v3950_v21 = vand.u32 2147483648, %v3929_v36  ;;  %vm3949_vm5 = vcmp.eq.f32.partialorder %v3929_v36, 0.0 }
0x1268   : > { %13115 = vrsqrt.f32 %v3928_v55  ;;  %vm3940_vm6 = vcmp.eq.f32.partialorder %v3928_v55, inf  ;;  %v3943_v19 = vand.u32 2147483648, %v3928_v55  ;;  %vm3942_vm7 = vcmp.eq.f32.partialorder %v3928_v55, 0.0 }
0x126b   : > { %v3909_v14 = vpop.xlane.xlu1 %3908 }
0x126c   : > { %v3931_v2 = vmul.f32 0.032258064, %v3909_v14  ;;  %v3906_v6 = vpop.xlane.xlu0 %3905  ;;  %v4034_v14 = vmul.f32 %v15189_v41, %v15118_v37  ;;  %v4036_v37 = vmul.f32 %v15189_v41, %v15130_v49  ;;  %v4039_v49 = vmul.f32 %v15189_v41, %v15139_v3 }
0x126d   : > { %v3930_v16 = vmul.f32 0.032258064, %v3906_v6 }
0x126e   : > { %13117 = vrsqrt.f32 %v3931_v2  ;;  %vm3961_vm13 = vcmp.eq.f32.partialorder %v3931_v2, inf  ;;  %v3964_v62 = vand.u32 2147483648, %v3931_v2  ;;  %vm3963_vm3 = vcmp.eq.f32.partialorder %v3931_v2, 0.0 }
0x126f   : > { %13119 = vrsqrt.f32 %v3930_v16  ;;  %v3957_v42 = vand.u32 2147483648, %v3930_v16 }
0x1271   : > { %v13114_v9 = vpop.eup %13113 }
0x1272   : > { %v13116_v30 = vpop.eup %13115  ;;  %v3946_v51 = vmul.f32 %v13114_v9, %v3929_v36  ;;  %v15198_v9 = vld [vmem:[%s18836_s7 + $0x1] ss:$0 sm:$0xff] }
0x1273   : > { %v3939_v13 = vmul.f32 %v13116_v30, %v3928_v55 }
0x1274   : > { %v3915_v27 = vpop.xlane.xlu1 %3914  ;;  %v3948_v20 = vsel %vm3947_vm4, %v3929_v36, %v3946_v51  ;;  %vm3954_vm4 = vcmp.eq.f32.partialorder %v3930_v16, inf }
0x1275   : > { %v3933_v50 = vmul.f32 0.032258064, %v3915_v27  ;;  %v3912_v35 = vpop.xlane.xlu0 %3911  ;;  %v3951_v52 = vsel %vm3949_vm5, %v3950_v21, %v3948_v20  ;;  %v3941_v22 = vsel %vm3940_vm6, %v3928_v55, %v3939_v13  ;;  %vm3956_vm5 = vcmp.eq.f32.partialorder %v3930_v16, 0.0 }
0x1276   : > { %v3932_v8 = vmul.f32 0.032258064, %v3912_v35  ;;  %v4009_v59 = vadd.f32 1e-06, %v3951_v52  ;;  %v3944_v5 = vsel %vm3942_vm7, %v3943_v19, %v3941_v22  ;;  %v4037_v27 = vmul.f32 %v15189_v41, %v15127_v54 }
0x1277   : > { %13121 = vrsqrt.f32 %v3933_v50  ;;  %v4008_v7 = vadd.f32 1e-06, %v3944_v5  ;;  %vm3975_vm6 = vcmp.eq.f32.partialorder %v3933_v50, inf  ;;  %v3978_v1 = vand.u32 2147483648, %v3933_v50 }
0x1278   : > { %v13118_v47 = vpop.eup %13117  ;;  %13123 = vrsqrt.f32 %v3932_v8  ;;  %vm3977_vm7 = vcmp.eq.f32.partialorder %v3933_v50, 0.0  ;;  %v3971_v55 = vand.u32 2147483648, %v3932_v8 }
0x1279   : > { %v13120_v56 = vpop.eup %13119  ;;  %13125 = vrcp.f32 %v4009_v59  ;;  %v3960_v18 = vmul.f32 %v13118_v47, %v3931_v2  ;;  %v4038_v47 = vmul.f32 %v15189_v41, %v15142_v38 }
0x127a   : > { %v3953_v39 = vmul.f32 %v13120_v56, %v3930_v16  ;;  %13127 = vrcp.f32 %v4008_v7 }
0x127b   : > { %v3962_v15 = vsel %vm3961_vm13, %v3931_v2, %v3960_v18  ;;  %vm3968_vm13 = vcmp.eq.f32.partialorder %v3932_v8, inf }
0x127c   : > { %v3955_v26 = vsel %vm3954_vm4, %v3930_v16, %v3953_v39  ;;  %v3965_v63 = vsel %vm3963_vm3, %v3964_v62, %v3962_v15  ;;  %vm3970_vm3 = vcmp.eq.f32.partialorder %v3932_v8, 0.0 }
0x127d   : > { %v3958_v24 = vsel %vm3956_vm5, %v3957_v42, %v3955_v26  ;;  %v4011_v31 = vadd.f32 1e-06, %v3965_v63 }
0x127e   : > { %v4010_v60 = vadd.f32 1e-06, %v3958_v24 }
0x127f   : > { %13129 = vrcp.f32 %v4011_v31 }
0x1280   : > { %13131 = vrcp.f32 %v4010_v60 }
0x1281   : > { %v13122_v34 = vpop.eup %13121 }
0x1282   : > { %v13124_v23 = vpop.eup %13123  ;;  %v3974_v46 = vmul.f32 %v13122_v34, %v3933_v50 }
0x1283   : > { %v13126_v11 = vpop.eup %13125  ;;  %v3967_v36 = vmul.f32 %v13124_v23, %v3932_v8 }
0x1284   : > { %v3976_v25 = vsel %vm3975_vm6, %v3933_v50, %v3974_v46  ;;  %v13128_v16 = vpop.eup %13127  ;;  %v4045_v12 = vmul.f32 %v13126_v11, %v4035_v0 }
0x1285   : > { %v3969_v2 = vsel %vm3968_vm13, %v3932_v8, %v3967_v36  ;;  %v3979_v6 = vsel %vm3977_vm7, %v3978_v1, %v3976_v25  ;;  %v4044_v21 = vmul.f32 %v13128_v16, %v4034_v14 }
0x1286   : > { %v3972_v30 = vsel %vm3970_vm3, %v3971_v55, %v3969_v2  ;;  %v4013_v51 = vadd.f32 1e-06, %v3979_v6  ;;  %v4061_v52 = vadd.f32 %v15198_v9, %v4045_v12 }
0x1287   : > { %v4012_v13 = vadd.f32 1e-06, %v3972_v30  ;;  %v4060_v50 = vadd.f32 %v15198_v9, %v4044_v21 }
0x1288   : > { %13133 = vrcp.f32 %v4013_v51 }
0x1289   : > { %v13130_v20 = vpop.eup %13129  ;;  %13135 = vrcp.f32 %v4012_v13  ;;  %11194 = vmatprep.mubr.msk.f32.mxu0 %vm615_vm0, %v4060_v50 }
0x128a   : > { %v13132_v35 = vpop.eup %13131  ;;  %v4047_v22 = vmul.f32 %v13130_v20, %v4037_v27  ;;  %11195 = vmatmul.mubr.msk.f32.vlgmr.msra.gmra.mrb[62].mxu0 %vm615_vm0, %v4061_v52 }
0x128b   : > { %v4046_v8 = vmul.f32 %v13132_v35, %v4036_v37  ;;  %v4041_v35 = vmul.f32 %v15189_v41, %v15163_v29 }
0x128c   : > { %v4063_v54 = vadd.f32 %v15198_v9, %v4047_v22  ;;  %v4040_v22 = vmul.f32 %v15189_v41, %v15166_v53 }
0x128d   : > { %v4062_v59 = vadd.f32 %v15198_v9, %v4046_v8 }
0x128f   : > { %11197 = vmatprep.mubr.msk.f32.mxu0 %vm615_vm0, %v4062_v59 }
0x1290   : > { %11198 = vmatmul.mubr.msk.f32.gmra.mrb[64].mxu0 %vm615_vm0, %v4063_v54 }
0x1292   : > { %v13134_v19 = vpop.eup %13133 }
0x1293   : > { %v13136_v56 = vpop.eup %13135  ;;  %v4049_v18 = vmul.f32 %v13134_v19, %v4039_v49 }
0x1294   : > { %v4048_v5 = vmul.f32 %v13136_v56, %v4038_v47  ;;  %v4043_v47 = vmul.f32 %v15189_v41, %v15175_v45  ;;  %v4042_v56 = vmul.f32 %v15189_v41, %v15178_v48  ;;  %v9860_v45 = vld [vmem:[%s18832_s3 + $0x1] ss:$0 sm:$0xff] }
0x1295   : > { %v4065_v39 = vadd.f32 %v15198_v9, %v4049_v18 }
0x1296   : > { %v4064_v62 = vadd.f32 %v15198_v9, %v4048_v5 }
0x1298   : > { %11200 = vmatprep.mubr.msk.f32.mxu0 %vm615_vm0, %v4064_v62  ;;  %v3921_v7 = vpop.xlane.xlu1 %3920 }
0x1299   : > { %11201 = vmatmul.mubr.msk.f32.gmra.mrb[66].mxu0 %vm615_vm0, %v4065_v39  ;;  %v3935_v15 = vmul.f32 0.032258064, %v3921_v7  ;;  %v3918_v42 = vpop.xlane.xlu0 %3917 }
0x129a   : > { %v3934_v26 = vmul.f32 0.032258064, %v3918_v42 }
0x129b   : > { %13137 = vrsqrt.f32 %v3935_v15  ;;  %vm3989_vm4 = vcmp.eq.f32.partialorder %v3935_v15, inf  ;;  %v3992_v23 = vand.u32 2147483648, %v3935_v15  ;;  %vm3991_vm5 = vcmp.eq.f32.partialorder %v3935_v15, 0.0 }
0x129c   : > { %13139 = vrsqrt.f32 %v3934_v26  ;;  %vm3982_vm6 = vcmp.eq.f32.partialorder %v3934_v26, inf  ;;  %v3985_v0 = vand.u32 2147483648, %v3934_v26  ;;  %vm3984_vm7 = vcmp.eq.f32.partialorder %v3934_v26, 0.0 }
0x12a0   : > { %v3927_v3 = vpop.xlane.xlu1 %3926 }
0x12a1   : > { %v3937_v63 = vmul.f32 0.032258064, %v3927_v3  ;;  %v3924_v38 = vpop.xlane.xlu0 %3923 }
0x12a2   : > { %v3936_v24 = vmul.f32 0.032258064, %v3924_v38 }
0x12a3   : > { %13141 = vrsqrt.f32 %v3937_v63  ;;  %vm4003_vm13 = vcmp.eq.f32.partialorder %v3937_v63, inf  ;;  %v4006_v12 = vand.u32 2147483648, %v3937_v63  ;;  %vm4005_vm3 = vcmp.eq.f32.partialorder %v3937_v63, 0.0 }
0x12a4   : > { %13143 = vrsqrt.f32 %v3936_v24  ;;  %v3999_v21 = vand.u32 2147483648, %v3936_v24  ;;  %vm3998_vm12 = vcmp.eq.f32.partialorder %v3936_v24, 0.0 }
0x12a5   : > { %v13138_v31 = vpop.eup %13137 }
0x12a6   : > { %v13140_v60 = vpop.eup %13139  ;;  %v3988_v34 = vmul.f32 %v13138_v31, %v3935_v15 }
0x12a7   : > { %v3981_v46 = vmul.f32 %v13140_v60, %v3934_v26 }
0x12a8   : > { %v3990_v11 = vsel %vm3989_vm4, %v3935_v15, %v3988_v34  ;;  %vm3996_vm4 = vcmp.eq.f32.partialorder %v3936_v24, inf }
0x12a9   : > { %v3983_v1 = vsel %vm3982_vm6, %v3934_v26, %v3981_v46  ;;  %v3993_v36 = vsel %vm3991_vm5, %v3992_v23, %v3990_v11 }
0x12aa   : > { %v3986_v25 = vsel %vm3984_vm7, %v3985_v0, %v3983_v1  ;;  %v4015_v55 = vadd.f32 1e-06, %v3993_v36 }
0x12ab   : > { %v4014_v14 = vadd.f32 1e-06, %v3986_v25 }
0x12ac   : > { %13145 = vrcp.f32 %v4015_v55 }
0x12ad   : > { %v13142_v2 = vpop.eup %13141  ;;  %13147 = vrcp.f32 %v4014_v14 }
0x12ae   : > { %v13144_v6 = vpop.eup %13143  ;;  %v4002_v16 = vmul.f32 %v13142_v2, %v3937_v63 }
0x12af   : > { %v3995_v30 = vmul.f32 %v13144_v6, %v3936_v24 }
0x12b0   : > { %v4004_v51 = vsel %vm4003_vm13, %v3937_v63, %v4002_v16 }
0x12b1   : > { %v3997_v13 = vsel %vm3996_vm4, %v3936_v24, %v3995_v30  ;;  %v4007_v27 = vsel %vm4005_vm3, %v4006_v12, %v4004_v51 }
0x12b2   : > { %v4000_v20 = vsel %vm3998_vm12, %v3999_v21, %v3997_v13  ;;  %v4017_v37 = vadd.f32 1e-06, %v4007_v27 }
0x12b3   : > { %v4016_v50 = vadd.f32 1e-06, %v4000_v20 }
0x12b4   : > { %13149 = vrcp.f32 %v4017_v37 }
0x12b5   : > { %13151 = vrcp.f32 %v4016_v50 }
0x12b6   : > { %v13146_v52 = vpop.eup %13145 }
0x12b7   : > { %v13148_v8 = vpop.eup %13147  ;;  %v4051_v59 = vmul.f32 %v13146_v52, %v4041_v35 }
0x12b8   : > { %v4050_v54 = vmul.f32 %v13148_v8, %v4040_v22 }
0x12b9   : > { %v4067_v19 = vadd.f32 %v15198_v9, %v4051_v59 }
0x12ba   : > { %v4066_v49 = vadd.f32 %v15198_v9, %v4050_v54 }
0x12bc   : > { %11203 = vmatprep.mubr.msk.f32.mxu0 %vm615_vm0, %v4066_v49 }
0x12bd   : > { %11204 = vmatmul.mubr.msk.f32.gmra.mrb[68].mxu0 %vm615_vm0, %v4067_v19 }
0x12be   : > { %v13150_v29 = vpop.eup %13149 }
0x12bf   : > { %v13152_v18 = vpop.eup %13151  ;;  %v4053_v53 = vmul.f32 %v13150_v29, %v4043_v47 }
0x12c0   : > { %v4052_v5 = vmul.f32 %v13152_v18, %v4042_v56 }
0x12c1   : > { %v4069_v39 = vadd.f32 %v15198_v9, %v4053_v53 }
0x12c2   : > { %v4068_v62 = vadd.f32 %v15198_v9, %v4052_v5 }
0x12c4   : > { %11206 = vmatprep.mubr.msk.f32.mxu0 %vm615_vm0, %v4068_v62 }
0x12c5   : > { %11207 = vmatmul.mubr.msk.f32.gmra.mrb[70].mxu0 %vm615_vm0, %v4069_v39 }
0x135d   : > { %v11196_v7 = vpop.f32.mrb[62].mxu0 }
0x135e   : > { %v15239_v15 = vadd.f32 %v11196_v7, %v9860_v45  ;;  %v4179_v42 = vpop.f32.mrb[63].mxu0 }
0x135f   : > { %v4180_v48 = vadd.f32 %v9860_v45, %v4179_v42 }
0x1361   : > { %v15242_v41 = vpack.i.bf16 %v15239_v15, %v4180_v48  ;;  %v15244_v26 = vmul.f32 0.35355338, %v4180_v48 }
0x1363   : > { %v11199_v3 = vpop.f32.mrb[64].mxu0  ;;  %12354 = vrot.lane.b32.xlu0 %v15242_v41, %s19034_s20  ;;  %11229 = vmatprep.mubr.msk.f32.mxu1 %vm1047_vm8, %v15244_v26 }
0x1364   : > { %v15246_v9 = vadd.f32 %v11199_v3, %v9860_v45  ;;  %v4189_v63 = vpop.f32.mrb[65].mxu0 }
0x1365   : > { %v15252_v38 = vadd.f32 %v9860_v45, %v4189_v63 }
0x1367   : > { %v15256_v24 = vpack.i.bf16 %v15246_v9, %v15252_v38 }
0x1369   : > { %12359 = vrot.lane.b32.xlu1 %v15256_v24, %s19034_s20 }
0x136c   : > { %v11202_v31 = vpop.f32.mrb[66].mxu0 }
0x136d   : > { %v15260_v60 = vadd.f32 %v11202_v31, %v9860_v45  ;;  %v4199_v34 = vpop.f32.mrb[67].mxu0 }
0x136e   : > { %v15262_v23 = vadd.f32 %v9860_v45, %v4199_v34  ;;  %v15321_v34 = vmul.f32 0.35355338, %v15239_v15 }
0x136f   : > { %v15341_v15 = vmul.f32 0.35355338, %v15260_v60 }
0x1370   : > { %v15266_v46 = vpack.i.bf16 %v15260_v60, %v15262_v23 }
0x1372   : > { %12364 = vrot.lane.b32.xlu1 %v15266_v46, %s19034_s20 }
0x1390   : > { %v11205_v11 = vpop.f32.mrb[68].mxu0 }
0x1391   : > { %v15270_v0 = vadd.f32 %v11205_v11, %v9860_v45  ;;  %v4209_v1 = vpop.f32.mrb[69].mxu0  ;;  %v15324_v11 = vmul.f32 0.35355338, %v15252_v38 }
0x1392   : > { %v15272_v36 = vadd.f32 %v9860_v45, %v4209_v1  ;;  %v15331_v1 = vmul.f32 0.35355338, %v15246_v9 }
0x1393   : > { %v15351_v9 = vmul.f32 0.35355338, %v15270_v0 }
0x1394   : > { %v15276_v25 = vpack.i.bf16 %v15270_v0, %v15272_v36  ;;  %v15344_v38 = vmul.f32 0.35355338, %v15272_v36 }
0x1396   : > { %12369 = vrot.lane.b32.xlu0 %v15276_v25, %s19034_s20 }
0x1398   : > { %v11208_v55 = vpop.f32.mrb[70].mxu0 }
0x1399   : > { %v15280_v14 = vadd.f32 %v11208_v55, %v9860_v45  ;;  %v4219_v2 = vpop.f32.mrb[71].mxu0  ;;  %v15334_v55 = vmul.f32 0.35355338, %v15262_v23 }
0x139a   : > { %v15282_v6 = vadd.f32 %v9860_v45, %v4219_v2  ;;  %12379 = vrot.lane.b32.xlu0 %v15242_v41, %s19035_s24 }
0x139b   : > { %v15361_v60 = vmul.f32 0.35355338, %v15280_v14 }
0x139c   : > { %v15288_v16 = vpack.i.bf16 %v15280_v14, %v15282_v6  ;;  %v15354_v23 = vmul.f32 0.35355338, %v15282_v6 }
0x139e   : > { %12389 = vrot.lane.b32.xlu0 %v15266_v46, %s19035_s24  ;;  %12374 = vrot.lane.b32.xlu1 %v15288_v16, %s19034_s20  ;;  %s19046_s20 = smov 40  }
0x13a2   : > { %12399 = vrot.lane.b32.xlu0 %v15288_v16, %s19035_s24  ;;  %12384 = vrot.lane.b32.xlu1 %v15256_v24, %s19035_s24 }
0x13a6   : > { %12404 = vrot.lane.b32.xlu0 %v15242_v41, %s19036_s27 }
0x13d5   : > { %v12355_v12 = vpop.permute.xlu0 %12354 }
0x13d6   : > { %v12357_v30 = vunpack.i.h.bf16 %v12355_v12  ;;  %v12356_v51 = vunpack.i.l.bf16 %v12355_v12 }
0x13d8   : > { %v11822_v21 = vpack.c.bf16 %v12357_v30, %v12356_v51 }
0x13da   : > { %11824 = vmatprep.subr.msk.bf16.mxu1 %vm14003_vm9, %v11822_v21 }
0x13db   : > { %v12360_v13 = vpop.permute.xlu1 %12359  ;;  %11827 = vmatpush3.bf16.xpose.msk.msra.mxu1 %vm14003_vm9, %v11822_v21 }
0x13dc   : > { %v12362_v27 = vunpack.i.h.bf16 %v12360_v13  ;;  %v12361_v20 = vunpack.i.l.bf16 %v12360_v13 }
0x13de   : > { %v11828_v37 = vpack.c.bf16 %v12362_v27, %v12361_v20 }
0x13e0   : > { %11830 = vmatprep.subr.msk.bf16.mxu1 %vm14003_vm9, %v11828_v37 }
0x13e3   : > { %11833 = vmatpush3.bf16.xpose.msk.msra.mxu1 %vm14003_vm9, %v11828_v37 }
0x13e4   : > { %v12365_v50 = vpop.permute.xlu1 %12364 }
0x13e5   : > { %v12367_v35 = vunpack.i.h.bf16 %v12365_v50  ;;  %v12366_v52 = vunpack.i.l.bf16 %v12365_v50 }
0x13e7   : > { %v11834_v22 = vpack.c.bf16 %v12367_v35, %v12366_v52 }
0x13e9   : > { %11836 = vmatprep.subr.msk.bf16.mxu1 %vm14003_vm9, %v11834_v22 }
0x13eb   : > { %11839 = vmatpush3.bf16.xpose.msk.msra.mxu1 %vm14003_vm9, %v11834_v22 }
0x1408   : > { %v12370_v8 = vpop.permute.xlu0 %12369 }
0x1409   : > { %v12372_v59 = vunpack.i.h.bf16 %v12370_v8  ;;  %v12371_v54 = vunpack.i.l.bf16 %v12370_v8 }
0x140b   : > { %v11840_v49 = vpack.c.bf16 %v12372_v59, %v12371_v54 }
0x140c   : > { %v12380_v19 = vpop.permute.xlu0 %12379 }
0x140d   : > { %v12382_v47 = vunpack.i.h.bf16 %v12380_v19  ;;  %v12381_v29 = vunpack.i.l.bf16 %v12380_v19  ;;  %11842 = vmatprep.subr.msk.bf16.mxu1 %vm14003_vm9, %v11840_v49 }
0x140e   : > { %11845 = vmatpush3.bf16.xpose.msk.msra.mxu1 %vm14003_vm9, %v11840_v49 }
0x140f   : > { %v11852_v56 = vpack.c.bf16 %v12382_v47, %v12381_v29 }
0x1410   : > { %v12375_v18 = vpop.permute.xlu1 %12374  ;;  %v12390_v62 = vpop.permute.xlu0 %12389 }
0x1411   : > { %v12377_v53 = vunpack.i.h.bf16 %v12375_v18  ;;  %v12376_v5 = vunpack.i.l.bf16 %v12375_v18  ;;  %11853 = vmatprep.subr.bf16.mxu0 %v11852_v56  ;;  %v12392_v7 = vunpack.i.h.bf16 %v12390_v62  ;;  %v12391_v42 = vunpack.i.l.bf16 %v12390_v62 }
0x1412   : > { %11855 = vmatpush3.bf16.msra.mxu0 %v11852_v56 }
0x1413   : > { %v11846_v39 = vpack.c.bf16 %v12377_v53, %v12376_v5  ;;  %v11860_v31 = vpack.c.bf16 %v12392_v7, %v12391_v42 }
0x1414   : > { %v12385_v45 = vpop.permute.xlu1 %12384  ;;  %v12400_v49 = vpop.permute.xlu0 %12399 }
0x1415   : > { %v12387_v48 = vunpack.i.h.bf16 %v12385_v45  ;;  %v12386_v3 = vunpack.i.l.bf16 %v12385_v45  ;;  %11848 = vmatprep.subr.msk.bf16.mxu1 %vm14003_vm9, %v11846_v39  ;;  %v12402_v5 = vunpack.i.h.bf16 %v12400_v49  ;;  %v12401_v45 = vunpack.i.l.bf16 %v12400_v49 }
0x1416   : > { %11851 = vmatpush3.bf16.xpose.msk.msra.mxu1 %vm14003_vm9, %v11846_v39 }
0x1417   : > { %v11856_v63 = vpack.c.bf16 %v12387_v48, %v12386_v3 }
0x1418   : > { %v12405_v19 = vpop.permute.xlu0 %12404 }
0x1419   : > { %11857 = vmatprep.subr.bf16.mxu0 %v11856_v63 }
0x141a   : > { %11859 = vmatpush3.bf16.msra.mxu0 %v11856_v63 }
0x141b   : > { %11861 = vmatprep.subr.bf16.mxu0 %v11860_v31 }
0x141d   : > { %11230 = vmatmul.mubr.msk.f32.vlgmr.msra.gmra.mrb[58].mxu1 %vm1047_vm8, %v15321_v34 }
0x141e   : > { %11232 = vmatprep.mubr.msk.f32.mxu1 %vm1047_vm8, %v15324_v11  ;;  %11863 = vmatpush3.bf16.msra.mxu0 %v11860_v31 }
0x1421   : > { %11233 = vmatmul.mubr.msk.f32.gmra.mrb[60].mxu1 %vm1047_vm8, %v15331_v1 }
0x1422   : > { %11235 = vmatprep.mubr.msk.f32.mxu1 %vm1047_vm8, %v15334_v55 }
0x1425   : > { %11236 = vmatmul.mubr.msk.f32.gmra.mrb[62].mxu1 %vm1047_vm8, %v15341_v15 }
0x1426   : > { %11238 = vmatprep.mubr.msk.f32.mxu1 %vm1047_vm8, %v15344_v38 }
0x1429   : > { %11239 = vmatmul.mubr.msk.f32.gmra.mrb[64].mxu1 %vm1047_vm8, %v15351_v9 }
0x142a   : > { %11241 = vmatprep.mubr.msk.f32.mxu1 %vm1047_vm8, %v15354_v23 }
0x142d   : > { %11242 = vmatmul.mubr.msk.f32.gmra.mrb[66].mxu1 %vm1047_vm8, %v15361_v60 }
0x14f0   : > { %v11231_v36 = vpop.f32.mrb[58].mxu1 }
0x14f1   : > { %v4384_v2 = vpop.f32.mrb[59].mxu1  ;;  %v4436_v0 = vsel %vm1213_vm10, %v11231_v36, -inf }
0x14f2   : > { %4437 = vmax.xlane.f32.xlu1 %v4436_v0  ;;  %v4433_v6 = vsel %vm1213_vm10, %v4384_v2, -inf  ;;  %v11868_v0 = vpack.c.bf16 %v12402_v5, %v12401_v45 }
0x14f3   : > { %4434 = vmax.xlane.f32.xlu0 %v4433_v6  ;;  %v12407_v6 = vunpack.i.h.bf16 %v12405_v19 }
0x14f4   : > { %v11234_v12 = vpop.f32.mrb[60].mxu1 }
0x14f5   : > { %v4394_v30 = vpop.f32.mrb[61].mxu1  ;;  %v4442_v51 = vsel %vm1213_vm10, %v11234_v12, -inf }
0x14f6   : > { %v4439_v14 = vsel %vm1213_vm10, %v4394_v30, -inf }
0x14f7   : > { %4443 = vmax.xlane.f32.xlu0 %v4442_v51  ;;  %v12406_v51 = vunpack.i.l.bf16 %v12405_v19 }
0x14f8   : > { %v11237_v21 = vpop.f32.mrb[62].mxu1 }
0x14f9   : > { %v15368_v13 = vpop.f32.mrb[63].mxu1  ;;  %v4448_v37 = vsel %vm1213_vm10, %v11237_v21, -inf }
0x14fa   : > { %v4445_v8 = vsel %vm1213_vm10, %v15368_v13, -inf }
0x14fb   : > { %4440 = vmax.xlane.f32.xlu0 %v4439_v14 }
0x14fc   : > { %v15371_v27 = vpop.f32.mrb[64].mxu1 }
0x14fd   : > { %v15373_v20 = vpop.f32.mrb[65].mxu1  ;;  %v4454_v52 = vsel %vm1213_vm10, %v15371_v27, -inf }
0x14fe   : > { %v4451_v59 = vsel %vm1213_vm10, %v15373_v20, -inf }
0x14ff   : > { %4449 = vmax.xlane.f32.xlu0 %v4448_v37  ;;  %v15398_v37 = vpack.c.bf16 %v12407_v6, %v12406_v51 }
0x1500   : > { %v15376_v50 = vpop.f32.mrb[66].mxu1 }
0x1501   : > { %v15378_v35 = vpop.f32.mrb[67].mxu1  ;;  %v4460_v22 = vsel %vm1241_vm11, %v15376_v50, -inf }
0x1502   : > { %v4457_v54 = vsel %vm1213_vm10, %v15378_v35, -inf }
0x1503   : > { %12394 = vrot.lane.b32.xlu1 %v15276_v25, %s19035_s24  ;;  %4455 = vmax.xlane.f32.xlu0 %v4454_v52  ;;  %s19047_s24 = smov 8  }
0x1507   : > { %4461 = vmax.xlane.f32.xlu0 %v4460_v22 }
0x151d   : > { %12414 = vrot.lane.b32.xlu0 %v15266_v46, %s19036_s27 }
0x1527   : > { %4446 = vmax.xlane.f32.xlu1 %v4445_v8 }
0x152b   : > { %4452 = vmax.xlane.f32.xlu1 %v4451_v59 }
0x152f   : > { %4458 = vmax.xlane.f32.xlu1 %v4457_v54 }
0x1540   : > { %12409 = vrot.lane.b32.xlu1 %v15256_v24, %s19036_s27 }
0x157f   : > { %v4438_v47 = vpop.xlane.xlu1 %4437 }
0x1580   : > { %v4464_v29 = vsub.f32 %v11231_v36, %v4438_v47  ;;  %v4435_v56 = vpop.xlane.xlu0 %4434 }
0x1581   : > { %v4463_v18 = vsub.f32 %v4384_v2, %v4435_v56 }
0x1582   : > { %v4475_v53 = vmul.f32 1.442695, %v4464_v29 }
0x1583   : > { %v4473_v62 = vmul.f32 1.442695, %v4463_v18  ;;  %v12395_v39 = vpop.permute.xlu1 %12394 }
0x1584   : > { %13153 = vpow2.f32 %v4475_v53  ;;  %v12397_v7 = vunpack.i.h.bf16 %v12395_v39  ;;  %v12396_v42 = vunpack.i.l.bf16 %v12395_v39  ;;  %v4444_v48 = vpop.xlane.xlu0 %4443 }
0x1585   : > { %v4466_v3 = vsub.f32 %v11234_v12, %v4444_v48  ;;  %13155 = vpow2.f32 %v4473_v62 }
0x1586   : > { %v11864_v63 = vpack.c.bf16 %v12397_v7, %v12396_v42 }
0x1587   : > { %v4479_v31 = vmul.f32 1.442695, %v4466_v3 }
0x1588   : > { %11865 = vmatprep.subr.bf16.mxu0 %v11864_v63  ;;  %v4441_v36 = vpop.xlane.xlu0 %4440 }
0x1589   : > { %13157 = vpow2.f32 %v4479_v31  ;;  %v4465_v2 = vsub.f32 %v4394_v30, %v4441_v36  ;;  %11867 = vmatpush3.bf16.msra.mxu0 %v11864_v63 }
0x158a   : > { %11870 = vmatprep.subr.msk.bf16.mxu0 %vm14105_vm14, %v11868_v0 }
0x158b   : > { %v4477_v14 = vmul.f32 1.442695, %v4465_v2 }
0x158c   : > { %v4450_v52 = vpop.xlane.xlu0 %4449 }
0x158d   : > { %13159 = vpow2.f32 %v4477_v14  ;;  %v4468_v12 = vsub.f32 %v11237_v21, %v4450_v52  ;;  %11873 = vmatpush3.bf16.msk.msra.mxu0 %vm14105_vm14, %v11868_v0 }
0x158e   : > { %v15402_v22 = vpop.eup %13153  ;;  %11876 = vmatprep.subr.msk.bf16.mxu0 %vm14003_vm9, %v15398_v37 }
0x158f   : > { %v4483_v30 = vmul.f32 1.442695, %v4468_v12  ;;  %v4496_v8 = vsel %vm1213_vm10, %v15402_v22, 0.0  ;;  %v15409_v59 = vpop.eup %13155 }
0x1590   : > { %4497 = vadd.xlane.f32.xlu1 %v4496_v8  ;;  %v4493_v21 = vsel %vm1213_vm10, %v15409_v59, 0.0  ;;  %v4456_v18 = vpop.xlane.xlu0 %4455 }
0x1591   : > { %13161 = vpow2.f32 %v4483_v30  ;;  %v4470_v53 = vsub.f32 %v15371_v27, %v4456_v18 }
0x1593   : > { %v15411_v54 = vpop.eup %13157  ;;  %v4487_v39 = vmul.f32 1.442695, %v4470_v53 }
0x1594   : > { %4494 = vadd.xlane.f32.xlu1 %v4493_v21  ;;  %v4502_v49 = vsel %vm1213_vm10, %v15411_v54, 0.0  ;;  %v4462_v7 = vpop.xlane.xlu0 %4461 }
0x1595   : > { %4503 = vadd.xlane.f32.xlu0 %v4502_v49  ;;  %v4472_v3 = vsub.f32 %v15376_v50, %v4462_v7 }
0x1597   : > { %v15417_v19 = vpop.eup %13159  ;;  %v4491_v6 = vmul.f32 1.442695, %v4472_v3 }
0x1598   : > { %v4499_v47 = vsel %vm1213_vm10, %v15417_v19, 0.0  ;;  %v12415_v21 = vpop.permute.xlu0 %12414 }
0x1599   : > { %4500 = vadd.xlane.f32.xlu1 %v4499_v47 }
0x159b   : > { %v15421_v29 = vpop.eup %13161 }
0x159c   : > { %v4508_v56 = vsel %vm1213_vm10, %v15421_v29, 0.0 }
0x159d   : > { %4509 = vadd.xlane.f32.xlu1 %v4508_v56 }
0x15ab   : > { %12424 = vrot.lane.b32.xlu0 %v15288_v16, %s19036_s27 }
0x15b4   : > { %v4447_v5 = vpop.xlane.xlu1 %4446 }
0x15b5   : > { %v4467_v62 = vsub.f32 %v15368_v13, %v4447_v5 }
0x15b7   : > { %v4481_v45 = vmul.f32 1.442695, %v4467_v62 }
0x15b8   : > { %v4453_v42 = vpop.xlane.xlu1 %4452 }
0x15b9   : > { %13163 = vpow2.f32 %v4481_v45  ;;  %v4469_v48 = vsub.f32 %v15373_v20, %v4453_v42 }
0x15ba   : > { %13165 = vpow2.f32 %v4487_v39 }
0x15bb   : > { %v4485_v63 = vmul.f32 1.442695, %v4469_v48 }
0x15bc   : > { %v4459_v31 = vpop.xlane.xlu1 %4458 }
0x15bd   : > { %v4471_v0 = vsub.f32 %v15378_v35, %v4459_v31  ;;  %13167 = vpow2.f32 %v4485_v63  ;;  %v12417_v63 = vunpack.i.h.bf16 %v12415_v21 }
0x15bf   : > { %v4489_v27 = vmul.f32 1.442695, %v4471_v0 }
0x15c0   : > { %v12410_v30 = vpop.permute.xlu1 %12409 }
0x15c1   : > { %13169 = vpow2.f32 %v4489_v27  ;;  %v12412_v5 = vunpack.i.h.bf16 %v12410_v30  ;;  %v12411_v62 = vunpack.i.l.bf16 %v12410_v30 }
0x15c2   : > { %13171 = vpow2.f32 %v4491_v6 }
0x15c3   : > { %v15432_v51 = vpop.eup %13163  ;;  %v11880_v42 = vpack.c.bf16 %v12412_v5, %v12411_v62 }
0x15c4   : > { %v4505_v13 = vsel %vm1213_vm10, %v15432_v51, 0.0  ;;  %v15436_v36 = vpop.eup %13165 }
0x15c5   : > { %4506 = vadd.xlane.f32.xlu1 %v4505_v13  ;;  %v4514_v20 = vsel %vm1213_vm10, %v15436_v36, 0.0 }
0x15c7   : > { %v15440_v50 = vpop.eup %13167 }
0x15c8   : > { %v4511_v2 = vsel %vm1213_vm10, %v15440_v50, 0.0 }
0x15c9   : > { %4515 = vadd.xlane.f32.xlu1 %v4514_v20 }
0x15cb   : > { %v15442_v35 = vpop.eup %13169 }
0x15cc   : > { %v4517_v14 = vsel %vm1213_vm10, %v15442_v35, 0.0  ;;  %v15448_v52 = vpop.eup %13171 }
0x15cd   : > { %4512 = vadd.xlane.f32.xlu1 %v4511_v2  ;;  %4518 = vadd.xlane.f32.xlu0 %v4517_v14  ;;  %v4520_v12 = vsel %vm1241_vm11, %v15448_v52, 0.0 }
0x15d1   : > { %4521 = vadd.xlane.f32.xlu1 %v4520_v12 }
0x15e2   : > { %12419 = vrot.lane.b32.xlu1 %v15276_v25, %s19036_s27  ;;  %s19048_s27 = smov 16  }
0x15e3   : > { %4719 = vrot.lane.b32.xlu0 %v15244_v26, %s19037_s29 }
0x15e6   : > { %4725 = vrot.lane.b32.xlu1 %v15331_v1, %s19037_s29 }
0x15e7   : > { %4721 = vrot.lane.b32.xlu0 %v15321_v34, %s19037_s29 }
0x15ea   : > { %4729 = vrot.lane.b32.xlu1 %v15341_v15, %s19037_s29 }
0x15eb   : > { %4723 = vrot.lane.b32.xlu0 %v15324_v11, %s19037_s29 }
0x15ee   : > { %4733 = vrot.lane.b32.xlu1 %v15351_v9, %s19037_s29 }
0x15ef   : > { %4727 = vrot.lane.b32.xlu0 %v15334_v55, %s19037_s29 }
0x15f2   : > { %4737 = vrot.lane.b32.xlu1 %v15361_v60, %s19037_s29 }
0x15f3   : > { %4731 = vrot.lane.b32.xlu0 %v15344_v38, %s19037_s29 }
0x15f6   : > { %12434 = vrot.lane.b32.xlu1 %v15256_v24, %s19038_s26 }
0x15f7   : > { %4735 = vrot.lane.b32.xlu0 %v15354_v23, %s19037_s29  ;;  %s10363_s29 = sshll.u32 %s13625_s0, 4  ;;  %s13508_s0 = smov [#allocation2]  }
0x15fb   : > { %12429 = vrot.lane.b32.xlu0 %v15242_v41, %s19038_s26 }
0x15ff   : > { %12439 = vrot.lane.b32.xlu0 %v15266_v46, %s19038_s26 }
0x1603   : > { %12449 = vrot.lane.b32.xlu0 %v15288_v16, %s19038_s26 }
0x1607   : > { %12454 = vrot.lane.b32.xlu0 %v15242_v41, %s19039_s19 }
0x161d   : > { %v4498_v8 = vpop.xlane.xlu1 %4497 }
0x161e   : > { %13173 = vrcp.f32 %v4498_v8 }
0x1621   : > { %v4495_v49 = vpop.xlane.xlu1 %4494 }
0x1622   : > { %13175 = vrcp.f32 %v4495_v49  ;;  %v4504_v47 = vpop.xlane.xlu0 %4503 }
0x1623   : > { %13177 = vrcp.f32 %v4504_v47 }
0x1626   : > { %v4501_v56 = vpop.xlane.xlu1 %4500 }
0x1627   : > { %13179 = vrcp.f32 %v4501_v56 }
0x1628   : > { %v13174_v18 = vpop.eup %13173 }
0x1629   : > { %v4534_v45 = vmul.f32 %v13174_v18, %v15402_v22  ;;  %v12416_v22 = vunpack.i.l.bf16 %v12415_v21 }
0x162b   : > { %v11886_v31 = vpack.c.bf16 %v12417_v63, %v12416_v22 }
0x162c   : > { %v13176_v53 = vpop.eup %13175 }
0x162d   : > { %v4533_v39 = vmul.f32 %v13176_v53, %v15409_v59  ;;  %v13178_v7 = vpop.eup %13177 }
0x162e   : > { %v4536_v59 = vmul.f32 %v13178_v7, %v15411_v54  ;;  %v12425_v54 = vpop.permute.xlu0 %12424 }
0x162f   : > { %11264 = vmatprep.mubr.msk.f32.mxu0 %vm1213_vm10, %v4533_v39  ;;  %v12427_v49 = vunpack.i.h.bf16 %v12425_v54  ;;  %v12426_v47 = vunpack.i.l.bf16 %v12425_v54 }
0x1630   : > { %11265 = vmatmul.mubr.msk.f32.vlgmr.msra.gmra.mrb[72].mxu0 %vm1213_vm10, %v4534_v45 }
0x1631   : > { %v13180_v48 = vpop.eup %13179  ;;  %11879 = vmatpush3.bf16.xpose.msk.msra.mxu0 %vm14003_vm9, %v15398_v37  ;;  %v4510_v37 = vpop.xlane.xlu1 %4509 }
0x1632   : > { %11882 = vmatprep.subr.msk.bf16.mxu0 %vm14003_vm9, %v11880_v42  ;;  %v4535_v3 = vmul.f32 %v13180_v48, %v15417_v19  ;;  %13181 = vrcp.f32 %v4510_v37 }
0x1634   : > { %11267 = vmatprep.mubr.msk.f32.mxu0 %vm1213_vm10, %v4535_v3 }
0x1635   : > { %11268 = vmatmul.mubr.msk.f32.gmra.mrb[74].mxu0 %vm1213_vm10, %v4536_v59 }
0x1639   : > { %11885 = vmatpush3.bf16.xpose.msk.msra.mxu0 %vm14003_vm9, %v11880_v42 }
0x163a   : > { %11888 = vmatprep.subr.msk.bf16.mxu0 %vm14003_vm9, %v11886_v31 }
0x163c   : > { %v13182_v13 = vpop.eup %13181 }
0x163d   : > { %v4538_v30 = vmul.f32 %v13182_v13, %v15421_v29 }
0x1641   : > { %11891 = vmatpush3.bf16.xpose.msk.msra.mxu0 %vm14003_vm9, %v11886_v31 }
0x1652   : > { %v4507_v19 = vpop.xlane.xlu1 %4506 }
0x1653   : > { %13183 = vrcp.f32 %v4507_v19 }
0x1656   : > { %v4516_v0 = vpop.xlane.xlu1 %4515 }
0x1657   : > { %13185 = vrcp.f32 %v4516_v0 }
0x165a   : > { %v4519_v6 = vpop.xlane.xlu0 %4518  ;;  %v4513_v27 = vpop.xlane.xlu1 %4512 }
0x165b   : > { %13187 = vrcp.f32 %v4519_v6 }
0x165c   : > { %13189 = vrcp.f32 %v4513_v27 }
0x165d   : > { %v13184_v20 = vpop.eup %13183 }
0x165e   : > { %v4720_v2 = vpop.permute.xlu0 %4719  ;;  %v4522_v14 = vpop.xlane.xlu1 %4521  ;;  %v4537_v12 = vmul.f32 %v13184_v20, %v15432_v51  ;;  %v11898_v51 = vpack.c.bf16 %v12427_v49, %v12426_v47 }
0x165f   : > { %13191 = vrcp.f32 %v4522_v14 }
0x1660   : > { %11270 = vmatprep.mubr.msk.f32.mxu0 %vm1213_vm10, %v4537_v12 }
0x1661   : > { %11271 = vmatmul.mubr.msk.f32.gmra.mrb[76].mxu0 %vm1213_vm10, %v4538_v30  ;;  %v13186_v53 = vpop.eup %13185 }
0x1662   : > { %v4722_v8 = vpop.permute.xlu0 %4721  ;;  %v12420_v21 = vpop.permute.xlu1 %12419  ;;  %v4540_v42 = vmul.f32 %v13186_v53, %v15436_v36 }
0x1663   : > { %v12422_v56 = vunpack.i.h.bf16 %v12420_v21  ;;  %v12421_v18 = vunpack.i.l.bf16 %v12420_v21 }
0x1665   : > { %v13188_v5 = vpop.eup %13187  ;;  %v11892_v62 = vpack.c.bf16 %v12422_v56, %v12421_v18 }
0x1666   : > { %v13190_v39 = vpop.eup %13189  ;;  %v4724_v45 = vpop.permute.xlu0 %4723  ;;  %v4541_v3 = vmul.f32 %v13188_v5, %v15442_v35 }
0x1667   : > { %v4726_v7 = vpop.permute.xlu1 %4725  ;;  %11894 = vmatprep.subr.msk.bf16.mxu0 %vm14003_vm9, %v11892_v62  ;;  %v4539_v29 = vmul.f32 %v13190_v39, %v15440_v50 }
0x1668   : > { %11897 = vmatpush3.bf16.xpose.msk.msra.mxu0 %vm14003_vm9, %v11892_v62 }
0x1669   : > { %v13192_v48 = vpop.eup %13191  ;;  %11273 = vmatprep.mubr.msk.f32.mxu0 %vm1213_vm10, %v4539_v29  ;;  %11900 = vmatprep.subr.msk.bf16.mxu0 %vm14003_vm9, %v11898_v51 }
0x166a   : > { %11274 = vmatmul.mubr.msk.f32.gmra.mrb[78].mxu0 %vm1213_vm10, %v4540_v42  ;;  %v4728_v59 = vpop.permute.xlu0 %4727  ;;  %v4542_v22 = vmul.f32 %v13192_v48, %v15448_v52 }
0x166b   : > { %v4730_v63 = vpop.permute.xlu1 %4729  ;;  %11276 = vmatprep.mubr.msk.f32.mxu0 %vm1213_vm10, %v4541_v3 }
0x166e   : > { %11277 = vmatmul.mubr.msk.f32.gmra.mrb[80].mxu0 %vm1213_vm10, %v4542_v22  ;;  %v4732_v50 = vpop.permute.xlu0 %4731 }
0x166f   : > { %v4734_v36 = vpop.permute.xlu1 %4733  ;;  %11299 = vmatprep.mubr.msk.f32.mxu0 %vm1047_vm8, %v4720_v2 }
0x1670   : > { %11903 = vmatpush3.bf16.xpose.msk.msra.mxu0 %vm14003_vm9, %v11898_v51 }
0x1672   : > { %v4736_v31 = vpop.permute.xlu0 %4735 }
0x1673   : > { %v4738_v37 = vpop.permute.xlu1 %4737 }
0x1676   : > { %v12430_v35 = vpop.permute.xlu0 %12429 }
0x1677   : > { %v12435_v19 = vpop.permute.xlu1 %12434  ;;  %v12432_v54 = vunpack.i.h.bf16 %v12430_v35  ;;  %v12431_v0 = vunpack.i.l.bf16 %v12430_v35  ;;  %11300 = vmatmul.mubr.msk.f32.vlgmr.msra.gmra.mrb[82].mxu0 %vm1047_vm8, %v4722_v8 }
0x1678   : > { %v12437_v6 = vunpack.i.h.bf16 %v12435_v19  ;;  %v12436_v27 = vunpack.i.l.bf16 %v12435_v19  ;;  %11302 = vmatprep.mubr.msk.f32.mxu0 %vm1047_vm8, %v4724_v45 }
0x1679   : > { %v11904_v52 = vpack.c.bf16 %v12432_v54, %v12431_v0 }
0x167a   : > { %v12440_v13 = vpop.permute.xlu0 %12439  ;;  %v11908_v2 = vpack.c.bf16 %v12437_v6, %v12436_v27 }
0x167b   : > { %v12442_v20 = vunpack.i.h.bf16 %v12440_v13  ;;  %v12441_v14 = vunpack.i.l.bf16 %v12440_v13  ;;  %11303 = vmatmul.mubr.msk.f32.gmra.mrb[84].mxu0 %vm1047_vm8, %v4726_v7  ;;  %11905 = vmatprep.subr.bf16.mxu1 %v11904_v52 }
0x167c   : > { %11305 = vmatprep.mubr.msk.f32.mxu0 %vm1047_vm8, %v4728_v59  ;;  %11907 = vmatpush3.bf16.msra.mxu1 %v11904_v52 }
0x167d   : > { %11909 = vmatprep.subr.bf16.mxu1 %v11908_v2  ;;  %v11912_v12 = vpack.c.bf16 %v12442_v20, %v12441_v14 }
0x167e   : > { %v12450_v27 = vpop.permute.xlu0 %12449 }
0x167f   : > { %11306 = vmatmul.mubr.msk.f32.gmra.mrb[86].mxu0 %vm1047_vm8, %v4730_v63 }
0x1680   : > { %11308 = vmatprep.mubr.msk.f32.mxu0 %vm1047_vm8, %v4732_v50  ;;  %11911 = vmatpush3.bf16.msra.mxu1 %v11908_v2 }
0x1681   : > { %11913 = vmatprep.subr.bf16.mxu1 %v11912_v12 }
0x1682   : > { %v12455_v52 = vpop.permute.xlu0 %12454 }
0x1683   : > { %11309 = vmatmul.mubr.msk.f32.gmra.mrb[88].mxu0 %vm1047_vm8, %v4734_v36  ;;  %v12457_v4 = vunpack.i.h.bf16 %v12455_v52  ;;  %v12456_v28 = vunpack.i.l.bf16 %v12455_v52 }
0x1684   : > { %11311 = vmatprep.mubr.msk.f32.mxu0 %vm1047_vm8, %v4736_v31  ;;  %11915 = vmatpush3.bf16.msra.mxu1 %v11912_v12 }
0x1687   : > { %11312 = vmatmul.mubr.msk.f32.gmra.mrb[90].mxu0 %vm1047_vm8, %v4738_v37 }
0x1703   : > { %v15533_v30 = vpop.f32.mrb[72].mxu0 }
0x1704   : > { %v15535_v8 = vpop.f32.mrb[73].mxu0 }
0x1708   : > { %v15537_v21 = vpop.f32.mrb[74].mxu0 }
0x1709   : > { %v15539_v49 = vpop.f32.mrb[75].mxu0 }
0x1734   : > { %v15541_v47 = vpop.f32.mrb[76].mxu0 }
0x1735   : > { %v15543_v56 = vpop.f32.mrb[77].mxu0 }
0x173d   : > { %v15545_v18 = vpop.f32.mrb[78].mxu0 }
0x173e   : > { %v15547_v53 = vpop.f32.mrb[79].mxu0 }
0x1741   : > { %v15549_v5 = vpop.f32.mrb[80].mxu0 }
0x1742   : > { %19040 = vst [vmem:[#allocation17_spill] sm:$0xff] %v15549_v5  ;;  %v15551_v62 = vpop.f32.mrb[81].mxu0 }
0x1743   : > { %19041 = vst [vmem:[#allocation20_spill] sm:$0xff] %v15551_v62 }
0x174a   : > { %v11301_v39 = vpop.f32.mrb[82].mxu0 }
0x174b   : > { %v4865_v45 = vpop.f32.mrb[83].mxu0  ;;  %v4917_v7 = vsel %vm1213_vm10, %v11301_v39, -inf }
0x174c   : > { %4918 = vmax.xlane.f32.xlu1 %v4917_v7  ;;  %v4914_v51 = vsel %vm1213_vm10, %v4865_v45, -inf  ;;  %v12452_v7 = vunpack.i.h.bf16 %v12450_v27 }
0x174d   : > { %4915 = vmax.xlane.f32.xlu0 %v4914_v51 }
0x174e   : > { %v11304_v29 = vpop.f32.mrb[84].mxu0 }
0x174f   : > { %v4875_v42 = vpop.f32.mrb[85].mxu0  ;;  %v4923_v48 = vsel %vm1213_vm10, %v11304_v29, -inf }
0x1750   : > { %v4920_v63 = vsel %vm1213_vm10, %v4875_v42, -inf }
0x1751   : > { %4924 = vmax.xlane.f32.xlu0 %v4923_v48 }
0x1752   : > { %v11307_v3 = vpop.f32.mrb[86].mxu0 }
0x1753   : > { %v15556_v59 = vpop.f32.mrb[87].mxu0  ;;  %v4929_v36 = vsel %vm1213_vm10, %v11307_v3, -inf }
0x1754   : > { %v4926_v54 = vsel %vm1213_vm10, %v15556_v59, -inf }
0x1755   : > { %4921 = vmax.xlane.f32.xlu0 %v4920_v63  ;;  %v12451_v63 = vunpack.i.l.bf16 %v12450_v27 }
0x1756   : > { %v15559_v22 = vpop.f32.mrb[88].mxu0 }
0x1757   : > { %v15561_v50 = vpop.f32.mrb[89].mxu0  ;;  %v4935_v35 = vsel %vm1213_vm10, %v15559_v22, -inf  ;;  %v11920_v10 = vpack.c.bf16 %v12452_v7, %v12451_v63 }
0x1758   : > { %v4932_v0 = vsel %vm1213_vm10, %v15561_v50, -inf }
0x1759   : > { %4930 = vmax.xlane.f32.xlu0 %v4929_v36 }
0x175a   : > { %v15564_v31 = vpop.f32.mrb[90].mxu0 }
0x175b   : > { %v15566_v37 = vpop.f32.mrb[91].mxu0  ;;  %v4941_v19 = vsel %vm1241_vm11, %v15564_v31, -inf }
0x175c   : > { %v4938_v6 = vsel %vm1213_vm10, %v15566_v37, -inf }
0x175d   : > { %12444 = vrot.lane.b32.xlu1 %v15276_v25, %s19038_s26  ;;  %4936 = vmax.xlane.f32.xlu0 %v4935_v35 }
0x1761   : > { %4942 = vmax.xlane.f32.xlu0 %v4941_v19 }
0x1777   : > { %12464 = vrot.lane.b32.xlu0 %v15266_v46, %s19039_s19 }
0x1781   : > { %4927 = vmax.xlane.f32.xlu1 %v4926_v54 }
0x1785   : > { %4933 = vmax.xlane.f32.xlu1 %v4932_v0 }
0x1789   : > { %4939 = vmax.xlane.f32.xlu1 %v4938_v6 }
0x179a   : > { %12459 = vrot.lane.b32.xlu1 %v15256_v24, %s19039_s19 }
0x17d9   : > { %v4919_v13 = vpop.xlane.xlu1 %4918 }
0x17da   : > { %v4945_v20 = vsub.f32 %v11301_v39, %v4919_v13  ;;  %v4916_v14 = vpop.xlane.xlu0 %4915  ;;  %v15586_v13 = vpack.c.bf16 %v12457_v4, %v12456_v28 }
0x17db   : > { %v4944_v2 = vsub.f32 %v4865_v45, %v4916_v14 }
0x17dc   : > { %v4956_v12 = vmul.f32 1.442695, %v4945_v20 }
0x17dd   : > { %v4954_v51 = vmul.f32 1.442695, %v4944_v2  ;;  %v12445_v48 = vpop.permute.xlu1 %12444 }
0x17de   : > { %13193 = vpow2.f32 %v4956_v12  ;;  %v12447_v36 = vunpack.i.h.bf16 %v12445_v48  ;;  %v12446_v35 = vunpack.i.l.bf16 %v12445_v48  ;;  %v4925_v19 = vpop.xlane.xlu0 %4924 }
0x17df   : > { %v4947_v54 = vsub.f32 %v11304_v29, %v4925_v19  ;;  %13195 = vpow2.f32 %v4954_v51 }
0x17e0   : > { %v11916_v0 = vpack.c.bf16 %v12447_v36, %v12446_v35 }
0x17e1   : > { %v4960_v6 = vmul.f32 1.442695, %v4947_v54 }
0x17e2   : > { %11917 = vmatprep.subr.bf16.mxu1 %v11916_v0  ;;  %v4922_v39 = vpop.xlane.xlu0 %4921 }
0x17e3   : > { %13197 = vpow2.f32 %v4960_v6  ;;  %v4946_v45 = vsub.f32 %v4875_v42, %v4922_v39  ;;  %11919 = vmatpush3.bf16.msra.mxu1 %v11916_v0 }
0x17e4   : > { %11922 = vmatprep.subr.msk.bf16.mxu1 %vm14105_vm14, %v11920_v10 }
0x17e5   : > { %v4958_v27 = vmul.f32 1.442695, %v4946_v45 }
0x17e6   : > { %v4931_v20 = vpop.xlane.xlu0 %4930 }
0x17e7   : > { %13199 = vpow2.f32 %v4958_v27  ;;  %v4949_v29 = vsub.f32 %v11307_v3, %v4931_v20  ;;  %11925 = vmatpush3.bf16.msk.msra.mxu1 %vm14105_vm14, %v11920_v10 }
0x17e8   : > { %v15590_v14 = vpop.eup %13193  ;;  %11928 = vmatprep.subr.msk.bf16.mxu1 %vm14003_vm9, %v15586_v13 }
0x17e9   : > { %v4964_v42 = vmul.f32 1.442695, %v4949_v29  ;;  %v4977_v52 = vsel %vm1213_vm10, %v15590_v14, 0.0  ;;  %v15597_v2 = vpop.eup %13195 }
0x17ea   : > { %4978 = vadd.xlane.f32.xlu1 %v4977_v52  ;;  %v4974_v4 = vsel %vm1213_vm10, %v15597_v2, 0.0  ;;  %v4937_v48 = vpop.xlane.xlu0 %4936 }
0x17eb   : > { %13201 = vpow2.f32 %v4964_v42  ;;  %v4951_v63 = vsub.f32 %v15559_v22, %v4937_v48 }
0x17ed   : > { %v15599_v28 = vpop.eup %13197  ;;  %v4968_v19 = vmul.f32 1.442695, %v4951_v63 }
0x17ee   : > { %4975 = vadd.xlane.f32.xlu1 %v4974_v4  ;;  %v4983_v10 = vsel %vm1213_vm10, %v15599_v28, 0.0  ;;  %v4943_v0 = vpop.xlane.xlu0 %4942 }
0x17ef   : > { %4984 = vadd.xlane.f32.xlu0 %v4983_v10  ;;  %v4953_v45 = vsub.f32 %v15564_v31, %v4943_v0 }
0x17f1   : > { %v15605_v3 = vpop.eup %13199  ;;  %v4972_v42 = vmul.f32 1.442695, %v4953_v45 }
0x17f2   : > { %v4980_v12 = vsel %vm1213_vm10, %v15605_v3, 0.0 }
0x17f3   : > { %4981 = vadd.xlane.f32.xlu1 %v4980_v12 }
0x17f5   : > { %v15609_v7 = vpop.eup %13201 }
0x17f6   : > { %v4989_v51 = vsel %vm1213_vm10, %v15609_v7, 0.0 }
0x17f7   : > { %4990 = vadd.xlane.f32.xlu1 %v4989_v51 }
0x1805   : > { %12474 = vrot.lane.b32.xlu0 %v15288_v16, %s19039_s19 }
0x180e   : > { %v4928_v36 = vpop.xlane.xlu1 %4927 }
0x180f   : > { %v4948_v35 = vsub.f32 %v15556_v59, %v4928_v36 }
0x1811   : > { %v4962_v54 = vmul.f32 1.442695, %v4948_v35  ;;  %v12465_v35 = vpop.permute.xlu0 %12464 }
0x1812   : > { %v4934_v6 = vpop.xlane.xlu1 %4933 }
0x1813   : > { %13203 = vpow2.f32 %v4962_v54  ;;  %v4950_v39 = vsub.f32 %v15561_v50, %v4934_v6 }
0x1814   : > { %13205 = vpow2.f32 %v4968_v19 }
0x1815   : > { %v4966_v27 = vmul.f32 1.442695, %v4950_v39 }
0x1816   : > { %v4940_v20 = vpop.xlane.xlu1 %4939 }
0x1817   : > { %v4952_v29 = vsub.f32 %v15566_v37, %v4940_v20  ;;  %13207 = vpow2.f32 %v4966_v27 }
0x1819   : > { %v4970_v22 = vmul.f32 1.442695, %v4952_v29 }
0x181a   : > { %v12460_v63 = vpop.permute.xlu1 %12459 }
0x181b   : > { %13209 = vpow2.f32 %v4970_v22  ;;  %v12462_v45 = vunpack.i.h.bf16 %v12460_v63  ;;  %v12461_v27 = vunpack.i.l.bf16 %v12460_v63 }
0x181c   : > { %13211 = vpow2.f32 %v4972_v42 }
0x181d   : > { %v15620_v52 = vpop.eup %13203  ;;  %v11932_v22 = vpack.c.bf16 %v12462_v45, %v12461_v27 }
0x181e   : > { %v4986_v59 = vsel %vm1213_vm10, %v15620_v52, 0.0  ;;  %v15624_v4 = vpop.eup %13205 }
0x181f   : > { %4987 = vadd.xlane.f32.xlu1 %v4986_v59  ;;  %v4995_v50 = vsel %vm1213_vm10, %v15624_v4, 0.0 }
0x1821   : > { %v15628_v31 = vpop.eup %13207 }
0x1822   : > { %v4992_v10 = vsel %vm1213_vm10, %v15628_v31, 0.0 }
0x1823   : > { %4996 = vadd.xlane.f32.xlu1 %v4995_v50 }
0x1825   : > { %v15630_v37 = vpop.eup %13209 }
0x1826   : > { %v4998_v12 = vsel %vm1213_vm10, %v15630_v37, 0.0  ;;  %v15636_v51 = vpop.eup %13211 }
0x1827   : > { %4993 = vadd.xlane.f32.xlu1 %v4992_v10  ;;  %4999 = vadd.xlane.f32.xlu0 %v4998_v12  ;;  %v5001_v48 = vsel %vm1241_vm11, %v15636_v51, 0.0  ;;  %v12467_v10 = vunpack.i.h.bf16 %v12465_v35 }
0x182b   : > { %5002 = vadd.xlane.f32.xlu1 %v5001_v48 }
0x183c   : > { %12469 = vrot.lane.b32.xlu1 %v15276_v25, %s19039_s19 }
0x183d   : > { %5200 = vrot.lane.b32.xlu0 %v15244_v26, %s19042_s22 }
0x1840   : > { %5206 = vrot.lane.b32.xlu1 %v15331_v1, %s19042_s22 }
0x1841   : > { %5202 = vrot.lane.b32.xlu0 %v15321_v34, %s19042_s22 }
0x1844   : > { %5210 = vrot.lane.b32.xlu1 %v15341_v15, %s19042_s22 }
0x1845   : > { %5204 = vrot.lane.b32.xlu0 %v15324_v11, %s19042_s22 }
0x1848   : > { %5214 = vrot.lane.b32.xlu1 %v15351_v9, %s19042_s22 }
0x1849   : > { %5208 = vrot.lane.b32.xlu0 %v15334_v55, %s19042_s22 }
0x184c   : > { %5218 = vrot.lane.b32.xlu1 %v15361_v60, %s19042_s22 }
0x184d   : > { %5212 = vrot.lane.b32.xlu0 %v15344_v38, %s19042_s22 }
0x1850   : > { %12484 = vrot.lane.b32.xlu1 %v15256_v24, %s19043_s21 }
0x1851   : > { %5216 = vrot.lane.b32.xlu0 %v15354_v23, %s19042_s22 }
0x1854   : > { %12494 = vrot.lane.b32.xlu1 %v15276_v25, %s19043_s21 }
0x1855   : > { %12479 = vrot.lane.b32.xlu0 %v15242_v41, %s19043_s21 }
0x1859   : > { %12489 = vrot.lane.b32.xlu0 %v15266_v46, %s19043_s21 }
0x185d   : > { %12499 = vrot.lane.b32.xlu0 %v15288_v16, %s19043_s21 }
0x1861   : > { %12504 = vrot.lane.b32.xlu0 %v15242_v41, %s19044_s30 }
0x1877   : > { %v4979_v36 = vpop.xlane.xlu1 %4978 }
0x1878   : > { %13213 = vrcp.f32 %v4979_v36 }
0x187b   : > { %v4976_v19 = vpop.xlane.xlu1 %4975 }
0x187c   : > { %13215 = vrcp.f32 %v4976_v19  ;;  %v4985_v54 = vpop.xlane.xlu0 %4984 }
0x187d   : > { %13217 = vrcp.f32 %v4985_v54 }
0x1880   : > { %v4982_v0 = vpop.xlane.xlu1 %4981 }
0x1881   : > { %13219 = vrcp.f32 %v4982_v0 }
0x1882   : > { %v13214_v6 = vpop.eup %13213 }
0x1883   : > { %v5015_v29 = vmul.f32 %v13214_v6, %v15590_v14  ;;  %v12466_v14 = vunpack.i.l.bf16 %v12465_v35 }
0x1885   : > { %v11938_v12 = vpack.c.bf16 %v12467_v10, %v12466_v14 }
0x1886   : > { %v13216_v39 = vpop.eup %13215 }
0x1887   : > { %v5014_v20 = vmul.f32 %v13216_v39, %v15597_v2  ;;  %v13218_v42 = vpop.eup %13217 }
0x1888   : > { %v5017_v2 = vmul.f32 %v13218_v42, %v15599_v28  ;;  %v12475_v28 = vpop.permute.xlu0 %12474 }
0x1889   : > { %11334 = vmatprep.mubr.msk.f32.mxu1 %vm1213_vm10, %v5014_v20  ;;  %v12477_v20 = vunpack.i.h.bf16 %v12475_v28 }
0x188a   : > { %11335 = vmatmul.mubr.msk.f32.vlgmr.msra.gmra.mrb[68].mxu1 %vm1213_vm10, %v5015_v29  ;;  %v12476_v29 = vunpack.i.l.bf16 %v12475_v28 }
0x188b   : > { %v13220_v59 = vpop.eup %13219  ;;  %11931 = vmatpush3.bf16.xpose.msk.msra.mxu1 %vm14003_vm9, %v15586_v13  ;;  %v4991_v13 = vpop.xlane.xlu1 %4990 }
0x188c   : > { %11934 = vmatprep.subr.msk.bf16.mxu1 %vm14003_vm9, %v11932_v22  ;;  %v5016_v50 = vmul.f32 %v13220_v59, %v15605_v3  ;;  %13221 = vrcp.f32 %v4991_v13 }
0x188e   : > { %11337 = vmatprep.mubr.msk.f32.mxu1 %vm1213_vm10, %v5016_v50 }
0x188f   : > { %11338 = vmatmul.mubr.msk.f32.gmra.mrb[70].mxu1 %vm1213_vm10, %v5017_v2 }
0x1893   : > { %11937 = vmatpush3.bf16.xpose.msk.msra.mxu1 %vm14003_vm9, %v11932_v22 }
0x1894   : > { %11940 = vmatprep.subr.msk.bf16.mxu1 %vm14003_vm9, %v11938_v12 }
0x1896   : > { %v13222_v35 = vpop.eup %13221 }
0x1897   : > { %v5019_v39 = vmul.f32 %v13222_v35, %v15609_v7 }
0x189b   : > { %11943 = vmatpush3.bf16.xpose.msk.msra.mxu1 %vm14003_vm9, %v11938_v12 }
0x18ac   : > { %v4988_v3 = vpop.xlane.xlu1 %4987 }
0x18ad   : > { %13223 = vrcp.f32 %v4988_v3 }
0x18b0   : > { %v4997_v48 = vpop.xlane.xlu1 %4996 }
0x18b1   : > { %13225 = vrcp.f32 %v4997_v48 }
0x18b4   : > { %v5000_v63 = vpop.xlane.xlu0 %4999  ;;  %v4994_v36 = vpop.xlane.xlu1 %4993 }
0x18b5   : > { %13227 = vrcp.f32 %v5000_v63 }
0x18b6   : > { %13229 = vrcp.f32 %v4994_v36 }
0x18b7   : > { %v13224_v19 = vpop.eup %13223 }
0x18b8   : > { %v5201_v54 = vpop.permute.xlu0 %5200  ;;  %v5003_v0 = vpop.xlane.xlu1 %5002  ;;  %v5018_v6 = vmul.f32 %v13224_v19, %v15620_v52  ;;  %v11950_v52 = vpack.c.bf16 %v12477_v20, %v12476_v29 }
0x18b9   : > { %13231 = vrcp.f32 %v5003_v0 }
0x18ba   : > { %11340 = vmatprep.mubr.msk.f32.mxu1 %vm1213_vm10, %v5018_v6 }
0x18bb   : > { %11341 = vmatmul.mubr.msk.f32.gmra.mrb[72].mxu1 %vm1213_vm10, %v5019_v39  ;;  %v13226_v59 = vpop.eup %13225 }
0x18bc   : > { %v5203_v45 = vpop.permute.xlu0 %5202  ;;  %v12470_v27 = vpop.permute.xlu1 %12469  ;;  %v5021_v13 = vmul.f32 %v13226_v59, %v15624_v4 }
0x18bd   : > { %v12472_v42 = vunpack.i.h.bf16 %v12470_v27  ;;  %v12471_v22 = vunpack.i.l.bf16 %v12470_v27 }
0x18bf   : > { %v13228_v50 = vpop.eup %13227  ;;  %v11944_v2 = vpack.c.bf16 %v12472_v42, %v12471_v22 }
0x18c0   : > { %v13230_v10 = vpop.eup %13229  ;;  %v5205_v14 = vpop.permute.xlu0 %5204  ;;  %v5022_v28 = vmul.f32 %v13228_v50, %v15630_v37 }
0x18c1   : > { %v5207_v12 = vpop.permute.xlu1 %5206  ;;  %11946 = vmatprep.subr.msk.bf16.mxu1 %vm14003_vm9, %v11944_v2  ;;  %v5020_v7 = vmul.f32 %v13230_v10, %v15628_v31 }
0x18c2   : > { %11949 = vmatpush3.bf16.xpose.msk.msra.mxu1 %vm14003_vm9, %v11944_v2 }
0x18c3   : > { %v13232_v3 = vpop.eup %13231  ;;  %11343 = vmatprep.mubr.msk.f32.mxu1 %vm1213_vm10, %v5020_v7  ;;  %11952 = vmatprep.subr.msk.bf16.mxu1 %vm14003_vm9, %v11950_v52 }
0x18c4   : > { %11344 = vmatmul.mubr.msk.f32.gmra.mrb[74].mxu1 %vm1213_vm10, %v5021_v13  ;;  %v5209_v48 = vpop.permute.xlu0 %5208  ;;  %v5023_v36 = vmul.f32 %v13232_v3, %v15636_v51 }
0x18c5   : > { %v5211_v63 = vpop.permute.xlu1 %5210  ;;  %11346 = vmatprep.mubr.msk.f32.mxu1 %vm1213_vm10, %v5022_v28 }
0x18c8   : > { %11347 = vmatmul.mubr.msk.f32.gmra.mrb[76].mxu1 %vm1213_vm10, %v5023_v36  ;;  %v5213_v31 = vpop.permute.xlu0 %5212 }
0x18c9   : > { %v5215_v4 = vpop.permute.xlu1 %5214  ;;  %11369 = vmatprep.mubr.msk.f32.mxu1 %vm1047_vm8, %v5201_v54 }
0x18ca   : > { %11955 = vmatpush3.bf16.xpose.msk.msra.mxu1 %vm14003_vm9, %v11950_v52 }
0x18cc   : > { %v5217_v35 = vpop.permute.xlu0 %5216 }
0x18cd   : > { %v5219_v19 = vpop.permute.xlu1 %5218 }
0x18d0   : > { %v12480_v37 = vpop.permute.xlu0 %12479 }
0x18d1   : > { %v12485_v0 = vpop.permute.xlu1 %12484  ;;  %v12482_v6 = vunpack.i.h.bf16 %v12480_v37  ;;  %v12481_v39 = vunpack.i.l.bf16 %v12480_v37  ;;  %11370 = vmatmul.mubr.msk.f32.vlgmr.msra.gmra.mrb[78].mxu1 %vm1047_vm8, %v5203_v45 }
0x18d2   : > { %v12487_v27 = vunpack.i.h.bf16 %v12485_v0  ;;  %v12486_v20 = vunpack.i.l.bf16 %v12485_v0  ;;  %11372 = vmatprep.mubr.msk.f32.mxu1 %vm1047_vm8, %v5205_v14 }
0x18d3   : > { %v11956_v51 = vpack.c.bf16 %v12482_v6, %v12481_v39 }
0x18d4   : > { %v12490_v29 = vpop.permute.xlu0 %12489  ;;  %v11960_v54 = vpack.c.bf16 %v12487_v27, %v12486_v20 }
0x18d5   : > { %v12492_v42 = vunpack.i.h.bf16 %v12490_v29  ;;  %v12491_v22 = vunpack.i.l.bf16 %v12490_v29  ;;  %11373 = vmatmul.mubr.msk.f32.gmra.mrb[80].mxu1 %vm1047_vm8, %v5207_v12  ;;  %11957 = vmatprep.subr.bf16.mxu0 %v11956_v51  ;;  %v12495_v59 = vpop.permute.xlu1 %12494 }
0x18d6   : > { %11375 = vmatprep.mubr.msk.f32.mxu1 %vm1047_vm8, %v5209_v48  ;;  %11959 = vmatpush3.bf16.msra.mxu0 %v11956_v51  ;;  %v12497_v2 = vunpack.i.h.bf16 %v12495_v59  ;;  %v12496_v10 = vunpack.i.l.bf16 %v12495_v59 }
0x18d7   : > { %11961 = vmatprep.subr.bf16.mxu0 %v11960_v54  ;;  %v11964_v45 = vpack.c.bf16 %v12492_v42, %v12491_v22 }
0x18d8   : > { %v12500_v50 = vpop.permute.xlu0 %12499  ;;  %v11968_v12 = vpack.c.bf16 %v12497_v2, %v12496_v10 }
0x18d9   : > { %11376 = vmatmul.mubr.msk.f32.gmra.mrb[82].mxu1 %vm1047_vm8, %v5211_v63  ;;  %v12502_v14 = vunpack.i.h.bf16 %v12500_v50  ;;  %v12501_v52 = vunpack.i.l.bf16 %v12500_v50 }
0x18da   : > { %11378 = vmatprep.mubr.msk.f32.mxu1 %vm1047_vm8, %v5213_v31  ;;  %11963 = vmatpush3.bf16.msra.mxu0 %v11960_v54 }
0x18db   : > { %11965 = vmatprep.subr.bf16.mxu0 %v11964_v45  ;;  %v11972_v13 = vpack.c.bf16 %v12502_v14, %v12501_v52 }
0x18dc   : > { %v12505_v7 = vpop.permute.xlu0 %12504 }
0x18dd   : > { %11379 = vmatmul.mubr.msk.f32.gmra.mrb[84].mxu1 %vm1047_vm8, %v5215_v4  ;;  %v12507_v3 = vunpack.i.h.bf16 %v12505_v7  ;;  %v12506_v28 = vunpack.i.l.bf16 %v12505_v7 }
0x18de   : > { %11381 = vmatprep.mubr.msk.f32.mxu1 %vm1047_vm8, %v5217_v35  ;;  %11967 = vmatpush3.bf16.msra.mxu0 %v11964_v45 }
0x18df   : > { %11969 = vmatprep.subr.bf16.mxu0 %v11968_v12  ;;  %v15725_v48 = vpack.c.bf16 %v12507_v3, %v12506_v28 }
0x18e1   : > { %11382 = vmatmul.mubr.msk.f32.gmra.mrb[86].mxu1 %vm1047_vm8, %v5219_v19 }
0x18e2   : > { %11971 = vmatpush3.bf16.msra.mxu0 %v11968_v12 }
0x18e3   : > { %11974 = vmatprep.subr.msk.bf16.mxu0 %vm14105_vm14, %v11972_v13 }
0x18e6   : > { %11977 = vmatpush3.bf16.msk.msra.mxu0 %vm14105_vm14, %v11972_v13 }
0x18e7   : > { %11980 = vmatprep.subr.msk.bf16.mxu0 %vm14003_vm9, %v15725_v48 }
0x195d   : > { %v15732_v63 = vpop.f32.mrb[68].mxu1 }
0x195e   : > { %v15734_v36 = vpop.f32.mrb[69].mxu1 }
0x1962   : > { %v15736_v31 = vpop.f32.mrb[70].mxu1 }
0x1963   : > { %v15738_v4 = vpop.f32.mrb[71].mxu1 }
0x198e   : > { %v15740_v35 = vpop.f32.mrb[72].mxu1 }
0x198f   : > { %v15742_v19 = vpop.f32.mrb[73].mxu1 }
0x1997   : > { %v15744_v37 = vpop.f32.mrb[74].mxu1 }
0x1998   : > { %v15746_v0 = vpop.f32.mrb[75].mxu1 }
0x199b   : > { %v15748_v6 = vpop.f32.mrb[76].mxu1 }
0x199c   : > { %v15750_v39 = vpop.f32.mrb[77].mxu1 }
0x19a4   : > { %v11371_v27 = vpop.f32.mrb[78].mxu1 }
0x19a5   : > { %v5346_v20 = vpop.f32.mrb[79].mxu1  ;;  %v5398_v51 = vsel %vm1213_vm10, %v11371_v27, -inf }
0x19a6   : > { %5399 = vmax.xlane.f32.xlu1 %v5398_v51  ;;  %v5395_v29 = vsel %vm1213_vm10, %v5346_v20, -inf }
0x19a7   : > { %5396 = vmax.xlane.f32.xlu0 %v5395_v29 }
0x19a8   : > { %v11374_v42 = vpop.f32.mrb[80].mxu1 }
0x19a9   : > { %v5356_v22 = vpop.f32.mrb[81].mxu1  ;;  %v5404_v54 = vsel %vm1213_vm10, %v11374_v42, -inf }
0x19aa   : > { %v5401_v2 = vsel %vm1213_vm10, %v5356_v22, -inf }
0x19ab   : > { %5405 = vmax.xlane.f32.xlu0 %v5404_v54 }
0x19ac   : > { %v11377_v59 = vpop.f32.mrb[82].mxu1 }
0x19ad   : > { %v5366_v50 = vpop.f32.mrb[83].mxu1  ;;  %v5410_v52 = vsel %vm1213_vm10, %v11377_v59, -inf }
0x19ae   : > { %v5407_v10 = vsel %vm1213_vm10, %v5366_v50, -inf }
0x19af   : > { %5402 = vmax.xlane.f32.xlu0 %v5401_v2  ;;  %5408 = vmax.xlane.f32.xlu1 %v5407_v10 }
0x19b0   : > { %v11380_v45 = vpop.f32.mrb[84].mxu1 }
0x19b1   : > { %v15757_v14 = vpop.f32.mrb[85].mxu1  ;;  %v5416_v3 = vsel %vm1213_vm10, %v11380_v45, -inf }
0x19b2   : > { %v5413_v12 = vsel %vm1213_vm10, %v15757_v14, -inf }
0x19b3   : > { %5411 = vmax.xlane.f32.xlu0 %v5410_v52  ;;  %5414 = vmax.xlane.f32.xlu1 %v5413_v12 }
0x19b4   : > { %v15762_v7 = vpop.f32.mrb[86].mxu1 }
0x19b5   : > { %v5386_v13 = vpop.f32.mrb[87].mxu1  ;;  %v5422_v51 = vsel %vm1241_vm11, %v15762_v7, -inf }
0x19b6   : > { %v5419_v28 = vsel %vm1213_vm10, %v5386_v13, -inf }
0x19b7   : > { %5417 = vmax.xlane.f32.xlu0 %v5416_v3  ;;  %5420 = vmax.xlane.f32.xlu1 %v5419_v28 }
0x19bb   : > { %5423 = vmax.xlane.f32.xlu0 %v5422_v51 }
0x19c8   : > { %12509 = vrot.lane.b32.xlu1 %v15256_v24, %s19044_s30 }
0x19d1   : > { %12514 = vrot.lane.b32.xlu0 %v15266_v46, %s19044_s30 }
0x19d5   : > { %12524 = vrot.lane.b32.xlu0 %v15288_v16, %s19044_s30 }
0x1a33   : > { %v5400_v29 = vpop.xlane.xlu1 %5399 }
0x1a34   : > { %v5426_v54 = vsub.f32 %v11371_v27, %v5400_v29  ;;  %v5397_v2 = vpop.xlane.xlu0 %5396 }
0x1a35   : > { %v5425_v10 = vsub.f32 %v5346_v20, %v5397_v2 }
0x1a36   : > { %v5437_v52 = vmul.f32 1.442695, %v5426_v54 }
0x1a37   : > { %v5435_v12 = vmul.f32 1.442695, %v5425_v10 }
0x1a38   : > { %13233 = vpow2.f32 %v5437_v52  ;;  %v5406_v3 = vpop.xlane.xlu0 %5405 }
0x1a39   : > { %v5428_v28 = vsub.f32 %v11374_v42, %v5406_v3  ;;  %13235 = vpow2.f32 %v5435_v12 }
0x1a3b   : > { %v5441_v51 = vmul.f32 1.442695, %v5428_v28 }
0x1a3c   : > { %v5409_v42 = vpop.xlane.xlu1 %5408  ;;  %v5403_v54 = vpop.xlane.xlu0 %5402 }
0x1a3d   : > { %13237 = vpow2.f32 %v5441_v51  ;;  %v5427_v2 = vsub.f32 %v5356_v22, %v5403_v54  ;;  %v5429_v51 = vsub.f32 %v5366_v50, %v5409_v42 }
0x1a3f   : > { %v5439_v12 = vmul.f32 1.442695, %v5427_v2  ;;  %v5443_v43 = vmul.f32 1.442695, %v5429_v51 }
0x1a40   : > { %v5415_v29 = vpop.xlane.xlu1 %5414  ;;  %v5412_v10 = vpop.xlane.xlu0 %5411 }
0x1a41   : > { %v5430_v3 = vsub.f32 %v11377_v59, %v5412_v10  ;;  %13239 = vpow2.f32 %v5439_v12  ;;  %v5431_v17 = vsub.f32 %v15757_v14, %v5415_v29 }
0x1a42   : > { %v15774_v44 = vpop.eup %13233 }
0x1a43   : > { %v5458_v32 = vsel %vm1213_vm10, %v15774_v44, 0.0  ;;  %v15778_v58 = vpop.eup %13235 }
0x1a44   : > { %5459 = vadd.xlane.f32.xlu1 %v5458_v32  ;;  %v5455_v27 = vsel %vm1213_vm10, %v15778_v58, 0.0  ;;  %v5421_v32 = vpop.xlane.xlu1 %5420 }
0x1a45   : > { %v5433_v52 = vsub.f32 %v5386_v13, %v5421_v32  ;;  %v5447_v13 = vmul.f32 1.442695, %v5431_v17 }
0x1a47   : > { %v15780_v40 = vpop.eup %13237  ;;  %v5451_v28 = vmul.f32 1.442695, %v5433_v52 }
0x1a48   : > { %5456 = vadd.xlane.f32.xlu1 %v5455_v27  ;;  %v5464_v20 = vsel %vm1213_vm10, %v15780_v40, 0.0  ;;  %v5445_v27 = vmul.f32 1.442695, %v5430_v3 }
0x1a49   : > { %5465 = vadd.xlane.f32.xlu0 %v5464_v20  ;;  %v5418_v20 = vpop.xlane.xlu0 %5417  ;;  %13241 = vpow2.f32 %v5451_v28 }
0x1a4a   : > { %13243 = vpow2.f32 %v5445_v27  ;;  %v5432_v57 = vsub.f32 %v11380_v45, %v5418_v20 }
0x1a4b   : > { %13245 = vpow2.f32 %v5443_v43  ;;  %v15791_v62 = vpop.eup %13239 }
0x1a4c   : > { %v5461_v50 = vsel %vm1213_vm10, %v15791_v62, 0.0 }
0x1a4d   : > { %v5424_v5 = vpop.xlane.xlu0 %5423 }
0x1a4e   : > { %v5434_v59 = vsub.f32 %v15762_v7, %v5424_v5 }
0x1a53   : > { %v15793_v22 = vpop.eup %13241 }
0x1a54   : > { %v15798_v42 = vpop.eup %13243  ;;  %v5479_v43 = vsel %vm1213_vm10, %v15793_v22, 0.0 }
0x1a55   : > { %v5470_v45 = vsel %vm1213_vm10, %v15798_v42, 0.0  ;;  %v15804_v14 = vpop.eup %13245 }
0x1a56   : > { %v5467_v17 = vsel %vm1213_vm10, %v15804_v14, 0.0 }
0x1a59   : > { %12519 = vrot.lane.b32.xlu1 %v15276_v25, %s19044_s30  ;;  %s18787_s30 = scalar_lea.hbm %s18847_s18, %s10363_s29 }
0x1a5f   : > { %5681 = vrot.lane.b32.xlu0 %v15244_v26, %s19045_s23  ;;  %v5449_v26 = vmul.f32 1.442695, %v5432_v57  ;;  %v5453_v57 = vmul.f32 1.442695, %v5434_v59 }
0x1a61   : > { %13247 = vpow2.f32 %v5449_v26 }
0x1a62   : > { %13249 = vpow2.f32 %v5447_v13 }
0x1a63   : > { %13251 = vpow2.f32 %v5453_v57 }
0x1a6b   : > { %v15808_v5 = vpop.eup %13247 }
0x1a6c   : > { %v5476_v7 = vsel %vm1213_vm10, %v15808_v5, 0.0  ;;  %v15812_v29 = vpop.eup %13249 }
0x1a6d   : > { %v5473_v54 = vsel %vm1213_vm10, %v15812_v29, 0.0  ;;  %v15816_v32 = vpop.eup %13251 }
0x1a6e   : > { %v5482_v2 = vsel %vm1241_vm11, %v15816_v32, 0.0 }
0x1a7d   : > { %5462 = vadd.xlane.f32.xlu1 %v5461_v50 }
0x1a7e   : > { %5480 = vadd.xlane.f32.xlu0 %v5479_v43 }
0x1a81   : > { %5471 = vadd.xlane.f32.xlu1 %v5470_v45 }
0x1a85   : > { %5468 = vadd.xlane.f32.xlu1 %v5467_v17 }
0x1a89   : > { %5477 = vadd.xlane.f32.xlu1 %v5476_v7 }
0x1a8d   : > { %5474 = vadd.xlane.f32.xlu1 %v5473_v54 }
0x1a91   : > { %5483 = vadd.xlane.f32.xlu1 %v5482_v2 }
0x1a94   : > { %5683 = vrot.lane.b32.xlu0 %v15321_v34, %s19045_s23  ;;  %v12510_v34 = vpop.permute.xlu1 %12509 }
0x1a95   : > { %v12511_v10 = vunpack.i.l.bf16 %v12510_v34 }
0x1a98   : > { %5685 = vrot.lane.b32.xlu0 %v15324_v11, %s19045_s23 }
0x1a9c   : > { %5689 = vrot.lane.b32.xlu0 %v15334_v55, %s19045_s23 }
0x1aa0   : > { %5693 = vrot.lane.b32.xlu0 %v15344_v38, %s19045_s23 }
0x1aa2   : > { %5687 = vrot.lane.b32.xlu1 %v15331_v1, %s19045_s23 }
0x1aa4   : > { %5697 = vrot.lane.b32.xlu0 %v15354_v23, %s19045_s23  ;;  %v12512_v23 = vunpack.i.h.bf16 %v12510_v34 }
0x1aa6   : > { %5691 = vrot.lane.b32.xlu1 %v15341_v15, %s19045_s23 }
0x1aaa   : > { %5695 = vrot.lane.b32.xlu1 %v15351_v9, %s19045_s23  ;;  %v11984_v9 = vpack.c.bf16 %v12512_v23, %v12511_v10 }
0x1aae   : > { %5699 = vrot.lane.b32.xlu1 %v15361_v60, %s19045_s23  ;;  %v12515_v60 = vpop.permute.xlu0 %12514 }
0x1aaf   : > { %v12516_v12 = vunpack.i.l.bf16 %v12515_v60 }
0x1ab2   : > { %12529 = vrot.lane.b32.xlu1 %v15242_v41, %s19046_s20  ;;  %v12517_v41 = vunpack.i.h.bf16 %v12515_v60  ;;  %v12525_v27 = vpop.permute.xlu0 %12524 }
0x1ab3   : > { %v12526_v20 = vunpack.i.l.bf16 %v12525_v27 }
0x1ab4   : > { %v11990_v3 = vpack.c.bf16 %v12517_v41, %v12516_v12 }
0x1ad1   : > { %v5460_v11 = vpop.xlane.xlu1 %5459 }
0x1ad2   : > { %13253 = vrcp.f32 %v5460_v11 }
0x1ad5   : > { %v5457_v55 = vpop.xlane.xlu1 %5456 }
0x1ad6   : > { %13255 = vrcp.f32 %v5457_v55  ;;  %v5466_v13 = vpop.xlane.xlu0 %5465 }
0x1ad7   : > { %13257 = vrcp.f32 %v5466_v13 }
0x1ad9   : > { %v12520_v28 = vpop.permute.xlu1 %12519 }
0x1ada   : > { %v5682_v43 = vpop.permute.xlu0 %5681 }
0x1adc   : > { %v13254_v1 = vpop.eup %13253 }
0x1add   : > { %v5496_v52 = vmul.f32 %v13254_v1, %v15774_v44  ;;  %v12521_v44 = vunpack.i.l.bf16 %v12520_v28 }
0x1ae0   : > { %v13256_v38 = vpop.eup %13255 }
0x1ae1   : > { %v5495_v15 = vmul.f32 %v13256_v38, %v15778_v58  ;;  %v12522_v58 = vunpack.i.h.bf16 %v12520_v28  ;;  %v13258_v45 = vpop.eup %13257 }
0x1ae2   : > { %v5498_v34 = vmul.f32 %v13258_v45, %v15780_v40 }
0x1ae3   : > { %11404 = vmatprep.mubr.msk.f32.mxu0 %vm1213_vm10, %v5495_v15  ;;  %v11996_v51 = vpack.c.bf16 %v12522_v58, %v12521_v44 }
0x1ae4   : > { %11405 = vmatmul.mubr.msk.f32.vlgmr.msra.gmra.mrb[92].mxu0 %vm1213_vm10, %v5496_v52 }
0x1ae5   : > { %11983 = vmatpush3.bf16.xpose.msk.msra.mxu0 %vm14003_vm9, %v15725_v48  ;;  %v12527_v48 = vunpack.i.h.bf16 %v12525_v27 }
0x1ae6   : > { %11986 = vmatprep.subr.msk.bf16.mxu0 %vm14003_vm9, %v11984_v9 }
0x1ae7   : > { %v12002_v26 = vpack.c.bf16 %v12527_v48, %v12526_v20 }
0x1aed   : > { %11989 = vmatpush3.bf16.xpose.msk.msra.mxu0 %vm14003_vm9, %v11984_v9 }
0x1aee   : > { %11992 = vmatprep.subr.msk.bf16.mxu0 %vm14003_vm9, %v11990_v3 }
0x1af5   : > { %11995 = vmatpush3.bf16.xpose.msk.msra.mxu0 %vm14003_vm9, %v11990_v3 }
0x1af6   : > { %11998 = vmatprep.subr.msk.bf16.mxu0 %vm14003_vm9, %v11996_v51 }
0x1afd   : > { %12001 = vmatpush3.bf16.xpose.msk.msra.mxu0 %vm14003_vm9, %v11996_v51 }
0x1afe   : > { %12004 = vmatprep.subr.msk.bf16.mxu0 %vm14003_vm9, %v12002_v26 }
0x1b05   : > { %12007 = vmatpush3.bf16.xpose.msk.msra.mxu0 %vm14003_vm9, %v12002_v26 }
0x1b0a   : > { %v5463_v59 = vpop.xlane.xlu1 %5462 }
0x1b0b   : > { %13259 = vrcp.f32 %v5463_v59  ;;  %v5481_v7 = vpop.xlane.xlu0 %5480 }
0x1b0e   : > { %v5472_v50 = vpop.xlane.xlu1 %5471 }
0x1b0f   : > { %13261 = vrcp.f32 %v5472_v50  ;;  %v5684_v52 = vpop.permute.xlu0 %5683 }
0x1b12   : > { %v5469_v57 = vpop.xlane.xlu1 %5468 }
0x1b13   : > { %13263 = vrcp.f32 %v5469_v57  ;;  %v5686_v28 = vpop.permute.xlu0 %5685 }
0x1b14   : > { %13265 = vrcp.f32 %v5481_v7 }
0x1b15   : > { %v13260_v17 = vpop.eup %13259 }
0x1b16   : > { %v5478_v54 = vpop.xlane.xlu1 %5477  ;;  %v5497_v2 = vmul.f32 %v13260_v17, %v15791_v62 }
0x1b17   : > { %13267 = vrcp.f32 %v5478_v54  ;;  %v5690_v58 = vpop.permute.xlu0 %5689 }
0x1b18   : > { %11407 = vmatprep.mubr.msk.f32.mxu0 %vm1213_vm10, %v5497_v2 }
0x1b19   : > { %11408 = vmatmul.mubr.msk.f32.gmra.mrb[94].mxu0 %vm1213_vm10, %v5498_v34  ;;  %v13262_v11 = vpop.eup %13261 }
0x1b1a   : > { %v5475_v61 = vpop.xlane.xlu1 %5474  ;;  %v5500_v23 = vmul.f32 %v13262_v11, %v15798_v42 }
0x1b1b   : > { %13269 = vrcp.f32 %v5475_v61 }
0x1b1d   : > { %v13264_v55 = vpop.eup %13263 }
0x1b1e   : > { %v5484_v1 = vpop.xlane.xlu1 %5483  ;;  %v5499_v38 = vmul.f32 %v13264_v55, %v15804_v14  ;;  %v13266_v62 = vpop.eup %13265 }
0x1b1f   : > { %13271 = vrcp.f32 %v5484_v1  ;;  %v5503_v14 = vmul.f32 %v13266_v62, %v15793_v22 }
0x1b20   : > { %11410 = vmatprep.mubr.msk.f32.mxu0 %vm1213_vm10, %v5499_v38 }
0x1b21   : > { %11411 = vmatmul.mubr.msk.f32.gmra.mrb[96].mxu0 %vm1213_vm10, %v5500_v23  ;;  %v13268_v10 = vpop.eup %13267 }
0x1b22   : > { %v5688_v40 = vpop.permute.xlu1 %5687  ;;  %v5502_v41 = vmul.f32 %v13268_v10, %v15808_v5 }
0x1b25   : > { %v13270_v15 = vpop.eup %13269 }
0x1b26   : > { %v5692_v9 = vpop.permute.xlu1 %5691  ;;  %v5501_v60 = vmul.f32 %v13270_v15, %v15812_v29 }
0x1b28   : > { %11413 = vmatprep.mubr.msk.f32.mxu0 %vm1213_vm10, %v5501_v60 }
0x1b29   : > { %v13272_v12 = vpop.eup %13271  ;;  %11414 = vmatmul.mubr.msk.f32.gmra.mrb[98].mxu0 %vm1213_vm10, %v5502_v41 }
0x1b2a   : > { %11416 = vmatprep.mubr.msk.f32.mxu0 %vm1213_vm10, %v5503_v14  ;;  %v5696_v42 = vpop.permute.xlu1 %5695  ;;  %v5504_v3 = vmul.f32 %v13272_v12, %v15816_v32  ;;  %v5694_v32 = vpop.permute.xlu0 %5693 }
0x1b2d   : > { %11417 = vmatmul.mubr.msk.f32.gmra.mrb[100].mxu0 %vm1213_vm10, %v5504_v3 }
0x1b2e   : > { %11439 = vmatprep.mubr.msk.f32.mxu0 %vm1047_vm8, %v5682_v43  ;;  %v5700_v29 = vpop.permute.xlu1 %5699  ;;  %v5698_v27 = vpop.permute.xlu0 %5697 }
0x1b31   : > { %11440 = vmatmul.mubr.msk.f32.vlgmr.msra.gmra.mrb[102].mxu0 %vm1047_vm8, %v5684_v52 }
0x1b32   : > { %v12530_v5 = vpop.permute.xlu1 %12529  ;;  %11442 = vmatprep.mubr.msk.f32.mxu0 %vm1047_vm8, %v5686_v28 }
0x1b33   : > { %v12532_v22 = vunpack.i.h.bf16 %v12530_v5  ;;  %v12531_v44 = vunpack.i.l.bf16 %v12530_v5 }
0x1b35   : > { %11443 = vmatmul.mubr.msk.f32.gmra.mrb[104].mxu0 %vm1047_vm8, %v5688_v40  ;;  %v12008_v51 = vpack.c.bf16 %v12532_v22, %v12531_v44 }
0x1b36   : > { %11445 = vmatprep.mubr.msk.f32.mxu0 %vm1047_vm8, %v5690_v58 }
0x1b37   : > { %12009 = vmatprep.subr.bf16.mxu1 %v12008_v51 }
0x1b38   : > { %12011 = vmatpush3.bf16.msra.mxu1 %v12008_v51 }
0x1b39   : > { %11446 = vmatmul.mubr.msk.f32.gmra.mrb[106].mxu0 %vm1047_vm8, %v5692_v9 }
0x1b3a   : > { %11448 = vmatprep.mubr.msk.f32.mxu0 %vm1047_vm8, %v5694_v32 }
0x1b3d   : > { %11449 = vmatmul.mubr.msk.f32.gmra.mrb[108].mxu0 %vm1047_vm8, %v5696_v42 }
0x1b3e   : > { %11451 = vmatprep.mubr.msk.f32.mxu0 %vm1047_vm8, %v5698_v27 }
0x1b41   : > { %11452 = vmatmul.mubr.msk.f32.gmra.mrb[110].mxu0 %vm1047_vm8, %v5700_v29 }
0x1bb7   : > { %v15889_v48 = vpop.f32.mrb[92].mxu0 }
0x1bb8   : > { %v15891_v20 = vpop.f32.mrb[93].mxu0 }
0x1bec   : > { %v15893_v26 = vpop.f32.mrb[94].mxu0 }
0x1bed   : > { %v15895_v13 = vpop.f32.mrb[95].mxu0 }
0x1bf4   : > { %v15897_v59 = vpop.f32.mrb[96].mxu0 }
0x1bf5   : > { %v15899_v50 = vpop.f32.mrb[97].mxu0 }
0x1bfc   : > { %v15901_v43 = vpop.f32.mrb[98].mxu0 }
0x1bfd   : > { %v15903_v57 = vpop.f32.mrb[99].mxu0 }
0x1c00   : > { %v15905_v45 = vpop.f32.mrb[100].mxu0 }
0x1c01   : > { %v15907_v17 = vpop.f32.mrb[101].mxu0 }
0x1c04   : > { %v11441_v7 = vpop.f32.mrb[102].mxu0 }
0x1c05   : > { %v5827_v54 = vpop.f32.mrb[103].mxu0  ;;  %v5879_v2 = vsel %vm1213_vm10, %v11441_v7, -inf }
0x1c06   : > { %5880 = vmax.xlane.f32.xlu1 %v5879_v2  ;;  %v5876_v34 = vsel %vm1213_vm10, %v5827_v54, -inf }
0x1c07   : > { %5877 = vmax.xlane.f32.xlu0 %v5876_v34 }
0x1c08   : > { %v11444_v61 = vpop.f32.mrb[104].mxu0 }
0x1c09   : > { %v5837_v11 = vpop.f32.mrb[105].mxu0  ;;  %v5885_v55 = vsel %vm1213_vm10, %v11444_v61, -inf }
0x1c0a   : > { %v5882_v23 = vsel %vm1213_vm10, %v5837_v11, -inf }
0x1c0b   : > { %5886 = vmax.xlane.f32.xlu0 %v5885_v55 }
0x1c0c   : > { %v11447_v1 = vpop.f32.mrb[106].mxu0 }
0x1c0d   : > { %v5847_v38 = vpop.f32.mrb[107].mxu0  ;;  %v5891_v15 = vsel %vm1213_vm10, %v11447_v1, -inf }
0x1c0e   : > { %v5888_v40 = vsel %vm1213_vm10, %v5847_v38, -inf }
0x1c0f   : > { %5883 = vmax.xlane.f32.xlu0 %v5882_v23  ;;  %5889 = vmax.xlane.f32.xlu1 %v5888_v40 }
0x1c10   : > { %v11450_v62 = vpop.f32.mrb[108].mxu0 }
0x1c11   : > { %v5857_v10 = vpop.f32.mrb[109].mxu0  ;;  %v5897_v41 = vsel %vm1213_vm10, %v11450_v62, -inf }
0x1c12   : > { %v5894_v52 = vsel %vm1213_vm10, %v5857_v10, -inf }
0x1c13   : > { %5892 = vmax.xlane.f32.xlu0 %v5891_v15  ;;  %5895 = vmax.xlane.f32.xlu1 %v5894_v52 }
0x1c14   : > { %v11453_v9 = vpop.f32.mrb[110].mxu0 }
0x1c15   : > { %v15916_v60 = vpop.f32.mrb[111].mxu0  ;;  %v5903_v12 = vsel %vm1241_vm11, %v11453_v9, -inf }
0x1c16   : > { %v5900_v14 = vsel %vm1213_vm10, %v15916_v60, -inf }
0x1c17   : > { %5898 = vmax.xlane.f32.xlu0 %v5897_v41  ;;  %5901 = vmax.xlane.f32.xlu1 %v5900_v14 }
0x1c1b   : > { %5904 = vmax.xlane.f32.xlu0 %v5903_v12 }
0x1c28   : > { %12539 = vrot.lane.b32.xlu1 %v15266_v46, %s19046_s20 }
0x1c31   : > { %12534 = vrot.lane.b32.xlu0 %v15256_v24, %s19046_s20 }
0x1c93   : > { %v5881_v42 = vpop.xlane.xlu1 %5880 }
0x1c94   : > { %v5907_v3 = vsub.f32 %v11441_v7, %v5881_v42  ;;  %v5878_v28 = vpop.xlane.xlu0 %5877 }
0x1c95   : > { %v5906_v29 = vsub.f32 %v5827_v54, %v5878_v28 }
0x1c96   : > { %v5918_v58 = vmul.f32 1.442695, %v5907_v3 }
0x1c97   : > { %v5916_v5 = vmul.f32 1.442695, %v5906_v29 }
0x1c98   : > { %13273 = vpow2.f32 %v5918_v58  ;;  %v5887_v22 = vpop.xlane.xlu0 %5886 }
0x1c99   : > { %13275 = vpow2.f32 %v5916_v5  ;;  %v5909_v44 = vsub.f32 %v11444_v61, %v5887_v22 }
0x1c9b   : > { %v5922_v51 = vmul.f32 1.442695, %v5909_v44 }
0x1c9c   : > { %v5884_v32 = vpop.xlane.xlu0 %5883  ;;  %v5890_v27 = vpop.xlane.xlu1 %5889 }
0x1c9d   : > { %13277 = vpow2.f32 %v5922_v51  ;;  %v5908_v2 = vsub.f32 %v5837_v11, %v5884_v32  ;;  %v5910_v34 = vsub.f32 %v5847_v38, %v5890_v27 }
0x1c9f   : > { %v5920_v46 = vmul.f32 1.442695, %v5908_v2  ;;  %v5924_v54 = vmul.f32 1.442695, %v5910_v34 }
0x1ca0   : > { %v5893_v55 = vpop.xlane.xlu0 %5892  ;;  %v5896_v23 = vpop.xlane.xlu1 %5895 }
0x1ca1   : > { %13279 = vpow2.f32 %v5920_v46  ;;  %v5911_v24 = vsub.f32 %v11447_v1, %v5893_v55  ;;  %v5912_v7 = vsub.f32 %v5857_v10, %v5896_v23 }
0x1ca2   : > { %v15926_v40 = vpop.eup %13273 }
0x1ca3   : > { %v15928_v15 = vpop.eup %13275  ;;  %v5926_v52 = vmul.f32 1.442695, %v5911_v24  ;;  %v5928_v41 = vmul.f32 1.442695, %v5912_v7  ;;  %v5939_v61 = vsel %vm1213_vm10, %v15926_v40, 0.0 }
0x1ca4   : > { %v5899_v14 = vpop.xlane.xlu0 %5898  ;;  %5940 = vadd.xlane.f32.xlu0 %v5939_v61  ;;  %v5902_v11 = vpop.xlane.xlu1 %5901  ;;  %v5936_v38 = vsel %vm1213_vm10, %v15928_v15, 0.0 }
0x1ca5   : > { %13281 = vpow2.f32 %v5926_v52  ;;  %v5913_v12 = vsub.f32 %v11450_v62, %v5899_v14  ;;  %5937 = vadd.xlane.f32.xlu1 %v5936_v38  ;;  %v5914_v5 = vsub.f32 %v15916_v60, %v5902_v11 }
0x1ca6   : > { %13283 = vpow2.f32 %v5928_v41 }
0x1ca7   : > { %v15934_v1 = vpop.eup %13277  ;;  %13285 = vpow2.f32 %v5924_v54  ;;  %v5930_v10 = vmul.f32 1.442695, %v5913_v12 }
0x1ca8   : > { %v5905_v42 = vpop.xlane.xlu0 %5904  ;;  %v5945_v3 = vsel %vm1213_vm10, %v15934_v1, 0.0  ;;  %v12540_v29 = vpop.permute.xlu1 %12539 }
0x1ca9   : > { %v5915_v28 = vsub.f32 %v11453_v9, %v5905_v42  ;;  %5946 = vadd.xlane.f32.xlu0 %v5945_v3  ;;  %13287 = vpow2.f32 %v5930_v10  ;;  %v12542_v51 = vunpack.i.h.bf16 %v12540_v29  ;;  %v12541_v32 = vunpack.i.l.bf16 %v12540_v29 }
0x1caa   : > { %v5932_v9 = vmul.f32 1.442695, %v5914_v5 }
0x1cab   : > { %v15938_v58 = vpop.eup %13279  ;;  %v5934_v22 = vmul.f32 1.442695, %v5915_v28  ;;  %v12016_v7 = vpack.c.bf16 %v12542_v51, %v12541_v32  ;;  %v9995_v32 = vld [vmem:[%s18833_s4 + $0x20] sm:$0xff] }
0x1cac   : > { %v12535_v62 = vpop.permute.xlu0 %12534  ;;  %v5942_v44 = vsel %vm1213_vm10, %v15938_v58, 0.0 }
0x1cad   : > { %v12537_v27 = vunpack.i.h.bf16 %v12535_v62  ;;  %v12536_v2 = vunpack.i.l.bf16 %v12535_v62  ;;  %5943 = vadd.xlane.f32.xlu1 %v5942_v44  ;;  %13289 = vpow2.f32 %v5934_v22 }
0x1cae   : > { %13291 = vpow2.f32 %v5932_v9  ;;  %v9998_v9 = vld [vmem:[%s18833_s4 + $0x38] sm:$0xff] }
0x1caf   : > { %v15943_v34 = vpop.eup %13281  ;;  %v12012_v46 = vpack.c.bf16 %v12537_v27, %v12536_v2  ;;  %v9996_v27 = vld [vmem:[%s18833_s4 + $0x28] sm:$0xff]  ;;  %v9997_v2 = vld [vmem:[%s18833_s4 + $0x30] sm:$0xff] }
0x1cb0   : > { %v15945_v55 = vpop.eup %13283  ;;  %v5951_v60 = vsel %vm1213_vm10, %v15943_v34, 0.0 }
0x1cb1   : > { %v15949_v23 = vpop.eup %13285  ;;  %5952 = vadd.xlane.f32.xlu0 %v5951_v60  ;;  %12013 = vmatprep.subr.bf16.mxu1 %v12012_v46  ;;  %v5954_v24 = vsel %vm1213_vm10, %v15945_v55, 0.0 }
0x1cb2   : > { %5955 = vadd.xlane.f32.xlu1 %v5954_v24  ;;  %12015 = vmatpush3.bf16.msra.mxu1 %v12012_v46  ;;  %v5948_v54 = vsel %vm1213_vm10, %v15949_v23, 0.0  ;;  %v12034_v46 = vpack.c.bf16 %v9998_v9, %v9997_v2 }
0x1cb3   : > { %12017 = vmatprep.subr.bf16.mxu1 %v12016_v7  ;;  %v15955_v52 = vpop.eup %13287 }
0x1cb4   : > { %v5957_v41 = vsel %vm1213_vm10, %v15955_v52, 0.0 }
0x1cb5   : > { %5949 = vadd.xlane.f32.xlu0 %v5948_v54 }
0x1cb6   : > { %12019 = vmatpush3.bf16.msra.mxu1 %v12016_v7 }
0x1cb7   : > { %v15959_v61 = vpop.eup %13289 }
0x1cb8   : > { %v5963_v14 = vsel %vm1241_vm11, %v15959_v61, 0.0  ;;  %v15963_v11 = vpop.eup %13291 }
0x1cb9   : > { %5958 = vadd.xlane.f32.xlu0 %v5957_v41  ;;  %v5960_v38 = vsel %vm1213_vm10, %v15963_v11, 0.0 }
0x1cbd   : > { %5964 = vadd.xlane.f32.xlu0 %v5963_v14 }
0x1cc1   : > { %5961 = vadd.xlane.f32.xlu0 %v5960_v38 }
0x1cc3   : > { %12549 = vrot.lane.b32.xlu1 %v15288_v16, %s19046_s20 }
0x1cc7   : > { %6172 = vrot.lane.b32.xlu1 %v15734_v36, %s19047_s24 }
0x1ccb   : > { %6174 = vrot.lane.b32.xlu1 %v15732_v63, %s19047_s24 }
0x1ccf   : > { %6212 = vrot.lane.b32.xlu1 %v15891_v20, %s19048_s27 }
0x1cd3   : > { %6214 = vrot.lane.b32.xlu1 %v15889_v48, %s19048_s27 }
0x1cd7   : > { %6176 = vrot.lane.b32.xlu1 %v15738_v4, %s19047_s24  ;;  %12544 = vrot.lane.b32.xlu0 %v15276_v25, %s19046_s20 }
0x1cdb   : > { %6216 = vrot.lane.b32.xlu1 %v15895_v13, %s19048_s27  ;;  %6178 = vrot.lane.b32.xlu0 %v15736_v31, %s19047_s24 }
0x1cdf   : > { %6180 = vrot.lane.b32.xlu1 %v15742_v19, %s19047_s24  ;;  %6218 = vrot.lane.b32.xlu0 %v15893_v26, %s19048_s27 }
0x1ce3   : > { %6220 = vrot.lane.b32.xlu1 %v15899_v50, %s19048_s27  ;;  %6182 = vrot.lane.b32.xlu0 %v15740_v35, %s19047_s24 }
0x1ce7   : > { %6184 = vrot.lane.b32.xlu1 %v15746_v0, %s19047_s24  ;;  %6222 = vrot.lane.b32.xlu0 %v15897_v59, %s19048_s27 }
0x1ceb   : > { %6224 = vrot.lane.b32.xlu1 %v15903_v57, %s19048_s27  ;;  %6186 = vrot.lane.b32.xlu0 %v15744_v37, %s19047_s24 }
0x1cef   : > { %6188 = vrot.lane.b32.xlu1 %v15750_v39, %s19047_s24  ;;  %6226 = vrot.lane.b32.xlu0 %v15901_v43, %s19048_s27 }
0x1cf3   : > { %6228 = vrot.lane.b32.xlu1 %v15907_v17, %s19048_s27  ;;  %6190 = vrot.lane.b32.xlu0 %v15748_v6, %s19047_s24  ;;  %s19049_s24 = smov 24  }
0x1cf7   : > { %6230 = vrot.lane.b32.xlu0 %v15905_v45, %s19048_s27  ;;  %s566_s27 = sand.u32 1, %s13451_s28  }
0x1cf8   : > { %s567_s26 = scalar_lea.vmem [#allocation2], %s566_s27  ;;  %s9607_s23 = scalar_lea.sflag [#allocation3], %s566_s27 }
0x1cf9   : > { %s9619_s19 = sshll.u32 %s567_s26, 4  ;;  %s18789_s19 = int_to_ptr.vmem [resolvable:$true] %s9619_s19 }
0x1cfa   : > { %s13397_s20 = scalar_lea.vmem %s18789_s19, 16 }
0x1cfb   : > { %p13398_p11 = scmp.ne.s32.totalorder %s18789_s19, %s13397_s20 }
0x1cfd   : > { %p13399_p12 = pnand %p13398_p11, %p13642_p5 }
0x1cff   : > { %p13400_p13 = pneg %p13399_p12 }
0x1d31   : > { %v5941_v16 = vpop.xlane.xlu0 %5940 }
0x1d32   : > { %v5938_v25 = vpop.xlane.xlu1 %5937 }
0x1d33   : > { %13293 = vrcp.f32 %v5938_v25 }
0x1d34   : > { %13295 = vrcp.f32 %v5941_v16 }
0x1d36   : > { %v5947_v63 = vpop.xlane.xlu0 %5946 }
0x1d3a   : > { %v5944_v19 = vpop.xlane.xlu1 %5943 }
0x1d3b   : > { %13297 = vrcp.f32 %v5944_v19 }
0x1d3c   : > { %13299 = vrcp.f32 %v5947_v63 }
0x1d3d   : > { %v13294_v36 = vpop.eup %13293 }
0x1d3e   : > { %v5953_v31 = vpop.xlane.xlu0 %5952  ;;  %v5976_v4 = vmul.f32 %v13294_v36, %v15928_v15  ;;  %v13296_v45 = vpop.eup %13295 }
0x1d3f   : > { %v5956_v0 = vpop.xlane.xlu1 %5955  ;;  %v5977_v15 = vmul.f32 %v13296_v45, %v15926_v40 }
0x1d40   : > { %11474 = vmatprep.mubr.msk.f32.mxu1 %vm1213_vm10, %v5976_v4 }
0x1d42   : > { %v5950_v35 = vpop.xlane.xlu0 %5949 }
0x1d43   : > { %v12550_v6 = vpop.permute.xlu1 %12549  ;;  %13301 = vrcp.f32 %v5950_v35 }
0x1d44   : > { %v12552_v26 = vunpack.i.h.bf16 %v12550_v6  ;;  %v12551_v13 = vunpack.i.l.bf16 %v12550_v6  ;;  %13303 = vrcp.f32 %v5953_v31 }
0x1d45   : > { %13305 = vrcp.f32 %v5956_v0  ;;  %v13298_v17 = vpop.eup %13297 }
0x1d46   : > { %v5959_v37 = vpop.xlane.xlu0 %5958  ;;  %v12024_v57 = vpack.c.bf16 %v12552_v26, %v12551_v13  ;;  %v13300_v12 = vpop.eup %13299  ;;  %v5978_v10 = vmul.f32 %v13298_v17, %v15938_v58 }
0x1d47   : > { %13307 = vrcp.f32 %v5959_v37  ;;  %v5979_v3 = vmul.f32 %v13300_v12, %v15934_v1 }
0x1d4a   : > { %v5965_v39 = vpop.xlane.xlu0 %5964 }
0x1d4d   : > { %v13302_v42 = vpop.eup %13301 }
0x1d4e   : > { %v5962_v48 = vpop.xlane.xlu0 %5961  ;;  %v13304_v28 = vpop.eup %13303  ;;  %v5980_v29 = vmul.f32 %v13302_v42, %v15949_v23 }
0x1d4f   : > { %13309 = vrcp.f32 %v5962_v48  ;;  %v13306_v5 = vpop.eup %13305  ;;  %v5981_v33 = vmul.f32 %v13304_v28, %v15943_v34  ;;  %v12030_v34 = vpack.c.bf16 %v9996_v27, %v9995_v32 }
0x1d50   : > { %13311 = vrcp.f32 %v5965_v39  ;;  %v5982_v58 = vmul.f32 %v13306_v5, %v15945_v55 }
0x1d51   : > { %v13308_v40 = vpop.eup %13307 }
0x1d52   : > { %v12545_v20 = vpop.permute.xlu0 %12544  ;;  %v5983_v1 = vmul.f32 %v13308_v40, %v15955_v52 }
0x1d53   : > { %v12547_v59 = vunpack.i.h.bf16 %v12545_v20  ;;  %v12546_v50 = vunpack.i.l.bf16 %v12545_v20 }
0x1d55   : > { %v12020_v43 = vpack.c.bf16 %v12547_v59, %v12546_v50 }
0x1d56   : > { %v6179_v63 = vpop.permute.xlu0 %6178 }
0x1d57   : > { %12021 = vmatprep.subr.bf16.mxu1 %v12020_v43 }
0x1d58   : > { %12023 = vmatpush3.bf16.msra.mxu1 %v12020_v43 }
0x1d59   : > { %12026 = vmatprep.subr.msk.bf16.mxu1 %vm14105_vm14, %v12024_v57  ;;  %v13310_v22 = vpop.eup %13309 }
0x1d5a   : > { %v13312_v62 = vpop.eup %13311  ;;  %v5984_v44 = vmul.f32 %v13310_v22, %v15963_v11  ;;  %v6173_v11 = vpop.permute.xlu1 %6172 }
0x1d5b   : > { %v5985_v51 = vmul.f32 %v13312_v62, %v15959_v61  ;;  %v6219_v31 = vpop.permute.xlu0 %6218  ;;  %v6282_v43 = vsel %vm1047_vm8, %v15535_v8, %v6173_v11 }
0x1d5c   : > { %12029 = vmatpush3.bf16.msk.msra.mxu1 %vm14105_vm14, %v12024_v57 }
0x1d5d   : > { %12031 = vmatprep.subr.bf16.mxu1 %v12030_v34 }
0x1d5e   : > { %v6175_v38 = vpop.permute.xlu1 %6174 }
0x1d5f   : > { %11475 = vmatmul.mubr.msk.f32.vlgmr.msra.gmra.mrb[88].mxu1 %vm1213_vm10, %v5977_v15  ;;  %v6183_v35 = vpop.permute.xlu0 %6182  ;;  %v6283_v45 = vsel %vm1047_vm8, %v15533_v30, %v6175_v38  ;;  %v6285_v30 = vsel %vm1047_vm8, %v15537_v21, %v6179_v63 }
0x1d60   : > { %11477 = vmatprep.mubr.msk.f32.mxu1 %vm1213_vm10, %v5978_v10  ;;  %12033 = vmatpush3.bf16.msra.mxu1 %v12030_v34  ;;  %v6295_v5 = vsel %vm3075_vm15, %v6285_v30, %v6219_v31  ;;  %v6287_v21 = vsel %vm1047_vm8, %v15541_v47, %v6183_v35 }
0x1d61   : > { %12035 = vmatprep.subr.bf16.mxu1 %v12034_v46 }
0x1d62   : > { %v6213_v25 = vpop.permute.xlu1 %6212 }
0x1d63   : > { %11478 = vmatmul.mubr.msk.f32.gmra.mrb[90].mxu1 %vm1213_vm10, %v5979_v3  ;;  %v6223_v37 = vpop.permute.xlu0 %6222  ;;  %v6292_v17 = vsel %vm3075_vm15, %v6282_v43, %v6213_v25 }
0x1d64   : > { %11480 = vmatprep.mubr.msk.f32.mxu1 %vm1213_vm10, %v5980_v29  ;;  %12037 = vmatpush3.bf16.msra.mxu1 %v12034_v46  ;;  %v6297_v62 = vsel %vm3075_vm15, %v6287_v21, %v6223_v37 }
0x1d66   : > { %v6215_v16 = vpop.permute.xlu1 %6214 }
0x1d67   : > { %11481 = vmatmul.mubr.msk.f32.gmra.mrb[92].mxu1 %vm1213_vm10, %v5981_v33  ;;  %v6187_v39 = vpop.permute.xlu0 %6186  ;;  %v6293_v12 = vsel %vm3075_vm15, %v6283_v45, %v6215_v16  ;;  %v19052_v16 = vld [vmem:[#allocation21_spill] sm:$0xff] }
0x1d68   : > { %11483 = vmatprep.mubr.msk.f32.mxu1 %vm1213_vm10, %v5982_v58  ;;  %v6289_v47 = vsel %vm1047_vm8, %v15545_v18, %v6187_v39 }
0x1d6a   : > { %v6177_v36 = vpop.permute.xlu1 %6176 }
0x1d6b   : > { %11484 = vmatmul.mubr.msk.f32.gmra.mrb[94].mxu1 %vm1213_vm10, %v5983_v1  ;;  %v6227_v6 = vpop.permute.xlu0 %6226  ;;  %v6284_v3 = vsel %vm1047_vm8, %v15539_v49, %v6177_v36  ;;  %v19053_v36 = vld [vmem:[#allocation23_spill] sm:$0xff] }
0x1d6c   : > { %11486 = vmatprep.mubr.msk.f32.mxu1 %vm1213_vm10, %v5984_v44  ;;  %v6299_v34 = vsel %vm3075_vm15, %v6289_v47, %v6227_v6 }
0x1d6e   : > { %v6217_v4 = vpop.permute.xlu1 %6216 }
0x1d6f   : > { %11487 = vmatmul.mubr.msk.f32.gmra.mrb[96].mxu1 %vm1213_vm10, %v5985_v51  ;;  %v6191_v26 = vpop.permute.xlu0 %6190  ;;  %v6294_v28 = vsel %vm3075_vm15, %v6284_v3, %v6217_v4 }
0x1d72   : > { %v6181_v19 = vpop.permute.xlu1 %6180 }
0x1d73   : > { %v6231_v59 = vpop.permute.xlu0 %6230  ;;  %v6286_v49 = vsel %vm1047_vm8, %v15543_v56, %v6181_v19 }
0x1d76   : > { %v6221_v0 = vpop.permute.xlu1 %6220 }
0x1d77   : > { %v6296_v22 = vsel %vm3075_vm15, %v6286_v49, %v6221_v0 }
0x1d7a   : > { %v6185_v48 = vpop.permute.xlu1 %6184 }
0x1d7b   : > { %v6288_v56 = vsel %vm1047_vm8, %v15547_v53, %v6185_v48  ;;  %v19054_v48 = vld [vmem:[#allocation22_spill] sm:$0xff] }
0x1d7e   : > { %v6225_v20 = vpop.permute.xlu1 %6224 }
0x1d7f   : > { %v6298_v27 = vsel %vm3075_vm15, %v6288_v56, %v6225_v20  ;;  %v19055_v20 = vld [vmem:[#allocation13_spill] sm:$0xff] }
0x1d82   : > { %v6189_v13 = vpop.permute.xlu1 %6188 }
0x1d86   : > { %v6229_v50 = vpop.permute.xlu1 %6228 }
0x1e32   : > { %v11476_v55 = vpop.f32.mrb[88].mxu1 }
0x1e33   : > { %6254 = vrot.lane.b32.xlu0 %v11476_v55, %s19049_s24  ;;  %v6113_v60 = vpop.f32.mrb[89].mxu1  ;;  %v19050_v55 = vld [vmem:[#allocation20_spill] sm:$0xff] }
0x1e34   : > { %6252 = vrot.lane.b32.xlu1 %v6113_v60, %s19049_s24  ;;  %v6290_v53 = vsel %vm1047_vm8, %v19050_v55, %v6189_v13 }
0x1e36   : > { %v11479_v23 = vpop.f32.mrb[90].mxu1 }
0x1e37   : > { %6258 = vrot.lane.b32.xlu0 %v11479_v23, %s19049_s24  ;;  %v6123_v24 = vpop.f32.mrb[91].mxu1  ;;  %v19051_v23 = vld [vmem:[#allocation17_spill] sm:$0xff] }
0x1e38   : > { %6256 = vrot.lane.b32.xlu1 %v6123_v24, %s19049_s24  ;;  %v6291_v18 = vsel %vm1047_vm8, %v19051_v23, %v6191_v26  ;;  %v6300_v24 = vsel %vm3075_vm15, %v6290_v53, %v6229_v50 }
0x1e3a   : > { %v11482_v7 = vpop.f32.mrb[92].mxu1 }
0x1e3b   : > { %6262 = vrot.lane.b32.xlu0 %v11482_v7, %s19049_s24  ;;  %v6133_v54 = vpop.f32.mrb[93].mxu1 }
0x1e3c   : > { %6260 = vrot.lane.b32.xlu1 %v6133_v54, %s19049_s24  ;;  %v6301_v54 = vsel %vm3075_vm15, %v6291_v18, %v6231_v59 }
0x1e3e   : > { %v11485_v52 = vpop.f32.mrb[94].mxu1 }
0x1e3f   : > { %6266 = vrot.lane.b32.xlu0 %v11485_v52, %s19049_s24  ;;  %v6143_v41 = vpop.f32.mrb[95].mxu1 }
0x1e40   : > { %6264 = vrot.lane.b32.xlu1 %v6143_v41, %s19049_s24 }
0x1e42   : > { %v11488_v61 = vpop.f32.mrb[96].mxu1 }
0x1e43   : > { %6270 = vrot.lane.b32.xlu0 %v11488_v61, %s19049_s24  ;;  %v6153_v14 = vpop.f32.mrb[97].mxu1  ;;  %v10000_v61 = vld [vmem:[%s18834_s5 + $0x1] ss:$0 sm:$0xff] }
0x1e44   : > { %6268 = vrot.lane.b32.xlu1 %v6153_v14, %s19049_s24  ;;  %s13401_s24 = sshll.u32 %s13508_s0, 4  ;;  %s13402_s24 = int_to_ptr.vmem [resolvable:$false] %s13401_s24 }
0x1e45   : > { %s13403_s1 = scalar_lea.vmem %s13402_s24, 32  ;;  %p13404_p0 = scmp.lt.s32.totalorder %s18789_s19, %s13402_s24 }
0x1e46   : > { %p13405_p1 = scmp.lt.s32.totalorder %s13403_s1, %s13397_s20 }
0x1e48   : > { %p13406_p2 = por %p13405_p1, %p13404_p0 }
0x1e4a   : > { %p13407_p3 = pnand %p13406_p2, %p13400_p13 }
0x1ea5   : > { %v6255_v57 = vpop.permute.xlu0 %6254 }
0x1ea6   : > { %v6253_v15 = vpop.permute.xlu1 %6252  ;;  %v6303_v42 = vsel %vm3086_vm2, %v6293_v12, %v6255_v57  ;;  %v19057_v12 = vld [vmem:[#allocation14_spill] sm:$0xff] }
0x1ea7   : > { %v6302_v10 = vsel %vm3086_vm2, %v6292_v17, %v6253_v15  ;;  %v19056_v17 = vld [vmem:[#allocation11_spill] sm:$0xff] }
0x1ea8   : > { %11497 = vmatprep.mubr.msk.f32.mxu1 %vm615_vm0, %v6302_v10 }
0x1ea9   : > { %11498 = vmatmul.mubr.msk.f32.vlgmr.msra.gmra.mrb[98].mxu1 %vm615_vm0, %v6303_v42  ;;  %v6259_v8 = vpop.permute.xlu0 %6258 }
0x1eaa   : > { %v6257_v29 = vpop.permute.xlu1 %6256  ;;  %v6305_v40 = vsel %vm3086_vm2, %v6295_v5, %v6259_v8  ;;  %v19058_v5 = vld [vmem:[#allocation12_spill] sm:$0xff] }
0x1eab   : > { %v6304_v33 = vsel %vm3086_vm2, %v6294_v28, %v6257_v29 }
0x1eac   : > { %11500 = vmatprep.mubr.msk.f32.mxu1 %vm615_vm0, %v6304_v33 }
0x1ead   : > { %11501 = vmatmul.mubr.msk.f32.gmra.mrb[100].mxu1 %vm615_vm0, %v6305_v40  ;;  %v6263_v58 = vpop.permute.xlu0 %6262  ;;  %v19059_v40 = vld [vmem:[#allocation16_spill] sm:$0xff] }
0x1eae   : > { %v6261_v1 = vpop.permute.xlu1 %6260  ;;  %v6307_v51 = vsel %vm3086_vm2, %v6297_v62, %v6263_v58 }
0x1eaf   : > { %v6306_v44 = vsel %vm3086_vm2, %v6296_v22, %v6261_v1 }
0x1eb0   : > { %11503 = vmatprep.mubr.msk.f32.mxu1 %vm615_vm0, %v6306_v44 }
0x1eb1   : > { %11504 = vmatmul.mubr.msk.f32.gmra.mrb[102].mxu1 %vm615_vm0, %v6307_v51  ;;  %v6267_v32 = vpop.permute.xlu0 %6266  ;;  %v19060_v51 = vld [vmem:[#allocation15_spill] sm:$0xff] }
0x1eb2   : > { %v6265_v2 = vpop.permute.xlu1 %6264  ;;  %v6309_v46 = vsel %vm3086_vm2, %v6299_v34, %v6267_v32  ;;  %v19061_v32 = vld [vmem:[#allocation18_spill] sm:$0xff] }
0x1eb3   : > { %v6308_v9 = vsel %vm3086_vm2, %v6298_v27, %v6265_v2 }
0x1eb4   : > { %11506 = vmatprep.mubr.msk.f32.mxu1 %vm615_vm0, %v6308_v9 }
0x1eb5   : > { %11507 = vmatmul.mubr.msk.f32.gmra.mrb[104].mxu1 %vm615_vm0, %v6309_v46  ;;  %v6271_v60 = vpop.permute.xlu0 %6270 }
0x1eb6   : > { %v6269_v7 = vpop.permute.xlu1 %6268  ;;  %v6311_v41 = vsel %vm3086_vm2, %v6301_v54, %v6271_v60 }
0x1eb7   : > { %v6310_v52 = vsel %vm3086_vm2, %v6300_v24, %v6269_v7 }
0x1eb8   : > { %11509 = vmatprep.mubr.msk.f32.mxu1 %vm615_vm0, %v6310_v52 }
0x1eb9   : > { %11510 = vmatmul.mubr.msk.f32.gmra.mrb[106].mxu1 %vm615_vm0, %v6311_v41 }
0x1f7c   : > { %v11499_v14 = vpop.f32.mrb[98].mxu1 }
0x1f7d   : > { %v6427_v11 = vadd.f32 %v11499_v14, %v10000_v61  ;;  %v6421_v38 = vpop.f32.mrb[99].mxu1 }
0x1f7e   : > { %v6422_v25 = vadd.f32 %v10000_v61, %v6421_v38 }
0x1f7f   : > { %v16111_v63 = vadd.f32 %v6427_v11, %v19052_v16 }
0x1f80   : > { %v16114_v31 = vadd.f32 %v6422_v25, %v19053_v36  ;;  %v11502_v4 = vpop.f32.mrb[100].mxu1 }
0x1f81   : > { %v6437_v35 = vadd.f32 %v11502_v4, %v10000_v61  ;;  %v6431_v19 = vpop.f32.mrb[101].mxu1  ;;  %v6487_v37 = vsel %vm615_vm0, %v16111_v63, 0.0 }
0x1f82   : > { %v6432_v0 = vadd.f32 %v10000_v61, %v6431_v19  ;;  %6488 = vadd.xlane.f32.xlu0 %v6487_v37  ;;  %v6484_v39 = vsel %vm615_vm0, %v16114_v31, 0.0 }
0x1f83   : > { %v16121_v6 = vadd.f32 %v6437_v35, %v19054_v48  ;;  %6485 = vadd.xlane.f32.xlu1 %v6484_v39 }
0x1f84   : > { %v16124_v26 = vadd.f32 %v6432_v0, %v19055_v20  ;;  %v11505_v13 = vpop.f32.mrb[102].mxu1 }
0x1f85   : > { %v6447_v59 = vadd.f32 %v11505_v13, %v10000_v61  ;;  %v6441_v50 = vpop.f32.mrb[103].mxu1  ;;  %v6493_v43 = vsel %vm615_vm0, %v16121_v6, 0.0 }
0x1f86   : > { %v6442_v57 = vadd.f32 %v10000_v61, %v6441_v50  ;;  %v6490_v45 = vsel %vm615_vm0, %v16124_v26, 0.0 }
0x1f87   : > { %v16131_v15 = vadd.f32 %v6447_v59, %v19056_v17  ;;  %6491 = vadd.xlane.f32.xlu0 %v6490_v45  ;;  %6494 = vadd.xlane.f32.xlu1 %v6493_v43 }
0x1f88   : > { %v16134_v10 = vadd.f32 %v6442_v57, %v19057_v12  ;;  %v11508_v42 = vpop.f32.mrb[104].mxu1 }
0x1f89   : > { %v6457_v3 = vadd.f32 %v11508_v42, %v10000_v61  ;;  %v6451_v8 = vpop.f32.mrb[105].mxu1  ;;  %v6499_v30 = vsel %vm615_vm0, %v16131_v15, 0.0 }
0x1f8a   : > { %v6452_v28 = vadd.f32 %v10000_v61, %v6451_v8  ;;  %v6496_v29 = vsel %vm615_vm0, %v16134_v10, 0.0 }
0x1f8b   : > { %v16141_v33 = vadd.f32 %v6457_v3, %v19058_v5  ;;  %6497 = vadd.xlane.f32.xlu0 %v6496_v29  ;;  %6500 = vadd.xlane.f32.xlu1 %v6499_v30 }
0x1f8c   : > { %v16144_v49 = vadd.f32 %v6452_v28, %v19059_v40  ;;  %v11511_v58 = vpop.f32.mrb[106].mxu1 }
0x1f8d   : > { %v6467_v21 = vadd.f32 %v11511_v58, %v10000_v61  ;;  %v6461_v22 = vpop.f32.mrb[107].mxu1  ;;  %v6505_v1 = vsel %vm615_vm0, %v16141_v33, 0.0 }
0x1f8e   : > { %v6462_v62 = vadd.f32 %v10000_v61, %v6461_v22  ;;  %v6502_v44 = vsel %vm615_vm0, %v16144_v49, 0.0 }
0x1f8f   : > { %v16151_v56 = vadd.f32 %v6467_v21, %v19060_v51  ;;  %6503 = vadd.xlane.f32.xlu0 %v6502_v44  ;;  %6506 = vadd.xlane.f32.xlu1 %v6505_v1  ;;  %v10015_v51 = vld [vmem:[%s18839_s10 + $0x20] sm:$0xff] }
0x1f90   : > { %v16154_v47 = vadd.f32 %v6462_v62, %v19061_v32  ;;  %v10016_v32 = vld [vmem:[%s18839_s10 + $0x28] sm:$0xff] }
0x1f91   : > { %v6511_v27 = vsel %vm643_vm1, %v16151_v56, 0.0 }
0x1f92   : > { %v6508_v2 = vsel %vm615_vm0, %v16154_v47, 0.0 }
0x1f93   : > { %6509 = vadd.xlane.f32.xlu0 %v6508_v2  ;;  %6512 = vadd.xlane.f32.xlu1 %v6511_v27  ;;  %v12038_v27 = vpack.c.bf16 %v10016_v32, %v10015_v51  ;;  %v10017_v2 = vld [vmem:[%s18839_s10 + $0x30] sm:$0xff] }
0x1f95   : > { %12039 = vmatprep.subr.bf16.mxu0 %v12038_v27 }
0x1f96   : > { %12041 = vmatpush3.bf16.msra.mxu0 %v12038_v27 }
0x200f   : > { %v6489_v34 = vpop.xlane.xlu0 %6488 }
0x2010   : > { %v6515_v9 = vmul.f32 0.03125, %v6489_v34  ;;  %v6486_v46 = vpop.xlane.xlu1 %6485  ;;  %v10018_v34 = vld [vmem:[%s18839_s10 + $0x38] sm:$0xff] }
0x2011   : > { %v6514_v55 = vmul.f32 0.03125, %v6486_v46  ;;  %v10031_v46 = vld [vmem:[%s18841_s12 + $0x40] sm:$0xff] }
0x2012   : > { %v16161_v53 = vsub.f32 %v16111_v63, %v6515_v9  ;;  %v12042_v9 = vpack.c.bf16 %v10018_v34, %v10017_v2 }
0x2013   : > { %v16164_v60 = vsub.f32 %v16114_v31, %v6514_v55  ;;  %v10032_v55 = vld [vmem:[%s18841_s12 + $0x48] sm:$0xff] }
0x2014   : > { %v6492_v23 = vpop.xlane.xlu0 %6491  ;;  %v6495_v18 = vpop.xlane.xlu1 %6494  ;;  %v6535_v24 = vmul.f32 %v16161_v53, %v16161_v53  ;;  %12043 = vmatprep.subr.bf16.mxu0 %v12042_v9 }
0x2015   : > { %v6516_v7 = vmul.f32 0.03125, %v6492_v23  ;;  %v6517_v54 = vmul.f32 0.03125, %v6495_v18  ;;  %v6534_v52 = vmul.f32 %v16164_v60, %v16164_v60  ;;  %12045 = vmatpush3.bf16.msra.mxu0 %v12042_v9  ;;  %v10033_v23 = vld [vmem:[%s18841_s12 + $0x50] sm:$0xff]  ;;  %v12046_v18 = vpack.c.bf16 %v10032_v55, %v10031_v46 }
0x2016   : > { %v6547_v41 = vsel %vm615_vm0, %v6535_v24, 0.0  ;;  %v10034_v24 = vld [vmem:[%s18841_s12 + $0x58] sm:$0xff] }
0x2017   : > { %v16172_v61 = vsub.f32 %v16124_v26, %v6516_v7  ;;  %v16175_v14 = vsub.f32 %v16121_v6, %v6517_v54  ;;  %6548 = vadd.xlane.f32.xlu1 %v6547_v41  ;;  %v6544_v11 = vsel %vm615_vm0, %v6534_v52, 0.0  ;;  %v12050_v7 = vpack.c.bf16 %v10034_v24, %v10033_v23  ;;  %v10035_v54 = vld [vmem:[%s18841_s12 + $0x60] sm:$0xff]  ;;  %v10036_v52 = vld [vmem:[%s18841_s12 + $0x68] sm:$0xff]  ;;  %12047 = vmatprep.subr.bf16.mxu1 %v12046_v18 }
0x2018   : > { %v6498_v38 = vpop.xlane.xlu0 %6497  ;;  %6545 = vadd.xlane.f32.xlu0 %v6544_v11  ;;  %v6501_v25 = vpop.xlane.xlu1 %6500  ;;  %12049 = vmatpush3.bf16.msra.mxu1 %v12046_v18  ;;  %v12054_v41 = vpack.c.bf16 %v10036_v52, %v10035_v54 }
0x2019   : > { %v6518_v16 = vmul.f32 0.03125, %v6498_v38  ;;  %v6519_v36 = vmul.f32 0.03125, %v6501_v25  ;;  %v6536_v4 = vmul.f32 %v16172_v61, %v16172_v61  ;;  %v6537_v35 = vmul.f32 %v16175_v14, %v16175_v14  ;;  %12051 = vmatprep.subr.bf16.mxu1 %v12050_v7 }
0x201b   : > { %v16183_v19 = vsub.f32 %v16134_v10, %v6518_v16  ;;  %v16186_v37 = vsub.f32 %v16131_v15, %v6519_v36  ;;  %v6550_v39 = vsel %vm615_vm0, %v6536_v4, 0.0  ;;  %v6553_v48 = vsel %vm615_vm0, %v6537_v35, 0.0 }
0x201c   : > { %v6504_v0 = vpop.xlane.xlu0 %6503  ;;  %v6507_v20 = vpop.xlane.xlu1 %6506  ;;  %6551 = vadd.xlane.f32.xlu0 %v6550_v39  ;;  %6554 = vadd.xlane.f32.xlu1 %v6553_v48 }
0x201d   : > { %v6520_v13 = vmul.f32 0.03125, %v6504_v0  ;;  %v6521_v59 = vmul.f32 0.03125, %v6507_v20  ;;  %v6538_v50 = vmul.f32 %v16183_v19, %v16183_v19  ;;  %v6539_v43 = vmul.f32 %v16186_v37, %v16186_v37  ;;  %12053 = vmatpush3.bf16.msra.mxu1 %v12050_v7 }
0x201e   : > { %12055 = vmatprep.subr.bf16.mxu1 %v12054_v41 }
0x201f   : > { %v16195_v57 = vsub.f32 %v16144_v49, %v6520_v13  ;;  %v16198_v45 = vsub.f32 %v16141_v33, %v6521_v59  ;;  %v6556_v12 = vsel %vm615_vm0, %v6538_v50, 0.0  ;;  %v6559_v42 = vsel %vm615_vm0, %v6539_v43, 0.0  ;;  %v16263_v50 = vld [vmem:[%s18837_s8 + $0x1] ss:$0 sm:$0xff] }
0x2020   : > { %v6510_v17 = vpop.xlane.xlu0 %6509  ;;  %v6513_v3 = vpop.xlane.xlu1 %6512  ;;  %6557 = vadd.xlane.f32.xlu0 %v6556_v12  ;;  %6560 = vadd.xlane.f32.xlu1 %v6559_v42 }
0x2021   : > { %v6522_v8 = vmul.f32 0.03125, %v6510_v17  ;;  %v6523_v30 = vmul.f32 0.03125, %v6513_v3  ;;  %v6540_v28 = vmul.f32 %v16195_v57, %v16195_v57  ;;  %v6541_v29 = vmul.f32 %v16198_v45, %v16198_v45  ;;  %12057 = vmatpush3.bf16.msra.mxu1 %v12054_v41 }
0x2023   : > { %v16207_v5 = vsub.f32 %v16154_v47, %v6522_v8  ;;  %v16210_v40 = vsub.f32 %v16151_v56, %v6523_v30  ;;  %v6562_v58 = vsel %vm615_vm0, %v6540_v28, 0.0  ;;  %v6565_v21 = vsel %vm615_vm0, %v6541_v29, 0.0 }
0x2024   : > { %6563 = vadd.xlane.f32.xlu0 %v6562_v58  ;;  %6566 = vadd.xlane.f32.xlu1 %v6565_v21  ;;  %v16273_v29 = vmul.f32 %v16263_v50, %v16161_v53  ;;  %v16277_v21 = vmul.f32 %v16263_v50, %v16164_v60 }
0x2025   : > { %v6542_v22 = vmul.f32 %v16207_v5, %v16207_v5  ;;  %v6543_v1 = vmul.f32 %v16210_v40, %v16210_v40 }
0x2027   : > { %v6568_v62 = vsel %vm615_vm0, %v6542_v22, 0.0  ;;  %v6571_v44 = vsel %vm643_vm1, %v6543_v1, 0.0 }
0x2028   : > { %6569 = vadd.xlane.f32.xlu0 %v6568_v62  ;;  %6572 = vadd.xlane.f32.xlu1 %v6571_v44 }
0x20a4   : > { %v6549_v11 = vpop.xlane.xlu1 %6548 }
0x20a5   : > { %v6575_v38 = vmul.f32 0.032258064, %v6549_v11  ;;  %v6546_v25 = vpop.xlane.xlu0 %6545 }
0x20a6   : > { %v6574_v16 = vmul.f32 0.032258064, %v6546_v25 }
0x20a7   : > { %13313 = vrsqrt.f32 %v6575_v38  ;;  %vm6593_vm8 = vcmp.eq.f32.partialorder %v6575_v38, inf  ;;  %v6596_v3 = vand.u32 2147483648, %v6575_v38  ;;  %vm6595_vm9 = vcmp.eq.f32.partialorder %v6575_v38, 0.0 }
0x20a8   : > { %13315 = vrsqrt.f32 %v6574_v16  ;;  %vm6586_vm10 = vcmp.eq.f32.partialorder %v6574_v16, inf  ;;  %vm6588_vm11 = vcmp.eq.f32.partialorder %v6574_v16, 0.0  ;;  %v6589_v44 = vand.u32 2147483648, %v6574_v16 }
0x20a9   : > { %v6552_v36 = vpop.xlane.xlu0 %6551  ;;  %v6555_v4 = vpop.xlane.xlu1 %6554 }
0x20aa   : > { %v16250_v35 = vmul.f32 0.032258064, %v6552_v36  ;;  %v16252_v0 = vmul.f32 0.032258064, %v6555_v4 }
0x20ac   : > { %13317 = vrsqrt.f32 %v16250_v35  ;;  %vm6600_vm14 = vcmp.eq.f32.partialorder %v16250_v35, inf  ;;  %vm6602_vm15 = vcmp.eq.f32.partialorder %v16250_v35, 0.0  ;;  %v6603_v27 = vand.u32 2147483648, %v16250_v35 }
0x20ad   : > { %13319 = vrsqrt.f32 %v16252_v0  ;;  %v6558_v39 = vpop.xlane.xlu0 %6557  ;;  %v6561_v48 = vpop.xlane.xlu1 %6560  ;;  %vm6607_vm2 = vcmp.eq.f32.partialorder %v16252_v0, inf  ;;  %vm6609_vm12 = vcmp.eq.f32.partialorder %v16252_v0, 0.0  ;;  %v6610_v18 = vand.u32 2147483648, %v16252_v0 }
0x20ae   : > { %v16256_v20 = vmul.f32 0.032258064, %v6558_v39  ;;  %v16258_v13 = vmul.f32 0.032258064, %v6561_v48 }
0x20b0   : > { %13321 = vrsqrt.f32 %v16256_v20  ;;  %vm6614_vm5 = vcmp.eq.f32.partialorder %v16256_v20, inf  ;;  %vm6616_vm6 = vcmp.eq.f32.partialorder %v16256_v20, 0.0  ;;  %v6617_v54 = vand.u32 2147483648, %v16256_v20 }
0x20b1   : > { %v13314_v59 = vpop.eup %13313  ;;  %13323 = vrsqrt.f32 %v16258_v13  ;;  %v6564_v12 = vpop.xlane.xlu0 %6563  ;;  %vm6621_vm7 = vcmp.eq.f32.partialorder %v16258_v13, inf  ;;  %vm6623_vm13 = vcmp.eq.f32.partialorder %v16258_v13, 0.0  ;;  %v6624_v39 = vand.u32 2147483648, %v16258_v13 }
0x20b2   : > { %v13316_v43 = vpop.eup %13315  ;;  %v6592_v17 = vmul.f32 %v13314_v59, %v6575_v38  ;;  %v6567_v42 = vpop.xlane.xlu1 %6566  ;;  %v16267_v30 = vmul.f32 0.032258064, %v6564_v12 }
0x20b3   : > { %v6585_v8 = vmul.f32 %v13316_v43, %v6574_v16  ;;  %v16269_v28 = vmul.f32 0.032258064, %v6567_v42 }
0x20b4   : > { %v6594_v58 = vsel %vm6593_vm8, %v6575_v38, %v6592_v17  ;;  %13325 = vrsqrt.f32 %v16267_v30  ;;  %vm6628_vm3 = vcmp.eq.f32.partialorder %v16267_v30, inf  ;;  %vm6630_vm4 = vcmp.eq.f32.partialorder %v16267_v30, 0.0 }
0x20b5   : > { %v6597_v22 = vsel %vm6595_vm9, %v6596_v3, %v6594_v58  ;;  %v6587_v1 = vsel %vm6586_vm10, %v6574_v16, %v6585_v8  ;;  %13327 = vrsqrt.f32 %v16269_v28  ;;  %v6570_v51 = vpop.xlane.xlu0 %6569  ;;  %v6631_v3 = vand.u32 2147483648, %v16267_v30 }
0x20b6   : > { %v6655_v62 = vadd.f32 1e-06, %v6597_v22  ;;  %v6573_v32 = vpop.xlane.xlu1 %6572  ;;  %v13318_v53 = vpop.eup %13317  ;;  %v16284_v60 = vmul.f32 0.032258064, %v6570_v51  ;;  %v6590_v46 = vsel %vm6588_vm11, %v6589_v44, %v6587_v1  ;;  %vm6635_vm8 = vcmp.eq.f32.partialorder %v16269_v28, inf }
0x20b7   : > { %v13320_v2 = vpop.eup %13319  ;;  %v6599_v34 = vmul.f32 %v13318_v53, %v16250_v35  ;;  %v16287_v9 = vmul.f32 0.032258064, %v6573_v32  ;;  %v6654_v52 = vadd.f32 1e-06, %v6590_v46  ;;  %vm6637_vm9 = vcmp.eq.f32.partialorder %v16269_v28, 0.0 }
0x20b8   : > { %13329 = vrcp.f32 %v6655_v62  ;;  %v6606_v55 = vmul.f32 %v13320_v2, %v16252_v0  ;;  %vm6642_vm10 = vcmp.eq.f32.partialorder %v16284_v60, inf  ;;  %vm6644_vm11 = vcmp.eq.f32.partialorder %v16284_v60, 0.0 }
0x20b9   : > { %13331 = vrsqrt.f32 %v16284_v60  ;;  %v6601_v23 = vsel %vm6600_vm14, %v16250_v35, %v6599_v34  ;;  %v6645_v2 = vand.u32 2147483648, %v16284_v60  ;;  %vm6649_vm14 = vcmp.eq.f32.partialorder %v16287_v9, inf }
0x20ba   : > { %13333 = vrsqrt.f32 %v16287_v9  ;;  %v13322_v24 = vpop.eup %13321  ;;  %v6608_v7 = vsel %vm6607_vm2, %v16252_v0, %v6606_v55  ;;  %v6604_v38 = vsel %vm6602_vm15, %v6603_v27, %v6601_v23  ;;  %vm6651_vm15 = vcmp.eq.f32.partialorder %v16287_v9, 0.0 }
0x20bb   : > { %v13324_v41 = vpop.eup %13323  ;;  %v6613_v11 = vmul.f32 %v13322_v24, %v16256_v20  ;;  %v6611_v25 = vsel %vm6609_vm12, %v6610_v18, %v6608_v7  ;;  %13335 = vrcp.f32 %v6654_v52  ;;  %v6656_v36 = vadd.f32 1e-06, %v6604_v38  ;;  %v10014_v18 = vld [vmem:[%s18838_s9 + $0x1] ss:$0 sm:$0xff] }
0x20bc   : > { %v6620_v16 = vmul.f32 %v13324_v41, %v16258_v13  ;;  %v6657_v4 = vadd.f32 1e-06, %v6611_v25  ;;  %vm19062_vm2 = vcmask 523264  }
0x20bd   : > { %v6615_v0 = vsel %vm6614_vm5, %v16256_v20, %v6613_v11  ;;  %13337 = vrcp.f32 %v6656_v36  ;;  %v6638_v20 = vand.u32 2147483648, %v16269_v28  ;;  %vm19063_vm12 = vmmov %vm19062_vm2 }
0x20be   : > { %v13326_v48 = vpop.eup %13325  ;;  %v6622_v35 = vsel %vm6621_vm7, %v16258_v13, %v6620_v16  ;;  %v6618_v59 = vsel %vm6616_vm6, %v6617_v54, %v6615_v0  ;;  %13339 = vrcp.f32 %v6657_v4  ;;  %v6682_v54 = vmul.f32 %v16263_v50, %v16172_v61  ;;  %vm19064_vm5 = vmmov %vm19062_vm2 }
0x20bf   : > { %v13328_v43 = vpop.eup %13327  ;;  %v6627_v17 = vmul.f32 %v13326_v48, %v16267_v30  ;;  %v6658_v12 = vadd.f32 1e-06, %v6618_v59  ;;  %v6625_v42 = vsel %vm6623_vm13, %v6624_v39, %v6622_v35  ;;  %vm19065_vm6 = vmmov %vm19062_vm2 }
0x20c0   : > { %v6634_v8 = vmul.f32 %v13328_v43, %v16269_v28  ;;  %v6659_v58 = vadd.f32 1e-06, %v6625_v42  ;;  %vm19066_vm7 = vmmov %vm19062_vm2 }
0x20c1   : > { %v6629_v22 = vsel %vm6628_vm3, %v16267_v30, %v6627_v17  ;;  %13341 = vrcp.f32 %v6658_v12  ;;  %v6652_v30 = vand.u32 2147483648, %v16287_v9  ;;  %v6687_v12 = vmul.f32 %v16263_v50, %v16198_v45  ;;  %vm19067_vm13 = vmmov %vm19062_vm2 }
0x20c2   : > { %v13330_v13 = vpop.eup %13329  ;;  %v6636_v62 = vsel %vm6635_vm8, %v16269_v28, %v6634_v8  ;;  %13343 = vrcp.f32 %v6659_v58  ;;  %v6632_v44 = vsel %vm6630_vm4, %v6631_v3, %v6629_v22  ;;  %v6688_v58 = vmul.f32 %v16263_v50, %v16207_v5  ;;  %v10037_v5 = vld [vmem:[%s18841_s12 + $0x70] sm:$0xff]  ;;  %vm19068_vm3 = vmmov %vm19062_vm2 }
0x20c3   : > { %v13332_v1 = vpop.eup %13331  ;;  %v6660_v53 = vadd.f32 1e-06, %v6632_v44  ;;  %v6639_v27 = vsel %vm6637_vm9, %v6638_v20, %v6636_v62  ;;  %v6691_v24 = vmul.f32 %v13330_v13, %v16273_v29  ;;  %v6684_v29 = vmul.f32 %v16263_v50, %v16183_v19  ;;  %vm19069_vm4 = vmmov %vm19062_vm2 }
0x20c4   : > { %v13334_v51 = vpop.eup %13333  ;;  %v6641_v32 = vmul.f32 %v13332_v1, %v16284_v60  ;;  %v6661_v28 = vadd.f32 1e-06, %v6639_v27  ;;  %v6686_v19 = vmul.f32 %v16263_v50, %v16195_v57  ;;  %v6689_v57 = vmul.f32 %v16263_v50, %v16210_v40  ;;  %v10038_v40 = vld [vmem:[%s18841_s12 + $0x78] sm:$0xff]  ;;  %vm19070_vm8 = vmmov %vm19062_vm2 }
0x20c5   : > { %v6648_v34 = vmul.f32 %v13334_v51, %v16287_v9  ;;  %13345 = vrcp.f32 %v6660_v53  ;;  %v13336_v55 = vpop.eup %13335  ;;  %vm19071_vm9 = vmmov %vm19062_vm2 }
0x20c6   : > { %v6643_v46 = vsel %vm6642_vm10, %v16284_v60, %v6641_v32  ;;  %13347 = vrcp.f32 %v6661_v28  ;;  %v6690_v52 = vmul.f32 %v13336_v55, %v16277_v21  ;;  %v6707_v60 = vadd.f32 %v10014_v18, %v6691_v24  ;;  %v10020_v32 = vld [vmem:[%s18840_s11 + $0x1] ss:$0 sm:$0xff] }
0x20c7   : > { %v6650_v23 = vsel %vm6649_vm14, %v16287_v9, %v6648_v34  ;;  %v6646_v7 = vsel %vm6644_vm11, %v6645_v2, %v6643_v46  ;;  %v13338_v38 = vpop.eup %13337  ;;  %v6683_v9 = vmul.f32 %v16263_v50, %v16175_v14  ;;  %v6685_v21 = vmul.f32 %v16263_v50, %v16186_v37 }
0x20c8   : > { %v6662_v41 = vadd.f32 1e-06, %v6646_v7  ;;  %v6653_v11 = vsel %vm6651_vm15, %v6652_v30, %v6650_v23  ;;  %v13340_v16 = vpop.eup %13339  ;;  %v6706_v36 = vadd.f32 %v10014_v18, %v6690_v52  ;;  %v6692_v4 = vmul.f32 %v13338_v38, %v6682_v54 }
0x20c9   : > { %v6663_v25 = vadd.f32 1e-06, %v6653_v11  ;;  %v6693_v0 = vmul.f32 %v13340_v16, %v6683_v9  ;;  %v12058_v50 = vpack.c.bf16 %v10038_v40, %v10037_v5 }
0x20ca   : > { %13349 = vrcp.f32 %v6662_v41  ;;  %11520 = vmatprep.mubr.msk.f32.mxu0 %vm615_vm0, %v6706_v36  ;;  %v6708_v39 = vadd.f32 %v10014_v18, %v6692_v4 }
0x20cb   : > { %13351 = vrcp.f32 %v6663_v25  ;;  %v13342_v61 = vpop.eup %13341  ;;  %11521 = vmatmul.mubr.msk.f32.vlgmr.msra.gmra.mrb[112].mxu0 %vm615_vm0, %v6707_v60  ;;  %v6709_v14 = vadd.f32 %v10014_v18, %v6693_v0  ;;  %12059 = vmatprep.subr.bf16.mxu1 %v12058_v50 }
0x20cc   : > { %v13344_v48 = vpop.eup %13343  ;;  %v6694_v35 = vmul.f32 %v13342_v61, %v6684_v29  ;;  %11523 = vmatprep.mubr.msk.f32.mxu0 %vm615_vm0, %v6708_v39  ;;  %12061 = vmatpush3.bf16.msra.mxu1 %v12058_v50 }
0x20cd   : > { %v6695_v59 = vmul.f32 %v13344_v48, %v6685_v21 }
0x20ce   : > { %v6710_v43 = vadd.f32 %v10014_v18, %v6694_v35  ;;  %v10040_v35 = vld [vmem:[%s18842_s13 + $0x1] ss:$0 sm:$0xff] }
0x20cf   : > { %v13346_v17 = vpop.eup %13345  ;;  %11524 = vmatmul.mubr.msk.f32.gmra.mrb[114].mxu0 %vm615_vm0, %v6709_v14  ;;  %v6711_v42 = vadd.f32 %v10014_v18, %v6695_v59 }
0x20d0   : > { %v13348_v37 = vpop.eup %13347  ;;  %v6696_v3 = vmul.f32 %v13346_v17, %v6686_v19  ;;  %11526 = vmatprep.mubr.msk.f32.mxu0 %vm615_vm0, %v6710_v43 }
0x20d1   : > { %v6697_v8 = vmul.f32 %v13348_v37, %v6687_v12 }
0x20d2   : > { %v6712_v13 = vadd.f32 %v10014_v18, %v6696_v3 }
0x20d3   : > { %11527 = vmatmul.mubr.msk.f32.gmra.mrb[116].mxu0 %vm615_vm0, %v6711_v42  ;;  %v6713_v45 = vadd.f32 %v10014_v18, %v6697_v8 }
0x20d4   : > { %v13350_v22 = vpop.eup %13349  ;;  %11529 = vmatprep.mubr.msk.f32.mxu0 %vm615_vm0, %v6712_v13 }
0x20d5   : > { %v13352_v20 = vpop.eup %13351  ;;  %v6698_v1 = vmul.f32 %v13350_v22, %v6688_v58 }
0x20d6   : > { %v6699_v62 = vmul.f32 %v13352_v20, %v6689_v57 }
0x20d7   : > { %v6714_v44 = vadd.f32 %v10014_v18, %v6698_v1  ;;  %11530 = vmatmul.mubr.msk.f32.gmra.mrb[118].mxu0 %vm615_vm0, %v6713_v45 }
0x20d8   : > { %v6715_v51 = vadd.f32 %v10014_v18, %v6699_v62 }
0x20d9   : > { %11532 = vmatprep.mubr.msk.f32.mxu0 %vm615_vm0, %v6714_v44 }
0x20db   : > { %11533 = vmatmul.mubr.msk.f32.gmra.mrb[120].mxu0 %vm615_vm0, %v6715_v51 }
0x219e   : > { %v11522_v53 = vpop.f32.mrb[112].mxu0 }
0x219f   : > { %v6831_v27 = vadd.f32 %v11522_v53, %v10020_v32  ;;  %v6825_v2 = vpop.f32.mrb[113].mxu0 }
0x21a0   : > { %v6826_v34 = vadd.f32 %v10020_v32, %v6825_v2 }
0x21a1   : > { %v6875_v30 = vmax.f32 %v6831_v27, 0.0 }
0x21a2   : > { %v6874_v28 = vmax.f32 %v6826_v34, 0.0  ;;  %v11525_v46 = vpop.f32.mrb[114].mxu0 }
0x21a3   : > { %v6841_v55 = vadd.f32 %v11525_v46, %v10020_v32  ;;  %v6835_v23 = vpop.f32.mrb[115].mxu0 }
0x21a4   : > { %v6836_v18 = vadd.f32 %v10020_v32, %v6835_v23  ;;  %11551 = vmatprep.mubr.msk.f32.mxu1 %vm19062_vm2, %v6874_v28 }
0x21a5   : > { %11552 = vmatmul.mubr.msk.f32.vlgmr.msra.gmra.mrb[108].mxu1 %vm19063_vm12, %v6875_v30  ;;  %v6877_v54 = vmax.f32 %v6841_v55, 0.0 }
0x21a6   : > { %v6876_v24 = vmax.f32 %v6836_v18, 0.0  ;;  %v11528_v7 = vpop.f32.mrb[116].mxu0 }
0x21a7   : > { %v6851_v52 = vadd.f32 %v11528_v7, %v10020_v32  ;;  %v6845_v41 = vpop.f32.mrb[117].mxu0 }
0x21a8   : > { %v6846_v11 = vadd.f32 %v10020_v32, %v6845_v41  ;;  %11554 = vmatprep.mubr.msk.f32.mxu1 %vm19064_vm5, %v6876_v24 }
0x21a9   : > { %11555 = vmatmul.mubr.msk.f32.gmra.mrb[110].mxu1 %vm19065_vm6, %v6877_v54  ;;  %v6879_v25 = vmax.f32 %v6851_v52, 0.0 }
0x21aa   : > { %v6878_v38 = vmax.f32 %v6846_v11, 0.0  ;;  %v11531_v9 = vpop.f32.mrb[118].mxu0 }
0x21ab   : > { %v6861_v16 = vadd.f32 %v11531_v9, %v10020_v32  ;;  %v6855_v36 = vpop.f32.mrb[119].mxu0 }
0x21ac   : > { %v6856_v4 = vadd.f32 %v10020_v32, %v6855_v36  ;;  %11557 = vmatprep.mubr.msk.f32.mxu1 %vm19066_vm7, %v6878_v38 }
0x21ad   : > { %11558 = vmatmul.mubr.msk.f32.gmra.mrb[112].mxu1 %vm19067_vm13, %v6879_v25  ;;  %v6881_v0 = vmax.f32 %v6861_v16, 0.0 }
0x21ae   : > { %v6880_v29 = vmax.f32 %v6856_v4, 0.0  ;;  %v11534_v60 = vpop.f32.mrb[120].mxu0 }
0x21af   : > { %v6871_v61 = vadd.f32 %v11534_v60, %v10020_v32  ;;  %v6865_v21 = vpop.f32.mrb[121].mxu0 }
0x21b0   : > { %v6866_v39 = vadd.f32 %v10020_v32, %v6865_v21  ;;  %11560 = vmatprep.mubr.msk.f32.mxu1 %vm19068_vm3, %v6880_v29 }
0x21b1   : > { %11561 = vmatmul.mubr.msk.f32.gmra.mrb[114].mxu1 %vm19069_vm4, %v6881_v0  ;;  %v6883_v14 = vmax.f32 %v6871_v61, 0.0 }
0x21b2   : > { %v6882_v48 = vmax.f32 %v6866_v39, 0.0 }
0x21b4   : > { %11563 = vmatprep.mubr.msk.f32.mxu1 %vm19070_vm8, %v6882_v48 }
0x21b5   : > { %11564 = vmatmul.mubr.msk.f32.gmra.mrb[116].mxu1 %vm19071_vm9, %v6883_v14 }
0x2278   : > { %v11553_v59 = vpop.f32.mrb[108].mxu1 }
0x2279   : > { %v7003_v19 = vadd.f32 %v11553_v59, %v10040_v35  ;;  %v6997_v43 = vpop.f32.mrb[109].mxu1 }
0x227a   : > { %v6998_v17 = vadd.f32 %v10040_v35, %v6997_v43 }
0x227b   : > { %v7047_v12 = vadd.f32 %v7003_v19, %v16111_v63 }
0x227c   : > { %v7046_v37 = vadd.f32 %v6998_v17, %v16114_v31  ;;  %v11556_v42 = vpop.f32.mrb[110].mxu1 }
0x227d   : > { %v7013_v3 = vadd.f32 %v11556_v42, %v10040_v35  ;;  %v7007_v8 = vpop.f32.mrb[111].mxu1  ;;  %v7061_v58 = vsel %vm615_vm0, %v7047_v12, 0.0 }
0x227e   : > { %v7008_v13 = vadd.f32 %v10040_v35, %v7007_v8  ;;  %7062 = vadd.xlane.f32.xlu1 %v7061_v58  ;;  %v7058_v22 = vsel %vm615_vm0, %v7046_v37, 0.0 }
0x227f   : > { %v7049_v57 = vadd.f32 %v7013_v3, %v16121_v6  ;;  %7059 = vadd.xlane.f32.xlu0 %v7058_v22 }
0x2280   : > { %v7048_v20 = vadd.f32 %v7008_v13, %v16124_v26  ;;  %v11559_v45 = vpop.f32.mrb[112].mxu1 }
0x2281   : > { %v7023_v1 = vadd.f32 %v11559_v45, %v10040_v35  ;;  %v7017_v62 = vpop.f32.mrb[113].mxu1  ;;  %v7067_v63 = vsel %vm615_vm0, %v7049_v57, 0.0 }
0x2282   : > { %v7018_v31 = vadd.f32 %v10040_v35, %v7017_v62  ;;  %7068 = vadd.xlane.f32.xlu1 %v7067_v63  ;;  %v7064_v44 = vsel %vm615_vm0, %v7048_v20, 0.0 }
0x2283   : > { %v7051_v51 = vadd.f32 %v7023_v1, %v16131_v15  ;;  %7065 = vadd.xlane.f32.xlu0 %v7064_v44 }
0x2284   : > { %v7050_v5 = vadd.f32 %v7018_v31, %v16134_v10  ;;  %v11562_v40 = vpop.f32.mrb[114].mxu1 }
0x2285   : > { %v7033_v50 = vadd.f32 %v11562_v40, %v10040_v35  ;;  %v7027_v6 = vpop.f32.mrb[115].mxu1  ;;  %v7073_v32 = vsel %vm615_vm0, %v7051_v51, 0.0 }
0x2286   : > { %v7028_v26 = vadd.f32 %v10040_v35, %v7027_v6  ;;  %7074 = vadd.xlane.f32.xlu1 %v7073_v32  ;;  %v7070_v53 = vsel %vm615_vm0, %v7050_v5, 0.0 }
0x2287   : > { %v7053_v27 = vadd.f32 %v7033_v50, %v16141_v33  ;;  %7071 = vadd.xlane.f32.xlu0 %v7070_v53 }
0x2288   : > { %v7052_v2 = vadd.f32 %v7028_v26, %v16144_v49  ;;  %v11565_v34 = vpop.f32.mrb[116].mxu1 }
0x2289   : > { %v7043_v28 = vadd.f32 %v11565_v34, %v10040_v35  ;;  %v7037_v15 = vpop.f32.mrb[117].mxu1  ;;  %v7079_v46 = vsel %vm615_vm0, %v7053_v27, 0.0 }
0x228a   : > { %v7038_v10 = vadd.f32 %v10040_v35, %v7037_v15  ;;  %7080 = vadd.xlane.f32.xlu1 %v7079_v46  ;;  %v7076_v30 = vsel %vm615_vm0, %v7052_v2, 0.0 }
0x228b   : > { %v16409_v55 = vadd.f32 %v7043_v28, %v16151_v56  ;;  %7077 = vadd.xlane.f32.xlu0 %v7076_v30  ;;  %v16421_v56 = vld [vmem:[%s18843_s14] ss:$0 sm:$0xff] }
0x228c   : > { %v16412_v23 = vadd.f32 %v7038_v10, %v16154_v47 }
0x228d   : > { %v7085_v33 = vsel %vm643_vm1, %v16409_v55, 0.0 }
0x228e   : > { %7086 = vadd.xlane.f32.xlu1 %v7085_v33  ;;  %v7082_v49 = vsel %vm615_vm0, %v16412_v23, 0.0 }
0x228f   : > { %7083 = vadd.xlane.f32.xlu0 %v7082_v49 }
0x230b   : > { %v7063_v18 = vpop.xlane.xlu1 %7062 }
0x230c   : > { %v7089_v24 = vmul.f32 0.03125, %v7063_v18  ;;  %v7060_v7 = vpop.xlane.xlu0 %7059 }
0x230d   : > { %v7088_v54 = vmul.f32 0.03125, %v7060_v7 }
0x230e   : > { %v16423_v52 = vsub.f32 %v7047_v12, %v7089_v24 }
0x230f   : > { %v7098_v47 = vsub.f32 %v7046_v37, %v7088_v54  ;;  %v7069_v41 = vpop.xlane.xlu1 %7068 }
0x2310   : > { %v7091_v11 = vmul.f32 0.03125, %v7069_v41  ;;  %v7066_v38 = vpop.xlane.xlu0 %7065  ;;  %v7109_v9 = vmul.f32 %v16423_v52, %v16423_v52 }
0x2311   : > { %v16428_v25 = vmul.f32 %v16421_v56, %v7098_v47  ;;  %v7090_v16 = vmul.f32 0.03125, %v7066_v38  ;;  %v7108_v36 = vmul.f32 %v7098_v47, %v7098_v47 }
0x2312   : > { %v7101_v4 = vsub.f32 %v7049_v57, %v7091_v11  ;;  %v7121_v29 = vsel %vm615_vm0, %v7109_v9, 0.0 }
0x2313   : > { %v7100_v60 = vsub.f32 %v7048_v20, %v7090_v16  ;;  %7122 = vadd.xlane.f32.xlu1 %v7121_v29  ;;  %v7075_v0 = vpop.xlane.xlu1 %7074  ;;  %v7118_v61 = vsel %vm615_vm0, %v7108_v36, 0.0  ;;  %v16476_v29 = vmul.f32 %v16421_v56, %v16423_v52 }
0x2314   : > { %v16433_v21 = vmul.f32 %v16421_v56, %v7101_v4  ;;  %v7093_v39 = vmul.f32 0.03125, %v7075_v0  ;;  %v7072_v48 = vpop.xlane.xlu0 %7071  ;;  %7119 = vadd.xlane.f32.xlu0 %v7118_v61  ;;  %v7111_v14 = vmul.f32 %v7101_v4, %v7101_v4 }
0x2315   : > { %v16436_v35 = vmul.f32 %v16421_v56, %v7100_v60  ;;  %v7092_v59 = vmul.f32 0.03125, %v7072_v48  ;;  %v7110_v19 = vmul.f32 %v7100_v60, %v7100_v60 }
0x2316   : > { %v7103_v43 = vsub.f32 %v7051_v51, %v7093_v39  ;;  %v7127_v17 = vsel %vm615_vm0, %v7111_v14, 0.0 }
0x2317   : > { %v7102_v12 = vsub.f32 %v7050_v5, %v7092_v59  ;;  %7128 = vadd.xlane.f32.xlu1 %v7127_v17  ;;  %v7081_v37 = vpop.xlane.xlu1 %7080  ;;  %v7124_v42 = vsel %vm615_vm0, %v7110_v19, 0.0 }
0x2318   : > { %v16441_v3 = vmul.f32 %v16421_v56, %v7103_v43  ;;  %v7095_v8 = vmul.f32 0.03125, %v7081_v37  ;;  %v7078_v58 = vpop.xlane.xlu0 %7077  ;;  %7125 = vadd.xlane.f32.xlu0 %v7124_v42  ;;  %v7113_v13 = vmul.f32 %v7103_v43, %v7103_v43 }
0x2319   : > { %v16444_v22 = vmul.f32 %v16421_v56, %v7102_v12  ;;  %v7094_v57 = vmul.f32 0.03125, %v7078_v58  ;;  %v7112_v20 = vmul.f32 %v7102_v12, %v7102_v12 }
0x231a   : > { %v7105_v45 = vsub.f32 %v7053_v27, %v7095_v8  ;;  %v7133_v1 = vsel %vm615_vm0, %v7113_v13, 0.0 }
0x231b   : > { %v7104_v62 = vsub.f32 %v7052_v2, %v7094_v57  ;;  %7134 = vadd.xlane.f32.xlu1 %v7133_v1  ;;  %v7087_v63 = vpop.xlane.xlu1 %7086  ;;  %v7130_v31 = vsel %vm615_vm0, %v7112_v20, 0.0 }
0x231c   : > { %v16449_v44 = vmul.f32 %v16421_v56, %v7105_v45  ;;  %v7097_v51 = vmul.f32 0.03125, %v7087_v63  ;;  %7131 = vadd.xlane.f32.xlu0 %v7130_v31  ;;  %v7084_v5 = vpop.xlane.xlu0 %7083  ;;  %v7115_v40 = vmul.f32 %v7105_v45, %v7105_v45 }
0x231d   : > { %v16452_v50 = vmul.f32 %v16421_v56, %v7104_v62  ;;  %v7096_v6 = vmul.f32 0.03125, %v7084_v5  ;;  %v7114_v32 = vmul.f32 %v7104_v62, %v7104_v62 }
0x231e   : > { %v7107_v26 = vsub.f32 %v16409_v55, %v7097_v51  ;;  %v7139_v53 = vsel %vm615_vm0, %v7115_v40, 0.0  ;;  %v18960_v55 = vmov 2  }
0x231f   : > { %v7106_v27 = vsub.f32 %v16412_v23, %v7096_v6  ;;  %7140 = vadd.xlane.f32.xlu1 %v7139_v53  ;;  %v7136_v2 = vsel %vm615_vm0, %v7114_v32, 0.0  ;;  %12555 = vset.pattern.permute.xlu0 %v18960_v55  ;;  %v18912_v23 = vmov 0  }
0x2320   : > { %v16459_v34 = vmul.f32 %v16421_v56, %v7107_v26  ;;  %7137 = vadd.xlane.f32.xlu0 %v7136_v2  ;;  %v7117_v28 = vmul.f32 %v7107_v26, %v7107_v26  ;;  %12553 = vset.pattern.permute.xlu1 %v18912_v23 }
0x2321   : > { %v16462_v15 = vmul.f32 %v16421_v56, %v7106_v27  ;;  %v7116_v46 = vmul.f32 %v7106_v27, %v7106_v27 }
0x2322   : > { %v7145_v10 = vsel %vm643_vm1, %v7117_v28, 0.0 }
0x2323   : > { %7146 = vadd.xlane.f32.xlu1 %v7145_v10  ;;  %v7142_v30 = vsel %vm615_vm0, %v7116_v46, 0.0 }
0x2324   : > { %7143 = vadd.xlane.f32.xlu0 %v7142_v30 }
0x23a0   : > { %v7123_v33 = vpop.xlane.xlu1 %7122 }
0x23a1   : > { %v7149_v49 = vmul.f32 0.032258064, %v7123_v33  ;;  %v7120_v18 = vpop.xlane.xlu0 %7119 }
0x23a2   : > { %v7148_v24 = vmul.f32 0.032258064, %v7120_v18 }
0x23a3   : > { %13353 = vrsqrt.f32 %v7149_v49  ;;  %vm7167_vm0 = vcmp.eq.f32.partialorder %v7149_v49, inf  ;;  %vm7169_vm1 = vcmp.eq.f32.partialorder %v7149_v49, 0.0  ;;  %v7170_v48 = vand.u32 2147483648, %v7149_v49 }
0x23a4   : > { %13355 = vrsqrt.f32 %v7148_v24  ;;  %v7129_v7 = vpop.xlane.xlu1 %7128  ;;  %vm7160_vm10 = vcmp.eq.f32.partialorder %v7148_v24, inf  ;;  %vm7162_vm11 = vcmp.eq.f32.partialorder %v7148_v24, 0.0  ;;  %v7163_v19 = vand.u32 2147483648, %v7148_v24 }
0x23a5   : > { %v7151_v54 = vmul.f32 0.032258064, %v7129_v7  ;;  %v7126_v47 = vpop.xlane.xlu0 %7125 }
0x23a6   : > { %v7150_v41 = vmul.f32 0.032258064, %v7126_v47 }
0x23a7   : > { %13357 = vrsqrt.f32 %v7151_v54  ;;  %vm7181_vm14 = vcmp.eq.f32.partialorder %v7151_v54, inf  ;;  %vm7183_vm15 = vcmp.eq.f32.partialorder %v7151_v54, 0.0  ;;  %v7184_v37 = vand.u32 2147483648, %v7151_v54 }
0x23a8   : > { %13359 = vrsqrt.f32 %v7150_v41  ;;  %v7135_v11 = vpop.xlane.xlu1 %7134  ;;  %vm7174_vm2 = vcmp.eq.f32.partialorder %v7150_v41, inf  ;;  %vm7176_vm12 = vcmp.eq.f32.partialorder %v7150_v41, 0.0  ;;  %v7177_v31 = vand.u32 2147483648, %v7150_v41 }
0x23a9   : > { %v16468_v38 = vmul.f32 0.032258064, %v7135_v11  ;;  %v7132_v9 = vpop.xlane.xlu0 %7131 }
0x23aa   : > { %v16470_v16 = vmul.f32 0.032258064, %v7132_v9 }
0x23ab   : > { %13361 = vrsqrt.f32 %v16468_v38  ;;  %vm7195_vm5 = vcmp.eq.f32.partialorder %v16468_v38, inf  ;;  %vm7197_vm6 = vcmp.eq.f32.partialorder %v16468_v38, 0.0  ;;  %v7198_v2 = vand.u32 2147483648, %v16468_v38 }
0x23ac   : > { %13363 = vrsqrt.f32 %v16470_v16  ;;  %v7141_v36 = vpop.xlane.xlu1 %7140  ;;  %vm7188_vm7 = vcmp.eq.f32.partialorder %v16470_v16, inf  ;;  %v7191_v10 = vand.u32 2147483648, %v16470_v16  ;;  %vm7190_vm13 = vcmp.eq.f32.partialorder %v16470_v16, 0.0 }
0x23ad   : > { %v13354_v4 = vpop.eup %13353  ;;  %v16478_v60 = vmul.f32 0.032258064, %v7141_v36  ;;  %v7138_v0 = vpop.xlane.xlu0 %7137 }
0x23ae   : > { %v13356_v61 = vpop.eup %13355  ;;  %v7166_v39 = vmul.f32 %v13354_v4, %v7149_v49  ;;  %v16480_v14 = vmul.f32 0.032258064, %v7138_v0  ;;  %v16522_v0 = vld [vmem:[%s18844_s15] ss:$0 sm:$0xff] }
0x23af   : > { %v7159_v59 = vmul.f32 %v13356_v61, %v7148_v24  ;;  %13365 = vrsqrt.f32 %v16478_v60  ;;  %vm7209_vm3 = vcmp.eq.f32.partialorder %v16478_v60, inf  ;;  %vm7211_vm4 = vcmp.eq.f32.partialorder %v16478_v60, 0.0 }
0x23b0   : > { %v7168_v43 = vsel %vm7167_vm0, %v7149_v49, %v7166_v39  ;;  %13367 = vrsqrt.f32 %v16480_v14  ;;  %v7147_v56 = vpop.xlane.xlu1 %7146  ;;  %vm7202_vm8 = vcmp.eq.f32.partialorder %v16480_v14, inf  ;;  %v7205_v9 = vand.u32 2147483648, %v16480_v14 }
0x23b1   : > { %v13358_v52 = vpop.eup %13357  ;;  %v7171_v17 = vsel %vm7169_vm1, %v7170_v48, %v7168_v43  ;;  %v7161_v12 = vsel %vm7160_vm10, %v7148_v24, %v7159_v59  ;;  %v7144_v42 = vpop.xlane.xlu0 %7143  ;;  %v16486_v20 = vmul.f32 0.032258064, %v7147_v56  ;;  %vm7204_vm9 = vcmp.eq.f32.partialorder %v16480_v14, 0.0 }
0x23b2   : > { %v13360_v8 = vpop.eup %13359  ;;  %v7229_v58 = vadd.f32 1e-06, %v7171_v17  ;;  %v7164_v13 = vsel %vm7162_vm11, %v7163_v19, %v7161_v12  ;;  %v7180_v57 = vmul.f32 %v13358_v52, %v7151_v54  ;;  %v16488_v62 = vmul.f32 0.032258064, %v7144_v42 }
0x23b3   : > { %v7228_v45 = vadd.f32 1e-06, %v7164_v13  ;;  %v7173_v1 = vmul.f32 %v13360_v8, %v7150_v41  ;;  %vm7223_vm0 = vcmp.eq.f32.partialorder %v16486_v20, inf  ;;  %vm7225_vm1 = vcmp.eq.f32.partialorder %v16486_v20, 0.0 }
0x23b4   : > { %13369 = vrcp.f32 %v7229_v58  ;;  %v7182_v63 = vsel %vm7181_vm14, %v7151_v54, %v7180_v57  ;;  %vm7216_vm10 = vcmp.eq.f32.partialorder %v16488_v62, inf  ;;  %v7219_v58 = vand.u32 2147483648, %v16488_v62 }
0x23b5   : > { %v13362_v51 = vpop.eup %13361  ;;  %13371 = vrcp.f32 %v7228_v45  ;;  %v7185_v5 = vsel %vm7183_vm15, %v7184_v37, %v7182_v63  ;;  %v7175_v40 = vsel %vm7174_vm2, %v7150_v41, %v7173_v1  ;;  %v7212_v41 = vand.u32 2147483648, %v16478_v60 }
0x23b6   : > { %v13364_v6 = vpop.eup %13363  ;;  %v7231_v32 = vadd.f32 1e-06, %v7185_v5  ;;  %v7178_v26 = vsel %vm7176_vm12, %v7177_v31, %v7175_v40  ;;  %v7194_v53 = vmul.f32 %v13362_v51, %v16468_v38  ;;  %13373 = vrsqrt.f32 %v16486_v20 }
0x23b7   : > { %v7230_v27 = vadd.f32 1e-06, %v7178_v26  ;;  %v7187_v28 = vmul.f32 %v13364_v6, %v16470_v16  ;;  %13375 = vrsqrt.f32 %v16488_v62  ;;  %vm7218_vm11 = vcmp.eq.f32.partialorder %v16488_v62, 0.0 }
0x23b8   : > { %13377 = vrcp.f32 %v7231_v32  ;;  %v7196_v46 = vsel %vm7195_vm5, %v16468_v38, %v7194_v53  ;;  %v18964_v6 = vmov 1   ;;  %vm19443_vm14 = vcmask 1045504  }
0x23b9   : > { %v13366_v30 = vpop.eup %13365  ;;  %13379 = vrcp.f32 %v7230_v27  ;;  %v7199_v33 = vsel %vm7197_vm6, %v7198_v2, %v7196_v46  ;;  %v7189_v49 = vsel %vm7188_vm7, %v16470_v16, %v7187_v28  ;;  %v18916_v28 = vmov 6  }
0x23ba   : > { %v13368_v18 = vpop.eup %13367  ;;  %v7233_v24 = vadd.f32 1e-06, %v7199_v33  ;;  %v7192_v7 = vsel %vm7190_vm13, %v7191_v10, %v7189_v49  ;;  %v7208_v54 = vmul.f32 %v13366_v30, %v16478_v60  ;;  %vm9593_vm2 = vcmask 1040384  }
0x23bb   : > { %v7232_v47 = vadd.f32 1e-06, %v7192_v7  ;;  %v7201_v11 = vmul.f32 %v13368_v18, %v16480_v14 }
0x23bc   : > { %13381 = vrcp.f32 %v7233_v24  ;;  %v7210_v38 = vsel %vm7209_vm3, %v16478_v60, %v7208_v54  ;;  %v18918_v54 = vmov 10  }
0x23bd   : > { %13383 = vrcp.f32 %v7232_v47  ;;  %v7213_v16 = vsel %vm7211_vm4, %v7212_v41, %v7210_v38  ;;  %v7203_v36 = vsel %vm7202_vm8, %v16480_v14, %v7201_v11  ;;  %v18910_v47 = vmov 7  }
0x23be   : > { %v13370_v4 = vpop.eup %13369  ;;  %v7235_v61 = vadd.f32 1e-06, %v7213_v16  ;;  %v7206_v39 = vsel %vm7204_vm9, %v7205_v9, %v7203_v36  ;;  %v18922_v41 = vmov 13   ;;  %v18934_v11 = vmov 12  }
0x23bf   : > { %v13372_v48 = vpop.eup %13371  ;;  %v7265_v60 = vmul.f32 %v13370_v4, %v16476_v29  ;;  %v7234_v59 = vadd.f32 1e-06, %v7206_v39  ;;  %v7226_v29 = vand.u32 2147483648, %v16486_v20  ;;  %v18924_v38 = vmov 14  }
0x23c0   : > { %v13374_v19 = vpop.eup %13373  ;;  %v7264_v43 = vmul.f32 %v13372_v48, %v16428_v25  ;;  %13385 = vrcp.f32 %v7235_v61  ;;  %v18938_v9 = vmov 15   ;;  %v18932_v16 = vmov 17  }
0x23c1   : > { %v13376_v56 = vpop.eup %13375  ;;  %v16527_v52 = vadd.f32 %v16522_v0, %v7265_v60  ;;  %13387 = vrcp.f32 %v7234_v59  ;;  %v7222_v14 = vmul.f32 %v13374_v19, %v16486_v20  ;;  %v18928_v36 = vmov 16  }
0x23c2   : > { %v13378_v17 = vpop.eup %13377  ;;  %v16532_v12 = vadd.f32 %v16522_v0, %v7264_v43  ;;  %v7215_v25 = vmul.f32 %v13376_v56, %v16488_v62  ;;  %v18940_v4 = vmov 20   ;;  %v18946_v61 = vmov 23  }
0x23c3   : > { %v13380_v37 = vpop.eup %13379  ;;  %v7267_v42 = vmul.f32 %v13378_v17, %v16433_v21  ;;  %v7224_v8 = vsel %vm7223_vm0, %v16486_v20, %v7222_v14  ;;  %7457 = vperm.xlu0 %12555, %v16527_v52   ;;  %7307 = vperm.xlu1 %12553, %v16527_v52   ;;  %v18936_v39 = vmov 19   ;;  %v18954_v48 = vmov 26  }
0x23c4   : > { %v7266_v13 = vmul.f32 %v13380_v37, %v16436_v35  ;;  %v7227_v57 = vsel %vm7225_vm1, %v7226_v29, %v7224_v8  ;;  %v7217_v45 = vsel %vm7216_vm10, %v16488_v62, %v7215_v25  ;;  %v18966_v35 = vmov 4  }
0x23c5   : > { %v16547_v1 = vadd.f32 %v16522_v0, %v7267_v42  ;;  %v7237_v21 = vadd.f32 1e-06, %v7227_v57  ;;  %v7220_v20 = vsel %vm7218_vm11, %v7219_v58, %v7217_v45  ;;  %v18956_v60 = vmov 21  }
0x23c6   : > { %v13382_v63 = vpop.eup %13381  ;;  %v16550_v31 = vadd.f32 %v16522_v0, %v7266_v13  ;;  %v7236_v51 = vadd.f32 1e-06, %v7220_v20  ;;  %v18962_v59 = vmov 29   ;;  %v18942_v19 = vmov 22  }
0x23c7   : > { %v13384_v5 = vpop.eup %13383  ;;  %v7269_v40 = vmul.f32 %v13382_v63, %v16441_v3  ;;  %13389 = vrcp.f32 %v7237_v21  ;;  %12557 = vset.pattern.permute.xlu0 %v18966_v35  ;;  %12554 = vset.pattern.permute.xlu1 %v18964_v6  ;;  %v18948_v43 = vmov 24   ;;  %v18950_v56 = vmov 25  }
0x23c8   : > { %v7268_v62 = vmul.f32 %v13384_v5, %v16444_v22  ;;  %13391 = vrcp.f32 %v7236_v51  ;;  %7599 = vperm.xlu0 %12557, %v16527_v52   ;;  %7386 = vperm.xlu1 %12554, %v16527_v52   ;;  %v18926_v22 = vmov 3   ;;  %v18952_v14 = vmov 27  }
0x23c9   : > { %v16559_v32 = vadd.f32 %v16522_v0, %v7269_v40  ;;  %v18958_v17 = vmov 28   ;;  %v18920_v29 = vmov 30   ;;  %v18968_v25 = vmov 31  }
0x23ca   : > { %v13386_v26 = vpop.eup %13385  ;;  %v16562_v3 = vadd.f32 %v16522_v0, %v7268_v62 }
0x23cb   : > { %v13388_v53 = vpop.eup %13387  ;;  %v7271_v27 = vmul.f32 %v13386_v26, %v16449_v44  ;;  %v18908_v44 = vmov 9  }
0x23cc   : > { %v7270_v2 = vmul.f32 %v13388_v53, %v16452_v50  ;;  %12559 = vset.pattern.permute.xlu0 %v18916_v28  ;;  %12556 = vset.pattern.permute.xlu1 %v18926_v22  ;;  %v18930_v50 = vmov 5  }
0x23cd   : > { %v16569_v46 = vadd.f32 %v16522_v0, %v7271_v27  ;;  %7741 = vperm.xlu0 %12559, %v16527_v52   ;;  %7528 = vperm.xlu1 %12556, %v16527_v52  }
0x23ce   : > { %v16574_v10 = vadd.f32 %v16522_v0, %v7270_v2 }
0x23d1   : > { %v13390_v30 = vpop.eup %13389  ;;  %12562 = vset.pattern.permute.xlu0 %v18908_v44  ;;  %12558 = vset.pattern.permute.xlu1 %v18930_v50 }
0x23d2   : > { %v13392_v33 = vpop.eup %13391  ;;  %v7273_v49 = vmul.f32 %v13390_v30, %v16459_v34  ;;  %7954 = vperm.xlu0 %12562, %v16527_v52   ;;  %7670 = vperm.xlu1 %12558, %v16527_v52   ;;  %v18906_v34 = vmov 11  }
0x23d3   : > { %v7272_v18 = vmul.f32 %v13392_v33, %v16462_v15  ;;  %v18914_v15 = vmov 8  }
0x23d4   : > { %v16583_v24 = vadd.f32 %v16522_v0, %v7273_v49 }
0x23d5   : > { %v16586_v7 = vadd.f32 %v16522_v0, %v7272_v18  ;;  %v18944_v0 = vmov 18  }
0x23d6   : > { %12563 = vset.pattern.permute.xlu0 %v18918_v54  ;;  %12560 = vset.pattern.permute.xlu1 %v18910_v47 }
0x23d7   : > { %19072 = vst [vmem:[#allocation19_spill] sm:$0xff] %v16586_v7  ;;  %8025 = vperm.xlu0 %12563, %v16527_v52   ;;  %7812 = vperm.xlu1 %12560, %v16527_v52  }
0x23db   : > { %12564 = vset.pattern.permute.xlu0 %v18906_v34  ;;  %12561 = vset.pattern.permute.xlu1 %v18914_v15 }
0x23dc   : > { %8096 = vperm.xlu0 %12564, %v16527_v52   ;;  %7883 = vperm.xlu1 %12561, %v16527_v52  }
0x23e0   : > { %12566 = vset.pattern.permute.xlu0 %v18922_v41  ;;  %12565 = vset.pattern.permute.xlu1 %v18934_v11 }
0x23e1   : > { %8238 = vperm.xlu0 %12566, %v16527_v52   ;;  %8167 = vperm.xlu1 %12565, %v16527_v52  }
0x23e5   : > { %12567 = vset.pattern.permute.xlu0 %v18924_v38  ;;  %12568 = vset.pattern.permute.xlu1 %v18938_v9 }
0x23e6   : > { %8309 = vperm.xlu0 %12567, %v16527_v52   ;;  %8380 = vperm.xlu1 %12568, %v16527_v52  }
0x23ea   : > { %12570 = vset.pattern.permute.xlu0 %v18932_v16  ;;  %12569 = vset.pattern.permute.xlu1 %v18928_v36 }
0x23eb   : > { %8522 = vperm.xlu0 %12570, %v16527_v52   ;;  %8451 = vperm.xlu1 %12569, %v16527_v52  }
0x23ef   : > { %12573 = vset.pattern.permute.xlu0 %v18940_v4  ;;  %12571 = vset.pattern.permute.xlu1 %v18944_v0 }
0x23f0   : > { %8735 = vperm.xlu0 %12573, %v16527_v52   ;;  %8593 = vperm.xlu1 %12571, %v16527_v52  }
0x23f4   : > { %12576 = vset.pattern.permute.xlu0 %v18946_v61  ;;  %12572 = vset.pattern.permute.xlu1 %v18936_v39 }
0x23f5   : > { %8948 = vperm.xlu0 %12576, %v16527_v52   ;;  %8664 = vperm.xlu1 %12572, %v16527_v52  }
0x23f9   : > { %12579 = vset.pattern.permute.xlu0 %v18954_v48  ;;  %12574 = vset.pattern.permute.xlu1 %v18956_v60 }
0x23fa   : > { %9161 = vperm.xlu0 %12579, %v16527_v52   ;;  %8806 = vperm.xlu1 %12574, %v16527_v52  }
0x23fe   : > { %12582 = vset.pattern.permute.xlu0 %v18962_v59  ;;  %12575 = vset.pattern.permute.xlu1 %v18942_v19 }
0x23ff   : > { %9374 = vperm.xlu0 %12582, %v16527_v52   ;;  %8877 = vperm.xlu1 %12575, %v16527_v52  }
0x2403   : > { %12585 = vset.pattern.permute.xlu0 %v18912_v23  ;;  %12577 = vset.pattern.permute.xlu1 %v18948_v43 }
0x2404   : > { %7302 = vperm.xlu0 %12585, %v16532_v12   ;;  %9019 = vperm.xlu1 %12577, %v16527_v52  }
0x2408   : > { %12586 = vset.pattern.permute.xlu0 %v18964_v6  ;;  %12578 = vset.pattern.permute.xlu1 %v18950_v56 }
0x2409   : > { %7382 = vperm.xlu0 %12586, %v16532_v12   ;;  %9090 = vperm.xlu1 %12578, %v16527_v52  }
0x240d   : > { %12588 = vset.pattern.permute.xlu0 %v18926_v22  ;;  %12580 = vset.pattern.permute.xlu1 %v18952_v14 }
0x240e   : > { %7524 = vperm.xlu0 %12588, %v16532_v12   ;;  %9232 = vperm.xlu1 %12580, %v16527_v52  }
0x2412   : > { %12590 = vset.pattern.permute.xlu0 %v18930_v50  ;;  %12581 = vset.pattern.permute.xlu1 %v18958_v17 }
0x2413   : > { %7666 = vperm.xlu0 %12590, %v16532_v12   ;;  %9303 = vperm.xlu1 %12581, %v16527_v52  }
0x2417   : > { %12592 = vset.pattern.permute.xlu0 %v18910_v47  ;;  %12583 = vset.pattern.permute.xlu1 %v18920_v29 }
0x2418   : > { %7808 = vperm.xlu0 %12592, %v16532_v12   ;;  %9445 = vperm.xlu1 %12583, %v16527_v52  }
0x241c   : > { %12593 = vset.pattern.permute.xlu0 %v18914_v15  ;;  %12584 = vset.pattern.permute.xlu1 %v18968_v25 }
0x241d   : > { %7879 = vperm.xlu0 %12593, %v16532_v12   ;;  %9516 = vperm.xlu1 %12584, %v16527_v52  }
0x2421   : > { %12597 = vset.pattern.permute.xlu0 %v18934_v11  ;;  %12587 = vset.pattern.permute.xlu1 %v18960_v55 }
0x2422   : > { %8163 = vperm.xlu0 %12597, %v16532_v12   ;;  %7453 = vperm.xlu1 %12587, %v16532_v12  }
0x2426   : > { %12600 = vset.pattern.permute.xlu0 %v18938_v9  ;;  %12589 = vset.pattern.permute.xlu1 %v18966_v35 }
0x2427   : > { %8376 = vperm.xlu0 %12600, %v16532_v12   ;;  %7595 = vperm.xlu1 %12589, %v16532_v12  }
0x242b   : > { %12603 = vset.pattern.permute.xlu0 %v18944_v0  ;;  %12591 = vset.pattern.permute.xlu1 %v18916_v28 }
0x242c   : > { %8589 = vperm.xlu0 %12603, %v16532_v12   ;;  %7737 = vperm.xlu1 %12591, %v16532_v12  }
0x2430   : > { %12606 = vset.pattern.permute.xlu0 %v18956_v60  ;;  %12594 = vset.pattern.permute.xlu1 %v18908_v44 }
0x2431   : > { %8802 = vperm.xlu0 %12606, %v16532_v12   ;;  %7950 = vperm.xlu1 %12594, %v16532_v12  }
0x2435   : > { %12609 = vset.pattern.permute.xlu0 %v18948_v43  ;;  %12595 = vset.pattern.permute.xlu1 %v18918_v54 }
0x2436   : > { %9015 = vperm.xlu0 %12609, %v16532_v12   ;;  %8021 = vperm.xlu1 %12595, %v16532_v12  }
0x243a   : > { %12612 = vset.pattern.permute.xlu0 %v18952_v14  ;;  %12596 = vset.pattern.permute.xlu1 %v18906_v34 }
0x243b   : > { %9228 = vperm.xlu0 %12612, %v16532_v12   ;;  %8092 = vperm.xlu1 %12596, %v16532_v12  }
0x243f   : > { %12615 = vset.pattern.permute.xlu0 %v18920_v29  ;;  %12598 = vset.pattern.permute.xlu1 %v18922_v41 }
0x2440   : > { %9441 = vperm.xlu0 %12615, %v16532_v12   ;;  %8234 = vperm.xlu1 %12598, %v16532_v12  }
0x2442   : > { %v16676_v52 = vpop.permute.xlu1 %7307  ;;  %v16742_v51 = vpop.permute.xlu0 %7457 }
0x2444   : > { %12618 = vset.pattern.permute.xlu0 %v18964_v6  ;;  %12599 = vset.pattern.permute.xlu1 %v18924_v38 }
0x2445   : > { %8305 = vperm.xlu1 %12599, %v16532_v12   ;;  %7394 = vperm.xlu0 %12618, %v16547_v1  }
0x2447   : > { %v16682_v37 = vpop.permute.xlu1 %7386  ;;  %v16750_v40 = vpop.permute.xlu0 %7599 }
0x2449   : > { %12601 = vset.pattern.permute.xlu1 %v18928_v36  ;;  %12620 = vset.pattern.permute.xlu0 %v18926_v22 }
0x244a   : > { %8447 = vperm.xlu1 %12601, %v16532_v12   ;;  %7536 = vperm.xlu0 %12620, %v16547_v1  }
0x244c   : > { %v16688_v42 = vpop.permute.xlu1 %7528  ;;  %v16760_v53 = vpop.permute.xlu0 %7741 }
0x244e   : > { %12602 = vset.pattern.permute.xlu1 %v18932_v16  ;;  %12622 = vset.pattern.permute.xlu0 %v18930_v50 }
0x244f   : > { %8518 = vperm.xlu1 %12602, %v16532_v12   ;;  %7678 = vperm.xlu0 %12622, %v16547_v1  }
0x2451   : > { %v16694_v8 = vpop.permute.xlu1 %7670  ;;  %v16768_v27 = vpop.permute.xlu0 %7954 }
0x2453   : > { %12604 = vset.pattern.permute.xlu1 %v18936_v39  ;;  %12626 = vset.pattern.permute.xlu0 %v18908_v44 }
0x2454   : > { %8660 = vperm.xlu1 %12604, %v16532_v12   ;;  %7962 = vperm.xlu0 %12626, %v16547_v1  }
0x2456   : > { %v16700_v58 = vpop.permute.xlu1 %7812  ;;  %v16778_v30 = vpop.permute.xlu0 %8025 }
0x2458   : > { %12605 = vset.pattern.permute.xlu1 %v18940_v4  ;;  %12628 = vset.pattern.permute.xlu0 %v18906_v34 }
0x2459   : > { %8731 = vperm.xlu1 %12605, %v16532_v12   ;;  %8104 = vperm.xlu0 %12628, %v16547_v1  }
0x245b   : > { %v16706_v13 = vpop.permute.xlu1 %7883  ;;  %v16788_v49 = vpop.permute.xlu0 %8096 }
0x245d   : > { %12607 = vset.pattern.permute.xlu1 %v18942_v19  ;;  %12629 = vset.pattern.permute.xlu0 %v18934_v11 }
0x245e   : > { %8873 = vperm.xlu1 %12607, %v16532_v12   ;;  %8175 = vperm.xlu0 %12629, %v16547_v1  }
0x2460   : > { %v16712_v57 = vpop.permute.xlu1 %8167  ;;  %v16796_v34 = vpop.permute.xlu0 %8238 }
0x2462   : > { %12608 = vset.pattern.permute.xlu1 %v18946_v61  ;;  %12632 = vset.pattern.permute.xlu0 %v18938_v9 }
0x2463   : > { %8944 = vperm.xlu1 %12608, %v16532_v12   ;;  %8388 = vperm.xlu0 %12632, %v16547_v1  }
0x2465   : > { %v16718_v45 = vpop.permute.xlu1 %8380 }
0x2466   : > { %19073 = vst [vmem:[#allocation20_spill] sm:$0xff] %v16718_v45 }
0x2467   : > { %12610 = vset.pattern.permute.xlu1 %v18950_v56  ;;  %12635 = vset.pattern.permute.xlu0 %v18944_v0 }
0x2468   : > { %9086 = vperm.xlu1 %12610, %v16532_v12   ;;  %8601 = vperm.xlu0 %12635, %v16547_v1  }
0x246a   : > { %v16724_v21 = vpop.permute.xlu1 %8451 }
0x246b   : > { %19074 = vst [vmem:[#allocation17_spill] sm:$0xff] %v16724_v21  ;;  %v19161_v21 = vmov 23  }
0x246c   : > { %12611 = vset.pattern.permute.xlu1 %v18954_v48  ;;  %12638 = vset.pattern.permute.xlu0 %v18956_v60 }
0x246d   : > { %9157 = vperm.xlu1 %12611, %v16532_v12   ;;  %8814 = vperm.xlu0 %12638, %v16547_v1  }
0x246f   : > { %v16730_v20 = vpop.permute.xlu1 %8593 }
0x2470   : > { %19075 = vst [vmem:[#allocation21_spill] sm:$0xff] %v16730_v20  ;;  %v19140_v20 = vmov 13  }
0x2471   : > { %12613 = vset.pattern.permute.xlu1 %v18958_v17  ;;  %12641 = vset.pattern.permute.xlu0 %v18948_v43 }
0x2472   : > { %9299 = vperm.xlu1 %12613, %v16532_v12   ;;  %9027 = vperm.xlu0 %12641, %v16547_v1  }
0x2474   : > { %v16736_v63 = vpop.permute.xlu1 %8664 }
0x2475   : > { %19076 = vst [vmem:[#allocation23_spill] sm:$0xff] %v16736_v63 }
0x2476   : > { %12614 = vset.pattern.permute.xlu1 %v18962_v59  ;;  %12644 = vset.pattern.permute.xlu0 %v18952_v14 }
0x2477   : > { %9370 = vperm.xlu1 %12614, %v16532_v12   ;;  %9240 = vperm.xlu0 %12644, %v16547_v1  }
0x2479   : > { %v16744_v5 = vpop.permute.xlu1 %8806 }
0x247a   : > { %19077 = vst [vmem:[#allocation22_spill] sm:$0xff] %v16744_v5 }
0x247b   : > { %12616 = vset.pattern.permute.xlu1 %v18968_v25  ;;  %12647 = vset.pattern.permute.xlu0 %v18920_v29 }
0x247c   : > { %9512 = vperm.xlu1 %12616, %v16532_v12   ;;  %9453 = vperm.xlu0 %12647, %v16547_v1  }
0x247e   : > { %v16752_v62 = vpop.permute.xlu1 %8877 }
0x247f   : > { %19078 = vst [vmem:[#allocation13_spill] sm:$0xff] %v16752_v62  ;;  %v19129_v62 = vmov 7  }
0x2480   : > { %12617 = vset.pattern.permute.xlu1 %v18912_v23  ;;  %12657 = vset.pattern.permute.xlu0 %v18914_v15  ;;  %v16806_v23 = vpop.permute.xlu0 %8309 }
0x2481   : > { %7887 = vperm.xlu0 %12657, %v16550_v31   ;;  %7317 = vperm.xlu1 %12617, %v16547_v1  }
0x2483   : > { %v16758_v26 = vpop.permute.xlu1 %9019 }
0x2484   : > { %19079 = vst [vmem:[#allocation11_spill] sm:$0xff] %v16758_v26  ;;  %v19119_v26 = vmov 4  }
0x2485   : > { %12658 = vset.pattern.permute.xlu0 %v18908_v44  ;;  %12619 = vset.pattern.permute.xlu1 %v18960_v55 }
0x2486   : > { %7958 = vperm.xlu0 %12658, %v16550_v31   ;;  %7465 = vperm.xlu1 %12619, %v16547_v1  }
0x2488   : > { %v16766_v12 = vpop.permute.xlu1 %9090 }
0x2489   : > { %19080 = vst [vmem:[#allocation14_spill] sm:$0xff] %v16766_v12  ;;  %v19115_v12 = vmov 3  }
0x248a   : > { %12664 = vset.pattern.permute.xlu0 %v18938_v9  ;;  %12621 = vset.pattern.permute.xlu1 %v18966_v35 }
0x248b   : > { %8384 = vperm.xlu0 %12664, %v16550_v31   ;;  %7607 = vperm.xlu1 %12621, %v16547_v1  }
0x248d   : > { %v16774_v2 = vpop.permute.xlu1 %9232 }
0x248e   : > { %19081 = vst [vmem:[#allocation12_spill] sm:$0xff] %v16774_v2 }
0x248f   : > { %12667 = vset.pattern.permute.xlu0 %v18944_v0  ;;  %12623 = vset.pattern.permute.xlu1 %v18916_v28  ;;  %v16814_v28 = vpop.permute.xlu0 %8522 }
0x2490   : > { %8597 = vperm.xlu0 %12667, %v16550_v31   ;;  %7749 = vperm.xlu1 %12623, %v16547_v1   ;;  %19085 = vst [vmem:[#allocation24_spill] sm:$0xff] %v16814_v28 }
0x2492   : > { %v16782_v33 = vpop.permute.xlu1 %9303 }
0x2493   : > { %19082 = vst [vmem:[#allocation16_spill] sm:$0xff] %v16782_v33  ;;  %v19111_v33 = vmov 2  }
0x2494   : > { %12670 = vset.pattern.permute.xlu0 %v18956_v60  ;;  %12624 = vset.pattern.permute.xlu1 %v18910_v47 }
0x2495   : > { %8810 = vperm.xlu0 %12670, %v16550_v31   ;;  %7820 = vperm.xlu1 %12624, %v16547_v1  }
0x2497   : > { %v16790_v18 = vpop.permute.xlu1 %9445 }
0x2498   : > { %19083 = vst [vmem:[#allocation15_spill] sm:$0xff] %v16790_v18 }
0x2499   : > { %12673 = vset.pattern.permute.xlu0 %v18948_v43  ;;  %12625 = vset.pattern.permute.xlu1 %v18914_v15 }
0x249a   : > { %9023 = vperm.xlu0 %12673, %v16550_v31   ;;  %7891 = vperm.xlu1 %12625, %v16547_v1  }
0x249c   : > { %v16798_v44 = vpop.permute.xlu1 %9516 }
0x249d   : > { %19084 = vst [vmem:[#allocation18_spill] sm:$0xff] %v16798_v44 }
0x249e   : > { %12676 = vset.pattern.permute.xlu0 %v18952_v14  ;;  %12627 = vset.pattern.permute.xlu1 %v18918_v54 }
0x249f   : > { %9236 = vperm.xlu0 %12676, %v16550_v31   ;;  %8033 = vperm.xlu1 %12627, %v16547_v1  }
0x24a1   : > { %v16804_v47 = vpop.permute.xlu1 %7453 }
0x24a3   : > { %12679 = vset.pattern.permute.xlu0 %v18920_v29  ;;  %12630 = vset.pattern.permute.xlu1 %v18922_v41  ;;  %v16824_v29 = vpop.permute.xlu0 %8735 }
0x24a4   : > { %9449 = vperm.xlu0 %12679, %v16550_v31   ;;  %8246 = vperm.xlu1 %12630, %v16547_v1   ;;  %19086 = vst [vmem:[#allocation25_spill] sm:$0xff] %v16824_v29 }
0x24a6   : > { %v16812_v15 = vpop.permute.xlu1 %7595 }
0x24a8   : > { %12682 = vset.pattern.permute.xlu0 %v18964_v6  ;;  %12631 = vset.pattern.permute.xlu1 %v18924_v38  ;;  %v16834_v38 = vpop.permute.xlu0 %8948  ;;  %v19104_v6 = vmov 0  }
0x24a9   : > { %7402 = vperm.xlu0 %12682, %v16559_v32   ;;  %8317 = vperm.xlu1 %12631, %v16547_v1   ;;  %19088 = vst [vmem:[#allocation27_spill] sm:$0xff] %v16834_v38  ;;  %v19122_v38 = vmov 21  }
0x24ab   : > { %v16820_v54 = vpop.permute.xlu1 %7737 }
0x24ad   : > { %12684 = vset.pattern.permute.xlu0 %v18926_v22  ;;  %12633 = vset.pattern.permute.xlu1 %v18928_v36  ;;  %v16842_v36 = vpop.permute.xlu0 %9161 }
0x24ae   : > { %7544 = vperm.xlu0 %12684, %v16559_v32   ;;  %8459 = vperm.xlu1 %12633, %v16547_v1   ;;  %19090 = vst [vmem:[#allocation29_spill] sm:$0xff] %v16842_v36 }
0x24b0   : > { %v16828_v41 = vpop.permute.xlu1 %7950 }
0x24b1   : > { %19087 = vst [vmem:[#allocation26_spill] sm:$0xff] %v16828_v41  ;;  %v19157_v41 = vmov 31  }
0x24b2   : > { %12686 = vset.pattern.permute.xlu0 %v18930_v50  ;;  %12634 = vset.pattern.permute.xlu1 %v18932_v16 }
0x24b3   : > { %7686 = vperm.xlu0 %12686, %v16559_v32   ;;  %8530 = vperm.xlu1 %12634, %v16547_v1  }
0x24b5   : > { %v16836_v22 = vpop.permute.xlu1 %8021 }
0x24b6   : > { %19089 = vst [vmem:[#allocation28_spill] sm:$0xff] %v16836_v22 }
0x24b7   : > { %12693 = vset.pattern.permute.xlu0 %v18934_v11  ;;  %12636 = vset.pattern.permute.xlu1 %v18936_v39  ;;  %v16852_v11 = vpop.permute.xlu0 %9374 }
0x24b8   : > { %8183 = vperm.xlu0 %12693, %v16559_v32   ;;  %8672 = vperm.xlu1 %12636, %v16547_v1   ;;  %19093 = vst [vmem:[#allocation32_spill] sm:$0xff] %v16852_v11  ;;  %v19110_v11 = vmov 12  }
0x24ba   : > { %v16844_v50 = vpop.permute.xlu1 %8092 }
0x24bb   : > { %19091 = vst [vmem:[#allocation30_spill] sm:$0xff] %v16844_v50  ;;  %v19145_v50 = vmov 16  }
0x24bc   : > { %12696 = vset.pattern.permute.xlu0 %v18938_v9  ;;  %12637 = vset.pattern.permute.xlu1 %v18940_v4  ;;  %v16860_v9 = vpop.permute.xlu0 %7302 }
0x24bd   : > { %8396 = vperm.xlu0 %12696, %v16559_v32   ;;  %8743 = vperm.xlu1 %12637, %v16547_v1  }
0x24bf   : > { %v16850_v16 = vpop.permute.xlu1 %8234 }
0x24c0   : > { %19092 = vst [vmem:[#allocation31_spill] sm:$0xff] %v16850_v16 }
0x24c1   : > { %12699 = vset.pattern.permute.xlu0 %v18944_v0  ;;  %12639 = vset.pattern.permute.xlu1 %v18942_v19  ;;  %v16870_v19 = vpop.permute.xlu0 %7382 }
0x24c2   : > { %8609 = vperm.xlu0 %12699, %v16559_v32   ;;  %8885 = vperm.xlu1 %12639, %v16547_v1  }
0x24c4   : > { %v16858_v39 = vpop.permute.xlu1 %8305 }
0x24c5   : > { %19094 = vst [vmem:[#allocation33_spill] sm:$0xff] %v16858_v39 }
0x24c6   : > { %12702 = vset.pattern.permute.xlu0 %v18956_v60  ;;  %12640 = vset.pattern.permute.xlu1 %v18946_v61  ;;  %v16880_v61 = vpop.permute.xlu0 %7524 }
0x24c7   : > { %8822 = vperm.xlu0 %12702, %v16559_v32   ;;  %8956 = vperm.xlu1 %12640, %v16547_v1  }
0x24c9   : > { %v16866_v4 = vpop.permute.xlu1 %8447 }
0x24ca   : > { %19095 = vst [vmem:[#allocation34_spill] sm:$0xff] %v16866_v4  ;;  %v19132_v4 = vmov 10  }
0x24cb   : > { %12705 = vset.pattern.permute.xlu0 %v18948_v43  ;;  %12642 = vset.pattern.permute.xlu1 %v18950_v56  ;;  %v16888_v56 = vpop.permute.xlu0 %7666 }
0x24cc   : > { %9035 = vperm.xlu0 %12705, %v16559_v32   ;;  %9098 = vperm.xlu1 %12642, %v16547_v1  }
0x24ce   : > { %v16874_v0 = vpop.permute.xlu1 %8518 }
0x24cf   : > { %19096 = vst [vmem:[#allocation35_spill] sm:$0xff] %v16874_v0  ;;  %v16898_v60 = vpop.permute.xlu0 %7808  ;;  %v19126_v0 = vmov 24  }
0x24d0   : > { %12708 = vset.pattern.permute.xlu0 %v18952_v14  ;;  %12643 = vset.pattern.permute.xlu1 %v18954_v48  ;;  %19100 = vst [vmem:[#allocation39_spill] sm:$0xff] %v16898_v60 }
0x24d1   : > { %9248 = vperm.xlu0 %12708, %v16559_v32   ;;  %9169 = vperm.xlu1 %12643, %v16547_v1  }
0x24d3   : > { %v16882_v43 = vpop.permute.xlu1 %8660 }
0x24d4   : > { %19097 = vst [vmem:[#allocation36_spill] sm:$0xff] %v16882_v43  ;;  %v19123_v43 = vmov 5  }
0x24d5   : > { %12710 = vset.pattern.permute.xlu0 %v18962_v59  ;;  %12645 = vset.pattern.permute.xlu1 %v18958_v17 }
0x24d6   : > { %9390 = vperm.xlu0 %12710, %v16559_v32   ;;  %9311 = vperm.xlu1 %12645, %v16547_v1  }
0x24d8   : > { %v16890_v14 = vpop.permute.xlu1 %8731 }
0x24d9   : > { %19098 = vst [vmem:[#allocation37_spill] sm:$0xff] %v16890_v14 }
0x24da   : > { %12715 = vset.pattern.permute.xlu0 %v18960_v55  ;;  %12646 = vset.pattern.permute.xlu1 %v18962_v59  ;;  %v16906_v55 = vpop.permute.xlu0 %7879  ;;  %v19103_v59 = vmov 6  }
0x24db   : > { %7469 = vperm.xlu0 %12715, %v16562_v3   ;;  %9382 = vperm.xlu1 %12646, %v16547_v1   ;;  %19102 = vst [vmem:[#allocation41_spill] sm:$0xff] %v16906_v55  ;;  %v19158_v55 = vmov 22  }
0x24dd   : > { %v16896_v48 = vpop.permute.xlu1 %8873 }
0x24de   : > { %19099 = vst [vmem:[#allocation38_spill] sm:$0xff] %v16896_v48  ;;  %v16916_v18 = vpop.permute.xlu0 %8163  ;;  %v19118_v48 = vmov 18  }
0x24df   : > { %12717 = vset.pattern.permute.xlu0 %v18966_v35  ;;  %12648 = vset.pattern.permute.xlu1 %v18968_v25  ;;  %v19106_v35 = vmov 9   ;;  %v19107_v25 = vmov 1   ;;  %19108 = vst [vmem:[#allocation43_spill] sm:$0xff] %v16916_v18  ;;  %v19143_v18 = vmov 14  }
0x24e0   : > { %7611 = vperm.xlu0 %12717, %v16562_v3   ;;  %9524 = vperm.xlu1 %12648, %v16547_v1  }
0x24e2   : > { %v16904_v17 = vpop.permute.xlu1 %8944  ;;  %v16926_v2 = vpop.permute.xlu0 %8376 }
0x24e3   : > { %19101 = vst [vmem:[#allocation40_spill] sm:$0xff] %v16904_v17  ;;  %19112 = vst [vmem:[#allocation45_spill] sm:$0xff] %v16926_v2 }
0x24e4   : > { %12719 = vset.pattern.permute.xlu0 %v19103_v59  ;;  %12649 = vset.pattern.permute.xlu1 %v19104_v6 }
0x24e5   : > { %7753 = vperm.xlu0 %12719, %v16562_v3   ;;  %7312 = vperm.xlu1 %12649, %v16550_v31  }
0x24e7   : > { %v16912_v44 = vpop.permute.xlu1 %9086 }
0x24e8   : > { %19105 = vst [vmem:[#allocation42_spill] sm:$0xff] %v16912_v44  ;;  %v19114_v44 = vmov 15  }
0x24e9   : > { %12722 = vset.pattern.permute.xlu0 %v19106_v35  ;;  %12650 = vset.pattern.permute.xlu1 %v19107_v25 }
0x24ea   : > { %7966 = vperm.xlu0 %12722, %v16562_v3   ;;  %7390 = vperm.xlu1 %12650, %v16550_v31  }
0x24ec   : > { %v16920_v1 = vpop.permute.xlu1 %9157 }
0x24ed   : > { %19109 = vst [vmem:[#allocation44_spill] sm:$0xff] %v16920_v1  ;;  %v16934_v1 = vpop.permute.xlu0 %8589 }
0x24ee   : > { %12725 = vset.pattern.permute.xlu0 %v19110_v11  ;;  %12651 = vset.pattern.permute.xlu1 %v19111_v33  ;;  %19116 = vst [vmem:[#allocation47_spill] sm:$0xff] %v16934_v1 }
0x24ef   : > { %8179 = vperm.xlu0 %12725, %v16562_v3   ;;  %7461 = vperm.xlu1 %12651, %v16550_v31  }
0x24f1   : > { %v16928_v36 = vpop.permute.xlu1 %9299  ;;  %v16944_v14 = vpop.permute.xlu0 %8802 }
0x24f2   : > { %19113 = vst [vmem:[#allocation46_spill] sm:$0xff] %v16928_v36  ;;  %19121 = vst [vmem:[#allocation50_spill] sm:$0xff] %v16944_v14  ;;  %v19128_v14 = vmov 27  }
0x24f3   : > { %12728 = vset.pattern.permute.xlu0 %v19114_v44  ;;  %12652 = vset.pattern.permute.xlu1 %v19115_v12 }
0x24f4   : > { %8392 = vperm.xlu0 %12728, %v16562_v3   ;;  %7532 = vperm.xlu1 %12652, %v16550_v31  }
0x24f5   : > { %v16952_v1 = vpop.permute.xlu0 %9015 }
0x24f6   : > { %v16936_v17 = vpop.permute.xlu1 %9370  ;;  %19125 = vst [vmem:[#allocation52_spill] sm:$0xff] %v16952_v1 }
0x24f7   : > { %19117 = vst [vmem:[#allocation48_spill] sm:$0xff] %v16936_v17 }
0x24f8   : > { %12731 = vset.pattern.permute.xlu0 %v19118_v48  ;;  %12653 = vset.pattern.permute.xlu1 %v19119_v26 }
0x24f9   : > { %8605 = vperm.xlu0 %12731, %v16562_v3   ;;  %7603 = vperm.xlu1 %12653, %v16550_v31   ;;  %v16962_v5 = vpop.permute.xlu0 %9228 }
0x24fa   : > { %19130 = vst [vmem:[#allocation54_spill] sm:$0xff] %v16962_v5  ;;  %v19135_v5 = vmov 11  }
0x24fb   : > { %v16942_v36 = vpop.permute.xlu1 %9512 }
0x24fc   : > { %19120 = vst [vmem:[#allocation49_spill] sm:$0xff] %v16942_v36 }
0x24fd   : > { %12734 = vset.pattern.permute.xlu0 %v19122_v38  ;;  %12654 = vset.pattern.permute.xlu1 %v19123_v43  ;;  %v16972_v2 = vpop.permute.xlu0 %9441 }
0x24fe   : > { %8818 = vperm.xlu0 %12734, %v16562_v3   ;;  %7674 = vperm.xlu1 %12654, %v16550_v31   ;;  %19133 = vst [vmem:[#allocation56_spill] sm:$0xff] %v16972_v2 }
0x2500   : > { %v16950_v17 = vpop.permute.xlu1 %7317 }
0x2501   : > { %19124 = vst [vmem:[#allocation51_spill] sm:$0xff] %v16950_v17  ;;  %v16980_v63 = vpop.permute.xlu0 %7394  ;;  %v19173_v17 = vmov 29  }
0x2502   : > { %12737 = vset.pattern.permute.xlu0 %v19126_v0  ;;  %12655 = vset.pattern.permute.xlu1 %v19103_v59  ;;  %19136 = vst [vmem:[#allocation58_spill] sm:$0xff] %v16980_v63  ;;  %v19169_v63 = vmov 8  }
0x2503   : > { %9031 = vperm.xlu0 %12737, %v16562_v3   ;;  %7745 = vperm.xlu1 %12655, %v16550_v31  }
0x2505   : > { %v16958_v36 = vpop.permute.xlu1 %7465  ;;  %v16990_v16 = vpop.permute.xlu0 %7536 }
0x2506   : > { %19127 = vst [vmem:[#allocation53_spill] sm:$0xff] %v16958_v36  ;;  %19139 = vst [vmem:[#allocation61_spill] sm:$0xff] %v16990_v16  ;;  %v19154_v16 = vmov 20  }
0x2507   : > { %12740 = vset.pattern.permute.xlu0 %v19128_v14  ;;  %12656 = vset.pattern.permute.xlu1 %v19129_v62 }
0x2508   : > { %9244 = vperm.xlu0 %12740, %v16562_v3   ;;  %7816 = vperm.xlu1 %12656, %v16550_v31  }
0x250a   : > { %v16966_v1 = vpop.permute.xlu1 %7607 }
0x250b   : > { %19131 = vst [vmem:[#allocation55_spill] sm:$0xff] %v16966_v1 }
0x250c   : > { %12746 = vset.pattern.permute.xlu0 %v19107_v25  ;;  %12659 = vset.pattern.permute.xlu1 %v19132_v4 }
0x250d   : > { %7410 = vperm.xlu0 %12746, %v16569_v46   ;;  %8029 = vperm.xlu1 %12659, %v16550_v31  }
0x250f   : > { %v16974_v29 = vpop.permute.xlu1 %7749 }
0x2510   : > { %19134 = vst [vmem:[#allocation57_spill] sm:$0xff] %v16974_v29  ;;  %v16998_v29 = vpop.permute.xlu0 %7678 }
0x2511   : > { %12748 = vset.pattern.permute.xlu0 %v19115_v12  ;;  %12660 = vset.pattern.permute.xlu1 %v19135_v5  ;;  %19142 = vst [vmem:[#allocation63_spill] sm:$0xff] %v16998_v29  ;;  %v19148_v29 = vmov 17  }
0x2512   : > { %7552 = vperm.xlu0 %12748, %v16569_v46   ;;  %8100 = vperm.xlu1 %12660, %v16550_v31  }
0x2514   : > { %v16982_v39 = vpop.permute.xlu1 %7820  ;;  %v17008_v1 = vpop.permute.xlu0 %7962 }
0x2515   : > { %19137 = vst [vmem:[#allocation59_spill] sm:$0xff] %v16982_v39  ;;  %19146 = vst [vmem:[#allocation65_spill] sm:$0xff] %v17008_v1  ;;  %v19151_v1 = vmov 19  }
0x2516   : > { %12750 = vset.pattern.permute.xlu0 %v19123_v43  ;;  %12661 = vset.pattern.permute.xlu1 %v19110_v11 }
0x2517   : > { %7694 = vperm.xlu0 %12750, %v16569_v46   ;;  %8171 = vperm.xlu1 %12661, %v16550_v31  }
0x2519   : > { %v16988_v2 = vpop.permute.xlu1 %7891 }
0x251a   : > { %19138 = vst [vmem:[#allocation60_spill] sm:$0xff] %v16988_v2 }
0x251b   : > { %12754 = vset.pattern.permute.xlu0 %v19106_v35  ;;  %12662 = vset.pattern.permute.xlu1 %v19140_v20 }
0x251c   : > { %7978 = vperm.xlu0 %12754, %v16569_v46   ;;  %8242 = vperm.xlu1 %12662, %v16550_v31  }
0x251e   : > { %v16996_v39 = vpop.permute.xlu1 %8033 }
0x251f   : > { %19141 = vst [vmem:[#allocation62_spill] sm:$0xff] %v16996_v39 }
0x2520   : > { %12757 = vset.pattern.permute.xlu0 %v19110_v11  ;;  %12663 = vset.pattern.permute.xlu1 %v19143_v18 }
0x2521   : > { %8191 = vperm.xlu0 %12757, %v16569_v46   ;;  %8313 = vperm.xlu1 %12663, %v16550_v31  }
0x2523   : > { %v17004_v2 = vpop.permute.xlu1 %8246 }
0x2524   : > { %19144 = vst [vmem:[#allocation64_spill] sm:$0xff] %v17004_v2  ;;  %v17018_v2 = vpop.permute.xlu0 %8104 }
0x2525   : > { %12760 = vset.pattern.permute.xlu0 %v19114_v44  ;;  %12665 = vset.pattern.permute.xlu1 %v19145_v50  ;;  %19149 = vst [vmem:[#allocation67_spill] sm:$0xff] %v17018_v2 }
0x2526   : > { %8404 = vperm.xlu0 %12760, %v16569_v46   ;;  %8455 = vperm.xlu1 %12665, %v16550_v31  }
0x2528   : > { %v17012_v39 = vpop.permute.xlu1 %8317 }
0x2529   : > { %19147 = vst [vmem:[#allocation66_spill] sm:$0xff] %v17012_v39  ;;  %v17026_v39 = vpop.permute.xlu0 %8175 }
0x252a   : > { %12763 = vset.pattern.permute.xlu0 %v19118_v48  ;;  %12666 = vset.pattern.permute.xlu1 %v19148_v29  ;;  %19152 = vst [vmem:[#allocation69_spill] sm:$0xff] %v17026_v39 }
0x252b   : > { %8617 = vperm.xlu0 %12763, %v16569_v46   ;;  %8526 = vperm.xlu1 %12666, %v16550_v31  }
0x252d   : > { %v17020_v22 = vpop.permute.xlu1 %8459  ;;  %v17036_v2 = vpop.permute.xlu0 %8388 }
0x252e   : > { %19150 = vst [vmem:[#allocation68_spill] sm:$0xff] %v17020_v22  ;;  %19156 = vst [vmem:[#allocation72_spill] sm:$0xff] %v17036_v2  ;;  %v19163_v2 = vmov 25  }
0x252f   : > { %12766 = vset.pattern.permute.xlu0 %v19122_v38  ;;  %12668 = vset.pattern.permute.xlu1 %v19151_v1 }
0x2530   : > { %8830 = vperm.xlu0 %12766, %v16569_v46   ;;  %8668 = vperm.xlu1 %12668, %v16550_v31  }
0x2531   : > { %v17044_v39 = vpop.permute.xlu0 %8601 }
0x2532   : > { %v17028_v28 = vpop.permute.xlu1 %8530  ;;  %19160 = vst [vmem:[#allocation74_spill] sm:$0xff] %v17044_v39  ;;  %v19166_v39 = vmov 26  }
0x2533   : > { %19153 = vst [vmem:[#allocation70_spill] sm:$0xff] %v17028_v28 }
0x2534   : > { %12769 = vset.pattern.permute.xlu0 %v19126_v0  ;;  %12669 = vset.pattern.permute.xlu1 %v19154_v16 }
0x2535   : > { %9043 = vperm.xlu0 %12769, %v16569_v46   ;;  %8739 = vperm.xlu1 %12669, %v16550_v31   ;;  %v17054_v45 = vpop.permute.xlu0 %8814 }
0x2536   : > { %19164 = vst [vmem:[#allocation76_spill] sm:$0xff] %v17054_v45  ;;  %v19170_v45 = vmov 28  }
0x2537   : > { %v17034_v22 = vpop.permute.xlu1 %8672 }
0x2538   : > { %19155 = vst [vmem:[#allocation71_spill] sm:$0xff] %v17034_v22 }
0x2539   : > { %12776 = vset.pattern.permute.xlu0 %v19157_v41  ;;  %12671 = vset.pattern.permute.xlu1 %v19158_v55 }
0x253a   : > { %9540 = vperm.xlu0 %12776, %v16569_v46   ;;  %8881 = vperm.xlu1 %12671, %v16550_v31  }
0x253c   : > { %v17042_v28 = vpop.permute.xlu1 %8743 }
0x253d   : > { %19159 = vst [vmem:[#allocation73_spill] sm:$0xff] %v17042_v28 }
0x253e   : > { %12779 = vset.pattern.permute.xlu0 %v19111_v33  ;;  %12672 = vset.pattern.permute.xlu1 %v19161_v21 }
0x253f   : > { %7477 = vperm.xlu0 %12779, %v16574_v10   ;;  %8952 = vperm.xlu1 %12672, %v16550_v31  }
0x2541   : > { %v17050_v22 = vpop.permute.xlu1 %8885 }
0x2542   : > { %19162 = vst [vmem:[#allocation75_spill] sm:$0xff] %v17050_v22  ;;  %v17064_v22 = vpop.permute.xlu0 %9027 }
0x2543   : > { %12781 = vset.pattern.permute.xlu0 %v19119_v26  ;;  %12674 = vset.pattern.permute.xlu1 %v19163_v2  ;;  %19167 = vst [vmem:[#allocation78_spill] sm:$0xff] %v17064_v22 }
0x2544   : > { %7619 = vperm.xlu0 %12781, %v16574_v10   ;;  %9094 = vperm.xlu1 %12674, %v16550_v31  }
0x2546   : > { %v17058_v28 = vpop.permute.xlu1 %8956 }
0x2547   : > { %19165 = vst [vmem:[#allocation77_spill] sm:$0xff] %v17058_v28  ;;  %v17072_v28 = vpop.permute.xlu0 %9240 }
0x2548   : > { %12783 = vset.pattern.permute.xlu0 %v19103_v59  ;;  %12675 = vset.pattern.permute.xlu1 %v19166_v39  ;;  %19171 = vst [vmem:[#allocation80_spill] sm:$0xff] %v17072_v28 }
0x2549   : > { %7761 = vperm.xlu0 %12783, %v16574_v10   ;;  %9165 = vperm.xlu1 %12675, %v16550_v31  }
0x254b   : > { %v17066_v36 = vpop.permute.xlu1 %9098  ;;  %v17082_v22 = vpop.permute.xlu0 %9453 }
0x254c   : > { %19168 = vst [vmem:[#allocation79_spill] sm:$0xff] %v17066_v36  ;;  %19175 = vst [vmem:[#allocation83_spill] sm:$0xff] %v17082_v22 }
0x254d   : > { %12785 = vset.pattern.permute.xlu0 %v19169_v63  ;;  %12677 = vset.pattern.permute.xlu1 %v19170_v45 }
0x254e   : > { %7903 = vperm.xlu0 %12785, %v16574_v10   ;;  %9307 = vperm.xlu1 %12677, %v16550_v31  }
0x2550   : > { %v17074_v60 = vpop.permute.xlu1 %9169 }
0x2551   : > { %19172 = vst [vmem:[#allocation81_spill] sm:$0xff] %v17074_v60  ;;  %v17090_v60 = vpop.permute.xlu0 %7887 }
0x2552   : > { %12786 = vset.pattern.permute.xlu0 %v19106_v35  ;;  %12678 = vset.pattern.permute.xlu1 %v19173_v17  ;;  %19177 = vst [vmem:[#allocation85_spill] sm:$0xff] %v17090_v60 }
0x2553   : > { %7974 = vperm.xlu0 %12786, %v16574_v10   ;;  %9378 = vperm.xlu1 %12678, %v16550_v31  }
0x2555   : > { %v17080_v36 = vpop.permute.xlu1 %9311 }
0x2556   : > { %19174 = vst [vmem:[#allocation82_spill] sm:$0xff] %v17080_v36  ;;  %v17100_v36 = vpop.permute.xlu0 %7958 }
0x2557   : > { %12789 = vset.pattern.permute.xlu0 %v19110_v11  ;;  %12680 = vset.pattern.permute.xlu1 %v19157_v41  ;;  %19179 = vst [vmem:[#allocation87_spill] sm:$0xff] %v17100_v36 }
0x2558   : > { %8187 = vperm.xlu0 %12789, %v16574_v10   ;;  %9520 = vperm.xlu1 %12680, %v16550_v31  }
0x255a   : > { %v17088_v28 = vpop.permute.xlu1 %9382 }
0x255b   : > { %19176 = vst [vmem:[#allocation84_spill] sm:$0xff] %v17088_v28 }
0x255c   : > { %12792 = vset.pattern.permute.xlu0 %v19114_v44  ;;  %12681 = vset.pattern.permute.xlu1 %v19104_v6 }
0x255d   : > { %8400 = vperm.xlu0 %12792, %v16574_v10   ;;  %7327 = vperm.xlu1 %12681, %v16559_v32  }
0x255f   : > { %v17096_v22 = vpop.permute.xlu1 %9524 }
0x2560   : > { %19178 = vst [vmem:[#allocation86_spill] sm:$0xff] %v17096_v22  ;;  %v17110_v22 = vpop.permute.xlu0 %8384 }
0x2561   : > { %12795 = vset.pattern.permute.xlu0 %v19118_v48  ;;  %12683 = vset.pattern.permute.xlu1 %v19111_v33  ;;  %19181 = vst [vmem:[#allocation89_spill] sm:$0xff] %v17110_v22 }
0x2562   : > { %8613 = vperm.xlu0 %12795, %v16574_v10   ;;  %7473 = vperm.xlu1 %12683, %v16559_v32  }
0x2564   : > { %v17104_v31 = vpop.permute.xlu1 %7312  ;;  %v17118_v36 = vpop.permute.xlu0 %8597 }
0x2565   : > { %19180 = vst [vmem:[#allocation88_spill] sm:$0xff] %v17104_v31  ;;  %19183 = vst [vmem:[#allocation91_spill] sm:$0xff] %v17118_v36 }
0x2566   : > { %12798 = vset.pattern.permute.xlu0 %v19122_v38  ;;  %12685 = vset.pattern.permute.xlu1 %v19119_v26 }
0x2567   : > { %8826 = vperm.xlu0 %12798, %v16574_v10   ;;  %7615 = vperm.xlu1 %12685, %v16559_v32  }
0x2568   : > { %v17128_v31 = vpop.permute.xlu0 %8810 }
0x2569   : > { %v17112_v28 = vpop.permute.xlu1 %7390  ;;  %19186 = vst [vmem:[#allocation94_spill] sm:$0xff] %v17128_v31 }
0x256a   : > { %19182 = vst [vmem:[#allocation90_spill] sm:$0xff] %v17112_v28  ;;  %v19189_v28 = vmov 30  }
0x256b   : > { %12801 = vset.pattern.permute.xlu0 %v19126_v0  ;;  %12687 = vset.pattern.permute.xlu1 %v19103_v59 }
0x256c   : > { %9039 = vperm.xlu0 %12801, %v16574_v10   ;;  %7757 = vperm.xlu1 %12687, %v16559_v32  }
0x256e   : > { %v17120_v60 = vpop.permute.xlu1 %7461 }
0x256f   : > { %19184 = vst [vmem:[#allocation92_spill] sm:$0xff] %v17120_v60  ;;  %v17136_v60 = vpop.permute.xlu0 %9023 }
0x2570   : > { %12804 = vset.pattern.permute.xlu0 %v19128_v14  ;;  %12688 = vset.pattern.permute.xlu1 %v19129_v62  ;;  %19188 = vst [vmem:[#allocation96_spill] sm:$0xff] %v17136_v60 }
0x2571   : > { %9252 = vperm.xlu0 %12804, %v16574_v10   ;;  %7828 = vperm.xlu1 %12688, %v16559_v32  }
0x2573   : > { %v17126_v22 = vpop.permute.xlu1 %7532 }
0x2574   : > { %19185 = vst [vmem:[#allocation93_spill] sm:$0xff] %v17126_v22  ;;  %v17146_v22 = vpop.permute.xlu0 %9236 }
0x2575   : > { %12806 = vset.pattern.permute.xlu0 %v19173_v17  ;;  %12689 = vset.pattern.permute.xlu1 %v19169_v63  ;;  %19191 = vst [vmem:[#allocation98_spill] sm:$0xff] %v17146_v22 }
0x2576   : > { %9394 = vperm.xlu0 %12806, %v16574_v10   ;;  %7899 = vperm.xlu1 %12689, %v16559_v32  }
0x2578   : > { %v17134_v36 = vpop.permute.xlu1 %7603 }
0x2579   : > { %19187 = vst [vmem:[#allocation95_spill] sm:$0xff] %v17134_v36 }
0x257a   : > { %12807 = vset.pattern.permute.xlu0 %v19189_v28  ;;  %12690 = vset.pattern.permute.xlu1 %v19106_v35 }
0x257b   : > { %9465 = vperm.xlu0 %12807, %v16574_v10   ;;  %7970 = vperm.xlu1 %12690, %v16559_v32  }
0x257d   : > { %v17142_v31 = vpop.permute.xlu1 %7674 }
0x257e   : > { %19190 = vst [vmem:[#allocation97_spill] sm:$0xff] %v17142_v31  ;;  %v17156_v31 = vpop.permute.xlu0 %9449 }
0x257f   : > { %12810 = vset.pattern.permute.xlu0 %v19107_v25  ;;  %12691 = vset.pattern.permute.xlu1 %v19132_v4  ;;  %19193 = vst [vmem:[#allocation100_spill] sm:$0xff] %v17156_v31 }
0x2580   : > { %7418 = vperm.xlu0 %12810, %v16583_v24   ;;  %8041 = vperm.xlu1 %12691, %v16559_v32  }
0x2582   : > { %v17150_v60 = vpop.permute.xlu1 %7745  ;;  %v17164_v22 = vpop.permute.xlu0 %7402 }
0x2583   : > { %19192 = vst [vmem:[#allocation99_spill] sm:$0xff] %v17150_v60  ;;  %19195 = vst [vmem:[#allocation102_spill] sm:$0xff] %v17164_v22 }
0x2584   : > { %12812 = vset.pattern.permute.xlu0 %v19115_v12  ;;  %12692 = vset.pattern.permute.xlu1 %v19135_v5 }
0x2585   : > { %7560 = vperm.xlu0 %12812, %v16583_v24   ;;  %8112 = vperm.xlu1 %12692, %v16559_v32  }
0x2587   : > { %v17158_v36 = vpop.permute.xlu1 %7816 }
0x2588   : > { %19194 = vst [vmem:[#allocation101_spill] sm:$0xff] %v17158_v36  ;;  %v17174_v36 = vpop.permute.xlu0 %7544 }
0x2589   : > { %12814 = vset.pattern.permute.xlu0 %v19123_v43  ;;  %12694 = vset.pattern.permute.xlu1 %v19140_v20  ;;  %19198 = vst [vmem:[#allocation105_spill] sm:$0xff] %v17174_v36 }
0x258a   : > { %7702 = vperm.xlu0 %12814, %v16583_v24   ;;  %8254 = vperm.xlu1 %12694, %v16559_v32  }
0x258c   : > { %v17166_v60 = vpop.permute.xlu1 %8029  ;;  %v17182_v22 = vpop.permute.xlu0 %7686 }
0x258d   : > { %19196 = vst [vmem:[#allocation103_spill] sm:$0xff] %v17166_v60  ;;  %19200 = vst [vmem:[#allocation107_spill] sm:$0xff] %v17182_v22 }
0x258e   : > { %12818 = vset.pattern.permute.xlu0 %v19106_v35  ;;  %12695 = vset.pattern.permute.xlu1 %v19143_v18 }
0x258f   : > { %7986 = vperm.xlu0 %12818, %v16583_v24   ;;  %8325 = vperm.xlu1 %12695, %v16559_v32  }
0x2590   : > { %v17192_v36 = vpop.permute.xlu0 %8183 }
0x2591   : > { %v17172_v31 = vpop.permute.xlu1 %8100  ;;  %19202 = vst [vmem:[#allocation109_spill] sm:$0xff] %v17192_v36 }
0x2592   : > { %19197 = vst [vmem:[#allocation104_spill] sm:$0xff] %v17172_v31 }
0x2593   : > { %12821 = vset.pattern.permute.xlu0 %v19110_v11  ;;  %12697 = vset.pattern.permute.xlu1 %v19145_v50 }
0x2594   : > { %8199 = vperm.xlu0 %12821, %v16583_v24   ;;  %8467 = vperm.xlu1 %12697, %v16559_v32  }
0x2596   : > { %v17180_v60 = vpop.permute.xlu1 %8171 }
0x2597   : > { %19199 = vst [vmem:[#allocation106_spill] sm:$0xff] %v17180_v60 }
0x2598   : > { %12824 = vset.pattern.permute.xlu0 %v19114_v44  ;;  %12698 = vset.pattern.permute.xlu1 %v19148_v29 }
0x2599   : > { %8412 = vperm.xlu0 %12824, %v16583_v24   ;;  %8538 = vperm.xlu1 %12698, %v16559_v32  }
0x259b   : > { %v17188_v31 = vpop.permute.xlu1 %8242 }
0x259c   : > { %19201 = vst [vmem:[#allocation108_spill] sm:$0xff] %v17188_v31  ;;  %v17202_v31 = vpop.permute.xlu0 %8396 }
0x259d   : > { %12827 = vset.pattern.permute.xlu0 %v19118_v48  ;;  %12700 = vset.pattern.permute.xlu1 %v19151_v1  ;;  %19204 = vst [vmem:[#allocation111_spill] sm:$0xff] %v17202_v31 }
0x259e   : > { %8625 = vperm.xlu0 %12827, %v16583_v24   ;;  %8680 = vperm.xlu1 %12700, %v16559_v32  }
0x25a0   : > { %v17196_v60 = vpop.permute.xlu1 %8313  ;;  %v17210_v36 = vpop.permute.xlu0 %8609 }
0x25a1   : > { %19203 = vst [vmem:[#allocation110_spill] sm:$0xff] %v17196_v60  ;;  %19206 = vst [vmem:[#allocation113_spill] sm:$0xff] %v17210_v36 }
0x25a2   : > { %12830 = vset.pattern.permute.xlu0 %v19122_v38  ;;  %12701 = vset.pattern.permute.xlu1 %v19154_v16 }
0x25a3   : > { %8838 = vperm.xlu0 %12830, %v16583_v24   ;;  %8751 = vperm.xlu1 %12701, %v16559_v32  }
0x25a5   : > { %v17204_v22 = vpop.permute.xlu1 %8455 }
0x25a6   : > { %19205 = vst [vmem:[#allocation112_spill] sm:$0xff] %v17204_v22  ;;  %v17220_v22 = vpop.permute.xlu0 %8822 }
0x25a7   : > { %12833 = vset.pattern.permute.xlu0 %v19126_v0  ;;  %12703 = vset.pattern.permute.xlu1 %v19158_v55  ;;  %19209 = vst [vmem:[#allocation116_spill] sm:$0xff] %v17220_v22 }
0x25a8   : > { %9051 = vperm.xlu0 %12833, %v16583_v24   ;;  %8893 = vperm.xlu1 %12703, %v16559_v32  }
0x25aa   : > { %v17212_v60 = vpop.permute.xlu1 %8526 }
0x25ab   : > { %19207 = vst [vmem:[#allocation114_spill] sm:$0xff] %v17212_v60  ;;  %v17228_v60 = vpop.permute.xlu0 %9035 }
0x25ac   : > { %12835 = vset.pattern.permute.xlu0 %v19166_v39  ;;  %12704 = vset.pattern.permute.xlu1 %v19161_v21  ;;  %19211 = vst [vmem:[#allocation118_spill] sm:$0xff] %v17228_v60 }
0x25ad   : > { %9193 = vperm.xlu0 %12835, %v16583_v24   ;;  %8964 = vperm.xlu1 %12704, %v16559_v32  }
0x25af   : > { %v17218_v31 = vpop.permute.xlu1 %8668 }
0x25b0   : > { %19208 = vst [vmem:[#allocation115_spill] sm:$0xff] %v17218_v31  ;;  %v17238_v31 = vpop.permute.xlu0 %9248 }
0x25b1   : > { %12836 = vset.pattern.permute.xlu0 %v19128_v14  ;;  %12706 = vset.pattern.permute.xlu1 %v19163_v2  ;;  %19213 = vst [vmem:[#allocation120_spill] sm:$0xff] %v17238_v31 }
0x25b2   : > { %9264 = vperm.xlu0 %12836, %v16583_v24   ;;  %9106 = vperm.xlu1 %12706, %v16559_v32  }
0x25b4   : > { %v17226_v36 = vpop.permute.xlu1 %8739 }
0x25b5   : > { %19210 = vst [vmem:[#allocation117_spill] sm:$0xff] %v17226_v36 }
0x25b6   : > { %12838 = vset.pattern.permute.xlu0 %v19173_v17  ;;  %12707 = vset.pattern.permute.xlu1 %v19166_v39 }
0x25b7   : > { %9406 = vperm.xlu0 %12838, %v16583_v24   ;;  %9177 = vperm.xlu1 %12707, %v16559_v32  }
0x25b9   : > { %v17234_v22 = vpop.permute.xlu1 %8881 }
0x25ba   : > { %19212 = vst [vmem:[#allocation119_spill] sm:$0xff] %v17234_v22  ;;  %v17248_v22 = vpop.permute.xlu0 %9390 }
0x25bb   : > { %12840 = vset.pattern.permute.xlu0 %v19104_v6  ;;  %12709 = vset.pattern.permute.xlu1 %v19170_v45  ;;  %19215 = vst [vmem:[#allocation122_spill] sm:$0xff] %v17248_v22 }
0x25bc   : > { %7342 = vperm.xlu0 %12840, %v16586_v7   ;;  %9319 = vperm.xlu1 %12709, %v16559_v32  }
0x25be   : > { %v17242_v60 = vpop.permute.xlu1 %8952  ;;  %v17256_v31 = vpop.permute.xlu0 %7469 }
0x25bf   : > { %19214 = vst [vmem:[#allocation121_spill] sm:$0xff] %v17242_v60 }
0x25c0   : > { %12842 = vset.pattern.permute.xlu0 %v19111_v33  ;;  %12711 = vset.pattern.permute.xlu1 %v19189_v28 }
0x25c1   : > { %7485 = vperm.xlu0 %12842, %v16586_v7   ;;  %9461 = vperm.xlu1 %12711, %v16559_v32  }
0x25c3   : > { %v17250_v36 = vpop.permute.xlu1 %9094 }
0x25c4   : > { %19216 = vst [vmem:[#allocation123_spill] sm:$0xff] %v17250_v36  ;;  %v17266_v36 = vpop.permute.xlu0 %7611 }
0x25c5   : > { %12844 = vset.pattern.permute.xlu0 %v19119_v26  ;;  %12712 = vset.pattern.permute.xlu1 %v19157_v41  ;;  %19219 = vst [vmem:[#allocation126_spill] sm:$0xff] %v17266_v36 }
0x25c6   : > { %7627 = vperm.xlu0 %12844, %v16586_v7   ;;  %9532 = vperm.xlu1 %12712, %v16559_v32  }
0x25c8   : > { %v17258_v60 = vpop.permute.xlu1 %9165 }
0x25c9   : > { %19217 = vst [vmem:[#allocation124_spill] sm:$0xff] %v17258_v60  ;;  %v17274_v60 = vpop.permute.xlu0 %7753 }
0x25ca   : > { %12846 = vset.pattern.permute.xlu0 %v19103_v59  ;;  %12713 = vset.pattern.permute.xlu1 %v19104_v6  ;;  %19221 = vst [vmem:[#allocation128_spill] sm:$0xff] %v17274_v60 }
0x25cb   : > { %7769 = vperm.xlu0 %12846, %v16586_v7   ;;  %7322 = vperm.xlu1 %12713, %v16562_v3  }
0x25cd   : > { %v17264_v22 = vpop.permute.xlu1 %9307 }
0x25ce   : > { %19218 = vst [vmem:[#allocation125_spill] sm:$0xff] %v17264_v22 }
0x25cf   : > { %12849 = vset.pattern.permute.xlu0 %v19106_v35  ;;  %12714 = vset.pattern.permute.xlu1 %v19107_v25  ;;  %v17284_v35 = vpop.permute.xlu0 %7966 }
0x25d0   : > { %7982 = vperm.xlu0 %12849, %v16586_v7   ;;  %7398 = vperm.xlu1 %12714, %v16562_v3   ;;  %19223 = vst [vmem:[#allocation130_spill] sm:$0xff] %v17284_v35 }
0x25d2   : > { %v17272_v32 = vpop.permute.xlu1 %9378 }
0x25d3   : > { %19220 = vst [vmem:[#allocation127_spill] sm:$0xff] %v17272_v32 }
0x25d4   : > { %12852 = vset.pattern.permute.xlu0 %v19110_v11  ;;  %12716 = vset.pattern.permute.xlu1 %v19115_v12  ;;  %v17294_v11 = vpop.permute.xlu0 %8179 }
0x25d5   : > { %8195 = vperm.xlu0 %12852, %v16586_v7   ;;  %7540 = vperm.xlu1 %12716, %v16562_v3   ;;  %19224 = vst [vmem:[#allocation131_spill] sm:$0xff] %v17294_v11 }
0x25d7   : > { %v17280_v22 = vpop.permute.xlu1 %9520 }
0x25d8   : > { %19222 = vst [vmem:[#allocation129_spill] sm:$0xff] %v17280_v22  ;;  %v17302_v22 = vpop.permute.xlu0 %8392 }
0x25d9   : > { %12855 = vset.pattern.permute.xlu0 %v19114_v44  ;;  %12718 = vset.pattern.permute.xlu1 %v19123_v43  ;;  %19226 = vst [vmem:[#allocation133_spill] sm:$0xff] %v17302_v22 }
0x25da   : > { %8408 = vperm.xlu0 %12855, %v16586_v7   ;;  %7682 = vperm.xlu1 %12718, %v16562_v3  }
0x25dc   : > { %v17288_v32 = vpop.permute.xlu1 %7327 }
0x25de   : > { %12858 = vset.pattern.permute.xlu0 %v19118_v48  ;;  %12720 = vset.pattern.permute.xlu1 %v19129_v62 }
0x25df   : > { %8621 = vperm.xlu0 %12858, %v16586_v7   ;;  %7824 = vperm.xlu1 %12720, %v16562_v3  }
0x25e1   : > { %v17296_v44 = vpop.permute.xlu1 %7473 }
0x25e2   : > { %19225 = vst [vmem:[#allocation132_spill] sm:$0xff] %v17296_v44 }
0x25e3   : > { %12861 = vset.pattern.permute.xlu0 %v19122_v38  ;;  %12721 = vset.pattern.permute.xlu1 %v19169_v63  ;;  %v17312_v38 = vpop.permute.xlu0 %8605 }
0x25e4   : > { %8834 = vperm.xlu0 %12861, %v16586_v7   ;;  %7895 = vperm.xlu1 %12721, %v16562_v3   ;;  %19229 = vst [vmem:[#allocation136_spill] sm:$0xff] %v17312_v38 }
0x25e6   : > { %v17304_v48 = vpop.permute.xlu1 %7615 }
0x25e7   : > { %19227 = vst [vmem:[#allocation134_spill] sm:$0xff] %v17304_v48 }
0x25e8   : > { %12864 = vset.pattern.permute.xlu0 %v19126_v0  ;;  %12723 = vset.pattern.permute.xlu1 %v19132_v4  ;;  %v17320_v0 = vpop.permute.xlu0 %8818 }
0x25e9   : > { %9047 = vperm.xlu0 %12864, %v16586_v7   ;;  %8037 = vperm.xlu1 %12723, %v16562_v3   ;;  %19231 = vst [vmem:[#allocation138_spill] sm:$0xff] %v17320_v0 }
0x25eb   : > { %v17310_v11 = vpop.permute.xlu1 %7757 }
0x25ec   : > { %19228 = vst [vmem:[#allocation135_spill] sm:$0xff] %v17310_v11  ;;  %v17330_v35 = vpop.permute.xlu0 %9031 }
0x25ed   : > { %12866 = vset.pattern.permute.xlu0 %v19166_v39  ;;  %12724 = vset.pattern.permute.xlu1 %v19135_v5  ;;  %19233 = vst [vmem:[#allocation140_spill] sm:$0xff] %v17330_v35 }
0x25ee   : > { %9189 = vperm.xlu0 %12866, %v16586_v7   ;;  %8108 = vperm.xlu1 %12724, %v16562_v3  }
0x25f0   : > { %v17318_v22 = vpop.permute.xlu1 %7828 }
0x25f1   : > { %19230 = vst [vmem:[#allocation137_spill] sm:$0xff] %v17318_v22 }
0x25f2   : > { %12869 = vset.pattern.permute.xlu0 %v19173_v17  ;;  %12726 = vset.pattern.permute.xlu1 %v19140_v20 }
0x25f3   : > { %9402 = vperm.xlu0 %12869, %v16586_v7   ;;  %8250 = vperm.xlu1 %12726, %v16562_v3  }
0x25f5   : > { %v17326_v38 = vpop.permute.xlu1 %7899 }
0x25f6   : > { %19232 = vst [vmem:[#allocation139_spill] sm:$0xff] %v17326_v38 }
0x25f7   : > { %12872 = vset.pattern.permute.xlu0 %v19157_v41  ;;  %12727 = vset.pattern.permute.xlu1 %v19143_v18 }
0x25f8   : > { %9548 = vperm.xlu0 %12872, %v16583_v24   ;;  %8321 = vperm.xlu1 %12727, %v16562_v3  }
0x25fa   : > { %v17334_v0 = vpop.permute.xlu1 %7970 }
0x25fb   : > { %19234 = vst [vmem:[#allocation141_spill] sm:$0xff] %v17334_v0 }
0x25fc   : > { %12729 = vset.pattern.permute.xlu1 %v19145_v50 }
0x25fd   : > { %8463 = vperm.xlu1 %12729, %v16562_v3  }
0x25ff   : > { %v17338_v7 = vpop.permute.xlu1 %8041 }
0x2600   : > { %19235 = vst [vmem:[#allocation142_spill] sm:$0xff] %v17338_v7 }
0x2601   : > { %12730 = vset.pattern.permute.xlu1 %v19148_v29 }
0x2602   : > { %8534 = vperm.xlu1 %12730, %v16562_v3  }
0x2604   : > { %v17342_v38 = vpop.permute.xlu1 %8112 }
0x2605   : > { %19236 = vst [vmem:[#allocation143_spill] sm:$0xff] %v17342_v38 }
0x2606   : > { %12732 = vset.pattern.permute.xlu1 %v19151_v1 }
0x2607   : > { %8676 = vperm.xlu1 %12732, %v16562_v3  }
0x2609   : > { %v17346_v35 = vpop.permute.xlu1 %8254 }
0x260a   : > { %19237 = vst [vmem:[#allocation144_spill] sm:$0xff] %v17346_v35 }
0x260b   : > { %12733 = vset.pattern.permute.xlu1 %v19154_v16 }
0x260c   : > { %8747 = vperm.xlu1 %12733, %v16562_v3  }
0x260e   : > { %v17350_v0 = vpop.permute.xlu1 %8325 }
0x260f   : > { %19238 = vst [vmem:[#allocation145_spill] sm:$0xff] %v17350_v0 }
0x2610   : > { %12735 = vset.pattern.permute.xlu1 %v19158_v55 }
0x2611   : > { %8889 = vperm.xlu1 %12735, %v16562_v3  }
0x2613   : > { %v17354_v7 = vpop.permute.xlu1 %8467 }
0x2614   : > { %19239 = vst [vmem:[#allocation146_spill] sm:$0xff] %v17354_v7 }
0x2615   : > { %12736 = vset.pattern.permute.xlu1 %v19161_v21 }
0x2616   : > { %8960 = vperm.xlu1 %12736, %v16562_v3  }
0x2618   : > { %v17358_v38 = vpop.permute.xlu1 %8538 }
0x2619   : > { %19240 = vst [vmem:[#allocation147_spill] sm:$0xff] %v17358_v38 }
0x261a   : > { %12738 = vset.pattern.permute.xlu1 %v19163_v2 }
0x261b   : > { %9102 = vperm.xlu1 %12738, %v16562_v3  }
0x261d   : > { %v17362_v35 = vpop.permute.xlu1 %8680 }
0x261e   : > { %19241 = vst [vmem:[#allocation148_spill] sm:$0xff] %v17362_v35 }
0x261f   : > { %12739 = vset.pattern.permute.xlu1 %v19166_v39 }
0x2620   : > { %9173 = vperm.xlu1 %12739, %v16562_v3  }
0x2622   : > { %v17366_v0 = vpop.permute.xlu1 %8751 }
0x2623   : > { %19242 = vst [vmem:[#allocation149_spill] sm:$0xff] %v17366_v0 }
0x2624   : > { %12741 = vset.pattern.permute.xlu1 %v19170_v45 }
0x2625   : > { %9315 = vperm.xlu1 %12741, %v16562_v3  }
0x2627   : > { %v17370_v7 = vpop.permute.xlu1 %8893 }
0x2628   : > { %19243 = vst [vmem:[#allocation150_spill] sm:$0xff] %v17370_v7 }
0x2629   : > { %12742 = vset.pattern.permute.xlu1 %v19173_v17 }
0x262a   : > { %9386 = vperm.xlu1 %12742, %v16562_v3  }
0x262c   : > { %v17374_v38 = vpop.permute.xlu1 %8964 }
0x262d   : > { %19244 = vst [vmem:[#allocation151_spill] sm:$0xff] %v17374_v38 }
0x262e   : > { %12743 = vset.pattern.permute.xlu1 %v19189_v28 }
0x262f   : > { %9457 = vperm.xlu1 %12743, %v16562_v3  }
0x2631   : > { %v17378_v35 = vpop.permute.xlu1 %9106 }
0x2632   : > { %19245 = vst [vmem:[#allocation152_spill] sm:$0xff] %v17378_v35 }
0x2633   : > { %12744 = vset.pattern.permute.xlu1 %v19157_v41 }
0x2634   : > { %9528 = vperm.xlu1 %12744, %v16562_v3  }
0x2636   : > { %v17382_v0 = vpop.permute.xlu1 %9177 }
0x2637   : > { %19246 = vst [vmem:[#allocation153_spill] sm:$0xff] %v17382_v0 }
0x2638   : > { %12745 = vset.pattern.permute.xlu1 %v19104_v6 }
0x2639   : > { %7337 = vperm.xlu1 %12745, %v16569_v46  }
0x263b   : > { %v17386_v7 = vpop.permute.xlu1 %9319 }
0x263c   : > { %19247 = vst [vmem:[#allocation154_spill] sm:$0xff] %v17386_v7 }
0x263d   : > { %12747 = vset.pattern.permute.xlu1 %v19111_v33 }
0x263e   : > { %7481 = vperm.xlu1 %12747, %v16569_v46  }
0x2640   : > { %v17390_v38 = vpop.permute.xlu1 %9461 }
0x2641   : > { %19248 = vst [vmem:[#allocation155_spill] sm:$0xff] %v17390_v38 }
0x2642   : > { %12749 = vset.pattern.permute.xlu1 %v19119_v26 }
0x2643   : > { %7623 = vperm.xlu1 %12749, %v16569_v46  }
0x2645   : > { %v17394_v35 = vpop.permute.xlu1 %9532 }
0x2646   : > { %19249 = vst [vmem:[#allocation156_spill] sm:$0xff] %v17394_v35 }
0x2647   : > { %12751 = vset.pattern.permute.xlu1 %v19103_v59 }
0x2648   : > { %7765 = vperm.xlu1 %12751, %v16569_v46  }
0x264a   : > { %v17398_v3 = vpop.permute.xlu1 %7322 }
0x264c   : > { %12752 = vset.pattern.permute.xlu1 %v19129_v62 }
0x264d   : > { %7836 = vperm.xlu1 %12752, %v16569_v46  }
0x264f   : > { %v17402_v7 = vpop.permute.xlu1 %7398 }
0x2651   : > { %12753 = vset.pattern.permute.xlu1 %v19169_v63 }
0x2652   : > { %7907 = vperm.xlu1 %12753, %v16569_v46  }
0x2654   : > { %v17406_v38 = vpop.permute.xlu1 %7540 }
0x2656   : > { %12755 = vset.pattern.permute.xlu1 %v19132_v4 }
0x2657   : > { %8049 = vperm.xlu1 %12755, %v16569_v46  }
0x2659   : > { %v17410_v35 = vpop.permute.xlu1 %7682 }
0x265a   : > { %19250 = vst [vmem:[#allocation157_spill] sm:$0xff] %v17410_v35  ;;  %v10090_v35 = vld [vmem:[%s18845_s16 + $0x178] sm:$0xff] }
0x265b   : > { %12756 = vset.pattern.permute.xlu1 %v19135_v5 }
0x265c   : > { %8120 = vperm.xlu1 %12756, %v16569_v46  }
0x265e   : > { %v17414_v0 = vpop.permute.xlu1 %7824 }
0x265f   : > { %19251 = vst [vmem:[#allocation158_spill] sm:$0xff] %v17414_v0 }
0x2660   : > { %12758 = vset.pattern.permute.xlu1 %v19140_v20 }
0x2661   : > { %8262 = vperm.xlu1 %12758, %v16569_v46  }
0x2663   : > { %v17418_v22 = vpop.permute.xlu1 %7895 }
0x2664   : > { %19252 = vst [vmem:[#allocation159_spill] sm:$0xff] %v17418_v22 }
0x2665   : > { %12759 = vset.pattern.permute.xlu1 %v19143_v18 }
0x2666   : > { %8333 = vperm.xlu1 %12759, %v16569_v46  }
0x2668   : > { %v17422_v11 = vpop.permute.xlu1 %8037 }
0x2669   : > { %19253 = vst [vmem:[#allocation160_spill] sm:$0xff] %v17422_v11 }
0x266a   : > { %12761 = vset.pattern.permute.xlu1 %v19145_v50 }
0x266b   : > { %8475 = vperm.xlu1 %12761, %v16569_v46  }
0x266d   : > { %v17426_v60 = vpop.permute.xlu1 %8108 }
0x266e   : > { %19254 = vst [vmem:[#allocation161_spill] sm:$0xff] %v17426_v60 }
0x266f   : > { %12762 = vset.pattern.permute.xlu1 %v19148_v29 }
0x2670   : > { %8546 = vperm.xlu1 %12762, %v16569_v46  }
0x2672   : > { %v17430_v0 = vpop.permute.xlu1 %8250 }
0x2673   : > { %19255 = vst [vmem:[#allocation162_spill] sm:$0xff] %v17430_v0 }
0x2674   : > { %12764 = vset.pattern.permute.xlu1 %v19151_v1 }
0x2675   : > { %8688 = vperm.xlu1 %12764, %v16569_v46  }
0x2677   : > { %v17434_v22 = vpop.permute.xlu1 %8321 }
0x2678   : > { %19256 = vst [vmem:[#allocation163_spill] sm:$0xff] %v17434_v22 }
0x2679   : > { %12765 = vset.pattern.permute.xlu1 %v19154_v16 }
0x267a   : > { %8759 = vperm.xlu1 %12765, %v16569_v46  }
0x267c   : > { %v17438_v11 = vpop.permute.xlu1 %8463 }
0x267d   : > { %19257 = vst [vmem:[#allocation164_spill] sm:$0xff] %v17438_v11 }
0x267e   : > { %12767 = vset.pattern.permute.xlu1 %v19158_v55 }
0x267f   : > { %8901 = vperm.xlu1 %12767, %v16569_v46  }
0x2681   : > { %v17442_v60 = vpop.permute.xlu1 %8534 }
0x2682   : > { %19258 = vst [vmem:[#allocation165_spill] sm:$0xff] %v17442_v60 }
0x2683   : > { %12768 = vset.pattern.permute.xlu1 %v19161_v21 }
0x2684   : > { %8972 = vperm.xlu1 %12768, %v16569_v46  }
0x2686   : > { %v17446_v0 = vpop.permute.xlu1 %8676 }
0x2687   : > { %19259 = vst [vmem:[#allocation166_spill] sm:$0xff] %v17446_v0 }
0x2688   : > { %12770 = vset.pattern.permute.xlu1 %v19163_v2 }
0x2689   : > { %9114 = vperm.xlu1 %12770, %v16569_v46  }
0x268b   : > { %v17450_v22 = vpop.permute.xlu1 %8747 }
0x268c   : > { %19260 = vst [vmem:[#allocation167_spill] sm:$0xff] %v17450_v22 }
0x268d   : > { %12771 = vset.pattern.permute.xlu1 %v19166_v39 }
0x268e   : > { %9185 = vperm.xlu1 %12771, %v16569_v46  }
0x2690   : > { %v17454_v11 = vpop.permute.xlu1 %8889 }
0x2691   : > { %19261 = vst [vmem:[#allocation168_spill] sm:$0xff] %v17454_v11 }
0x2692   : > { %12772 = vset.pattern.permute.xlu1 %v19128_v14 }
0x2693   : > { %9256 = vperm.xlu1 %12772, %v16569_v46  }
0x2695   : > { %v17458_v60 = vpop.permute.xlu1 %8960 }
0x2696   : > { %19262 = vst [vmem:[#allocation169_spill] sm:$0xff] %v17458_v60 }
0x2697   : > { %12773 = vset.pattern.permute.xlu1 %v19170_v45 }
0x2698   : > { %9327 = vperm.xlu1 %12773, %v16569_v46  }
0x269a   : > { %v17462_v0 = vpop.permute.xlu1 %9102 }
0x269b   : > { %19263 = vst [vmem:[#allocation170_spill] sm:$0xff] %v17462_v0  ;;  %v17480_v0 = vpop.permute.xlu0 %9244 }
0x269c   : > { %12774 = vset.pattern.permute.xlu1 %v19173_v17  ;;  %19268 = vst [vmem:[#allocation175_spill] sm:$0xff] %v17480_v0 }
0x269d   : > { %9398 = vperm.xlu1 %12774, %v16569_v46  }
0x269f   : > { %v17466_v22 = vpop.permute.xlu1 %9173 }
0x26a0   : > { %19264 = vst [vmem:[#allocation171_spill] sm:$0xff] %v17466_v22 }
0x26a1   : > { %12775 = vset.pattern.permute.xlu1 %v19189_v28 }
0x26a2   : > { %9469 = vperm.xlu1 %12775, %v16569_v46  }
0x26a4   : > { %v17470_v14 = vpop.permute.xlu1 %9315 }
0x26a5   : > { %19265 = vst [vmem:[#allocation172_spill] sm:$0xff] %v17470_v14  ;;  %v7411_v14 = vpop.permute.xlu0 %7410 }
0x26a6   : > { %12777 = vset.pattern.permute.xlu1 %v19104_v6 }
0x26a7   : > { %7332 = vperm.xlu1 %12777, %v16574_v10  }
0x26a9   : > { %v17474_v60 = vpop.permute.xlu1 %9386 }
0x26aa   : > { %19266 = vst [vmem:[#allocation173_spill] sm:$0xff] %v17474_v60  ;;  %v7297_v60 = vld [vmem:[%s18845_s16 + $0x38] sm:$0xff] }
0x26ab   : > { %12778 = vset.pattern.permute.xlu1 %v19107_v25  ;;  %v10080_v25 = vld [vmem:[%s18845_s16 + $0x128] sm:$0xff] }
0x26ac   : > { %7406 = vperm.xlu1 %12778, %v16574_v10  }
0x26ae   : > { %v17478_v17 = vpop.permute.xlu1 %9457 }
0x26af   : > { %19267 = vst [vmem:[#allocation174_spill] sm:$0xff] %v17478_v17  ;;  %v10060_v17 = vld [vmem:[%s18845_s16 + $0x88] sm:$0xff] }
0x26b0   : > { %12780 = vset.pattern.permute.xlu1 %v19115_v12  ;;  %v7553_v12 = vpop.permute.xlu0 %7552 }
0x26b1   : > { %7548 = vperm.xlu1 %12780, %v16574_v10  }
0x26b3   : > { %v17484_v46 = vpop.permute.xlu1 %9528 }
0x26b4   : > { %19269 = vst [vmem:[#allocation176_spill] sm:$0xff] %v17484_v46  ;;  %v10070_v46 = vld [vmem:[%s18845_s16 + $0xd8] sm:$0xff] }
0x26b5   : > { %12782 = vset.pattern.permute.xlu1 %v19123_v43  ;;  %v7428_v43 = vmul.f32 %v10060_v17, %v7411_v14  ;;  %v10100_v14 = vld [vmem:[%s18845_s16 + $0x1c8] sm:$0xff]  ;;  %v7695_v17 = vpop.permute.xlu0 %7694 }
0x26b6   : > { %7690 = vperm.xlu1 %12782, %v16574_v10  }
0x26b8   : > { %v7338_v22 = vpop.permute.xlu1 %7337 }
0x26b9   : > { %v7357_v0 = vmul.f32 %v7338_v22, %v7297_v60  ;;  %v7570_v22 = vmul.f32 %v10080_v25, %v7553_v12 }
0x26ba   : > { %12784 = vset.pattern.permute.xlu1 %v19129_v62 }
0x26bb   : > { %7832 = vperm.xlu1 %12784, %v16574_v10   ;;  %v7438_v11 = vadd.f32 %v7428_v43, %v7357_v0 }
0x26bd   : > { %v7482_v28 = vpop.permute.xlu1 %7481 }
0x26be   : > { %v7499_v48 = vmul.f32 %v10070_v46, %v7482_v28  ;;  %v7712_v28 = vmul.f32 %v10100_v14, %v7695_v17  ;;  %v10140_v46 = vld [vmem:[%s18845_s16 + $0x308] sm:$0xff] }
0x26bf   : > { %12787 = vset.pattern.permute.xlu1 %v19132_v4 }
0x26c0   : > { %v7509_v60 = vadd.f32 %v7499_v48, %v7438_v11  ;;  %8045 = vperm.xlu1 %12787, %v16574_v10   ;;  %v10110_v11 = vld [vmem:[%s18845_s16 + $0x218] sm:$0xff] }
0x26c2   : > { %v7580_v36 = vadd.f32 %v7570_v22, %v7509_v60  ;;  %v7624_v44 = vpop.permute.xlu1 %7623  ;;  %v7979_v22 = vpop.permute.xlu0 %7978 }
0x26c3   : > { %v7641_v63 = vmul.f32 %v10090_v35, %v7624_v44  ;;  %v10120_v35 = vld [vmem:[%s18845_s16 + $0x268] sm:$0xff] }
0x26c4   : > { %12788 = vset.pattern.permute.xlu1 %v19135_v5 }
0x26c5   : > { %v7651_v43 = vadd.f32 %v7641_v63, %v7580_v36  ;;  %8116 = vperm.xlu1 %12788, %v16574_v10   ;;  %v10130_v36 = vld [vmem:[%s18845_s16 + $0x2b8] sm:$0xff] }
0x26c7   : > { %v7722_v25 = vadd.f32 %v7712_v28, %v7651_v43  ;;  %v7766_v12 = vpop.permute.xlu1 %7765  ;;  %v10054_v28 = vld [vmem:[%s18845_s16 + $0x58] sm:$0xff]  ;;  %v7996_v43 = vmul.f32 %v10140_v46, %v7979_v22  ;;  %v10064_v46 = vld [vmem:[%s18845_s16 + $0xa8] sm:$0xff] }
0x26c8   : > { %v7783_v44 = vmul.f32 %v10110_v11, %v7766_v12  ;;  %v7291_v11 = vld [vmem:[%s18845_s16 + $0x8] sm:$0xff] }
0x26c9   : > { %12790 = vset.pattern.permute.xlu1 %v19140_v20 }
0x26ca   : > { %8258 = vperm.xlu1 %12790, %v16574_v10   ;;  %v7793_v63 = vadd.f32 %v7783_v44, %v7722_v25  ;;  %v10150_v25 = vld [vmem:[%s18845_s16 + $0x358] sm:$0xff] }
0x26cc   : > { %v7837_v48 = vpop.permute.xlu1 %7836 }
0x26cd   : > { %v7854_v0 = vmul.f32 %v10120_v35, %v7837_v48  ;;  %v7422_v48 = vmul.f32 %v10054_v28, %v16682_v37  ;;  %v10170_v37 = vld [vmem:[%s18845_s16 + $0x3f8] sm:$0xff] }
0x26ce   : > { %12791 = vset.pattern.permute.xlu1 %v19143_v18 }
0x26cf   : > { %8329 = vperm.xlu1 %12791, %v16574_v10   ;;  %v7864_v14 = vadd.f32 %v7854_v0, %v7793_v63  ;;  %v10160_v63 = vld [vmem:[%s18845_s16 + $0x3a8] sm:$0xff] }
0x26d1   : > { %v7908_v60 = vpop.permute.xlu1 %7907 }
0x26d2   : > { %v7925_v17 = vmul.f32 %v10130_v36, %v7908_v60  ;;  %v7351_v36 = vmul.f32 %v16676_v52, %v7291_v11  ;;  %v8192_v60 = vpop.permute.xlu0 %8191  ;;  %v10074_v52 = vld [vmem:[%s18845_s16 + $0xf8] sm:$0xff] }
0x26d3   : > { %12793 = vset.pattern.permute.xlu1 %v19145_v50 }
0x26d4   : > { %v7935_v12 = vadd.f32 %v7925_v17, %v7864_v14  ;;  %8471 = vperm.xlu1 %12793, %v16574_v10   ;;  %v7432_v22 = vadd.f32 %v7422_v48, %v7351_v36  ;;  %v10180_v48 = vld [vmem:[%s18845_s16 + $0x448] sm:$0xff] }
0x26d6   : > { %v8006_v35 = vadd.f32 %v7996_v43, %v7935_v12  ;;  %v8050_v44 = vpop.permute.xlu1 %8049  ;;  %v7493_v43 = vmul.f32 %v10064_v46, %v16742_v51  ;;  %v8209_v12 = vmul.f32 %v10170_v37, %v8192_v60 }
0x26d7   : > { %v8067_v0 = vmul.f32 %v10150_v25, %v8050_v44  ;;  %v7564_v44 = vmul.f32 %v10074_v52, %v16688_v42  ;;  %v10190_v42 = vld [vmem:[%s18845_s16 + $0x498] sm:$0xff] }
0x26d8   : > { %12794 = vset.pattern.permute.xlu1 %v19148_v29  ;;  %v7503_v11 = vadd.f32 %v7493_v43, %v7432_v22  ;;  %v10200_v22 = vld [vmem:[%s18845_s16 + $0x4e8] sm:$0xff] }
0x26d9   : > { %8542 = vperm.xlu1 %12794, %v16574_v10   ;;  %v8077_v17 = vadd.f32 %v8067_v0, %v8006_v35  ;;  %v10084_v35 = vld [vmem:[%s18845_s16 + $0x148] sm:$0xff] }
0x26da   : > { %v7574_v0 = vadd.f32 %v7564_v44, %v7503_v11  ;;  %v7635_v46 = vmul.f32 %v10084_v35, %v16750_v40  ;;  %v10210_v40 = vld [vmem:[%s18845_s16 + $0x538] sm:$0xff]  ;;  %v10220_v35 = vld [vmem:[%s18845_s16 + $0x588] sm:$0xff] }
0x26db   : > { %v8121_v14 = vpop.permute.xlu1 %8120 }
0x26dc   : > { %v8138_v28 = vmul.f32 %v10160_v63, %v8121_v14  ;;  %v10094_v63 = vld [vmem:[%s18845_s16 + $0x198] sm:$0xff]  ;;  %v7645_v52 = vadd.f32 %v7635_v46, %v7574_v0 }
0x26dd   : > { %12796 = vset.pattern.permute.xlu1 %v19151_v1 }
0x26de   : > { %v8148_v25 = vadd.f32 %v8138_v28, %v8077_v17  ;;  %8684 = vperm.xlu1 %12796, %v16574_v10   ;;  %v7706_v17 = vmul.f32 %v10094_v63, %v16694_v8  ;;  %v10114_v8 = vld [vmem:[%s18845_s16 + $0x238] sm:$0xff] }
0x26df   : > { %v10230_v63 = vld [vmem:[%s18845_s16 + $0x5d8] sm:$0xff] }
0x26e0   : > { %v8219_v36 = vadd.f32 %v8209_v12, %v8148_v25  ;;  %v8263_v29 = vpop.permute.xlu1 %8262  ;;  %v10104_v12 = vld [vmem:[%s18845_s16 + $0x1e8] sm:$0xff]  ;;  %v7716_v44 = vadd.f32 %v7706_v17, %v7645_v52 }
0x26e1   : > { %v8280_v51 = vmul.f32 %v10180_v48, %v8263_v29  ;;  %v8405_v29 = vpop.permute.xlu0 %8404  ;;  %v10240_v17 = vld [vmem:[%s18845_s16 + $0x628] sm:$0xff] }
0x26e2   : > { %12797 = vset.pattern.permute.xlu1 %v19154_v16  ;;  %v8422_v28 = vmul.f32 %v10200_v22, %v8405_v29 }
0x26e3   : > { %8755 = vperm.xlu1 %12797, %v16574_v10   ;;  %v8290_v60 = vadd.f32 %v8280_v51, %v8219_v36  ;;  %v7777_v36 = vmul.f32 %v10104_v12, %v16760_v53  ;;  %v10124_v51 = vld [vmem:[%s18845_s16 + $0x288] sm:$0xff] }
0x26e5   : > { %v8334_v37 = vpop.permute.xlu1 %8333  ;;  %v7787_v0 = vadd.f32 %v7777_v36, %v7716_v44  ;;  %v8618_v46 = vpop.permute.xlu0 %8617 }
0x26e6   : > { %v8351_v14 = vmul.f32 %v10190_v42, %v8334_v37  ;;  %v7848_v42 = vmul.f32 %v10114_v8, %v16700_v58  ;;  %v7919_v37 = vmul.f32 %v10124_v51, %v16706_v13  ;;  %v7290_v13 = vld [vmem:[%s18845_s16] sm:$0xff]  ;;  %v10144_v51 = vld [vmem:[%s18845_s16 + $0x328] sm:$0xff] }
0x26e7   : > { %12799 = vset.pattern.permute.xlu1 %v19158_v55 }
0x26e8   : > { %v8361_v43 = vadd.f32 %v8351_v14, %v8290_v60  ;;  %8897 = vperm.xlu1 %12799, %v16574_v10   ;;  %v10053_v60 = vld [vmem:[%s18845_s16 + $0x50] sm:$0xff]  ;;  %v8635_v14 = vmul.f32 %v10230_v63, %v8618_v46  ;;  %v7858_v58 = vadd.f32 %v7848_v42, %v7787_v0  ;;  %v8061_v46 = vmul.f32 %v10144_v51, %v16778_v30  ;;  %v10270_v30 = vld [vmem:[%s18845_s16 + $0x718] sm:$0xff] }
0x26ea   : > { %v8432_v25 = vadd.f32 %v8422_v28, %v8361_v43  ;;  %v8476_v11 = vpop.permute.xlu1 %8475  ;;  %v10134_v28 = vld [vmem:[%s18845_s16 + $0x2d8] sm:$0xff]  ;;  %v10063_v43 = vld [vmem:[%s18845_s16 + $0xa0] sm:$0xff] }
0x26eb   : > { %v8493_v48 = vmul.f32 %v10210_v40, %v8476_v11  ;;  %v7421_v11 = vmul.f32 %v10053_v60, %v16870_v19  ;;  %v7990_v8 = vmul.f32 %v10134_v28, %v16768_v27  ;;  %v7492_v36 = vmul.f32 %v10063_v43, %v16804_v47  ;;  %v8831_v27 = vpop.permute.xlu0 %8830  ;;  %v10073_v47 = vld [vmem:[%s18845_s16 + $0xf0] sm:$0xff] }
0x26ec   : > { %12800 = vset.pattern.permute.xlu1 %v19161_v21 }
0x26ed   : > { %8968 = vperm.xlu1 %12800, %v16574_v10   ;;  %v8503_v53 = vadd.f32 %v8493_v48, %v8432_v25  ;;  %v7929_v25 = vadd.f32 %v7919_v37, %v7858_v58  ;;  %v7350_v48 = vmul.f32 %v16860_v9, %v7290_v13 }
0x26ef   : > { %v8547_v22 = vpop.permute.xlu1 %8546  ;;  %v8000_v19 = vadd.f32 %v7990_v8, %v7929_v25  ;;  %v7431_v0 = vadd.f32 %v7421_v11, %v7350_v48  ;;  %v9044_v8 = vpop.permute.xlu0 %9043 }
0x26f0   : > { %v8564_v29 = vmul.f32 %v10220_v35, %v8547_v22  ;;  %v10250_v35 = vld [vmem:[%s18845_s16 + $0x678] sm:$0xff] }
0x26f1   : > { %12802 = vset.pattern.permute.xlu1 %v19163_v2  ;;  %v7502_v22 = vadd.f32 %v7492_v36, %v7431_v0  ;;  %v10103_v36 = vld [vmem:[%s18845_s16 + $0x1e0] sm:$0xff] }
0x26f2   : > { %v8574_v52 = vadd.f32 %v8564_v29, %v8503_v53  ;;  %9110 = vperm.xlu1 %12802, %v16574_v10   ;;  %v10154_v53 = vld [vmem:[%s18845_s16 + $0x378] sm:$0xff]  ;;  %v10083_v29 = vld [vmem:[%s18845_s16 + $0x140] sm:$0xff] }
0x26f3   : > { %v8132_v28 = vmul.f32 %v10154_v53, %v16788_v49  ;;  %v7634_v43 = vmul.f32 %v10083_v29, %v16812_v15  ;;  %v10093_v49 = vld [vmem:[%s18845_s16 + $0x190] sm:$0xff]  ;;  %v10056_v53 = vld [vmem:[%s18845_s16 + $0x68] sm:$0xff]  ;;  %v10066_v29 = vld [vmem:[%s18845_s16 + $0xb8] sm:$0xff] }
0x26f4   : > { %v8645_v40 = vadd.f32 %v8635_v14, %v8574_v52  ;;  %v8689_v12 = vpop.permute.xlu1 %8688  ;;  %v8071_v14 = vadd.f32 %v8061_v46, %v8000_v19  ;;  %v7563_v52 = vmul.f32 %v10073_v47, %v16880_v61  ;;  %v10280_v61 = vld [vmem:[%s18845_s16 + $0x768] sm:$0xff]  ;;  %v7776_v47 = vmul.f32 %v10103_v36, %v16820_v54 }
0x26f5   : > { %v8706_v44 = vmul.f32 %v10240_v17, %v8689_v12  ;;  %v10076_v36 = vld [vmem:[%s18845_s16 + $0x108] sm:$0xff] }
0x26f6   : > { %12803 = vset.pattern.permute.xlu1 %v19166_v39  ;;  %v10260_v39 = vld [vmem:[%s18845_s16 + $0x6c8] sm:$0xff]  ;;  %v7573_v13 = vadd.f32 %v7563_v52, %v7502_v22  ;;  %v8142_v25 = vadd.f32 %v8132_v28, %v8071_v14  ;;  %v19272_v28 = vld [vmem:[#allocation58_spill] sm:$0xff] }
0x26f7   : > { %9181 = vperm.xlu1 %12803, %v16574_v10   ;;  %v8716_v42 = vadd.f32 %v8706_v44, %v8645_v40  ;;  %v8848_v37 = vmul.f32 %v10260_v39, %v8831_v27  ;;  %v10164_v40 = vld [vmem:[%s18845_s16 + $0x3c8] sm:$0xff]  ;;  %v10290_v44 = vld [vmem:[%s18845_s16 + $0x7b8] sm:$0xff] }
0x26f8   : > { %v8203_v15 = vmul.f32 %v10164_v40, %v16712_v57  ;;  %v7644_v11 = vadd.f32 %v7634_v43, %v7573_v13  ;;  %v7705_v57 = vmul.f32 %v10093_v49, %v16888_v56  ;;  %v9061_v0 = vmul.f32 %v10290_v44, %v9044_v8  ;;  %v10113_v56 = vld [vmem:[%s18845_s16 + $0x230] sm:$0xff]  ;;  %v19271_v52 = vld [vmem:[#allocation39_spill] sm:$0xff] }
0x26f9   : > { %v8760_v9 = vpop.permute.xlu1 %8759  ;;  %v7424_v13 = vmul.f32 %v10056_v53, %v19272_v28  ;;  %v19273_v43 = vld [vmem:[#allocation53_spill] sm:$0xff] }
0x26fa   : > { %v8777_v63 = vmul.f32 %v10250_v35, %v8760_v9  ;;  %v8213_v19 = vadd.f32 %v8203_v15, %v8142_v25  ;;  %v7715_v9 = vadd.f32 %v7705_v57, %v7644_v11  ;;  %v7495_v40 = vmul.f32 %v10066_v29, %v19273_v43  ;;  %v10133_v49 = vld [vmem:[%s18845_s16 + $0x2d0] sm:$0xff]  ;;  %v10055_v57 = vld [vmem:[%s18845_s16 + $0x60] sm:$0xff] }
0x26fb   : > { %12805 = vset.pattern.permute.xlu1 %v19170_v45  ;;  %v19275_v44 = vld [vmem:[#allocation17_spill] sm:$0xff] }
0x26fc   : > { %v8787_v60 = vadd.f32 %v8777_v63, %v8716_v42  ;;  %9323 = vperm.xlu1 %12805, %v16574_v10   ;;  %v10184_v42 = vld [vmem:[%s18845_s16 + $0x468] sm:$0xff]  ;;  %v10065_v53 = vld [vmem:[%s18845_s16 + $0xb0] sm:$0xff] }
0x26fd   : > { %v8345_v54 = vmul.f32 %v10184_v42, %v16806_v23  ;;  %v7847_v23 = vmul.f32 %v10113_v56, %v19271_v52  ;;  %v7294_v42 = vld [vmem:[%s18845_s16 + $0x20] sm:$0xff]  ;;  %v19278_v56 = vld [vmem:[#allocation61_spill] sm:$0xff] }
0x26fe   : > { %v8858_v58 = vadd.f32 %v8848_v37, %v8787_v60  ;;  %v8902_v17 = vpop.permute.xlu1 %8901  ;;  %v10194_v37 = vld [vmem:[%s18845_s16 + $0x4b8] sm:$0xff]  ;;  %v19270_v60 = vld [vmem:[#allocation51_spill] sm:$0xff] }
0x26ff   : > { %v8919_v12 = vmul.f32 %v10270_v30, %v8902_v17  ;;  %v10123_v17 = vld [vmem:[%s18845_s16 + $0x280] sm:$0xff] }
0x2700   : > { %12808 = vset.pattern.permute.xlu1 %v19157_v41 }
0x2701   : > { %9536 = vperm.xlu1 %12808, %v16574_v10   ;;  %v10174_v10 = vld [vmem:[%s18845_s16 + $0x418] sm:$0xff]  ;;  %v8929_v35 = vadd.f32 %v8919_v12, %v8858_v58  ;;  %v10204_v58 = vld [vmem:[%s18845_s16 + $0x508] sm:$0xff] }
0x2702   : > { %v8274_v27 = vmul.f32 %v10174_v10, %v16796_v34  ;;  %v7786_v34 = vadd.f32 %v7776_v47, %v7715_v9  ;;  %v19274_v12 = vld [vmem:[#allocation20_spill] sm:$0xff]  ;;  %v8487_v8 = vmul.f32 %v10204_v58, %v19275_v44  ;;  %v10086_v47 = vld [vmem:[%s18845_s16 + $0x158] sm:$0xff] }
0x2703   : > { %v8973_v48 = vpop.permute.xlu1 %8972  ;;  %v8416_v25 = vmul.f32 %v10194_v37, %v19274_v12  ;;  %v19279_v37 = vld [vmem:[#allocation24_spill] sm:$0xff] }
0x2704   : > { %v8990_v51 = vmul.f32 %v10280_v61, %v8973_v48  ;;  %v8284_v22 = vadd.f32 %v8274_v27, %v8213_v19  ;;  %v7857_v61 = vadd.f32 %v7847_v23, %v7786_v34  ;;  %v19276_v48 = vld [vmem:[#allocation41_spill] sm:$0xff]  ;;  %v19277_v27 = vld [vmem:[#allocation26_spill] sm:$0xff]  ;;  %v19285_v44 = vld [vmem:[#allocation92_spill] sm:$0xff] }
0x2705   : > { %12809 = vset.pattern.permute.xlu1 %v19104_v6  ;;  %v7293_v6 = vld [vmem:[%s18845_s16 + $0x18] sm:$0xff]  ;;  %v7918_v10 = vmul.f32 %v10123_v17, %v19276_v48  ;;  %v7989_v9 = vmul.f32 %v10133_v49, %v19277_v27  ;;  %v7292_v34 = vld [vmem:[%s18845_s16 + $0x10] sm:$0xff]  ;;  %v10067_v49 = vld [vmem:[%s18845_s16 + $0xc0] sm:$0xff] }
0x2706   : > { %v9000_v39 = vadd.f32 %v8990_v51, %v8929_v35  ;;  %7347 = vperm.xlu1 %12809, %v16583_v24   ;;  %v7353_v14 = vmul.f32 %v19270_v60, %v7293_v6  ;;  %v10214_v35 = vld [vmem:[%s18845_s16 + $0x558] sm:$0xff]  ;;  %v10143_v51 = vld [vmem:[%s18845_s16 + $0x320] sm:$0xff]  ;;  %v10153_v6 = vld [vmem:[%s18845_s16 + $0x370] sm:$0xff] }
0x2707   : > { %v8558_v60 = vmul.f32 %v10214_v35, %v19279_v37  ;;  %v19281_v23 = vld [vmem:[#allocation90_spill] sm:$0xff]  ;;  %v10320_v48 = vld [vmem:[%s18845_s16 + $0x8a8] sm:$0xff]  ;;  %v10077_v27 = vld [vmem:[%s18845_s16 + $0x110] sm:$0xff] }
0x2708   : > { %v17682_v63 = vadd.f32 %v9061_v0, %v9000_v39  ;;  %v9115_v46 = vpop.permute.xlu1 %9114  ;;  %v7434_v15 = vadd.f32 %v7424_v13, %v7353_v14  ;;  %v7928_v39 = vadd.f32 %v7918_v10, %v7857_v61  ;;  %v7423_v58 = vmul.f32 %v10055_v57, %v19281_v23  ;;  %v10310_v17 = vld [vmem:[%s18845_s16 + $0x858] sm:$0xff]  ;;  %v19282_v13 = vld [vmem:[#allocation55_spill] sm:$0xff] }
0x2709   : > { %v7637_v43 = vmul.f32 %v10086_v47, %v19282_v13  ;;  %v19286_v57 = vld [vmem:[#allocation93_spill] sm:$0xff] }
0x270a   : > { %12811 = vset.pattern.permute.xlu1 %v19111_v33  ;;  %v8355_v33 = vadd.f32 %v8345_v54, %v8284_v22  ;;  %v7505_v19 = vadd.f32 %v7495_v40, %v7434_v15  ;;  %v10300_v22 = vld [vmem:[%s18845_s16 + $0x808] sm:$0xff]  ;;  %v7566_v54 = vmul.f32 %v10076_v36, %v19278_v56  ;;  %v7999_v12 = vadd.f32 %v7989_v9, %v7928_v39  ;;  %v10330_v9 = vld [vmem:[%s18845_s16 + $0x8f8] sm:$0xff] }
0x270b   : > { %7489 = vperm.xlu1 %12811, %v16583_v24   ;;  %v9132_v40 = vmul.f32 %v10300_v22, %v9115_v46  ;;  %v19284_v15 = vld [vmem:[#allocation88_spill] sm:$0xff]  ;;  %v10095_v22 = vld [vmem:[%s18845_s16 + $0x1a0] sm:$0xff] }
0x270c   : > { %v8426_v11 = vadd.f32 %v8416_v25, %v8355_v33  ;;  %v19280_v33 = vld [vmem:[#allocation28_spill] sm:$0xff]  ;;  %v7576_v28 = vadd.f32 %v7566_v54, %v7505_v19  ;;  %v19283_v25 = vld [vmem:[#allocation30_spill] sm:$0xff] }
0x270d   : > { %v9186_v30 = vpop.permute.xlu1 %9185  ;;  %v8060_v52 = vmul.f32 %v10143_v51, %v19280_v33  ;;  %v8131_v61 = vmul.f32 %v10153_v6, %v19283_v25  ;;  %v10085_v46 = vld [vmem:[%s18845_s16 + $0x150] sm:$0xff]  ;;  %v7295_v6 = vld [vmem:[%s18845_s16 + $0x28] sm:$0xff]  ;;  %v9142_v56 = vadd.f32 %v9132_v40, %v17682_v63  ;;  %v10058_v63 = vld [vmem:[%s18845_s16 + $0x78] sm:$0xff] }
0x270e   : > { %v8497_v14 = vadd.f32 %v8487_v8, %v8426_v11  ;;  %v7352_v11 = vmul.f32 %v19284_v15, %v7292_v34  ;;  %v7494_v8 = vmul.f32 %v10065_v53, %v19285_v44  ;;  %v7647_v47 = vadd.f32 %v7637_v43, %v7576_v28  ;;  %v19287_v53 = vld [vmem:[#allocation63_spill] sm:$0xff] }
0x270f   : > { %12813 = vset.pattern.permute.xlu1 %v19119_v26  ;;  %v10057_v26 = vld [vmem:[%s18845_s16 + $0x70] sm:$0xff]  ;;  %v8070_v51 = vadd.f32 %v8060_v52, %v7999_v12  ;;  %v10340_v33 = vld [vmem:[%s18845_s16 + $0x948] sm:$0xff] }
0x2710   : > { %7631 = vperm.xlu1 %12813, %v16583_v24   ;;  %v7425_v29 = vmul.f32 %v10057_v26, %v17402_v7  ;;  %v10075_v7 = vld [vmem:[%s18845_s16 + $0x100] sm:$0xff]  ;;  %v9203_v26 = vmul.f32 %v10310_v17, %v9186_v30  ;;  %v17784_v35 = vadd.f32 %v8558_v60, %v8497_v14  ;;  %v7433_v19 = vadd.f32 %v7423_v58, %v7352_v11  ;;  %v10068_v52 = vld [vmem:[%s18845_s16 + $0xc8] sm:$0xff]  ;;  %v19290_v12 = vld [vmem:[#allocation97_spill] sm:$0xff] }
0x2711   : > { %v7565_v39 = vmul.f32 %v10075_v7, %v19286_v57  ;;  %v10163_v30 = vld [vmem:[%s18845_s16 + $0x3c0] sm:$0xff]  ;;  %v8141_v34 = vadd.f32 %v8131_v61, %v8070_v51  ;;  %v7567_v58 = vmul.f32 %v10077_v27, %v17406_v38  ;;  %v10224_v43 = vld [vmem:[%s18845_s16 + $0x5a8] sm:$0xff]  ;;  %v7707_v25 = vmul.f32 %v10095_v22, %v19290_v12  ;;  %v19291_v38 = vld [vmem:[#allocation57_spill] sm:$0xff] }
0x2712   : > { %v9257_v0 = vpop.permute.xlu1 %9256  ;;  %v7504_v37 = vadd.f32 %v7494_v8, %v7433_v19  ;;  %v19288_v60 = vld [vmem:[#allocation95_spill] sm:$0xff]  ;;  %v9213_v17 = vadd.f32 %v9203_v26, %v9142_v56  ;;  %v7355_v61 = vmul.f32 %v17288_v32, %v7295_v6  ;;  %v9541_v8 = vpop.permute.xlu0 %9540  ;;  %v10126_v22 = vld [vmem:[%s18845_s16 + $0x298] sm:$0xff] }
0x2713   : > { %v9274_v54 = vmul.f32 %v10320_v48, %v9257_v0  ;;  %v7636_v14 = vmul.f32 %v10085_v46, %v19288_v60  ;;  %v10105_v0 = vld [vmem:[%s18845_s16 + $0x1f0] sm:$0xff]  ;;  %v19289_v7 = vld [vmem:[#allocation43_spill] sm:$0xff]  ;;  %v19293_v46 = vld [vmem:[#allocation102_spill] sm:$0xff] }
0x2714   : > { %12815 = vset.pattern.permute.xlu1 %v19103_v59  ;;  %v7354_v59 = vmul.f32 %v17398_v3, %v7294_v42  ;;  %v10096_v3 = vld [vmem:[%s18845_s16 + $0x1a8] sm:$0xff]  ;;  %v7496_v42 = vmul.f32 %v10067_v49, %v17256_v31  ;;  %v10106_v31 = vld [vmem:[%s18845_s16 + $0x1f8] sm:$0xff]  ;;  %v7575_v40 = vadd.f32 %v7565_v39, %v7504_v37  ;;  %v10173_v49 = vld [vmem:[%s18845_s16 + $0x410] sm:$0xff] }
0x2715   : > { %7773 = vperm.xlu1 %12815, %v16583_v24   ;;  %v7779_v11 = vmul.f32 %v10106_v31, %v19291_v38  ;;  %v10116_v44 = vld [vmem:[%s18845_s16 + $0x248] sm:$0xff]  ;;  %v9284_v48 = vadd.f32 %v9274_v54, %v9213_v17  ;;  %v10087_v32 = vld [vmem:[%s18845_s16 + $0x160] sm:$0xff] }
0x2716   : > { %v7435_v36 = vadd.f32 %v7425_v29, %v7354_v59  ;;  %v7708_v29 = vmul.f32 %v10096_v3, %v19287_v53  ;;  %v8202_v59 = vmul.f32 %v10163_v30, %v19289_v7  ;;  %v19292_v3 = vmov 8   ;;  %v19294_v51 = vld [vmem:[#allocation99_spill] sm:$0xff]  ;;  %v19295_v39 = vld [vmem:[#allocation132_spill] sm:$0xff]  ;;  %v19296_v30 = vld [vmem:[#allocation21_spill] sm:$0xff] }
0x2717   : > { %v9328_v10 = vpop.permute.xlu1 %9327  ;;  %v7646_v26 = vadd.f32 %v7636_v14, %v7575_v40  ;;  %v7778_v19 = vmul.f32 %v10105_v0, %v19294_v51  ;;  %v10115_v57 = vld [vmem:[%s18845_s16 + $0x240] sm:$0xff]  ;;  %v7497_v27 = vmul.f32 %v10068_v52, %v19295_v39  ;;  %v10360_v60 = vld [vmem:[%s18845_s16 + $0x9e8] sm:$0xff]  ;;  %v10078_v0 = vld [vmem:[%s18845_s16 + $0x118] sm:$0xff] }
0x2718   : > { %v7506_v23 = vadd.f32 %v7496_v42, %v7435_v36  ;;  %v9345_v28 = vmul.f32 %v10330_v9, %v9328_v10  ;;  %v7718_v15 = vadd.f32 %v7708_v29, %v7647_v47  ;;  %v7426_v36 = vmul.f32 %v10058_v63, %v19293_v46  ;;  %v10350_v9 = vld [vmem:[%s18845_s16 + $0x998] sm:$0xff]  ;;  %v19297_v54 = vld [vmem:[#allocation31_spill] sm:$0xff] }
0x2719   : > { %12816 = vset.pattern.permute.xlu1 %v19129_v62  ;;  %v8629_v47 = vmul.f32 %v10224_v43, %v19296_v30  ;;  %v8212_v42 = vadd.f32 %v8202_v59, %v8141_v34  ;;  %v8273_v53 = vmul.f32 %v10173_v49, %v19297_v54  ;;  %v19298_v29 = vld [vmem:[#allocation59_spill] sm:$0xff]  ;;  %v7717_v37 = vadd.f32 %v7707_v25, %v7646_v26  ;;  %v10097_v34 = vld [vmem:[%s18845_s16 + $0x1b0] sm:$0xff]  ;;  %v19299_v52 = vld [vmem:[#allocation126_spill] sm:$0xff]  ;;  %v17876_v49 = vpop.permute.xlu0 %7477 }
0x271a   : > { %7844 = vperm.xlu1 %12816, %v16583_v24   ;;  %v7577_v6 = vadd.f32 %v7567_v58, %v7506_v23  ;;  %v9355_v56 = vadd.f32 %v9345_v28, %v9284_v48  ;;  %v7850_v31 = vmul.f32 %v10116_v44, %v19298_v29  ;;  %v7436_v14 = vadd.f32 %v7426_v36, %v7355_v61  ;;  %v10183_v63 = vld [vmem:[%s18845_s16 + $0x460] sm:$0xff]  ;;  %v19300_v58 = vld [vmem:[#allocation101_spill] sm:$0xff]  ;;  %v19301_v59 = vld [vmem:[#allocation60_spill] sm:$0xff] }
0x271b   : > { %v7638_v23 = vmul.f32 %v10087_v32, %v19299_v52  ;;  %v7849_v17 = vmul.f32 %v10115_v57, %v19300_v58  ;;  %v10234_v43 = vld [vmem:[%s18845_s16 + $0x5f8] sm:$0xff]  ;;  %v7789_v7 = vadd.f32 %v7779_v11, %v7718_v15  ;;  %v7921_v40 = vmul.f32 %v10126_v22, %v19301_v59  ;;  %v10088_v38 = vld [vmem:[%s18845_s16 + $0x168] sm:$0xff]  ;;  %v10125_v36 = vld [vmem:[%s18845_s16 + $0x290] sm:$0xff] }
0x271c   : > { %v9399_v13 = vpop.permute.xlu1 %9398  ;;  %v7788_v12 = vadd.f32 %v7778_v19, %v7717_v37  ;;  %v7507_v25 = vadd.f32 %v7497_v27, %v7436_v14  ;;  %v9558_v61 = vmul.f32 %v10360_v60, %v9541_v8  ;;  %v19302_v48 = vld [vmem:[#allocation157_spill] sm:$0xff]  ;;  %v10244_v51 = vld [vmem:[%s18845_s16 + $0x648] sm:$0xff]  ;;  %v10107_v54 = vld [vmem:[%s18845_s16 + $0x200] sm:$0xff]  ;;  %v8639_v60 = vadd.f32 %v8629_v47, %v17784_v35 }
0x271d   : > { %v9416_v10 = vmul.f32 %v10340_v33, %v9399_v13  ;;  %v7648_v44 = vadd.f32 %v7638_v23, %v7577_v6  ;;  %v19303_v15 = vld [vmem:[#allocation33_spill] sm:$0xff]  ;;  %v7860_v32 = vadd.f32 %v7850_v31, %v7789_v7  ;;  %v19305_v19 = vld [vmem:[#allocation23_spill] sm:$0xff]  ;;  %v8283_v6 = vadd.f32 %v8273_v53, %v8212_v42  ;;  %v19306_v31 = vld [vmem:[#allocation134_spill] sm:$0xff] }
0x271e   : > { %12817 = vset.pattern.permute.xlu1 %v19292_v3  ;;  %v8344_v11 = vmul.f32 %v10183_v63, %v19303_v15  ;;  %v19304_v8 = vld [vmem:[#allocation105_spill] sm:$0xff]  ;;  %v8700_v57 = vmul.f32 %v10234_v43, %v19305_v19  ;;  %v10136_v39 = vld [vmem:[%s18845_s16 + $0x2e8] sm:$0xff]  ;;  %v7859_v27 = vadd.f32 %v7849_v17, %v7788_v12  ;;  %v7639_v37 = vmul.f32 %v10088_v38, %v19306_v31  ;;  %v10059_v17 = vld [vmem:[%s18845_s16 + $0x80] sm:$0xff]  ;;  %v7620_v38 = vpop.permute.xlu0 %7619 }
0x271f   : > { %7915 = vperm.xlu1 %12817, %v16583_v24   ;;  %v9426_v28 = vadd.f32 %v9416_v10, %v9355_v56  ;;  %v7709_v10 = vmul.f32 %v10097_v34, %v19302_v48  ;;  %v7568_v26 = vmul.f32 %v10078_v0, %v19304_v8  ;;  %v10193_v22 = vld [vmem:[%s18845_s16 + $0x4b0] sm:$0xff]  ;;  %v7931_v56 = vadd.f32 %v7921_v40, %v7860_v32  ;;  %v10146_v42 = vld [vmem:[%s18845_s16 + $0x338] sm:$0xff]  ;;  %v10203_v7 = vld [vmem:[%s18845_s16 + $0x500] sm:$0xff] }
0x2720   : > { %v19307_v14 = vld [vmem:[#allocation85_spill] sm:$0xff]  ;;  %v8354_v52 = vadd.f32 %v8344_v11, %v8283_v6  ;;  %v19311_v40 = vld [vmem:[#allocation128_spill] sm:$0xff]  ;;  %v10127_v32 = vld [vmem:[%s18845_s16 + $0x2a0] sm:$0xff] }
0x2721   : > { %v9470_v33 = vpop.permute.xlu1 %9469  ;;  %v7578_v29 = vadd.f32 %v7568_v26, %v7507_v25  ;;  %v7920_v34 = vmul.f32 %v10125_v36, %v19307_v14  ;;  %v7719_v53 = vadd.f32 %v7709_v10, %v7648_v44  ;;  %v19308_v63 = vld [vmem:[#allocation25_spill] sm:$0xff]  ;;  %v7780_v12 = vmul.f32 %v10107_v54, %v19311_v40  ;;  %v19312_v44 = vld [vmem:[#allocation87_spill] sm:$0xff]  ;;  %v19314_v19 = vld [vmem:[#allocation158_spill] sm:$0xff] }
0x2722   : > { %v9487_v13 = vmul.f32 %v10350_v9, %v9470_v33  ;;  %v10135_v33 = vld [vmem:[%s18845_s16 + $0x2e0] sm:$0xff]  ;;  %v8771_v0 = vmul.f32 %v10244_v51, %v19308_v63  ;;  %v19309_v23 = vld [vmem:[#allocation65_spill] sm:$0xff]  ;;  %v10108_v26 = vld [vmem:[%s18845_s16 + $0x208] sm:$0xff] }
0x2723   : > { %12819 = vset.pattern.permute.xlu1 %v19132_v4  ;;  %v7992_v58 = vmul.f32 %v10136_v39, %v19309_v23  ;;  %v10117_v35 = vld [vmem:[%s18845_s16 + $0x250] sm:$0xff]  ;;  %v10098_v59 = vld [vmem:[%s18845_s16 + $0x1b8] sm:$0xff]  ;;  %v7930_v25 = vadd.f32 %v7920_v34, %v7859_v27  ;;  %v7991_v48 = vmul.f32 %v10135_v33, %v19312_v44  ;;  %v7649_v36 = vadd.f32 %v7639_v37, %v7578_v29  ;;  %v10264_v6 = vld [vmem:[%s18845_s16 + $0x6e8] sm:$0xff] }
0x2724   : > { %v9497_v46 = vadd.f32 %v9487_v13, %v9426_v28  ;;  %8057 = vperm.xlu1 %12819, %v16583_v24   ;;  %v7296_v47 = vld [vmem:[%s18845_s16 + $0x30] sm:$0xff]  ;;  %v8710_v28 = vadd.f32 %v8700_v57, %v8639_v60  ;;  %v7790_v51 = vadd.f32 %v7780_v12, %v7719_v53  ;;  %v7851_v57 = vmul.f32 %v10117_v35, %v19314_v19  ;;  %v19315_v54 = vld [vmem:[#allocation34_spill] sm:$0xff]  ;;  %v19316_v31 = vld [vmem:[#allocation107_spill] sm:$0xff] }
0x2725   : > { %v19310_v13 = vld [vmem:[#allocation45_spill] sm:$0xff]  ;;  %v8002_v10 = vadd.f32 %v7992_v58, %v7931_v56  ;;  %v8486_v29 = vmul.f32 %v10203_v7, %v19315_v54  ;;  %v7710_v37 = vmul.f32 %v10098_v59, %v19316_v31  ;;  %v19317_v60 = vld [vmem:[#allocation103_spill] sm:$0xff]  ;;  %v8001_v34 = vadd.f32 %v7991_v48, %v7930_v25 }
0x2726   : > { %v17895_v9 = vadd.f32 %v9558_v61, %v9497_v46  ;;  %v7333_v30 = vpop.permute.xlu1 %7332  ;;  %v8415_v43 = vmul.f32 %v10193_v22, %v19310_v13  ;;  %v10145_v61 = vld [vmem:[%s18845_s16 + $0x330] sm:$0xff]  ;;  %v19313_v46 = vld [vmem:[#allocation62_spill] sm:$0xff]  ;;  %v19318_v53 = vld [vmem:[#allocation159_spill] sm:$0xff]  ;;  %v17970_v58 = vadd.f32 %v8771_v0, %v8710_v28  ;;  %v7762_v28 = vpop.permute.xlu0 %7761  ;;  %v7861_v40 = vadd.f32 %v7851_v57, %v7790_v51 }
0x2727   : > { %v8063_v15 = vmul.f32 %v10146_v42, %v19313_v46  ;;  %v10069_v11 = vld [vmem:[%s18845_s16 + $0xd0] sm:$0xff]  ;;  %v7356_v39 = vmul.f32 %v7333_v30, %v7296_v47  ;;  %v10254_v22 = vld [vmem:[%s18845_s16 + $0x698] sm:$0xff]  ;;  %v8062_v14 = vmul.f32 %v10145_v61, %v19317_v60  ;;  %v10155_v30 = vld [vmem:[%s18845_s16 + $0x380] sm:$0xff]  ;;  %v7922_v63 = vmul.f32 %v10127_v32, %v19318_v53 }
0x2728   : > { %12820 = vset.pattern.permute.xlu1 %v19135_v5  ;;  %v8425_v56 = vadd.f32 %v8415_v43, %v8354_v52  ;;  %v7498_v33 = vmul.f32 %v10069_v11, %v17876_v49  ;;  %v10118_v42 = vld [vmem:[%s18845_s16 + $0x258] sm:$0xff]  ;;  %v10079_v23 = vld [vmem:[%s18845_s16 + $0x120] sm:$0xff]  ;;  %v10156_v35 = vld [vmem:[%s18845_s16 + $0x388] sm:$0xff]  ;;  %v7720_v49 = vadd.f32 %v7710_v37, %v7649_v36 }
0x2729   : > { %8128 = vperm.xlu1 %12820, %v16583_v24   ;;  %v19319_v47 = vld [vmem:[#allocation135_spill] sm:$0xff]  ;;  %v19320_v13 = vld [vmem:[#allocation22_spill] sm:$0xff]  ;;  %v8073_v7 = vadd.f32 %v8063_v15, %v8002_v10  ;;  %v10165_v59 = vld [vmem:[%s18845_s16 + $0x3d0] sm:$0xff]  ;;  %v8072_v57 = vadd.f32 %v8062_v14, %v8001_v34 }
0x272a   : > { %v17977_v43 = vmul.f32 %v10254_v22, %v19320_v13  ;;  %v10089_v0 = vld [vmem:[%s18845_s16 + $0x170] sm:$0xff]  ;;  %v10128_v32 = vld [vmem:[%s18845_s16 + $0x2a8] sm:$0xff]  ;;  %v19325_v22 = vld [vmem:[#allocation106_spill] sm:$0xff] }
0x272b   : > { %v7407_v8 = vpop.permute.xlu1 %7406  ;;  %v19321_v61 = vld [vmem:[#allocation13_spill] sm:$0xff]  ;;  %v19322_v46 = vld [vmem:[#allocation104_spill] sm:$0xff]  ;;  %v19324_v51 = vld [vmem:[#allocation67_spill] sm:$0xff]  ;;  %v7640_v54 = vmul.f32 %v10089_v0, %v7620_v38 }
0x272c   : > { %v7427_v27 = vmul.f32 %v10059_v17, %v7407_v8  ;;  %v7781_v17 = vmul.f32 %v10108_v26, %v19319_v47  ;;  %v17986_v44 = vmul.f32 %v10264_v6, %v19321_v61  ;;  %v10213_v48 = vld [vmem:[%s18845_s16 + $0x550] sm:$0xff]  ;;  %v8133_v15 = vmul.f32 %v10155_v30, %v19322_v46  ;;  %v10138_v37 = vld [vmem:[%s18845_s16 + $0x2f8] sm:$0xff]  ;;  %v10099_v60 = vld [vmem:[%s18845_s16 + $0x1c0] sm:$0xff] }
0x272d   : > { %12822 = vset.pattern.permute.xlu1 %v19140_v20  ;;  %v10137_v10 = vld [vmem:[%s18845_s16 + $0x2f0] sm:$0xff]  ;;  %v8496_v26 = vadd.f32 %v8486_v29, %v8425_v56  ;;  %v8134_v19 = vmul.f32 %v10156_v35, %v19324_v51  ;;  %v8204_v6 = vmul.f32 %v10165_v59, %v19325_v22  ;;  %v10147_v56 = vld [vmem:[%s18845_s16 + $0x340] sm:$0xff]  ;;  %v10166_v38 = vld [vmem:[%s18845_s16 + $0x3d8] sm:$0xff] }
0x272e   : > { %v7437_v52 = vadd.f32 %v7427_v27, %v7356_v39  ;;  %8270 = vperm.xlu1 %12822, %v16583_v24   ;;  %v19323_v11 = vld [vmem:[#allocation137_spill] sm:$0xff]  ;;  %v10175_v39 = vld [vmem:[%s18845_s16 + $0x420] sm:$0xff]  ;;  %v7932_v27 = vadd.f32 %v7922_v63, %v7861_v40  ;;  %v7791_v31 = vadd.f32 %v7781_v17, %v7720_v49  ;;  %v8143_v35 = vadd.f32 %v8133_v15, %v8072_v57  ;;  %v19329_v49 = vld [vmem:[#allocation108_spill] sm:$0xff] }
0x272f   : > { %v7852_v36 = vmul.f32 %v10118_v42, %v19323_v11  ;;  %v19326_v14 = vld [vmem:[#allocation35_spill] sm:$0xff]  ;;  %v8144_v30 = vadd.f32 %v8134_v19, %v8073_v7  ;;  %v10185_v53 = vld [vmem:[%s18845_s16 + $0x470] sm:$0xff]  ;;  %v8275_v47 = vmul.f32 %v10175_v39, %v19329_v49  ;;  %v10158_v57 = vld [vmem:[%s18845_s16 + $0x398] sm:$0xff] }
0x2730   : > { %v7508_v12 = vadd.f32 %v7498_v33, %v7437_v52  ;;  %v7549_v25 = vpop.permute.xlu1 %7548  ;;  %v8557_v34 = vmul.f32 %v10213_v48, %v19326_v14  ;;  %v19327_v33 = vld [vmem:[#allocation130_spill] sm:$0xff]  ;;  %v10109_v63 = vld [vmem:[%s18845_s16 + $0x210] sm:$0xff]  ;;  %v19328_v52 = vld [vmem:[#allocation139_spill] sm:$0xff] }
0x2731   : > { %v7569_v8 = vmul.f32 %v10079_v23, %v7549_v25  ;;  %v7993_v42 = vmul.f32 %v10137_v10, %v19327_v33  ;;  %v7923_v23 = vmul.f32 %v10128_v32, %v19328_v52  ;;  %v7862_v17 = vadd.f32 %v7852_v36, %v7791_v31  ;;  %v10148_v13 = vld [vmem:[%s18845_s16 + $0x348] sm:$0xff]  ;;  %v10157_v7 = vld [vmem:[%s18845_s16 + $0x390] sm:$0xff]  ;;  %v19334_v22 = vld [vmem:[#allocation142_spill] sm:$0xff] }
0x2732   : > { %12823 = vset.pattern.permute.xlu1 %v19143_v18  ;;  %v10176_v40 = vld [vmem:[%s18845_s16 + $0x428] sm:$0xff]  ;;  %v19330_v25 = vld [vmem:[#allocation141_spill] sm:$0xff]  ;;  %v8214_v32 = vadd.f32 %v8204_v6, %v8143_v35  ;;  %v7782_v19 = vmul.f32 %v10109_v63, %v7762_v28  ;;  %v10119_v6 = vld [vmem:[%s18845_s16 + $0x260] sm:$0xff]  ;;  %v8852_v35 = vadd.f32 %v17977_v43, %v17970_v58 }
0x2733   : > { %v7579_v29 = vadd.f32 %v7569_v8, %v7508_v12  ;;  %8341 = vperm.xlu1 %12823, %v16583_v24   ;;  %v7904_v12 = vpop.permute.xlu0 %7903  ;;  %v7994_v61 = vmul.f32 %v10138_v37, %v19330_v25  ;;  %v8003_v48 = vadd.f32 %v7993_v42, %v7932_v27  ;;  %v19331_v10 = vld [vmem:[#allocation160_spill] sm:$0xff]  ;;  %v19332_v11 = vld [vmem:[#allocation69_spill] sm:$0xff]  ;;  %v19333_v8 = vld [vmem:[#allocation110_spill] sm:$0xff]  ;;  %v7933_v39 = vadd.f32 %v7923_v23, %v7862_v17 }
0x2734   : > { %v8064_v46 = vmul.f32 %v10147_v56, %v19331_v10  ;;  %v8205_v36 = vmul.f32 %v10166_v38, %v19332_v11  ;;  %v8346_v51 = vmul.f32 %v10185_v53, %v19333_v8  ;;  %v19335_v31 = vld [vmem:[#allocation161_spill] sm:$0xff]  ;;  %v10223_v28 = vld [vmem:[%s18845_s16 + $0x5a0] sm:$0xff]  ;;  %v8567_v56 = vadd.f32 %v8557_v34, %v8496_v26  ;;  %v10168_v11 = vld [vmem:[%s18845_s16 + $0x3e8] sm:$0xff] }
0x2735   : > { %v7650_v59 = vadd.f32 %v7640_v54, %v7579_v29  ;;  %v7691_v0 = vpop.permute.xlu1 %7690  ;;  %v8065_v54 = vmul.f32 %v10148_v13, %v19334_v22  ;;  %v8135_v27 = vmul.f32 %v10157_v7, %v19335_v31  ;;  %v10186_v38 = vld [vmem:[%s18845_s16 + $0x478] sm:$0xff]  ;;  %v8285_v33 = vadd.f32 %v8275_v47, %v8214_v32  ;;  %v10195_v42 = vld [vmem:[%s18845_s16 + $0x4c0] sm:$0xff]  ;;  %v10129_v53 = vld [vmem:[%s18845_s16 + $0x2b0] sm:$0xff] }
0x2736   : > { %v7711_v15 = vmul.f32 %v10099_v60, %v7691_v0  ;;  %v8215_v29 = vadd.f32 %v8205_v36, %v8144_v30  ;;  %v19336_v60 = vld [vmem:[#allocation64_spill] sm:$0xff]  ;;  %v8004_v63 = vadd.f32 %v7994_v61, %v7933_v39  ;;  %v19337_v52 = vld [vmem:[#allocation143_spill] sm:$0xff]  ;;  %v8074_v26 = vadd.f32 %v8064_v46, %v8003_v48  ;;  %v19341_v46 = vld [vmem:[#allocation89_spill] sm:$0xff] }
0x2737   : > { %12825 = vset.pattern.permute.xlu1 %v19145_v50  ;;  %v8276_v14 = vmul.f32 %v10176_v40, %v19336_v60  ;;  %v8136_v23 = vmul.f32 %v10158_v57, %v19337_v52  ;;  %v10167_v49 = vld [vmem:[%s18845_s16 + $0x3e0] sm:$0xff]  ;;  %v8356_v47 = vadd.f32 %v8346_v51, %v8285_v33  ;;  %v10205_v40 = vld [vmem:[%s18845_s16 + $0x510] sm:$0xff]  ;;  %v7975_v61 = vpop.permute.xlu0 %7974  ;;  %v19340_v48 = vmov 17   ;;  %v10196_v31 = vld [vmem:[%s18845_s16 + $0x4c8] sm:$0xff] }
0x2738   : > { %v7721_v37 = vadd.f32 %v7711_v15, %v7650_v59  ;;  %8483 = vperm.xlu1 %12825, %v16583_v24   ;;  %v19338_v13 = vld [vmem:[#allocation47_spill] sm:$0xff]  ;;  %v19339_v59 = vld [vmem:[#allocation66_spill] sm:$0xff]  ;;  %v8075_v58 = vadd.f32 %v8065_v54, %v8004_v63  ;;  %v8145_v43 = vadd.f32 %v8135_v27, %v8074_v26  ;;  %v8923_v10 = vadd.f32 %v17986_v44, %v8852_v35  ;;  %v10177_v32 = vld [vmem:[%s18845_s16 + $0x430] sm:$0xff] }
0x2739   : > { %v8628_v7 = vmul.f32 %v10223_v28, %v19338_v13  ;;  %v8347_v0 = vmul.f32 %v10186_v38, %v19339_v59  ;;  %v10139_v25 = vld [vmem:[%s18845_s16 + $0x300] sm:$0xff]  ;;  %v8417_v15 = vmul.f32 %v10195_v42, %v19341_v46  ;;  %v7924_v36 = vmul.f32 %v10129_v53, %v7904_v12  ;;  %v10149_v54 = vld [vmem:[%s18845_s16 + $0x350] sm:$0xff]  ;;  %v10274_v38 = vld [vmem:[%s18845_s16 + $0x738] sm:$0xff] }
0x273a   : > { %v7792_v34 = vadd.f32 %v7782_v19, %v7721_v37  ;;  %v7833_v30 = vpop.permute.xlu1 %7832  ;;  %v10233_v19 = vld [vmem:[%s18845_s16 + $0x5f0] sm:$0xff]  ;;  %v8286_v44 = vadd.f32 %v8276_v14, %v8215_v29  ;;  %v19342_v57 = vld [vmem:[#allocation131_spill] sm:$0xff]  ;;  %v8146_v12 = vadd.f32 %v8136_v23, %v8075_v58  ;;  %v7995_v28 = vmul.f32 %v10139_v25, %v7975_v61  ;;  %v19345_v23 = vld [vmem:[#allocation162_spill] sm:$0xff] }
0x273b   : > { %v7853_v17 = vmul.f32 %v10119_v6, %v7833_v30  ;;  %v8638_v51 = vadd.f32 %v8628_v7, %v8567_v56  ;;  %v8206_v39 = vmul.f32 %v10167_v49, %v19342_v57  ;;  %v10215_v22 = vld [vmem:[%s18845_s16 + $0x560] sm:$0xff]  ;;  %v8427_v27 = vadd.f32 %v8417_v15, %v8356_v47  ;;  %v19343_v37 = vld [vmem:[#allocation112_spill] sm:$0xff]  ;;  %v10178_v56 = vld [vmem:[%s18845_s16 + $0x438] sm:$0xff] }
0x273c   : > { %12826 = vset.pattern.permute.xlu1 %v19340_v48  ;;  %v8488_v6 = vmul.f32 %v10205_v40, %v19343_v37  ;;  %v10187_v29 = vld [vmem:[%s18845_s16 + $0x480] sm:$0xff]  ;;  %v8357_v42 = vadd.f32 %v8347_v0, %v8286_v44  ;;  %v19344_v53 = vld [vmem:[#allocation109_spill] sm:$0xff]  ;;  %v8277_v26 = vmul.f32 %v10177_v32, %v19345_v23  ;;  %v19348_v59 = vld [vmem:[#allocation72_spill] sm:$0xff] }
0x273d   : > { %v7863_v8 = vadd.f32 %v7853_v17, %v7792_v34  ;;  %8554 = vperm.xlu1 %12826, %v16583_v24   ;;  %v10243_v33 = vld [vmem:[%s18845_s16 + $0x640] sm:$0xff]  ;;  %v8207_v63 = vmul.f32 %v10168_v11, %v19344_v53  ;;  %v8216_v52 = vadd.f32 %v8206_v39, %v8145_v43  ;;  %v19346_v34 = vld [vmem:[#allocation36_spill] sm:$0xff]  ;;  %v10206_v35 = vld [vmem:[%s18845_s16 + $0x518] sm:$0xff]  ;;  %v8418_v0 = vmul.f32 %v10196_v31, %v19348_v59 }
0x273e   : > { %v8699_v30 = vmul.f32 %v10233_v19, %v19346_v34  ;;  %v19347_v49 = vld [vmem:[#allocation114_spill] sm:$0xff]  ;;  %v10188_v17 = vld [vmem:[%s18845_s16 + $0x488] sm:$0xff]  ;;  %v8498_v19 = vadd.f32 %v8488_v6, %v8427_v27  ;;  %v10225_v44 = vld [vmem:[%s18845_s16 + $0x5b0] sm:$0xff] }
0x273f   : > { %v7934_v60 = vadd.f32 %v7924_v36, %v7863_v8  ;;  %v8046_v14 = vpop.permute.xlu1 %8045  ;;  %v8559_v47 = vmul.f32 %v10215_v22, %v19347_v49  ;;  %v8217_v40 = vadd.f32 %v8207_v63, %v8146_v12  ;;  %v19349_v25 = vld [vmem:[#allocation144_spill] sm:$0xff]  ;;  %v19350_v58 = vld [vmem:[#allocation163_spill] sm:$0xff]  ;;  %v19352_v36 = vld [vmem:[#allocation37_spill] sm:$0xff]  ;;  %v8428_v57 = vadd.f32 %v8418_v0, %v8357_v42 }
0x2740   : > { %v8066_v7 = vmul.f32 %v10149_v54, %v8046_v14  ;;  %v8278_v61 = vmul.f32 %v10178_v56, %v19349_v25  ;;  %v8348_v43 = vmul.f32 %v10187_v29, %v19350_v58  ;;  %v10159_v46 = vld [vmem:[%s18845_s16 + $0x3a0] sm:$0xff]  ;;  %v8770_v32 = vmul.f32 %v10243_v33, %v19352_v36  ;;  %v10216_v8 = vld [vmem:[%s18845_s16 + $0x568] sm:$0xff]  ;;  %v10169_v12 = vld [vmem:[%s18845_s16 + $0x3f0] sm:$0xff]  ;;  %v8188_v54 = vpop.permute.xlu0 %8187 }
0x2741   : > { %v8005_v13 = vadd.f32 %v7995_v28, %v7934_v60  ;;  %12828 = vset.pattern.permute.xlu1 %v19151_v1  ;;  %v19351_v15 = vld [vmem:[#allocation27_spill] sm:$0xff]  ;;  %v19353_v39 = vld [vmem:[#allocation68_spill] sm:$0xff]  ;;  %v19354_v31 = vld [vmem:[#allocation145_spill] sm:$0xff]  ;;  %v8287_v28 = vadd.f32 %v8277_v26, %v8216_v52  ;;  %v8709_v6 = vadd.f32 %v8699_v30, %v8638_v51  ;;  %v8569_v60 = vadd.f32 %v8559_v47, %v8498_v19 }
0x2742   : > { %8696 = vperm.xlu1 %12828, %v16583_v24   ;;  %v8984_v11 = vmul.f32 %v10274_v38, %v19351_v15  ;;  %v8489_v22 = vmul.f32 %v10206_v35, %v19353_v39  ;;  %v8349_v37 = vmul.f32 %v10188_v17, %v19354_v31  ;;  %v10284_v27 = vld [vmem:[%s18845_s16 + $0x788] sm:$0xff]  ;;  %v10197_v29 = vld [vmem:[%s18845_s16 + $0x4d0] sm:$0xff]  ;;  %v19355_v53 = vld [vmem:[#allocation70_spill] sm:$0xff]  ;;  %v8288_v51 = vadd.f32 %v8278_v61, %v8217_v40 }
0x2743   : > { %v8076_v14 = vadd.f32 %v8066_v7, %v8005_v13  ;;  %v10253_v42 = vld [vmem:[%s18845_s16 + $0x690] sm:$0xff]  ;;  %v8560_v63 = vmul.f32 %v10216_v8, %v19355_v53  ;;  %v10235_v52 = vld [vmem:[%s18845_s16 + $0x600] sm:$0xff]  ;;  %v8358_v23 = vadd.f32 %v8348_v43, %v8287_v28  ;;  %v8780_v26 = vadd.f32 %v8770_v32, %v8709_v6  ;;  %v10226_v15 = vld [vmem:[%s18845_s16 + $0x5b8] sm:$0xff] }
0x2744   : > { %v8117_v56 = vpop.permute.xlu1 %8116  ;;  %v18151_v33 = vadd.f32 %v8984_v11, %v8923_v10  ;;  %v19356_v34 = vld [vmem:[#allocation91_spill] sm:$0xff]  ;;  %v10198_v10 = vld [vmem:[%s18845_s16 + $0x4d8] sm:$0xff]  ;;  %v8208_v35 = vmul.f32 %v10169_v12, %v8188_v54  ;;  %v8499_v59 = vadd.f32 %v8489_v22, %v8428_v57  ;;  %v10245_v25 = vld [vmem:[%s18845_s16 + $0x650] sm:$0xff]  ;;  %v8359_v61 = vadd.f32 %v8349_v37, %v8288_v51 }
0x2745   : > { %v8137_v38 = vmul.f32 %v10159_v46, %v8117_v56  ;;  %v8630_v30 = vmul.f32 %v10225_v44, %v19356_v34  ;;  %v10207_v49 = vld [vmem:[%s18845_s16 + $0x520] sm:$0xff]  ;;  %v19358_v0 = vld [vmem:[#allocation133_spill] sm:$0xff]  ;;  %v10208_v8 = vld [vmem:[%s18845_s16 + $0x528] sm:$0xff] }
0x2746   : > { %12829 = vset.pattern.permute.xlu1 %v19154_v16  ;;  %v19357_v17 = vld [vmem:[#allocation11_spill] sm:$0xff]  ;;  %v8419_v40 = vmul.f32 %v10197_v29, %v19358_v0  ;;  %v19359_v43 = vld [vmem:[#allocation50_spill] sm:$0xff]  ;;  %v10217_v19 = vld [vmem:[%s18845_s16 + $0x570] sm:$0xff]  ;;  %v8570_v22 = vadd.f32 %v8560_v63, %v8499_v59 }
0x2747   : > { %v8147_v47 = vadd.f32 %v8137_v38, %v8076_v14  ;;  %8767 = vperm.xlu1 %12829, %v16583_v24   ;;  %v9055_v13 = vmul.f32 %v10284_v27, %v19357_v17  ;;  %v10263_v7 = vld [vmem:[%s18845_s16 + $0x6e0] sm:$0xff]  ;;  %v8841_v46 = vmul.f32 %v10253_v42, %v19359_v43  ;;  %v8640_v11 = vadd.f32 %v8630_v30, %v8569_v60  ;;  %v10273_v39 = vld [vmem:[%s18845_s16 + $0x730] sm:$0xff]  ;;  %v10236_v29 = vld [vmem:[%s18845_s16 + $0x608] sm:$0xff] }
0x2748   : > { %v10179_v58 = vld [vmem:[%s18845_s16 + $0x440] sm:$0xff]  ;;  %v8429_v31 = vadd.f32 %v8419_v40, %v8358_v23  ;;  %v19362_v37 = vld [vmem:[#allocation164_spill] sm:$0xff]  ;;  %v19364_v60 = vld [vmem:[#allocation117_spill] sm:$0xff] }
0x2749   : > { %v19360_v36 = vld [vmem:[#allocation115_spill] sm:$0xff]  ;;  %v8218_v44 = vadd.f32 %v8208_v35, %v8147_v47  ;;  %v8259_v57 = vpop.permute.xlu1 %8258  ;;  %v8490_v28 = vmul.f32 %v10207_v49, %v19362_v37  ;;  %v8851_v56 = vadd.f32 %v8841_v46, %v8780_v26  ;;  %v19363_v27 = vld [vmem:[#allocation38_spill] sm:$0xff]  ;;  %v8772_v14 = vmul.f32 %v10245_v25, %v19364_v60  ;;  %v19367_v26 = vld [vmem:[#allocation165_spill] sm:$0xff]  ;;  %v8401_v25 = vpop.permute.xlu0 %8400 }
0x274a   : > { %v8701_v32 = vmul.f32 %v10235_v52, %v19360_v36  ;;  %v19361_v12 = vld [vmem:[#allocation111_spill] sm:$0xff]  ;;  %v8912_v6 = vmul.f32 %v10263_v7, %v19363_v27  ;;  %v10218_v38 = vld [vmem:[%s18845_s16 + $0x578] sm:$0xff]  ;;  %v8279_v42 = vmul.f32 %v10179_v58, %v8259_v57  ;;  %v8561_v34 = vmul.f32 %v10217_v19, %v19367_v26  ;;  %v10189_v30 = vld [vmem:[%s18845_s16 + $0x490] sm:$0xff] }
0x274b   : > { %v8420_v54 = vmul.f32 %v10198_v10, %v19361_v12  ;;  %12831 = vset.pattern.permute.xlu1 %v19158_v55  ;;  %v19365_v53 = vld [vmem:[#allocation74_spill] sm:$0xff]  ;;  %v19368_v10 = vld [vmem:[#allocation40_spill] sm:$0xff]  ;;  %v19369_v59 = vld [vmem:[#allocation71_spill] sm:$0xff]  ;;  %v8500_v43 = vadd.f32 %v8490_v28, %v8429_v31  ;;  %v9065_v57 = vadd.f32 %v9055_v13, %v18151_v33 }
0x274c   : > { %v8631_v63 = vmul.f32 %v10226_v15, %v19365_v53  ;;  %v19366_v51 = vld [vmem:[#allocation146_spill] sm:$0xff]  ;;  %8909 = vperm.xlu1 %12831, %v16583_v24   ;;  %v8983_v35 = vmul.f32 %v10273_v39, %v19368_v10  ;;  %v8711_v47 = vadd.f32 %v8701_v32, %v8640_v11  ;;  %v8702_v0 = vmul.f32 %v10236_v29, %v19369_v59  ;;  %v10228_v33 = vld [vmem:[%s18845_s16 + $0x5c8] sm:$0xff]  ;;  %v10237_v27 = vld [vmem:[%s18845_s16 + $0x610] sm:$0xff] }
0x274d   : > { %v8430_v52 = vadd.f32 %v8420_v54, %v8359_v61  ;;  %v8491_v23 = vmul.f32 %v10208_v8, %v19366_v51  ;;  %v10246_v49 = vld [vmem:[%s18845_s16 + $0x658] sm:$0xff]  ;;  %v10255_v17 = vld [vmem:[%s18845_s16 + $0x6a0] sm:$0xff]  ;;  %v8922_v11 = vadd.f32 %v8912_v6, %v8851_v56  ;;  %v8289_v8 = vadd.f32 %v8279_v42, %v8218_v44  ;;  %v10265_v54 = vld [vmem:[%s18845_s16 + $0x6f0] sm:$0xff] }
0x274e   : > { %v8641_v7 = vadd.f32 %v8631_v63, %v8570_v22  ;;  %v10199_v40 = vld [vmem:[%s18845_s16 + $0x4e0] sm:$0xff]  ;;  %v8330_v46 = vpop.permute.xlu1 %8329  ;;  %v10294_v15 = vld [vmem:[%s18845_s16 + $0x7d8] sm:$0xff]  ;;  %v8782_v32 = vadd.f32 %v8772_v14, %v8711_v47  ;;  %v8571_v37 = vadd.f32 %v8561_v34, %v8500_v43  ;;  %v10293_v14 = vld [vmem:[%s18845_s16 + $0x7d0] sm:$0xff] }
0x274f   : > { %v19370_v61 = vld [vmem:[#allocation147_spill] sm:$0xff]  ;;  %v8350_v19 = vmul.f32 %v10189_v30, %v8330_v46  ;;  %v19371_v22 = vld [vmem:[#allocation73_spill] sm:$0xff]  ;;  %v8501_v31 = vadd.f32 %v8491_v23, %v8430_v52  ;;  %v8993_v28 = vadd.f32 %v8983_v35, %v8922_v11  ;;  %v19372_v56 = vld [vmem:[#allocation94_spill] sm:$0xff]  ;;  %v8421_v13 = vmul.f32 %v10199_v40, %v8401_v25 }
0x2750   : > { %v8562_v58 = vmul.f32 %v10218_v38, %v19370_v61  ;;  %v10227_v36 = vld [vmem:[%s18845_s16 + $0x5c0] sm:$0xff]  ;;  %v8773_v12 = vmul.f32 %v10246_v49, %v19371_v22  ;;  %12832 = vset.pattern.permute.xlu1 %v19161_v21  ;;  %v8843_v44 = vmul.f32 %v10255_v17, %v19372_v56  ;;  %v8712_v38 = vadd.f32 %v8702_v0, %v8641_v7  ;;  %v19374_v42 = vld [vmem:[#allocation136_spill] sm:$0xff]  ;;  %v10238_v49 = vld [vmem:[%s18845_s16 + $0x618] sm:$0xff] }
0x2751   : > { %v10283_v39 = vld [vmem:[%s18845_s16 + $0x780] sm:$0xff]  ;;  %v8360_v6 = vadd.f32 %v8350_v19, %v8289_v8  ;;  %8980 = vperm.xlu1 %12832, %v16583_v24   ;;  %v8632_v53 = vmul.f32 %v10227_v36, %v19374_v42  ;;  %v10209_v51 = vld [vmem:[%s18845_s16 + $0x530] sm:$0xff]  ;;  %v10256_v34 = vld [vmem:[%s18845_s16 + $0x6a8] sm:$0xff] }
0x2752   : > { %v19373_v29 = vld [vmem:[#allocation14_spill] sm:$0xff]  ;;  %v8572_v52 = vadd.f32 %v8562_v58, %v8501_v31  ;;  %v19375_v23 = vld [vmem:[#allocation52_spill] sm:$0xff]  ;;  %v8853_v30 = vadd.f32 %v8843_v44, %v8782_v32  ;;  %v19376_v10 = vld [vmem:[#allocation119_spill] sm:$0xff]  ;;  %v8783_v59 = vadd.f32 %v8773_v12, %v8712_v38 }
0x2753   : > { %v9126_v60 = vmul.f32 %v10294_v15, %v19373_v29  ;;  %v10275_v63 = vld [vmem:[%s18845_s16 + $0x740] sm:$0xff]  ;;  %v9054_v26 = vmul.f32 %v10283_v39, %v19375_v23  ;;  %v8914_v35 = vmul.f32 %v10265_v54, %v19376_v10  ;;  %v8431_v17 = vadd.f32 %v8421_v13, %v8360_v6  ;;  %v8472_v7 = vpop.permute.xlu1 %8471  ;;  %v19377_v0 = vld [vmem:[#allocation113_spill] sm:$0xff]  ;;  %v10248_v8 = vld [vmem:[%s18845_s16 + $0x668] sm:$0xff] }
0x2754   : > { %v10247_v47 = vld [vmem:[%s18845_s16 + $0x660] sm:$0xff]  ;;  %v8633_v40 = vmul.f32 %v10228_v33, %v19377_v0  ;;  %v8642_v25 = vadd.f32 %v8632_v53, %v8571_v37  ;;  %v19380_v36 = vld [vmem:[#allocation121_spill] sm:$0xff]  ;;  %v8492_v19 = vmul.f32 %v10209_v51, %v8472_v7  ;;  %v19381_v39 = vld [vmem:[#allocation76_spill] sm:$0xff] }
0x2755   : > { %v19378_v61 = vld [vmem:[#allocation166_spill] sm:$0xff]  ;;  %v9064_v43 = vadd.f32 %v9054_v26, %v8993_v28  ;;  %v8985_v32 = vmul.f32 %v10275_v63, %v19380_v36  ;;  %12834 = vset.pattern.permute.xlu1 %v19163_v2  ;;  %v8844_v22 = vmul.f32 %v10256_v34, %v19381_v39  ;;  %v19382_v31 = vld [vmem:[#allocation148_spill] sm:$0xff]  ;;  %v19383_v28 = vld [vmem:[#allocation167_spill] sm:$0xff]  ;;  %v9136_v13 = vadd.f32 %v9126_v60, %v9065_v57  ;;  %v8614_v63 = vpop.permute.xlu0 %8613 }
0x2756   : > { %v8703_v58 = vmul.f32 %v10237_v27, %v19378_v61  ;;  %v19379_v46 = vld [vmem:[#allocation42_spill] sm:$0xff]  ;;  %v8643_v54 = vadd.f32 %v8633_v40, %v8572_v52  ;;  %v8704_v37 = vmul.f32 %v10238_v49, %v19382_v31  ;;  %v8774_v56 = vmul.f32 %v10247_v47, %v19383_v28  ;;  %9122 = vperm.xlu1 %12834, %v16583_v24   ;;  %v10304_v33 = vld [vmem:[%s18845_s16 + $0x828] sm:$0xff]  ;;  %v10229_v53 = vld [vmem:[%s18845_s16 + $0x5d0] sm:$0xff] }
0x2757   : > { %v9125_v15 = vmul.f32 %v10293_v14, %v19379_v46  ;;  %v10303_v11 = vld [vmem:[%s18845_s16 + $0x820] sm:$0xff]  ;;  %v10266_v12 = vld [vmem:[%s18845_s16 + $0x6f8] sm:$0xff]  ;;  %v8924_v27 = vadd.f32 %v8914_v35, %v8853_v30  ;;  %v19384_v6 = vld [vmem:[#allocation44_spill] sm:$0xff]  ;;  %v8854_v38 = vadd.f32 %v8844_v22, %v8783_v59  ;;  %v8502_v10 = vadd.f32 %v8492_v19, %v8431_v17 }
0x2758   : > { %v10219_v44 = vld [vmem:[%s18845_s16 + $0x580] sm:$0xff]  ;;  %v9196_v29 = vmul.f32 %v10303_v11, %v19384_v6  ;;  %v10285_v14 = vld [vmem:[%s18845_s16 + $0x790] sm:$0xff]  ;;  %v10276_v42 = vld [vmem:[%s18845_s16 + $0x748] sm:$0xff]  ;;  %v8713_v57 = vadd.f32 %v8703_v58, %v8642_v25  ;;  %v8543_v60 = vpop.permute.xlu1 %8542  ;;  %v8714_v0 = vadd.f32 %v8704_v37, %v8643_v54  ;;  %v8634_v11 = vmul.f32 %v10229_v53, %v8614_v63 }
0x2759   : > { %v19385_v52 = vld [vmem:[#allocation149_spill] sm:$0xff]  ;;  %v19386_v23 = vld [vmem:[#allocation75_spill] sm:$0xff]  ;;  %v8995_v30 = vadd.f32 %v8985_v32, %v8924_v27  ;;  %v8563_v35 = vmul.f32 %v10219_v44, %v8543_v60  ;;  %v9135_v7 = vadd.f32 %v9125_v15, %v9064_v43  ;;  %v19388_v25 = vld [vmem:[#allocation96_spill] sm:$0xff] }
0x275a   : > { %v8775_v51 = vmul.f32 %v10248_v8, %v19385_v52  ;;  %v8915_v26 = vmul.f32 %v10266_v12, %v19386_v23  ;;  %v10257_v34 = vld [vmem:[%s18845_s16 + $0x6b0] sm:$0xff]  ;;  %v10295_v59 = vld [vmem:[%s18845_s16 + $0x7e0] sm:$0xff]  ;;  %v8784_v40 = vadd.f32 %v8774_v56, %v8713_v57  ;;  %12837 = vset.pattern.permute.xlu1 %v19170_v45  ;;  %v9056_v61 = vmul.f32 %v10285_v14, %v19388_v25  ;;  %v10258_v58 = vld [vmem:[%s18845_s16 + $0x6b8] sm:$0xff] }
0x275b   : > { %v19387_v49 = vld [vmem:[#allocation29_spill] sm:$0xff]  ;;  %v10267_v43 = vld [vmem:[%s18845_s16 + $0x700] sm:$0xff]  ;;  %v8573_v15 = vadd.f32 %v8563_v35, %v8502_v10  ;;  %9335 = vperm.xlu1 %12837, %v16583_v24   ;;  %v9206_v39 = vadd.f32 %v9196_v29, %v9135_v7  ;;  %v10324_v29 = vld [vmem:[%s18845_s16 + $0x8c8] sm:$0xff] }
0x275c   : > { %v9197_v47 = vmul.f32 %v10304_v33, %v19387_v49  ;;  %v19389_v46 = vld [vmem:[#allocation77_spill] sm:$0xff]  ;;  %v10239_v36 = vld [vmem:[%s18845_s16 + $0x620] sm:$0xff]  ;;  %v8785_v31 = vadd.f32 %v8775_v51, %v8714_v0  ;;  %v8925_v37 = vadd.f32 %v8915_v26, %v8854_v38  ;;  %v9066_v28 = vadd.f32 %v9056_v61, %v8995_v30  ;;  %v10268_v33 = vld [vmem:[%s18845_s16 + $0x708] sm:$0xff] }
0x275d   : > { %v8986_v17 = vmul.f32 %v10276_v42, %v19389_v46  ;;  %v10314_v8 = vld [vmem:[%s18845_s16 + $0x878] sm:$0xff]  ;;  %v10313_v19 = vld [vmem:[%s18845_s16 + $0x870] sm:$0xff]  ;;  %v19391_v56 = vld [vmem:[#allocation123_spill] sm:$0xff]  ;;  %v8644_v27 = vadd.f32 %v8634_v11, %v8573_v15  ;;  %v8685_v6 = vpop.permute.xlu1 %8684 }
0x275e   : > { %v9207_v32 = vadd.f32 %v9197_v47, %v9136_v13  ;;  %v19390_v22 = vld [vmem:[#allocation138_spill] sm:$0xff]  ;;  %v10305_v54 = vld [vmem:[%s18845_s16 + $0x830] sm:$0xff]  ;;  %v9127_v44 = vmul.f32 %v10295_v59, %v19391_v56  ;;  %v8705_v51 = vmul.f32 %v10239_v36, %v8685_v6  ;;  %v19397_v47 = vmov 30   ;;  %v10296_v7 = vld [vmem:[%s18845_s16 + $0x7e8] sm:$0xff] }
0x275f   : > { %v8845_v12 = vmul.f32 %v10257_v34, %v19390_v22  ;;  %v10277_v13 = vld [vmem:[%s18845_s16 + $0x750] sm:$0xff]  ;;  %v10286_v14 = vld [vmem:[%s18845_s16 + $0x798] sm:$0xff]  ;;  %v10323_v34 = vld [vmem:[%s18845_s16 + $0x8c0] sm:$0xff]  ;;  %v8996_v30 = vadd.f32 %v8986_v17, %v8925_v37  ;;  %12839 = vset.pattern.permute.xlu1 %v19397_v47  ;;  %v8827_v37 = vpop.permute.xlu0 %8826 }
0x2760   : > { %v19392_v38 = vld [vmem:[#allocation116_spill] sm:$0xff]  ;;  %v19395_v23 = vld [vmem:[#allocation54_spill] sm:$0xff]  ;;  %v19399_v25 = vld [vmem:[#allocation169_spill] sm:$0xff]  ;;  %9477 = vperm.xlu1 %12839, %v16583_v24  }
0x2761   : > { %v8846_v42 = vmul.f32 %v10258_v58, %v19392_v38  ;;  %v8855_v53 = vadd.f32 %v8845_v12, %v8784_v40  ;;  %v19393_v63 = vld [vmem:[#allocation168_spill] sm:$0xff]  ;;  %v9267_v26 = vmul.f32 %v10313_v19, %v19395_v23  ;;  %v10278_v49 = vld [vmem:[%s18845_s16 + $0x758] sm:$0xff]  ;;  %v8987_v61 = vmul.f32 %v10277_v13, %v19399_v25  ;;  %v10315_v24 = vld [vmem:[%s18845_s16 + $0x880] sm:$0xff] }
0x2762   : > { %v8916_v52 = vmul.f32 %v10267_v43, %v19393_v63  ;;  %v19394_v57 = vld [vmem:[#allocation12_spill] sm:$0xff]  ;;  %v19398_v0 = vld [vmem:[#allocation150_spill] sm:$0xff]  ;;  %v8715_v58 = vadd.f32 %v8705_v51, %v8644_v27  ;;  %v19403_v56 = vld [vmem:[#allocation151_spill] sm:$0xff] }
0x2763   : > { %v9268_v60 = vmul.f32 %v10314_v8, %v19394_v57  ;;  %v19396_v10 = vld [vmem:[#allocation124_spill] sm:$0xff]  ;;  %v8856_v59 = vadd.f32 %v8846_v42, %v8785_v31  ;;  %v8917_v40 = vmul.f32 %v10268_v33, %v19398_v0  ;;  %v19401_v43 = vld [vmem:[#allocation78_spill] sm:$0xff]  ;;  %v9137_v8 = vadd.f32 %v9127_v44, %v9066_v28  ;;  %v8756_v28 = vpop.permute.xlu1 %8755  ;;  %v19404_v44 = vld [vmem:[#allocation79_spill] sm:$0xff] }
0x2764   : > { %v9198_v35 = vmul.f32 %v10305_v54, %v19396_v10  ;;  %v10249_v46 = vld [vmem:[%s18845_s16 + $0x670] sm:$0xff]  ;;  %v9057_v15 = vmul.f32 %v10286_v14, %v19401_v43  ;;  %v9277_v19 = vadd.f32 %v9267_v26, %v9206_v39  ;;  %v19402_v22 = vld [vmem:[#allocation46_spill] sm:$0xff]  ;;  %v8988_v33 = vmul.f32 %v10278_v49, %v19403_v56  ;;  %v19409_v49 = vld [vmem:[#allocation19_spill] sm:$0xff] }
0x2765   : > { %v19400_v17 = vld [vmem:[#allocation16_spill] sm:$0xff]  ;;  %v9338_v12 = vmul.f32 %v10323_v34, %v19402_v22  ;;  %v10306_v54 = vld [vmem:[%s18845_s16 + $0x838] sm:$0xff]  ;;  %v10259_v31 = vld [vmem:[%s18845_s16 + $0x6c0] sm:$0xff]  ;;  %v8926_v13 = vadd.f32 %v8916_v52, %v8855_v53  ;;  %v9128_v27 = vmul.f32 %v10296_v7, %v19404_v44  ;;  %v8776_v14 = vmul.f32 %v10249_v46, %v8756_v28 }
0x2766   : > { %v9339_v11 = vmul.f32 %v10324_v29, %v19400_v17  ;;  %v10333_v36 = vld [vmem:[%s18845_s16 + $0x910] sm:$0xff]  ;;  %v9067_v39 = vadd.f32 %v9057_v15, %v8996_v30  ;;  %v10287_v6 = vld [vmem:[%s18845_s16 + $0x7a0] sm:$0xff]  ;;  %v9208_v29 = vadd.f32 %v9198_v35, %v9137_v8  ;;  %v9278_v38 = vadd.f32 %v9268_v60, %v9207_v32  ;;  %v10288_v34 = vld [vmem:[%s18845_s16 + $0x7a8] sm:$0xff] }
0x2767   : > { %v19405_v42 = vld [vmem:[#allocation48_spill] sm:$0xff]  ;;  %v8927_v57 = vadd.f32 %v8917_v40, %v8856_v59  ;;  %v8997_v23 = vadd.f32 %v8987_v61, %v8926_v13  ;;  %v19406_v53 = vmov 1   ;;  %v19407_v52 = vld [vmem:[#allocation98_spill] sm:$0xff]  ;;  %v19408_v30 = vld [vmem:[#allocation81_spill] sm:$0xff]  ;;  %v8847_v35 = vmul.f32 %v10259_v31, %v8827_v37  ;;  %v8898_v22 = vpop.permute.xlu1 %8897 }
0x2768   : > { %v9409_v63 = vmul.f32 %v10333_v36, %v19405_v42  ;;  %v10325_v51 = vld [vmem:[%s18845_s16 + $0x8d0] sm:$0xff]  ;;  %12841 = vset.pattern.permute.xlu1 %v19406_v53  ;;  %v9269_v26 = vmul.f32 %v10315_v24, %v19407_v52  ;;  %v9199_v10 = vmul.f32 %v10306_v54, %v19408_v30  ;;  %v8786_v60 = vadd.f32 %v8776_v14, %v8715_v58  ;;  %v10334_v59 = vld [vmem:[%s18845_s16 + $0x918] sm:$0xff]  ;;  %v10335_v46 = vld [vmem:[%s18845_s16 + $0x920] sm:$0xff] }
0x2769   : > { %v10297_v32 = vld [vmem:[%s18845_s16 + $0x7f0] sm:$0xff]  ;;  %7414 = vperm.xlu1 %12841, %v19409_v49   ;;  %v9349_v0 = vadd.f32 %v9339_v11, %v9278_v38  ;;  %v9348_v40 = vadd.f32 %v9338_v12, %v9277_v19  ;;  %v8998_v17 = vadd.f32 %v8988_v33, %v8927_v57  ;;  %v9138_v58 = vadd.f32 %v9128_v27, %v9067_v39  ;;  %v10298_v8 = vld [vmem:[%s18845_s16 + $0x7f8] sm:$0xff]  ;;  %v10307_v11 = vld [vmem:[%s18845_s16 + $0x840] sm:$0xff] }
0x276a   : > { %v10269_v7 = vld [vmem:[%s18845_s16 + $0x710] sm:$0xff]  ;;  %v9279_v43 = vadd.f32 %v9269_v26, %v9208_v29  ;;  %v8857_v19 = vadd.f32 %v8847_v35, %v8786_v60  ;;  %v10316_v12 = vld [vmem:[%s18845_s16 + $0x888] sm:$0xff]  ;;  %v19412_v24 = vld [vmem:[#allocation118_spill] sm:$0xff]  ;;  %v19416_v42 = vmov 3  }
0x276b   : > { %v19410_v25 = vld [vmem:[#allocation140_spill] sm:$0xff]  ;;  %v19411_v15 = vld [vmem:[#allocation125_spill] sm:$0xff]  ;;  %v9059_v54 = vmul.f32 %v10288_v34, %v19412_v24  ;;  %v19413_v37 = vld [vmem:[#allocation170_spill] sm:$0xff]  ;;  %v8918_v33 = vmul.f32 %v10269_v7, %v8898_v22  ;;  %v9419_v27 = vadd.f32 %v9409_v63, %v9348_v40  ;;  %v9040_v7 = vpop.permute.xlu0 %9039 }
0x276c   : > { %v9058_v61 = vmul.f32 %v10287_v6, %v19410_v25  ;;  %v9340_v36 = vmul.f32 %v10325_v51, %v19411_v15  ;;  %v9129_v56 = vmul.f32 %v10297_v32, %v19413_v37  ;;  %v19414_v13 = vld [vmem:[#allocation32_spill] sm:$0xff]  ;;  %v10343_v44 = vld [vmem:[%s18845_s16 + $0x960] sm:$0xff]  ;;  %v9209_v6 = vadd.f32 %v9199_v10, %v9138_v58  ;;  %v10326_v51 = vld [vmem:[%s18845_s16 + $0x8d8] sm:$0xff] }
0x276d   : > { %v9410_v28 = vmul.f32 %v10334_v59, %v19414_v13  ;;  %v10344_v39 = vld [vmem:[%s18845_s16 + $0x968] sm:$0xff]  ;;  %12843 = vset.pattern.permute.xlu1 %v19416_v42  ;;  %v9069_v57 = vadd.f32 %v9059_v54, %v8998_v17  ;;  %v8928_v34 = vadd.f32 %v8918_v33, %v8857_v19  ;;  %v10279_v63 = vld [vmem:[%s18845_s16 + $0x760] sm:$0xff]  ;;  %v10353_v32 = vld [vmem:[%s18845_s16 + $0x9b0] sm:$0xff] }
0x276e   : > { %v9068_v31 = vadd.f32 %v9058_v61, %v8997_v23  ;;  %v19415_v29 = vld [vmem:[#allocation127_spill] sm:$0xff]  ;;  %v19417_v23 = vld [vmem:[#allocation152_spill] sm:$0xff]  ;;  %7556 = vperm.xlu1 %12843, %v19409_v49   ;;  %v9350_v60 = vadd.f32 %v9340_v36, %v9279_v43  ;;  %v19422_v58 = vld [vmem:[#allocation153_spill] sm:$0xff]  ;;  %v8969_v36 = vpop.permute.xlu1 %8968 }
0x276f   : > { %v9411_v14 = vmul.f32 %v10335_v46, %v19415_v29  ;;  %v10308_v38 = vld [vmem:[%s18845_s16 + $0x848] sm:$0xff]  ;;  %v9130_v53 = vmul.f32 %v10298_v8, %v19417_v23  ;;  %v9420_v30 = vadd.f32 %v9410_v28, %v9349_v0  ;;  %v10345_v46 = vld [vmem:[%s18845_s16 + $0x970] sm:$0xff]  ;;  %v10354_v8 = vld [vmem:[%s18845_s16 + $0x9b8] sm:$0xff]  ;;  %v8989_v54 = vmul.f32 %v10279_v63, %v8969_v36 }
0x2770   : > { %v19418_v52 = vld [vmem:[#allocation171_spill] sm:$0xff]  ;;  %v19419_v10 = vld [vmem:[#allocation80_spill] sm:$0xff]  ;;  %v9201_v15 = vmul.f32 %v10308_v38, %v19422_v58  ;;  %v9139_v43 = vadd.f32 %v9129_v56, %v9068_v31  ;;  %v19423_v19 = vld [vmem:[#allocation82_spill] sm:$0xff] }
0x2771   : > { %v9200_v26 = vmul.f32 %v10307_v11, %v19418_v52  ;;  %v9270_v35 = vmul.f32 %v10316_v12, %v19419_v10  ;;  %v19420_v59 = vld [vmem:[#allocation15_spill] sm:$0xff]  ;;  %v19421_v25 = vld [vmem:[#allocation56_spill] sm:$0xff]  ;;  %v9341_v22 = vmul.f32 %v10326_v51, %v19423_v19  ;;  %v9421_v24 = vadd.f32 %v9411_v14, %v9350_v60  ;;  %v19424_v33 = vld [vmem:[#allocation49_spill] sm:$0xff] }
0x2772   : > { %v9481_v40 = vmul.f32 %v10344_v39, %v19420_v59  ;;  %v9480_v61 = vmul.f32 %v10343_v44, %v19421_v25  ;;  %v10336_v0 = vld [vmem:[%s18845_s16 + $0x928] sm:$0xff]  ;;  %v10289_v17 = vld [vmem:[%s18845_s16 + $0x7b0] sm:$0xff]  ;;  %v9551_v13 = vmul.f32 %v10353_v32, %v19424_v33  ;;  %v10318_v31 = vld [vmem:[%s18845_s16 + $0x898] sm:$0xff]  ;;  %v9140_v56 = vadd.f32 %v9130_v53, %v9069_v57 }
0x2773   : > { %v9280_v11 = vadd.f32 %v9270_v35, %v9209_v6  ;;  %v10317_v12 = vld [vmem:[%s18845_s16 + $0x890] sm:$0xff]  ;;  %v9210_v28 = vadd.f32 %v9200_v26, %v9139_v43  ;;  %v19425_v39 = vmov 5   ;;  %v10355_v14 = vld [vmem:[%s18845_s16 + $0x9c0] sm:$0xff]  ;;  %v9060_v42 = vmul.f32 %v10289_v17, %v9040_v7  ;;  %v9253_v7 = vpop.permute.xlu0 %9252 }
0x2774   : > { %v9490_v37 = vadd.f32 %v9480_v61, %v9419_v27  ;;  %12845 = vset.pattern.permute.xlu1 %v19425_v39  ;;  %v19426_v44 = vld [vmem:[#allocation100_spill] sm:$0xff]  ;;  %v10327_v27 = vld [vmem:[%s18845_s16 + $0x8e0] sm:$0xff]  ;;  %v8999_v51 = vadd.f32 %v8989_v54, %v8928_v34  ;;  %v9211_v63 = vadd.f32 %v9201_v15, %v9140_v56  ;;  %v9111_v61 = vpop.permute.xlu1 %9110 }
0x2775   : > { %v9482_v6 = vmul.f32 %v10345_v46, %v19426_v44  ;;  %v19427_v29 = vld [vmem:[#allocation84_spill] sm:$0xff]  ;;  %7698 = vperm.xlu1 %12845, %v19409_v49   ;;  %v10299_v57 = vld [vmem:[%s18845_s16 + $0x800] sm:$0xff]  ;;  %v9351_v32 = vadd.f32 %v9341_v22, %v9280_v11  ;;  %v10346_v46 = vld [vmem:[%s18845_s16 + $0x978] sm:$0xff] }
0x2776   : > { %v9412_v38 = vmul.f32 %v10336_v0, %v19427_v29  ;;  %v19428_v23 = vld [vmem:[#allocation18_spill] sm:$0xff]  ;;  %v19429_v52 = vld [vmem:[#allocation175_spill] sm:$0xff]  ;;  %v19430_v10 = vld [vmem:[#allocation120_spill] sm:$0xff]  ;;  %v9070_v25 = vadd.f32 %v9060_v42, %v8999_v51  ;;  %v9131_v36 = vmul.f32 %v10299_v57, %v9111_v61  ;;  %v9561_v11 = vadd.f32 %v9551_v13, %v9490_v37 }
0x2777   : > { %v9552_v53 = vmul.f32 %v10354_v8, %v19428_v23  ;;  %v9271_v26 = vmul.f32 %v10317_v12, %v19429_v52  ;;  %v9272_v35 = vmul.f32 %v10318_v31, %v19430_v10  ;;  %v9492_v60 = vadd.f32 %v9482_v6, %v9421_v24  ;;  %v10328_v34 = vld [vmem:[%s18845_s16 + $0x8e8] sm:$0xff]  ;;  %v10337_v59 = vld [vmem:[%s18845_s16 + $0x930] sm:$0xff]  ;;  %v10347_v22 = vld [vmem:[%s18845_s16 + $0x980] sm:$0xff]  ;;  %v9395_v23 = vpop.permute.xlu0 %9394 }
0x2778   : > { %v19431_v0 = vld [vmem:[#allocation129_spill] sm:$0xff]  ;;  %v19432_v15 = vld [vmem:[#allocation172_spill] sm:$0xff]  ;;  %v9491_v8 = vadd.f32 %v9481_v40, %v9420_v30  ;;  %v9422_v19 = vadd.f32 %v9412_v38, %v9351_v32  ;;  %v19433_v54 = vld [vmem:[#allocation154_spill] sm:$0xff] }
0x2779   : > { %v9553_v17 = vmul.f32 %v10355_v14, %v19431_v0  ;;  %v9281_v58 = vadd.f32 %v9271_v26, %v9210_v28  ;;  %v9342_v43 = vmul.f32 %v10327_v27, %v19432_v15  ;;  %12847 = vset.pattern.permute.xlu1 %v19129_v62  ;;  %v10356_v12 = vld [vmem:[%s18845_s16 + $0x9c8] sm:$0xff]  ;;  %v9282_v24 = vadd.f32 %v9272_v35, %v9211_v63  ;;  %v19434_v31 = vld [vmem:[#allocation173_spill] sm:$0xff]  ;;  %v10319_v44 = vld [vmem:[%s18845_s16 + $0x8a0] sm:$0xff]  ;;  %v9182_v14 = vpop.permute.xlu1 %9181 }
0x277a   : > { %v9343_v33 = vmul.f32 %v10328_v34, %v19433_v54  ;;  %v9413_v56 = vmul.f32 %v10337_v59, %v19434_v31  ;;  %v9141_v28 = vadd.f32 %v9131_v36, %v9070_v25  ;;  %7840 = vperm.xlu1 %12847, %v19409_v49   ;;  %v10309_v30 = vld [vmem:[%s18845_s16 + $0x850] sm:$0xff]  ;;  %v19435_v40 = vld [vmem:[#allocation83_spill] sm:$0xff]  ;;  %v9562_v13 = vadd.f32 %v9552_v53, %v9491_v8  ;;  %v19436_v29 = vld [vmem:[#allocation174_spill] sm:$0xff] }
0x277b   : > { %v9483_v37 = vmul.f32 %v10346_v46, %v19435_v40  ;;  %v10357_v62 = vld [vmem:[%s18845_s16 + $0x9d0] sm:$0xff]  ;;  %v9563_v39 = vadd.f32 %v9553_v17, %v9492_v60  ;;  %v9352_v6 = vadd.f32 %v9342_v43, %v9281_v58  ;;  %v9484_v38 = vmul.f32 %v10347_v22, %v19436_v29  ;;  %v10338_v42 = vld [vmem:[%s18845_s16 + $0x938] sm:$0xff]  ;;  %v10348_v60 = vld [vmem:[%s18845_s16 + $0x988] sm:$0xff] }
0x277c   : > { %v19437_v51 = vld [vmem:[#allocation86_spill] sm:$0xff]  ;;  %v9202_v52 = vmul.f32 %v10309_v30, %v9182_v14  ;;  %v9571_v26 = vadd.f32 %v9562_v13, %v9561_v11  ;;  %v9353_v53 = vadd.f32 %v9343_v33, %v9282_v24  ;;  %v19438_v10 = vld [vmem:[#allocation176_spill] sm:$0xff]  ;;  %v9273_v32 = vmul.f32 %v10319_v44, %v9253_v7  ;;  %v19440_v36 = vld [vmem:[#allocation155_spill] sm:$0xff] }
0x277d   : > { %v9493_v27 = vadd.f32 %v9483_v37, %v9422_v19  ;;  %v9554_v57 = vmul.f32 %v10356_v12, %v19437_v51  ;;  %v9423_v63 = vadd.f32 %v9413_v56, %v9352_v6  ;;  %v9555_v35 = vmul.f32 %v10357_v62, %v19438_v10  ;;  %v10329_v59 = vld [vmem:[%s18845_s16 + $0x8f0] sm:$0xff]  ;;  %v19439_v25 = vld [vmem:[#allocation122_spill] sm:$0xff]  ;;  %v9324_v15 = vpop.permute.xlu1 %9323  ;;  %v9466_v12 = vpop.permute.xlu0 %9465  ;;  %v7299_v14 = vld [vmem:[%s18845_s16 + $0x48] sm:$0x3f] }
0x277e   : > { %12848 = vset.pattern.permute.xlu1 %v19292_v3  ;;  %v9212_v34 = vadd.f32 %v9202_v52, %v9141_v28  ;;  %v9414_v61 = vmul.f32 %v10338_v42, %v19439_v25  ;;  %v9572_v46 = vadd.f32 %v9571_v26, %v9563_v39  ;;  %v10339_v3 = vld [vmem:[%s18845_s16 + $0x940] sm:$0xff]  ;;  %v10358_v7 = vld [vmem:[%s18845_s16 + $0x9d8] sm:$0xff]  ;;  %v9485_v8 = vmul.f32 %v10348_v60, %v19440_v36  ;;  %v10349_v22 = vld [vmem:[%s18845_s16 + $0x990] sm:$0xff] }
0x277f   : > { %7911 = vperm.xlu1 %12848, %v19409_v49   ;;  %v9494_v0 = vadd.f32 %v9484_v38, %v9423_v63  ;;  %v9564_v17 = vadd.f32 %v9554_v57, %v9493_v27  ;;  %v9344_v19 = vmul.f32 %v10329_v59, %v9324_v15  ;;  %v9415_v24 = vmul.f32 %v10339_v3, %v9395_v23  ;;  %v19441_v54 = vld [vmem:[#allocation156_spill] sm:$0xff]  ;;  %v10359_v28 = vld [vmem:[%s18845_s16 + $0x9e0] sm:$0xff]  ;;  %v10062_v27 = vld [vmem:[%s18845_s16 + $0x98] sm:$0x3f] }
0x2780   : > { %v9283_v58 = vadd.f32 %v9273_v32, %v9212_v34  ;;  %v9424_v43 = vadd.f32 %v9414_v61, %v9353_v53  ;;  %v9556_v33 = vmul.f32 %v10358_v7, %v19441_v54  ;;  %v9486_v30 = vmul.f32 %v10349_v22, %v9466_v12  ;;  %v10082_v53 = vld [vmem:[%s18845_s16 + $0x138] sm:$0x3f] }
0x2781   : > { %v9565_v11 = vadd.f32 %v9555_v35, %v9494_v0  ;;  %v9573_v31 = vadd.f32 %v9572_v46, %v9564_v17  ;;  %v9537_v13 = vpop.permute.xlu1 %9536  ;;  %v10102_v60 = vld [vmem:[%s18845_s16 + $0x1d8] sm:$0x3f]  ;;  %v10112_v0 = vld [vmem:[%s18845_s16 + $0x228] sm:$0x3f] }
0x2782   : > { %v9354_v56 = vadd.f32 %v9344_v19, %v9283_v58  ;;  %v9495_v40 = vadd.f32 %v9485_v8, %v9424_v43  ;;  %v9557_v39 = vmul.f32 %v10359_v28, %v9537_v13  ;;  %v10132_v8 = vld [vmem:[%s18845_s16 + $0x2c8] sm:$0x3f] }
0x2783   : > { %12850 = vset.pattern.permute.xlu1 %v19132_v4  ;;  %v9574_v37 = vadd.f32 %v9573_v31, %v9565_v11  ;;  %v7419_v4 = vpop.permute.xlu0 %7418  ;;  %v10172_v28 = vld [vmem:[%s18845_s16 + $0x408] sm:$0x3f] }
0x2784   : > { %8053 = vperm.xlu1 %12850, %v19409_v49   ;;  %v9425_v62 = vadd.f32 %v9415_v24, %v9354_v56  ;;  %v9566_v44 = vadd.f32 %v9556_v33, %v9495_v40  ;;  %v7430_v52 = vmul.f32 %v10062_v27, %v7419_v4  ;;  %v19442_v27 = vmov 27  }
0x2785   : > { %v7348_v42 = vpop.permute.xlu1 %7347 }
0x2786   : > { %v9496_v6 = vadd.f32 %v9486_v30, %v9425_v62  ;;  %v9575_v29 = vadd.f32 %v9574_v37, %v9566_v44  ;;  %v7359_v57 = vmul.f32 %v7348_v42, %v7299_v14 }
0x2787   : > { %v7561_v26 = vpop.permute.xlu0 %7560 }
0x2788   : > { %12851 = vset.pattern.permute.xlu1 %v19135_v5  ;;  %v9567_v38 = vadd.f32 %v9557_v39, %v9496_v6  ;;  %v10072_v5 = vld [vmem:[%s18845_s16 + $0xe8] sm:$0x3f]  ;;  %v7440_v10 = vadd.f32 %v7430_v52, %v7359_v57 }
0x2789   : > { %8124 = vperm.xlu1 %12851, %v19409_v49  }
0x278a   : > { %v9576_v51 = vadd.f32 %v9575_v29, %v9567_v38  ;;  %v7490_v63 = vpop.permute.xlu1 %7489  ;;  %v10202_v29 = vld [vmem:[%s18845_s16 + $0x4f8] sm:$0x3f] }
0x278b   : > { %v7501_v35 = vmul.f32 %v10072_v5, %v7490_v63  ;;  %v7703_v34 = vpop.permute.xlu0 %7702 }
0x278c   : > { %v18565_v23 = vadd.f32 %v9576_v51, %v17895_v9  ;;  %v10092_v9 = vld [vmem:[%s18845_s16 + $0x188] sm:$0x3f]  ;;  %v7714_v46 = vmul.f32 %v10102_v60, %v7703_v34 }
0x278d   : > { %12853 = vset.pattern.permute.xlu1 %v19140_v20  ;;  %v7572_v20 = vmul.f32 %v10082_v53, %v7561_v26  ;;  %v7511_v32 = vadd.f32 %v7501_v35, %v7440_v10  ;;  %v10222_v10 = vld [vmem:[%s18845_s16 + $0x598] sm:$0x3f]  ;;  %v10232_v35 = vld [vmem:[%s18845_s16 + $0x5e8] sm:$0x3f] }
0x278e   : > { %8266 = vperm.xlu1 %12853, %v19409_v49  }
0x278f   : > { %v7582_v59 = vadd.f32 %v7572_v20, %v7511_v32  ;;  %v7632_v25 = vpop.permute.xlu1 %7631  ;;  %v7987_v11 = vpop.permute.xlu0 %7986 }
0x2790   : > { %v7643_v61 = vmul.f32 %v10092_v9, %v7632_v25 }
0x2792   : > { %12854 = vset.pattern.permute.xlu1 %v19143_v18  ;;  %v7653_v18 = vadd.f32 %v7643_v61, %v7582_v59 }
0x2793   : > { %8337 = vperm.xlu1 %12854, %v19409_v49   ;;  %v8200_v30 = vpop.permute.xlu0 %8199 }
0x2794   : > { %v7724_v17 = vadd.f32 %v7714_v46, %v7653_v18  ;;  %v7774_v3 = vpop.permute.xlu1 %7773  ;;  %v8211_v62 = vmul.f32 %v10172_v28, %v8200_v30 }
0x2795   : > { %v7785_v7 = vmul.f32 %v10112_v0, %v7774_v3  ;;  %v10262_v0 = vld [vmem:[%s18845_s16 + $0x6d8] sm:$0x3f] }
0x2797   : > { %12856 = vset.pattern.permute.xlu1 %v19145_v50  ;;  %v7795_v58 = vadd.f32 %v7785_v7, %v7724_v17  ;;  %v10122_v50 = vld [vmem:[%s18845_s16 + $0x278] sm:$0x3f]  ;;  %v8413_v38 = vpop.permute.xlu0 %8412 }
0x2798   : > { %8479 = vperm.xlu1 %12856, %v19409_v49   ;;  %v8424_v51 = vmul.f32 %v10202_v29, %v8413_v38 }
0x2799   : > { %v7845_v15 = vpop.permute.xlu1 %7844 }
0x279a   : > { %v7856_v43 = vmul.f32 %v10122_v50, %v7845_v15 }
0x279b   : > { %v8626_v53 = vpop.permute.xlu0 %8625 }
0x279c   : > { %12857 = vset.pattern.permute.xlu1 %v19340_v48  ;;  %v7866_v36 = vadd.f32 %v7856_v43, %v7795_v58  ;;  %v10142_v48 = vld [vmem:[%s18845_s16 + $0x318] sm:$0x3f]  ;;  %v8637_v9 = vmul.f32 %v10232_v35, %v8626_v53 }
0x279d   : > { %8550 = vperm.xlu1 %12857, %v19409_v49   ;;  %v7998_v12 = vmul.f32 %v10142_v48, %v7987_v11  ;;  %v10292_v48 = vld [vmem:[%s18845_s16 + $0x7c8] sm:$0x3f] }
0x279e   : > { %v7916_v19 = vpop.permute.xlu1 %7915 }
0x279f   : > { %v7927_v22 = vmul.f32 %v10132_v8, %v7916_v19  ;;  %v8839_v60 = vpop.permute.xlu0 %8838  ;;  %v10282_v8 = vld [vmem:[%s18845_s16 + $0x778] sm:$0x3f] }
0x27a0   : > { %v8850_v7 = vmul.f32 %v10262_v0, %v8839_v60  ;;  %v10111_v0 = vld [vmem:[%s18845_s16 + $0x220] sm:$0xff] }
0x27a1   : > { %12859 = vset.pattern.permute.xlu1 %v19151_v1  ;;  %v7937_v24 = vadd.f32 %v7927_v22, %v7866_v36  ;;  %v10152_v1 = vld [vmem:[%s18845_s16 + $0x368] sm:$0x3f] }
0x27a2   : > { %8692 = vperm.xlu1 %12859, %v19409_v49  }
0x27a3   : > { %v8008_v54 = vadd.f32 %v7998_v12, %v7937_v24  ;;  %v8058_v33 = vpop.permute.xlu1 %8057  ;;  %v9052_v18 = vpop.permute.xlu0 %9051 }
0x27a4   : > { %v8069_v31 = vmul.f32 %v10152_v1, %v8058_v33  ;;  %v9063_v12 = vmul.f32 %v10292_v48, %v9052_v18  ;;  %v10302_v1 = vld [vmem:[%s18845_s16 + $0x818] sm:$0x3f]  ;;  %v10141_v48 = vld [vmem:[%s18845_s16 + $0x310] sm:$0xff] }
0x27a6   : > { %12860 = vset.pattern.permute.xlu1 %v19154_v16  ;;  %v8079_v56 = vadd.f32 %v8069_v31, %v8008_v54  ;;  %v10162_v16 = vld [vmem:[%s18845_s16 + $0x3b8] sm:$0x3f]  ;;  %v10312_v54 = vld [vmem:[%s18845_s16 + $0x868] sm:$0x3f] }
0x27a7   : > { %8763 = vperm.xlu1 %12860, %v19409_v49   ;;  %v9194_v50 = vpop.permute.xlu0 %9193 }
0x27a8   : > { %v8129_v40 = vpop.permute.xlu1 %8128  ;;  %v9205_v30 = vmul.f32 %v10312_v54, %v9194_v50 }
0x27a9   : > { %v8140_v37 = vmul.f32 %v10162_v16, %v8129_v40  ;;  %v10322_v16 = vld [vmem:[%s18845_s16 + $0x8b8] sm:$0x3f] }
0x27ab   : > { %12862 = vset.pattern.permute.xlu1 %v19158_v55  ;;  %v8150_v13 = vadd.f32 %v8140_v37, %v8079_v56  ;;  %v10182_v55 = vld [vmem:[%s18845_s16 + $0x458] sm:$0x3f]  ;;  %v9265_v19 = vpop.permute.xlu0 %9264  ;;  %v10332_v37 = vld [vmem:[%s18845_s16 + $0x908] sm:$0x3f] }
0x27ac   : > { %8905 = vperm.xlu1 %12862, %v19409_v49  }
0x27ad   : > { %v8221_v39 = vadd.f32 %v8211_v62, %v8150_v13  ;;  %v8271_v44 = vpop.permute.xlu1 %8270  ;;  %v9276_v62 = vmul.f32 %v10322_v16, %v9265_v19 }
0x27ae   : > { %v8282_v6 = vmul.f32 %v10182_v55, %v8271_v44 }
0x27af   : > { %v9407_v28 = vpop.permute.xlu0 %9406 }
0x27b0   : > { %12863 = vset.pattern.permute.xlu1 %v19161_v21  ;;  %v8292_v4 = vadd.f32 %v8282_v6, %v8221_v39  ;;  %v10192_v21 = vld [vmem:[%s18845_s16 + $0x4a8] sm:$0x3f]  ;;  %v10342_v39 = vld [vmem:[%s18845_s16 + $0x958] sm:$0x3f] }
0x27b1   : > { %8976 = vperm.xlu1 %12863, %v19409_v49   ;;  %v9418_v29 = vmul.f32 %v10342_v39, %v9407_v28  ;;  %v10171_v28 = vld [vmem:[%s18845_s16 + $0x400] sm:$0xff] }
0x27b2   : > { %v8342_v14 = vpop.permute.xlu1 %8341 }
0x27b3   : > { %v8353_v42 = vmul.f32 %v10192_v21, %v8342_v14  ;;  %v10352_v21 = vld [vmem:[%s18845_s16 + $0x9a8] sm:$0x3f] }
0x27b5   : > { %12865 = vset.pattern.permute.xlu1 %v19163_v2  ;;  %v8363_v57 = vadd.f32 %v8353_v42, %v8292_v4  ;;  %v10212_v2 = vld [vmem:[%s18845_s16 + $0x548] sm:$0x3f]  ;;  %v7343_v4 = vpop.permute.xlu0 %7342 }
0x27b6   : > { %9118 = vperm.xlu1 %12865, %v19409_v49  }
0x27b7   : > { %v8434_v5 = vadd.f32 %v8424_v51, %v8363_v57  ;;  %v8484_v52 = vpop.permute.xlu1 %8483  ;;  %v7298_v51 = vld [vmem:[%s18845_s16 + $0x40] sm:$0xff] }
0x27b8   : > { %v8495_v26 = vmul.f32 %v10212_v2, %v8484_v52  ;;  %v10061_v2 = vld [vmem:[%s18845_s16 + $0x90] sm:$0xff]  ;;  %v10071_v52 = vld [vmem:[%s18845_s16 + $0xe0] sm:$0xff]  ;;  %v7358_v53 = vmul.f32 %v7343_v4, %v7298_v51 }
0x27ba   : > { %12867 = vset.pattern.permute.xlu1 %v19442_v27  ;;  %v8505_v63 = vadd.f32 %v8495_v26, %v8434_v5  ;;  %v7486_v5 = vpop.permute.xlu0 %7485 }
0x27bb   : > { %9260 = vperm.xlu1 %12867, %v19409_v49  }
0x27bc   : > { %v8555_v20 = vpop.permute.xlu1 %8554 }
0x27bd   : > { %v8566_v32 = vmul.f32 %v10222_v10, %v8555_v20  ;;  %v7500_v10 = vmul.f32 %v10071_v52, %v7486_v5  ;;  %v10081_v20 = vld [vmem:[%s18845_s16 + $0x130] sm:$0xff] }
0x27be   : > { %v10221_v52 = vld [vmem:[%s18845_s16 + $0x590] sm:$0xff] }
0x27bf   : > { %12868 = vset.pattern.permute.xlu1 %v19170_v45  ;;  %v8576_v34 = vadd.f32 %v8566_v32, %v8505_v63  ;;  %v10242_v45 = vld [vmem:[%s18845_s16 + $0x638] sm:$0x3f]  ;;  %v10091_v32 = vld [vmem:[%s18845_s16 + $0x180] sm:$0xff] }
0x27c0   : > { %9331 = vperm.xlu1 %12868, %v19409_v49  }
0x27c1   : > { %v8647_v59 = vadd.f32 %v8637_v9, %v8576_v34  ;;  %v8697_v25 = vpop.permute.xlu1 %8696  ;;  %v7628_v9 = vpop.permute.xlu0 %7627 }
0x27c2   : > { %v8708_v61 = vmul.f32 %v10242_v45, %v8697_v25 }
0x27c4   : > { %12870 = vset.pattern.permute.xlu1 %v19397_v47  ;;  %v8718_v46 = vadd.f32 %v8708_v61, %v8647_v59  ;;  %v10252_v47 = vld [vmem:[%s18845_s16 + $0x688] sm:$0x3f]  ;;  %v7642_v59 = vmul.f32 %v10091_v32, %v7628_v9  ;;  %v10101_v61 = vld [vmem:[%s18845_s16 + $0x1d0] sm:$0xff] }
0x27c5   : > { %9473 = vperm.xlu1 %12870, %v19409_v49   ;;  %v10241_v32 = vld [vmem:[%s18845_s16 + $0x630] sm:$0xff] }
0x27c6   : > { %v8768_v17 = vpop.permute.xlu1 %8767 }
0x27c7   : > { %v8779_v3 = vmul.f32 %v10252_v47, %v8768_v17  ;;  %v7770_v17 = vpop.permute.xlu0 %7769 }
0x27c9   : > { %12871 = vset.pattern.permute.xlu1 %v19157_v41  ;;  %v8789_v58 = vadd.f32 %v8779_v3, %v8718_v46  ;;  %v10272_v41 = vld [vmem:[%s18845_s16 + $0x728] sm:$0x3f] }
0x27ca   : > { %9544 = vperm.xlu1 %12871, %v19409_v49  }
0x27cb   : > { %v8860_v15 = vadd.f32 %v8850_v7, %v8789_v58  ;;  %v8910_v49 = vpop.permute.xlu1 %8909  ;;  %v10121_v7 = vld [vmem:[%s18845_s16 + $0x270] sm:$0xff]  ;;  %v7784_v58 = vmul.f32 %v10111_v0, %v7770_v17  ;;  %v10271_v17 = vld [vmem:[%s18845_s16 + $0x720] sm:$0xff] }
0x27cc   : > { %v8921_v43 = vmul.f32 %v10272_v41, %v8910_v49  ;;  %v10131_v49 = vld [vmem:[%s18845_s16 + $0x2c0] sm:$0xff] }
0x27ce   : > { %v8931_v36 = vadd.f32 %v8921_v43, %v8860_v15 }
0x27d0   : > { %v8981_v11 = vpop.permute.xlu1 %8980 }
0x27d1   : > { %v8992_v22 = vmul.f32 %v10282_v8, %v8981_v11  ;;  %v7983_v11 = vpop.permute.xlu0 %7982 }
0x27d3   : > { %v9002_v24 = vadd.f32 %v8992_v22, %v8931_v36  ;;  %v10151_v22 = vld [vmem:[%s18845_s16 + $0x360] sm:$0xff] }
0x27d5   : > { %v9073_v33 = vadd.f32 %v9063_v12, %v9002_v24  ;;  %v9123_v31 = vpop.permute.xlu1 %9122  ;;  %v7997_v12 = vmul.f32 %v10141_v48, %v7983_v11 }
0x27d6   : > { %v9134_v56 = vmul.f32 %v10302_v1, %v9123_v31 }
0x27d8   : > { %v9144_v40 = vadd.f32 %v9134_v56, %v9073_v33  ;;  %v10161_v33 = vld [vmem:[%s18845_s16 + $0x3b0] sm:$0xff] }
0x27da   : > { %v9215_v13 = vadd.f32 %v9205_v30, %v9144_v40  ;;  %v9336_v55 = vpop.permute.xlu1 %9335  ;;  %v8196_v30 = vpop.permute.xlu0 %8195 }
0x27db   : > { %v9347_v44 = vmul.f32 %v10332_v37, %v9336_v55  ;;  %v10181_v37 = vld [vmem:[%s18845_s16 + $0x450] sm:$0xff] }
0x27dc   : > { %v9286_v6 = vadd.f32 %v9276_v62, %v9215_v13  ;;  %v8210_v62 = vmul.f32 %v10171_v28, %v8196_v30 }
0x27de   : > { %v9357_v38 = vadd.f32 %v9347_v44, %v9286_v6  ;;  %v10191_v44 = vld [vmem:[%s18845_s16 + $0x4a0] sm:$0xff] }
0x27df   : > { %v9478_v14 = vpop.permute.xlu1 %9477 }
0x27e0   : > { %v9428_v42 = vadd.f32 %v9418_v29, %v9357_v38  ;;  %v9489_v27 = vmul.f32 %v10352_v21, %v9478_v14  ;;  %v10201_v29 = vld [vmem:[%s18845_s16 + $0x4f0] sm:$0xff]  ;;  %v8409_v38 = vpop.permute.xlu0 %8408 }
0x27e2   : > { %v18678_v57 = vadd.f32 %v9489_v27, %v9428_v42  ;;  %v10211_v42 = vld [vmem:[%s18845_s16 + $0x540] sm:$0xff]  ;;  %v8423_v27 = vmul.f32 %v10201_v29, %v8409_v38  ;;  %v10362_v29 = vld [vmem:[%s18845_s16 + $0x9f8] sm:$0x3f] }
0x27e8   : > { %v7415_v26 = vpop.permute.xlu1 %7414 }
0x27e9   : > { %v7429_v63 = vmul.f32 %v10061_v2, %v7415_v26 }
0x27eb   : > { %v7439_v35 = vadd.f32 %v7429_v63, %v7358_v53 }
0x27ed   : > { %v7510_v60 = vadd.f32 %v7500_v10, %v7439_v35  ;;  %v7557_v34 = vpop.permute.xlu1 %7556  ;;  %v10231_v10 = vld [vmem:[%s18845_s16 + $0x5e0] sm:$0xff]  ;;  %v8622_v35 = vpop.permute.xlu0 %8621 }
0x27ee   : > { %v7571_v45 = vmul.f32 %v10081_v20, %v7557_v34  ;;  %v8636_v9 = vmul.f32 %v10231_v10, %v8622_v35 }
0x27f0   : > { %v7581_v25 = vadd.f32 %v7571_v45, %v7510_v60 }
0x27f2   : > { %v7652_v46 = vadd.f32 %v7642_v59, %v7581_v25  ;;  %v10251_v59 = vld [vmem:[%s18845_s16 + $0x680] sm:$0xff] }
0x27f4   : > { %v7699_v47 = vpop.permute.xlu1 %7698 }
0x27f5   : > { %v7713_v18 = vmul.f32 %v10101_v61, %v7699_v47  ;;  %v10261_v47 = vld [vmem:[%s18845_s16 + $0x6d0] sm:$0xff] }
0x27f7   : > { %v7723_v3 = vadd.f32 %v7713_v18, %v7652_v46  ;;  %v8835_v18 = vpop.permute.xlu0 %8834 }
0x27f9   : > { %v7841_v41 = vpop.permute.xlu1 %7840  ;;  %v7794_v50 = vadd.f32 %v7784_v58, %v7723_v3  ;;  %v8849_v3 = vmul.f32 %v10261_v47, %v8835_v18 }
0x27fa   : > { %v7855_v15 = vmul.f32 %v10121_v7, %v7841_v41 }
0x27fc   : > { %v7865_v36 = vadd.f32 %v7855_v15, %v7794_v50  ;;  %v10281_v50 = vld [vmem:[%s18845_s16 + $0x770] sm:$0xff]  ;;  %v10291_v15 = vld [vmem:[%s18845_s16 + $0x7c0] sm:$0xff] }
0x27fe   : > { %v7912_v43 = vpop.permute.xlu1 %7911 }
0x27ff   : > { %v7926_v8 = vmul.f32 %v10131_v49, %v7912_v43  ;;  %v9048_v49 = vpop.permute.xlu0 %9047 }
0x2800   : > { %v9062_v48 = vmul.f32 %v10291_v15, %v9048_v49 }
0x2801   : > { %v7936_v19 = vadd.f32 %v7926_v8, %v7865_v36 }
0x2803   : > { %v8054_v24 = vpop.permute.xlu1 %8053  ;;  %v8007_v1 = vadd.f32 %v7997_v12, %v7936_v19  ;;  %v10301_v19 = vld [vmem:[%s18845_s16 + $0x810] sm:$0xff] }
0x2804   : > { %v8068_v54 = vmul.f32 %v10151_v22, %v8054_v24 }
0x2806   : > { %v8078_v56 = vadd.f32 %v8068_v54, %v8007_v1  ;;  %v10311_v1 = vld [vmem:[%s18845_s16 + $0x860] sm:$0xff]  ;;  %v9190_v54 = vpop.permute.xlu0 %9189 }
0x2808   : > { %v8125_v31 = vpop.permute.xlu1 %8124 }
0x2809   : > { %v8139_v16 = vmul.f32 %v10161_v33, %v8125_v31  ;;  %v10321_v31 = vld [vmem:[%s18845_s16 + $0x8b0] sm:$0xff] }
0x280b   : > { %v8149_v40 = vadd.f32 %v8139_v16, %v8078_v56  ;;  %v9204_v56 = vmul.f32 %v10311_v1, %v9190_v54 }
0x280d   : > { %v8267_v13 = vpop.permute.xlu1 %8266  ;;  %v8220_v55 = vadd.f32 %v8210_v62, %v8149_v40  ;;  %v10331_v40 = vld [vmem:[%s18845_s16 + $0x900] sm:$0xff]  ;;  %v9403_v62 = vpop.permute.xlu0 %9402 }
0x280e   : > { %v8281_v39 = vmul.f32 %v10181_v37, %v8267_v13 }
0x2810   : > { %v8291_v4 = vadd.f32 %v8281_v39, %v8220_v55  ;;  %v10341_v39 = vld [vmem:[%s18845_s16 + $0x950] sm:$0xff] }
0x2811   : > { %v9549_v38 = vpop.permute.xlu0 %9548 }
0x2812   : > { %v8338_v6 = vpop.permute.xlu1 %8337 }
0x2813   : > { %v8352_v21 = vmul.f32 %v10191_v44, %v8338_v6  ;;  %v10351_v6 = vld [vmem:[%s18845_s16 + $0x9a0] sm:$0xff] }
0x2815   : > { %v8362_v14 = vadd.f32 %v8352_v21, %v8291_v4  ;;  %v9417_v4 = vmul.f32 %v10341_v39, %v9403_v62 }
0x2817   : > { %v8480_v51 = vpop.permute.xlu1 %8479  ;;  %v8433_v2 = vadd.f32 %v8423_v27, %v8362_v14  ;;  %v10361_v27 = vld [vmem:[%s18845_s16 + $0x9f0] sm:$0xff] }
0x2818   : > { %v8494_v5 = vmul.f32 %v10211_v42, %v8480_v51  ;;  %v9560_v51 = vmul.f32 %v10362_v29, %v9549_v38 }
0x281a   : > { %v8504_v53 = vadd.f32 %v8494_v5, %v8433_v2 }
0x281c   : > { %v8551_v26 = vpop.permute.xlu1 %8550 }
0x281d   : > { %v8565_v63 = vmul.f32 %v10221_v52, %v8551_v26  ;;  %v9570_v26 = vadd.f32 %v9560_v51, %v18678_v57 }
0x281f   : > { %v8575_v20 = vadd.f32 %v8565_v63, %v8504_v53  ;;  %v9579_v10 = vsel %vm19443_vm14, %v9570_v26, 0.0 }
0x2821   : > { %v8693_v60 = vpop.permute.xlu1 %8692  ;;  %v8646_v34 = vadd.f32 %v8636_v9, %v8575_v20  ;;  %v9589_v9 = vlaneseq }
0x2822   : > { %v8707_v45 = vmul.f32 %v10241_v32, %v8693_v60 }
0x2824   : > { %v8717_v61 = vadd.f32 %v8707_v45, %v8646_v34  ;;  %v9590_v45 = vand.u32 127, %v9589_v9 }
0x2826   : > { %v8764_v25 = vpop.permute.xlu1 %8763  ;;  %vm9591_vm15 = vcmp.lt.s32.totalorder %v9590_v45, 5 }
0x2827   : > { %v8778_v46 = vmul.f32 %v10251_v59, %v8764_v25  ;;  %v9587_v25 = vld [vmem:[%s18846_s17] sm:$0x1] }
0x2829   : > { %v8788_v0 = vadd.f32 %v8778_v46, %v8717_v61 }
0x282b   : > { %v8906_v7 = vpop.permute.xlu1 %8905  ;;  %v8859_v58 = vadd.f32 %v8849_v3, %v8788_v0 }
0x282c   : > { %v8920_v41 = vmul.f32 %v10271_v17, %v8906_v7 }
0x282e   : > { %v8930_v36 = vadd.f32 %v8920_v41, %v8859_v58 }
0x2830   : > { %v8977_v43 = vpop.permute.xlu1 %8976 }
0x2831   : > { %v8991_v8 = vmul.f32 %v10281_v50, %v8977_v43 }
0x2833   : > { %v9001_v11 = vadd.f32 %v8991_v8, %v8930_v36 }
0x2835   : > { %v9072_v22 = vadd.f32 %v9062_v48, %v9001_v11  ;;  %v9119_v12 = vpop.permute.xlu1 %9118 }
0x2836   : > { %v9133_v24 = vmul.f32 %v10301_v19, %v9119_v12 }
0x2838   : > { %v9143_v33 = vadd.f32 %v9133_v24, %v9072_v22 }
0x283a   : > { %v9261_v16 = vpop.permute.xlu1 %9260  ;;  %v9214_v28 = vadd.f32 %v9204_v56, %v9143_v33 }
0x283b   : > { %v9275_v30 = vmul.f32 %v10321_v31, %v9261_v16 }
0x283d   : > { %v9285_v13 = vadd.f32 %v9275_v30, %v9214_v28 }
0x283f   : > { %v9332_v37 = vpop.permute.xlu1 %9331 }
0x2840   : > { %v9346_v55 = vmul.f32 %v10331_v40, %v9332_v37 }
0x2842   : > { %v9356_v44 = vadd.f32 %v9346_v55, %v9285_v13 }
0x2844   : > { %v9474_v21 = vpop.permute.xlu1 %9473  ;;  %v9427_v14 = vadd.f32 %v9417_v4, %v9356_v44 }
0x2845   : > { %v9488_v42 = vmul.f32 %v10351_v6, %v9474_v21 }
0x2847   : > { %v9498_v5 = vadd.f32 %v9488_v42, %v9427_v14 }
0x2849   : > { %v9545_v2 = vpop.permute.xlu1 %9544 }
0x284a   : > { %v9559_v52 = vmul.f32 %v10361_v27, %v9545_v2 }
0x284c   : > { %v9569_v53 = vadd.f32 %v9559_v52, %v9498_v5 }
0x284e   : > { %v9578_v63 = vadd.f32 %v18565_v23, %v9569_v53 }
0x2850   : > { %v9580_v35 = vadd.f32 %v9579_v10, %v9578_v63 }
0x2852   : > { %v9581_v20 = vrot.slane %v9580_v35, 4 }
0x2854   : > { %v9582_v32 = vadd.f32 %v9581_v20, %v9580_v35 }
0x2856   : > { %v9583_v60 = vrot.slane %v9582_v32, 2 }
0x2858   : > { %v9584_v34 = vadd.f32 %v9583_v60, %v9582_v32 }
0x285a   : > { %v9585_v59 = vrot.slane %v9584_v34, 1 }
0x285c   : > { %v9586_v61 = vadd.f32 %v9585_v59, %v9584_v34 }
0x285e   : > { %v9588_v57 = vadd.f32 %v9587_v25, %v9586_v61 }
0x2860   : > { %v9592_v23 = vsel %vm9591_vm15, %v9588_v57, -inf }
0x2861   : > { %v9594_v46 = vsel %vm9593_vm2, %v9592_v23, -inf }
0x2862   : > { %9595 = vmax.xlane.f32.xlu1 %v9594_v46 }
0x28ef   : > { %v9596_v47 = vpop.xlane.xlu1 %9595 }
0x28f0   : > { %v9597_v18 = vsub.f32 %v9592_v23, %v9596_v47 }
0x28f2   : > { %v9598_v0 = vmul.f32 1.442695, %v9597_v18 }
0x28f4   : > { %13393 = vpow2.f32 %v9598_v0 }
0x28fe   : > { %v13394_v17 = vpop.eup %13393 }
0x28ff   : > { %v9600_v3 = vsel %vm9593_vm2, %v13394_v17, 0.0 }
0x2900   : > { %9601 = vadd.xlane.f32.xlu0 %v9600_v3 }
0x298d   : > { %v9602_v7 = vpop.xlane.xlu0 %9601 }
0x298e   : > { %13395 = vrcp.f32 %v9602_v7 }
0x2998   : > { %v13396_v58 = vpop.eup %13395 }
0x2999   : > { %v9604_v41 = vmul.f32 %v13396_v58, %v13394_v17 }
0x299b   : > { %9605 = vst [vmem:[%s567_s26] sm:$0x1] %v9604_v41 }
0x299c   : > { %13410 = shalt.err (!%p13407_p3)
}
0x299d   : > { %s13411_s27 = scalar_lea.hbm %s18787_s30, 16  ;;  %s13415_s22 = scalar_lea.hbm %s18847_s18, 32 }
0x299e   : > { %p13412_p4 = scmp.ne.s32.totalorder %s18787_s30, %s13411_s27  ;;  %p13416_p9 = scmp.lt.u32.totalorder %s18787_s30, %s18847_s18 }
0x299f   : > { %p13417_p10 = scmp.lt.u32.totalorder %s13415_s22, %s13411_s27  ;;  %p13419_p12 = scmp.lt.u32.totalorder %s13411_s27, %s18787_s30 }
0x29a0   : > { %p13413_p7 = pnand %p13412_p4, %p13642_p5 }
0x29a1   : > { %p13418_p11 = por %p13417_p10, %p13416_p9 }
0x29a2   : > { %p13414_p8 = pneg %p13413_p7 }
0x29a3   : > { %p13420_p13 = por %p13419_p12, %p13418_p11 }
0x29a5   : > { %p13421_p0 = pnand %p13420_p13, %p13414_p8 }
0x29a7   : > { %13424 = shalt.err (!%p13421_p0)
}
0x29a8   : > { %12067 = dma.vmem_to_hbm [thread:$0]  (%p13642_p5), %s18789_s19, 16, %s18787_s30, %s9607_s23  }
0x29a9 PF: > { %s19444_s1 = sld [smem:[#allocation7_spill]]  ;;  %s19445_s20 = sld [smem:[#allocation5_spill]] }
0x29af   : > { %p12073_p1 = scmp.ge.s32.totalorder %s19444_s1, 2  ;;  %s9631_s29 = sand.u32 1, %s19445_s20  }
0x29b0   : > { %s9632_s26 = scalar_lea.sflag [#allocation3], %s9631_s29 }
0x29b1   : > { %p12070_p2 = pnand %p12073_p1, %p13646_p6 }
0x29b3   : > { %13442 = dma.done.wait (!%p12070_p2), %s9632_s26, 16  }
0x29b4   : > { %13444 = vsyncadd (!%p12070_p2), %s9632_s26, 4294967280  ;;  %s19447_s30 = sld [smem:[#allocation8_spill]]  ;;  %s19448_s22 = sld [smem:[#allocation6_spill]] }
0x29b5   : > { %s19449_s29 = sld [smem:[#allocation9_spill]]  ;;  %s19450_s27 = smov %s13451_s28 }
0x29ba   : > { %p28_p3 = scmp.ge.s32.totalorder %s19447_s30, 4   ;;  %s19451_s28 = smov %s19448_s22 }
0x29bc   :  { %30 = sbr.rel (!%p28_p3) target bundleno = 7 (0x7), region = 170 }
0x29c3   :  { %9636 = vsyncpa [#allocation3], 1 }
0x29c4   :  { %9638 = vsyncpa [#allocation3 + $0x1], 1 }

</bundles_post_ra>
